<compile_context>
chip_gen: v6e
topology: v6e:2x2x1
jax: 0.10.0
libtpu: 0.0.40
codegen_flags: <defaults>
</compile_context>

<pallas_src>
import itertools

import jax
import jax.numpy as jnp
from jax import lax
from jax.experimental import pallas as pl
from jax.experimental.pallas import tpu as pltpu

# ----------------------------- configuration --------------------------------
DIM = 64                 # embedding dim
H, W = 8, 8              # input_resolution
DEPTH = 2                # number of TinyViT blocks in the BasicLayer
NUM_HEADS = 2
WINDOW = 4               # attention window size (H % WINDOW == 0, W % WINDOW == 0)
MLP_RATIO = 4.0
BATCH = 2
LN_EPS = 1e-5
BN_EPS = 1e-5

HEAD_DIM = DIM // NUM_HEADS          # key_dim (attn_ratio = 1 in TinyViTBlock)
ATTN_D = HEAD_DIM                    # value dim per head
QKV_PER_HEAD = 2 * HEAD_DIM + ATTN_D # q | k | v columns per head in the fused QKV weight
HIDDEN = int(DIM * MLP_RATIO)
N_WIN = WINDOW * WINDOW              # tokens per attention window
ROWS = BATCH * H * W                 # total token rows processed by the fused kernel
NEG_INF = -1e9                       # finite off-window mask value (avoids inf-inf NaNs)


# ----------------------------- fused Pallas kernel ---------------------------
def _layer_kernel(x_ref, mask_ref,
                  ab_ref, ln1g_ref, ln1b_ref, wqkv_ref, bqkv_ref, wp_ref, bp_ref,
                  cw_ref, cb_ref, ln2g_ref, ln2b_ref, w1_ref, b1_ref, w2_ref, b2_ref,
                  out_ref):
    """Whole BasicLayer (DEPTH TinyViT blocks) on all ROWS token rows in one grid step.

    Per block: LN -> fused QKV -> block-diag masked attention -> proj -> +residual
               -> depthwise 3x3 conv (+folded BN) -> LN -> fc1 -> GELU -> fc2 -> +residual
    """
    masks = mask_ref[...]                     # (9, ROWS, 1) conv border-validity masks
    y = x_ref[...]                            # (ROWS, DIM) f32 activations

    for blk in range(DEPTH):                  # fully unrolled (DEPTH = 2)
        # ---------------- attention: LayerNorm -> fused QKV ----------------
        mu = jnp.mean(y, axis=-1, keepdims=True)
        var = jnp.mean((y - mu) ** 2, axis=-1, keepdims=True)
        xn = (y - mu) * lax.rsqrt(var + LN_EPS) * ln1g_ref[blk] + ln1b_ref[blk]
        # One (ROWS,DIM)@(DIM,192) MXU push; softmax scale already folded into Wq/bq.
        qkv = jnp.dot(xn, wqkv_ref[blk], preferred_element_type=jnp.float32) + bqkv_ref[blk]

        # residual + proj bias accumulated once; per-head projections added on top.
        yb = y + bp_ref[blk]
        for h in range(NUM_HEADS):            # unrolled (2 heads)
            base = h * QKV_PER_HEAD
            q = qkv[:, base:base + HEAD_DIM]
            k = qkv[:, base + HEAD_DIM:base + 2 * HEAD_DIM]
            v = qkv[:, base + 2 * HEAD_DIM:base + QKV_PER_HEAD]

            # Block-diagonal attention over all ROWS tokens: the precomputed bias holds
            # the trained spatial bias inside each window and NEG_INF across windows /
            # across batch images, so this is exactly per-window attention.
            s = lax.dot_general(q, k, (((1,), (1,)), ((), ())),
                                preferred_element_type=jnp.float32) + ab_ref[blk, h]
            s = s - jnp.max(s, axis=-1, keepdims=True)
            e = jnp.exp(s)
            p_attn = e * pl.reciprocal(jnp.sum(e, axis=-1, keepdims=True), approx=True)
            ctx = jnp.dot(p_attn, v, preferred_element_type=jnp.float32)
            # proj(concat_h ctx_h) == sum_h ctx_h @ Wproj_h  (Wproj pre-split per head)
            yb = yb + jnp.dot(ctx, wp_ref[blk, h], preferred_element_type=jnp.float32)
        y = yb                                # (ROWS, DIM): attention output + residual

        # ------- depthwise 3x3 conv + folded BatchNorm (no residual here) -------
        # Rows are (b, y, x) row-major, so the (dy, dx) tap is a row shift by dy*W + dx;
        # wrapped / cross-image / cross-row-boundary contributions are zeroed by masks.
        cw = cw_ref[blk]                      # (9, 1, DIM) BN-folded taps
        acc = jnp.zeros((ROWS, DIM), jnp.float32)
        kidx = 0
        for dy in (-1, 0, 1):
            for dx in (-1, 0, 1):
                off = dy * W + dx
                if off == 0:
                    shifted = y
                else:
                    shifted = jnp.concatenate([y[off:], y[:off]], axis=0)
                acc = acc + shifted * (masks[kidx] * cw[kidx])
                kidx += 1
        conv = acc + cb_ref[blk]              # (ROWS, DIM)

        # ---------------- MLP: LN -> fc1 -> exact GELU -> fc2 ----------------
        mu2 = jnp.mean(conv, axis=-1, keepdims=True)
        var2 = jnp.mean((conv - mu2) ** 2, axis=-1, keepdims=True)
        xn2 = (conv - mu2) * lax.rsqrt(var2 + LN_EPS) * ln2g_ref[blk] + ln2b_ref[blk]
        h1 = jnp.dot(xn2, w1_ref[blk], preferred_element_type=jnp.float32) + b1_ref[blk]
        h1 = 0.5 * h1 * (1.0 + lax.erf(h1 * 0.7071067811865476))   # exact nn.GELU
        y = conv + jnp.dot(h1, w2_ref[blk], preferred_element_type=jnp.float32) + b2_ref[blk]

    out_ref[...] = y.astype(out_ref.dtype)


# ----------------------------- pallas_call wrapper ---------------------------
def _full_spec(shape):
    """Whole-array block for a grid=(1,) call."""
    nd = len(shape)
    return pl.BlockSpec(tuple(shape), lambda i, _n=nd: (0,) * _n)


_PARAM_ORDER = ("ab", "ln1_g", "ln1_b", "wqkv", "bqkv", "wproj", "bproj",
                "conv_w", "conv_b", "ln2_g", "ln2_b", "w1", "b1", "w2", "b2")


def basic_layer_forward(x, params):
    """BasicLayer forward: (B, H*W, C) -> (B, H*W, C). downsample=None."""
    b, hw, c = x.shape
    xf = x.reshape(b * hw, c)                 # row-major (batch, y, x) token rows
    args = (xf, params["conv_mask"]) + tuple(params[k] for k in _PARAM_ORDER)
    out = pl.pallas_call(
        _layer_kernel,
        out_shape=jax.ShapeDtypeStruct((b * hw, c), x.dtype),
        grid=(1,),
        in_specs=[_full_spec(a.shape) for a in args],
        out_specs=_full_spec((b * hw, c)),
        compiler_params=pltpu.CompilerParams(dimension_semantics=("arbitrary",)),
    )(*args)
    return out.reshape(b, hw, c)


# ----------------------------- host-side precomputation ----------------------
def _attention_bias_index(ws):
    points = list(itertools.product(range(ws), range(ws)))
    n = len(points)
    offsets = {}
    idxs = []
    for p1 in points:
        for p2 in points:
            off = (abs(p1[0] - p2[0]), abs(p1[1] - p2[1]))
            if off not in offsets:
                offsets[off] = len(offsets)
            idxs.append(offsets[off])
    return jnp.asarray(idxs, dtype=jnp.int32).reshape(n, n), len(offsets)


def _expand_attention_bias(ab_win):
    """(NUM_HEADS, N_WIN, N_WIN) window bias -> (NUM_HEADS, ROWS, ROWS) block-diag bias.

    Rows are raw row-major tokens (b, y, x).  Same-window pairs get the trained bias at
    their within-window positions; everything else (other windows / other batch image)
    gets NEG_INF so softmax weights vanish -> exactly per-window attention.
    """
    t = jnp.arange(ROWS)
    b = t // (H * W)
    s = t % (H * W)
    yy = s // W
    xx = s % W
    win = b * ((H // WINDOW) * (W // WINDOW)) + (yy // WINDOW) * (W // WINDOW) + (xx // WINDOW)
    pos = (yy % WINDOW) * WINDOW + (xx % WINDOW)
    same = win[:, None] == win[None, :]
    bias_pairs = ab_win[:, pos[:, None], pos[None, :]]       # (NUM_HEADS, ROWS, ROWS)
    return jnp.where(same[None], bias_pairs, jnp.float32(NEG_INF))


def _build_conv_masks():
    """(9, ROWS, 1) validity masks for the 3x3 depthwise-conv row shifts (zero padding)."""
    t = jnp.arange(ROWS)
    yy = (t % (H * W)) // W
    xx = t % W
    masks = []
    for dy in (-1, 0, 1):
        for dx in (-1, 0, 1):
            valid = (yy + dy >= 0) & (yy + dy < H) & (xx + dx >= 0) & (xx + dx < W)
            masks.append(valid.astype(jnp.float32))
    return jnp.stack(masks).reshape(9, ROWS, 1)


def init_params(key):
    """Deterministic synthetic parameters, pre-packed/stacked for the fused kernel."""
    idx, n_off = _attention_bias_index(WINDOW)
    f32 = jnp.float32
    qscale = HEAD_DIM ** -0.5
    per = {k: [] for k in _PARAM_ORDER}

    for i in range(DEPTH):
        ks = jax.random.split(jax.random.fold_in(key, i), 14)

        biases = jax.random.normal(ks[0], (NUM_HEADS, n_off), f32) * 0.02
        per["ab"].append(_expand_attention_bias(biases[:, idx]))
        per["ln1_g"].append(jnp.ones((1, DIM), f32))
        per["ln1_b"].append(jnp.zeros((1, DIM), f32))

        # per-head q/k/v weights, pre-transposed to (in, out); fused into one (DIM, 192)
        # weight with the softmax scale folded into the q columns / bias.
        wq = jax.random.normal(ks[1], (NUM_HEADS, DIM, HEAD_DIM), f32) * 0.05
        wk = jax.random.normal(ks[2], (NUM_HEADS, DIM, HEAD_DIM), f32) * 0.05
        wv = jax.random.normal(ks[3], (NUM_HEADS, DIM, ATTN_D), f32) * 0.05
        bq = jax.random.normal(ks[4], (NUM_HEADS, HEAD_DIM), f32) * 0.02
        bk = jax.random.normal(ks[5], (NUM_HEADS, HEAD_DIM), f32) * 0.02
        bv = jax.random.normal(ks[6], (NUM_HEADS, ATTN_D), f32) * 0.02
        per["wqkv"].append(jnp.concatenate(
            [jnp.concatenate([wq[h] * qscale, wk[h], wv[h]], axis=1) for h in range(NUM_HEADS)],
            axis=1))
        per["bqkv"].append(jnp.concatenate(
            [jnp.concatenate([bq[h] * qscale, bk[h], bv[h]], axis=0) for h in range(NUM_HEADS)],
            axis=0)[None, :])
        per["wproj"].append(jax.random.normal(ks[7], (NUM_HEADS, ATTN_D, DIM), f32) * 0.05)
        per["bproj"].append(jax.random.normal(ks[8], (1, DIM), f32) * 0.02)

        # depthwise conv (DIM,1,3,3) with eval-mode BatchNorm folded -> (9, 1, DIM) taps
        conv_w = jax.random.normal(ks[13], (DIM, 1, 3, 3), f32) * 0.1
        bn_gamma = jnp.ones((DIM,), f32)
        bn_beta = jnp.zeros((DIM,), f32)
        bn_mean = jnp.zeros((DIM,), f32)
        bn_var = jnp.ones((DIM,), f32)
        bscale = bn_gamma * lax.rsqrt(bn_var + BN_EPS)
        w_eff = jnp.transpose(conv_w[:, 0] * bscale[:, None, None], (1, 2, 0))  # (3,3,DIM)
        per["conv_w"].append(w_eff.reshape(9, 1, DIM))
        per["conv_b"].append((bn_beta - bn_mean * bscale).reshape(1, DIM))

        per["ln2_g"].append(jnp.ones((1, DIM), f32))
        per["ln2_b"].append(jnp.zeros((1, DIM), f32))
        per["w1"].append(jax.random.normal(ks[9], (DIM, HIDDEN), f32) * 0.05)   # pre-transposed
        per["b1"].append(jax.random.normal(ks[10], (1, HIDDEN), f32) * 0.02)
        per["w2"].append(jax.random.normal(ks[11], (HIDDEN, DIM), f32) * 0.05)  # pre-transposed
        per["b2"].append(jax.random.normal(ks[12], (1, DIM), f32) * 0.02)

    params = {k: jnp.stack(v) for k, v in per.items()}   # leading DEPTH axis
    params["conv_mask"] = _build_conv_masks()
    return params


# ----------------------------- main -------------------------------------------
if __name__ == "__main__":
    assert H % WINDOW == 0 and W % WINDOW == 0   # reference's pad-to-window branch is a no-op
    key = jax.random.PRNGKey(0)
    x = jax.random.normal(jax.random.fold_in(key, 123), (BATCH, H * W, DIM), jnp.float32)
    params = init_params(key)

    out = jax.jit(basic_layer_forward)(x, params)
    out = jax.block_until_ready(out)

    assert out.shape == (BATCH, H * W, DIM), out.shape
    assert bool(jnp.all(jnp.isfinite(out)))
    print("KERNEL_OK")
</pallas_src>

<mosaic_0001>
module attributes {stable_mosaic.version = 11 : i64} {
  func.func @_layer_kernel(%arg0: i32, %arg1: memref<128x64xf32, #tpu.memory_space<vmem>>, %arg2: memref<9x128x1xf32, #tpu.memory_space<vmem>>, %arg3: memref<2x2x128x128xf32, #tpu.memory_space<vmem>>, %arg4: memref<2x1x64xf32, #tpu.memory_space<vmem>>, %arg5: memref<2x1x64xf32, #tpu.memory_space<vmem>>, %arg6: memref<2x64x192xf32, #tpu.memory_space<vmem>>, %arg7: memref<2x1x192xf32, #tpu.memory_space<vmem>>, %arg8: memref<2x2x32x64xf32, #tpu.memory_space<vmem>>, %arg9: memref<2x1x64xf32, #tpu.memory_space<vmem>>, %arg10: memref<2x9x1x64xf32, #tpu.memory_space<vmem>>, %arg11: memref<2x1x64xf32, #tpu.memory_space<vmem>>, %arg12: memref<2x1x64xf32, #tpu.memory_space<vmem>>, %arg13: memref<2x1x64xf32, #tpu.memory_space<vmem>>, %arg14: memref<2x64x256xf32, #tpu.memory_space<vmem>>, %arg15: memref<2x1x256xf32, #tpu.memory_space<vmem>>, %arg16: memref<2x256x64xf32, #tpu.memory_space<vmem>>, %arg17: memref<2x1x64xf32, #tpu.memory_space<vmem>>, %arg18: memref<128x64xf32, #tpu.memory_space<vmem>>) attributes {dimension_semantics = [#tpu.dimension_semantics<arbitrary>], iteration_bounds = array<i64: 1>, scalar_prefetch = 0 : i64, scratch_operands = 0 : i64, tpu.core_type = #tpu.core_type<tc>, window_params = [{pipeline_mode = #tpu.pipeline_mode<synchronous>, transform_indices = @transform_0, window_bounds = array<i64: 128, 64>}, {pipeline_mode = #tpu.pipeline_mode<synchronous>, transform_indices = @transform_1, window_bounds = array<i64: 9, 128, 1>}, {pipeline_mode = #tpu.pipeline_mode<synchronous>, transform_indices = @transform_2, window_bounds = array<i64: 2, 2, 128, 128>}, {pipeline_mode = #tpu.pipeline_mode<synchronous>, transform_indices = @transform_3, window_bounds = array<i64: 2, 1, 64>}, {pipeline_mode = #tpu.pipeline_mode<synchronous>, transform_indices = @transform_4, window_bounds = array<i64: 2, 1, 64>}, {pipeline_mode = #tpu.pipeline_mode<synchronous>, transform_indices = @transform_5, window_bounds = array<i64: 2, 64, 192>}, {pipeline_mode = #tpu.pipeline_mode<synchronous>, transform_indices = @transform_6, window_bounds = array<i64: 2, 1, 192>}, {pipeline_mode = #tpu.pipeline_mode<synchronous>, transform_indices = @transform_7, window_bounds = array<i64: 2, 2, 32, 64>}, {pipeline_mode = #tpu.pipeline_mode<synchronous>, transform_indices = @transform_8, window_bounds = array<i64: 2, 1, 64>}, {pipeline_mode = #tpu.pipeline_mode<synchronous>, transform_indices = @transform_9, window_bounds = array<i64: 2, 9, 1, 64>}, {pipeline_mode = #tpu.pipeline_mode<synchronous>, transform_indices = @transform_10, window_bounds = array<i64: 2, 1, 64>}, {pipeline_mode = #tpu.pipeline_mode<synchronous>, transform_indices = @transform_11, window_bounds = array<i64: 2, 1, 64>}, {pipeline_mode = #tpu.pipeline_mode<synchronous>, transform_indices = @transform_12, window_bounds = array<i64: 2, 1, 64>}, {pipeline_mode = #tpu.pipeline_mode<synchronous>, transform_indices = @transform_13, window_bounds = array<i64: 2, 64, 256>}, {pipeline_mode = #tpu.pipeline_mode<synchronous>, transform_indices = @transform_14, window_bounds = array<i64: 2, 1, 256>}, {pipeline_mode = #tpu.pipeline_mode<synchronous>, transform_indices = @transform_15, window_bounds = array<i64: 2, 256, 64>}, {pipeline_mode = #tpu.pipeline_mode<synchronous>, transform_indices = @transform_16, window_bounds = array<i64: 2, 1, 64>}, {pipeline_mode = #tpu.pipeline_mode<synchronous>, transform_indices = @transform_17, window_bounds = array<i64: 128, 64>}]} {
    %c0 = arith.constant 0 : index
    %c0_0 = arith.constant 0 : index
    %c0_1 = arith.constant 0 : index
    %0 = vector.load %arg2[%c0, %c0_0, %c0_1] : memref<9x128x1xf32, #tpu.memory_space<vmem>>, vector<9x128x1xf32>
    %c0_2 = arith.constant 0 : index
    %c0_3 = arith.constant 0 : index
    %1 = vector.load %arg1[%c0_2, %c0_3] : memref<128x64xf32, #tpu.memory_space<vmem>>, vector<128x64xf32>
    %cst = arith.constant dense<0.000000e+00> : vector<128xf32>
    %2 = vector.multi_reduction <add>, %1, %cst [1] : vector<128x64xf32> to vector<128xf32>
    %3 = vector.shape_cast %2 : vector<128xf32> to vector<128x1xf32>
    %cst_4 = arith.constant 6.400000e+01 : f32
    %4 = vector.broadcast %cst_4 : f32 to vector<128x1xf32>
    %5 = arith.divf %3, %4 : vector<128x1xf32>
    %6 = vector.broadcast %5 : vector<128x1xf32> to vector<128x64xf32>
    %7 = arith.subf %1, %6 : vector<128x64xf32>
    %8 = arith.mulf %7, %7 : vector<128x64xf32>
    %cst_5 = arith.constant dense<0.000000e+00> : vector<128xf32>
    %9 = vector.multi_reduction <add>, %8, %cst_5 [1] : vector<128x64xf32> to vector<128xf32>
    %10 = vector.shape_cast %9 : vector<128xf32> to vector<128x1xf32>
    %cst_6 = arith.constant 6.400000e+01 : f32
    %11 = vector.broadcast %cst_6 : f32 to vector<128x1xf32>
    %12 = arith.divf %10, %11 : vector<128x1xf32>
    %13 = vector.broadcast %5 : vector<128x1xf32> to vector<128x64xf32>
    %14 = arith.subf %1, %13 : vector<128x64xf32>
    %cst_7 = arith.constant 9.99999974E-6 : f32
    %15 = vector.broadcast %cst_7 : f32 to vector<128x1xf32>
    %16 = arith.addf %12, %15 : vector<128x1xf32>
    %17 = math.rsqrt %16 : vector<128x1xf32>
    %18 = vector.broadcast %17 : vector<128x1xf32> to vector<128x64xf32>
    %19 = arith.mulf %14, %18 : vector<128x64xf32>
    %c0_8 = arith.constant 0 : index
    %c0_9 = arith.constant 0 : index
    %c0_10 = arith.constant 0 : index
    %20 = vector.load %arg4[%c0_8, %c0_9, %c0_10] : memref<2x1x64xf32, #tpu.memory_space<vmem>>, vector<1x1x64xf32>
    %21 = vector.shape_cast %20 : vector<1x1x64xf32> to vector<1x64xf32>
    %22 = vector.broadcast %21 : vector<1x64xf32> to vector<128x64xf32>
    %23 = arith.mulf %19, %22 : vector<128x64xf32>
    %c0_11 = arith.constant 0 : index
    %c0_12 = arith.constant 0 : index
    %c0_13 = arith.constant 0 : index
    %24 = vector.load %arg5[%c0_11, %c0_12, %c0_13] : memref<2x1x64xf32, #tpu.memory_space<vmem>>, vector<1x1x64xf32>
    %25 = vector.shape_cast %24 : vector<1x1x64xf32> to vector<1x64xf32>
    %26 = vector.broadcast %25 : vector<1x64xf32> to vector<128x64xf32>
    %27 = arith.addf %23, %26 : vector<128x64xf32>
    %c0_14 = arith.constant 0 : index
    %c0_15 = arith.constant 0 : index
    %c0_16 = arith.constant 0 : index
    %28 = vector.load %arg6[%c0_14, %c0_15, %c0_16] : memref<2x64x192xf32, #tpu.memory_space<vmem>>, vector<1x64x192xf32>
    %29 = vector.shape_cast %28 : vector<1x64x192xf32> to vector<64x192xf32>
    %cst_17 = arith.constant dense<0.000000e+00> : vector<128x192xf32>
    %30 = tpu.matmul %27, %29, %cst_17 {dimension_numbers = #tpu.dot_dimension_numbers<[1], [0], [0], [1], [0, 0, 1, 1], [], []>} : vector<128x64xf32>, vector<64x192xf32>, vector<128x192xf32> -> vector<128x192xf32>
    %c0_18 = arith.constant 0 : index
    %c0_19 = arith.constant 0 : index
    %c0_20 = arith.constant 0 : index
    %31 = vector.load %arg7[%c0_18, %c0_19, %c0_20] : memref<2x1x192xf32, #tpu.memory_space<vmem>>, vector<1x1x192xf32>
    %32 = vector.shape_cast %31 : vector<1x1x192xf32> to vector<1x192xf32>
    %33 = vector.broadcast %32 : vector<1x192xf32> to vector<128x192xf32>
    %34 = arith.addf %30, %33 : vector<128x192xf32>
    %c0_21 = arith.constant 0 : index
    %c0_22 = arith.constant 0 : index
    %c0_23 = arith.constant 0 : index
    %35 = vector.load %arg9[%c0_21, %c0_22, %c0_23] : memref<2x1x64xf32, #tpu.memory_space<vmem>>, vector<1x1x64xf32>
    %36 = vector.shape_cast %35 : vector<1x1x64xf32> to vector<1x64xf32>
    %37 = vector.broadcast %36 : vector<1x64xf32> to vector<128x64xf32>
    %38 = arith.addf %1, %37 : vector<128x64xf32>
    %39 = vector.extract_strided_slice %34 {offsets = [0, 0], sizes = [128, 32], strides = [1, 1]} : vector<128x192xf32> to vector<128x32xf32>
    %40 = vector.extract_strided_slice %34 {offsets = [0, 32], sizes = [128, 32], strides = [1, 1]} : vector<128x192xf32> to vector<128x32xf32>
    %41 = vector.extract_strided_slice %34 {offsets = [0, 64], sizes = [128, 32], strides = [1, 1]} : vector<128x192xf32> to vector<128x32xf32>
    %cst_24 = arith.constant dense<0.000000e+00> : vector<128x128xf32>
    %42 = tpu.matmul %39, %40, %cst_24 {dimension_numbers = #tpu.dot_dimension_numbers<[1], [1], [0], [0], [0, 0, 1, 0], [], []>} : vector<128x32xf32>, vector<128x32xf32>, vector<128x128xf32> -> vector<128x128xf32>
    %c0_25 = arith.constant 0 : index
    %c0_26 = arith.constant 0 : index
    %c0_27 = arith.constant 0 : index
    %c0_28 = arith.constant 0 : index
    %43 = vector.load %arg3[%c0_25, %c0_26, %c0_27, %c0_28] : memref<2x2x128x128xf32, #tpu.memory_space<vmem>>, vector<1x1x128x128xf32>
    %44 = vector.shape_cast %43 : vector<1x1x128x128xf32> to vector<128x128xf32>
    %45 = arith.addf %42, %44 : vector<128x128xf32>
    %cst_29 = arith.constant dense<0xFF800000> : vector<128xf32>
    %46 = vector.multi_reduction <maximumf>, %45, %cst_29 [1] : vector<128x128xf32> to vector<128xf32>
    %47 = vector.shape_cast %46 : vector<128xf32> to vector<128x1xf32>
    %48 = vector.broadcast %47 : vector<128x1xf32> to vector<128x128xf32>
    %49 = arith.subf %45, %48 : vector<128x128xf32>
    %50 = math.exp %49 : vector<128x128xf32>
    %cst_30 = arith.constant dense<0.000000e+00> : vector<128xf32>
    %51 = vector.multi_reduction <add>, %50, %cst_30 [1] : vector<128x128xf32> to vector<128xf32>
    %52 = vector.shape_cast %51 : vector<128xf32> to vector<128x1xf32>
    %53 = tpu.reciprocal %52 {approx = true} : vector<128x1xf32> -> vector<128x1xf32>
    %54 = vector.broadcast %53 : vector<128x1xf32> to vector<128x128xf32>
    %55 = arith.mulf %50, %54 : vector<128x128xf32>
    %cst_31 = arith.constant dense<0.000000e+00> : vector<128x32xf32>
    %56 = tpu.matmul %55, %41, %cst_31 {dimension_numbers = #tpu.dot_dimension_numbers<[1], [0], [0], [1], [0, 0, 1, 1], [], []>} : vector<128x128xf32>, vector<128x32xf32>, vector<128x32xf32> -> vector<128x32xf32>
    %c0_32 = arith.constant 0 : index
    %c0_33 = arith.constant 0 : index
    %c0_34 = arith.constant 0 : index
    %c0_35 = arith.constant 0 : index
    %57 = vector.load %arg8[%c0_32, %c0_33, %c0_34, %c0_35] : memref<2x2x32x64xf32, #tpu.memory_space<vmem>>, vector<1x1x32x64xf32>
    %58 = vector.shape_cast %57 : vector<1x1x32x64xf32> to vector<32x64xf32>
    %cst_36 = arith.constant dense<0.000000e+00> : vector<128x64xf32>
    %59 = tpu.matmul %56, %58, %cst_36 {dimension_numbers = #tpu.dot_dimension_numbers<[1], [0], [0], [1], [0, 0, 1, 1], [], []>} : vector<128x32xf32>, vector<32x64xf32>, vector<128x64xf32> -> vector<128x64xf32>
    %60 = arith.addf %38, %59 : vector<128x64xf32>
    %61 = vector.extract_strided_slice %34 {offsets = [0, 96], sizes = [128, 32], strides = [1, 1]} : vector<128x192xf32> to vector<128x32xf32>
    %62 = vector.extract_strided_slice %34 {offsets = [0, 128], sizes = [128, 32], strides = [1, 1]} : vector<128x192xf32> to vector<128x32xf32>
    %63 = vector.extract_strided_slice %34 {offsets = [0, 160], sizes = [128, 32], strides = [1, 1]} : vector<128x192xf32> to vector<128x32xf32>
    %cst_37 = arith.constant dense<0.000000e+00> : vector<128x128xf32>
    %64 = tpu.matmul %61, %62, %cst_37 {dimension_numbers = #tpu.dot_dimension_numbers<[1], [1], [0], [0], [0, 0, 1, 0], [], []>} : vector<128x32xf32>, vector<128x32xf32>, vector<128x128xf32> -> vector<128x128xf32>
    %c0_38 = arith.constant 0 : index
    %c1 = arith.constant 1 : index
    %c0_39 = arith.constant 0 : index
    %c0_40 = arith.constant 0 : index
    %65 = vector.load %arg3[%c0_38, %c1, %c0_39, %c0_40] : memref<2x2x128x128xf32, #tpu.memory_space<vmem>>, vector<1x1x128x128xf32>
    %66 = vector.shape_cast %65 : vector<1x1x128x128xf32> to vector<128x128xf32>
    %67 = arith.addf %64, %66 : vector<128x128xf32>
    %cst_41 = arith.constant dense<0xFF800000> : vector<128xf32>
    %68 = vector.multi_reduction <maximumf>, %67, %cst_41 [1] : vector<128x128xf32> to vector<128xf32>
    %69 = vector.shape_cast %68 : vector<128xf32> to vector<128x1xf32>
    %70 = vector.broadcast %69 : vector<128x1xf32> to vector<128x128xf32>
    %71 = arith.subf %67, %70 : vector<128x128xf32>
    %72 = math.exp %71 : vector<128x128xf32>
    %cst_42 = arith.constant dense<0.000000e+00> : vector<128xf32>
    %73 = vector.multi_reduction <add>, %72, %cst_42 [1] : vector<128x128xf32> to vector<128xf32>
    %74 = vector.shape_cast %73 : vector<128xf32> to vector<128x1xf32>
    %75 = tpu.reciprocal %74 {approx = true} : vector<128x1xf32> -> vector<128x1xf32>
    %76 = vector.broadcast %75 : vector<128x1xf32> to vector<128x128xf32>
    %77 = arith.mulf %72, %76 : vector<128x128xf32>
    %cst_43 = arith.constant dense<0.000000e+00> : vector<128x32xf32>
    %78 = tpu.matmul %77, %63, %cst_43 {dimension_numbers = #tpu.dot_dimension_numbers<[1], [0], [0], [1], [0, 0, 1, 1], [], []>} : vector<128x128xf32>, vector<128x32xf32>, vector<128x32xf32> -> vector<128x32xf32>
    %c0_44 = arith.constant 0 : index
    %c1_45 = arith.constant 1 : index
    %c0_46 = arith.constant 0 : index
    %c0_47 = arith.constant 0 : index
    %79 = vector.load %arg8[%c0_44, %c1_45, %c0_46, %c0_47] : memref<2x2x32x64xf32, #tpu.memory_space<vmem>>, vector<1x1x32x64xf32>
    %80 = vector.shape_cast %79 : vector<1x1x32x64xf32> to vector<32x64xf32>
    %cst_48 = arith.constant dense<0.000000e+00> : vector<128x64xf32>
    %81 = tpu.matmul %78, %80, %cst_48 {dimension_numbers = #tpu.dot_dimension_numbers<[1], [0], [0], [1], [0, 0, 1, 1], [], []>} : vector<128x32xf32>, vector<32x64xf32>, vector<128x64xf32> -> vector<128x64xf32>
    %82 = arith.addf %60, %81 : vector<128x64xf32>
    %c0_49 = arith.constant 0 : index
    %c0_50 = arith.constant 0 : index
    %c0_51 = arith.constant 0 : index
    %c0_52 = arith.constant 0 : index
    %83 = vector.load %arg10[%c0_49, %c0_50, %c0_51, %c0_52] : memref<2x9x1x64xf32, #tpu.memory_space<vmem>>, vector<1x9x1x64xf32>
    %84 = vector.shape_cast %83 : vector<1x9x1x64xf32> to vector<9x1x64xf32>
    %cst_53 = arith.constant 0.000000e+00 : f32
    %85 = vector.broadcast %cst_53 : f32 to vector<128x64xf32>
    %86 = vector.extract_strided_slice %82 {offsets = [119, 0], sizes = [9, 64], strides = [1, 1]} : vector<128x64xf32> to vector<9x64xf32>
    %87 = vector.extract_strided_slice %82 {offsets = [0, 0], sizes = [119, 64], strides = [1, 1]} : vector<128x64xf32> to vector<119x64xf32>
    %88 = tpu.concatenate %86, %87 in 0 : vector<9x64xf32>, vector<119x64xf32> -> vector<128x64xf32>
    %89 = vector.extract_strided_slice %0 {offsets = [0, 0, 0], sizes = [1, 128, 1], strides = [1, 1, 1]} : vector<9x128x1xf32> to vector<1x128x1xf32>
    %90 = vector.shape_cast %89 : vector<1x128x1xf32> to vector<128x1xf32>
    %91 = vector.extract_strided_slice %84 {offsets = [0, 0, 0], sizes = [1, 1, 64], strides = [1, 1, 1]} : vector<9x1x64xf32> to vector<1x1x64xf32>
    %92 = vector.shape_cast %91 : vector<1x1x64xf32> to vector<1x64xf32>
    %93 = vector.broadcast %90 : vector<128x1xf32> to vector<128x64xf32>
    %94 = vector.broadcast %92 : vector<1x64xf32> to vector<128x64xf32>
    %95 = arith.mulf %93, %94 : vector<128x64xf32>
    %96 = arith.mulf %88, %95 : vector<128x64xf32>
    %97 = arith.addf %85, %96 : vector<128x64xf32>
    %98 = vector.extract_strided_slice %82 {offsets = [120, 0], sizes = [8, 64], strides = [1, 1]} : vector<128x64xf32> to vector<8x64xf32>
    %99 = vector.extract_strided_slice %82 {offsets = [0, 0], sizes = [120, 64], strides = [1, 1]} : vector<128x64xf32> to vector<120x64xf32>
    %100 = tpu.concatenate %98, %99 in 0 : vector<8x64xf32>, vector<120x64xf32> -> vector<128x64xf32>
    %101 = vector.extract_strided_slice %0 {offsets = [1, 0, 0], sizes = [1, 128, 1], strides = [1, 1, 1]} : vector<9x128x1xf32> to vector<1x128x1xf32>
    %102 = vector.shape_cast %101 : vector<1x128x1xf32> to vector<128x1xf32>
    %103 = vector.extract_strided_slice %84 {offsets = [1, 0, 0], sizes = [1, 1, 64], strides = [1, 1, 1]} : vector<9x1x64xf32> to vector<1x1x64xf32>
    %104 = vector.shape_cast %103 : vector<1x1x64xf32> to vector<1x64xf32>
    %105 = vector.broadcast %102 : vector<128x1xf32> to vector<128x64xf32>
    %106 = vector.broadcast %104 : vector<1x64xf32> to vector<128x64xf32>
    %107 = arith.mulf %105, %106 : vector<128x64xf32>
    %108 = arith.mulf %100, %107 : vector<128x64xf32>
    %109 = arith.addf %97, %108 : vector<128x64xf32>
    %110 = vector.extract_strided_slice %82 {offsets = [121, 0], sizes = [7, 64], strides = [1, 1]} : vector<128x64xf32> to vector<7x64xf32>
    %111 = vector.extract_strided_slice %82 {offsets = [0, 0], sizes = [121, 64], strides = [1, 1]} : vector<128x64xf32> to vector<121x64xf32>
    %112 = tpu.concatenate %110, %111 in 0 : vector<7x64xf32>, vector<121x64xf32> -> vector<128x64xf32>
    %113 = vector.extract_strided_slice %0 {offsets = [2, 0, 0], sizes = [1, 128, 1], strides = [1, 1, 1]} : vector<9x128x1xf32> to vector<1x128x1xf32>
    %114 = vector.shape_cast %113 : vector<1x128x1xf32> to vector<128x1xf32>
    %115 = vector.extract_strided_slice %84 {offsets = [2, 0, 0], sizes = [1, 1, 64], strides = [1, 1, 1]} : vector<9x1x64xf32> to vector<1x1x64xf32>
    %116 = vector.shape_cast %115 : vector<1x1x64xf32> to vector<1x64xf32>
    %117 = vector.broadcast %114 : vector<128x1xf32> to vector<128x64xf32>
    %118 = vector.broadcast %116 : vector<1x64xf32> to vector<128x64xf32>
    %119 = arith.mulf %117, %118 : vector<128x64xf32>
    %120 = arith.mulf %112, %119 : vector<128x64xf32>
    %121 = arith.addf %109, %120 : vector<128x64xf32>
    %122 = vector.extract_strided_slice %82 {offsets = [127, 0], sizes = [1, 64], strides = [1, 1]} : vector<128x64xf32> to vector<1x64xf32>
    %123 = vector.extract_strided_slice %82 {offsets = [0, 0], sizes = [127, 64], strides = [1, 1]} : vector<128x64xf32> to vector<127x64xf32>
    %124 = tpu.concatenate %122, %123 in 0 : vector<1x64xf32>, vector<127x64xf32> -> vector<128x64xf32>
    %125 = vector.extract_strided_slice %0 {offsets = [3, 0, 0], sizes = [1, 128, 1], strides = [1, 1, 1]} : vector<9x128x1xf32> to vector<1x128x1xf32>
    %126 = vector.shape_cast %125 : vector<1x128x1xf32> to vector<128x1xf32>
    %127 = vector.extract_strided_slice %84 {offsets = [3, 0, 0], sizes = [1, 1, 64], strides = [1, 1, 1]} : vector<9x1x64xf32> to vector<1x1x64xf32>
    %128 = vector.shape_cast %127 : vector<1x1x64xf32> to vector<1x64xf32>
    %129 = vector.broadcast %126 : vector<128x1xf32> to vector<128x64xf32>
    %130 = vector.broadcast %128 : vector<1x64xf32> to vector<128x64xf32>
    %131 = arith.mulf %129, %130 : vector<128x64xf32>
    %132 = arith.mulf %124, %131 : vector<128x64xf32>
    %133 = arith.addf %121, %132 : vector<128x64xf32>
    %134 = vector.extract_strided_slice %0 {offsets = [4, 0, 0], sizes = [1, 128, 1], strides = [1, 1, 1]} : vector<9x128x1xf32> to vector<1x128x1xf32>
    %135 = vector.shape_cast %134 : vector<1x128x1xf32> to vector<128x1xf32>
    %136 = vector.extract_strided_slice %84 {offsets = [4, 0, 0], sizes = [1, 1, 64], strides = [1, 1, 1]} : vector<9x1x64xf32> to vector<1x1x64xf32>
    %137 = vector.shape_cast %136 : vector<1x1x64xf32> to vector<1x64xf32>
    %138 = vector.broadcast %135 : vector<128x1xf32> to vector<128x64xf32>
    %139 = vector.broadcast %137 : vector<1x64xf32> to vector<128x64xf32>
    %140 = arith.mulf %138, %139 : vector<128x64xf32>
    %141 = arith.mulf %82, %140 : vector<128x64xf32>
    %142 = arith.addf %133, %141 : vector<128x64xf32>
    %143 = vector.extract_strided_slice %82 {offsets = [1, 0], sizes = [127, 64], strides = [1, 1]} : vector<128x64xf32> to vector<127x64xf32>
    %144 = vector.extract_strided_slice %82 {offsets = [0, 0], sizes = [1, 64], strides = [1, 1]} : vector<128x64xf32> to vector<1x64xf32>
    %145 = tpu.concatenate %143, %144 in 0 : vector<127x64xf32>, vector<1x64xf32> -> vector<128x64xf32>
    %146 = vector.extract_strided_slice %0 {offsets = [5, 0, 0], sizes = [1, 128, 1], strides = [1, 1, 1]} : vector<9x128x1xf32> to vector<1x128x1xf32>
    %147 = vector.shape_cast %146 : vector<1x128x1xf32> to vector<128x1xf32>
    %148 = vector.extract_strided_slice %84 {offsets = [5, 0, 0], sizes = [1, 1, 64], strides = [1, 1, 1]} : vector<9x1x64xf32> to vector<1x1x64xf32>
    %149 = vector.shape_cast %148 : vector<1x1x64xf32> to vector<1x64xf32>
    %150 = vector.broadcast %147 : vector<128x1xf32> to vector<128x64xf32>
    %151 = vector.broadcast %149 : vector<1x64xf32> to vector<128x64xf32>
    %152 = arith.mulf %150, %151 : vector<128x64xf32>
    %153 = arith.mulf %145, %152 : vector<128x64xf32>
    %154 = arith.addf %142, %153 : vector<128x64xf32>
    %155 = vector.extract_strided_slice %82 {offsets = [7, 0], sizes = [121, 64], strides = [1, 1]} : vector<128x64xf32> to vector<121x64xf32>
    %156 = vector.extract_strided_slice %82 {offsets = [0, 0], sizes = [7, 64], strides = [1, 1]} : vector<128x64xf32> to vector<7x64xf32>
    %157 = tpu.concatenate %155, %156 in 0 : vector<121x64xf32>, vector<7x64xf32> -> vector<128x64xf32>
    %158 = vector.extract_strided_slice %0 {offsets = [6, 0, 0], sizes = [1, 128, 1], strides = [1, 1, 1]} : vector<9x128x1xf32> to vector<1x128x1xf32>
    %159 = vector.shape_cast %158 : vector<1x128x1xf32> to vector<128x1xf32>
    %160 = vector.extract_strided_slice %84 {offsets = [6, 0, 0], sizes = [1, 1, 64], strides = [1, 1, 1]} : vector<9x1x64xf32> to vector<1x1x64xf32>
    %161 = vector.shape_cast %160 : vector<1x1x64xf32> to vector<1x64xf32>
    %162 = vector.broadcast %159 : vector<128x1xf32> to vector<128x64xf32>
    %163 = vector.broadcast %161 : vector<1x64xf32> to vector<128x64xf32>
    %164 = arith.mulf %162, %163 : vector<128x64xf32>
    %165 = arith.mulf %157, %164 : vector<128x64xf32>
    %166 = arith.addf %154, %165 : vector<128x64xf32>
    %167 = vector.extract_strided_slice %82 {offsets = [8, 0], sizes = [120, 64], strides = [1, 1]} : vector<128x64xf32> to vector<120x64xf32>
    %168 = vector.extract_strided_slice %82 {offsets = [0, 0], sizes = [8, 64], strides = [1, 1]} : vector<128x64xf32> to vector<8x64xf32>
    %169 = tpu.concatenate %167, %168 in 0 : vector<120x64xf32>, vector<8x64xf32> -> vector<128x64xf32>
    %170 = vector.extract_strided_slice %0 {offsets = [7, 0, 0], sizes = [1, 128, 1], strides = [1, 1, 1]} : vector<9x128x1xf32> to vector<1x128x1xf32>
    %171 = vector.shape_cast %170 : vector<1x128x1xf32> to vector<128x1xf32>
    %172 = vector.extract_strided_slice %84 {offsets = [7, 0, 0], sizes = [1, 1, 64], strides = [1, 1, 1]} : vector<9x1x64xf32> to vector<1x1x64xf32>
    %173 = vector.shape_cast %172 : vector<1x1x64xf32> to vector<1x64xf32>
    %174 = vector.broadcast %171 : vector<128x1xf32> to vector<128x64xf32>
    %175 = vector.broadcast %173 : vector<1x64xf32> to vector<128x64xf32>
    %176 = arith.mulf %174, %175 : vector<128x64xf32>
    %177 = arith.mulf %169, %176 : vector<128x64xf32>
    %178 = arith.addf %166, %177 : vector<128x64xf32>
    %179 = vector.extract_strided_slice %82 {offsets = [9, 0], sizes = [119, 64], strides = [1, 1]} : vector<128x64xf32> to vector<119x64xf32>
    %180 = vector.extract_strided_slice %82 {offsets = [0, 0], sizes = [9, 64], strides = [1, 1]} : vector<128x64xf32> to vector<9x64xf32>
    %181 = tpu.concatenate %179, %180 in 0 : vector<119x64xf32>, vector<9x64xf32> -> vector<128x64xf32>
    %182 = vector.extract_strided_slice %0 {offsets = [8, 0, 0], sizes = [1, 128, 1], strides = [1, 1, 1]} : vector<9x128x1xf32> to vector<1x128x1xf32>
    %183 = vector.shape_cast %182 : vector<1x128x1xf32> to vector<128x1xf32>
    %184 = vector.extract_strided_slice %84 {offsets = [8, 0, 0], sizes = [1, 1, 64], strides = [1, 1, 1]} : vector<9x1x64xf32> to vector<1x1x64xf32>
    %185 = vector.shape_cast %184 : vector<1x1x64xf32> to vector<1x64xf32>
    %186 = vector.broadcast %183 : vector<128x1xf32> to vector<128x64xf32>
    %187 = vector.broadcast %185 : vector<1x64xf32> to vector<128x64xf32>
    %188 = arith.mulf %186, %187 : vector<128x64xf32>
    %189 = arith.mulf %181, %188 : vector<128x64xf32>
    %190 = arith.addf %178, %189 : vector<128x64xf32>
    %c0_54 = arith.constant 0 : index
    %c0_55 = arith.constant 0 : index
    %c0_56 = arith.constant 0 : index
    %191 = vector.load %arg11[%c0_54, %c0_55, %c0_56] : memref<2x1x64xf32, #tpu.memory_space<vmem>>, vector<1x1x64xf32>
    %192 = vector.shape_cast %191 : vector<1x1x64xf32> to vector<1x64xf32>
    %193 = vector.broadcast %192 : vector<1x64xf32> to vector<128x64xf32>
    %194 = arith.addf %190, %193 : vector<128x64xf32>
    %cst_57 = arith.constant dense<0.000000e+00> : vector<128xf32>
    %195 = vector.multi_reduction <add>, %194, %cst_57 [1] : vector<128x64xf32> to vector<128xf32>
    %196 = vector.shape_cast %195 : vector<128xf32> to vector<128x1xf32>
    %cst_58 = arith.constant 6.400000e+01 : f32
    %197 = vector.broadcast %cst_58 : f32 to vector<128x1xf32>
    %198 = arith.divf %196, %197 : vector<128x1xf32>
    %199 = vector.broadcast %198 : vector<128x1xf32> to vector<128x64xf32>
    %200 = arith.subf %194, %199 : vector<128x64xf32>
    %201 = arith.mulf %200, %200 : vector<128x64xf32>
    %cst_59 = arith.constant dense<0.000000e+00> : vector<128xf32>
    %202 = vector.multi_reduction <add>, %201, %cst_59 [1] : vector<128x64xf32> to vector<128xf32>
    %203 = vector.shape_cast %202 : vector<128xf32> to vector<128x1xf32>
    %cst_60 = arith.constant 6.400000e+01 : f32
    %204 = vector.broadcast %cst_60 : f32 to vector<128x1xf32>
    %205 = arith.divf %203, %204 : vector<128x1xf32>
    %206 = vector.broadcast %198 : vector<128x1xf32> to vector<128x64xf32>
    %207 = arith.subf %194, %206 : vector<128x64xf32>
    %cst_61 = arith.constant 9.99999974E-6 : f32
    %208 = vector.broadcast %cst_61 : f32 to vector<128x1xf32>
    %209 = arith.addf %205, %208 : vector<128x1xf32>
    %210 = math.rsqrt %209 : vector<128x1xf32>
    %211 = vector.broadcast %210 : vector<128x1xf32> to vector<128x64xf32>
    %212 = arith.mulf %207, %211 : vector<128x64xf32>
    %c0_62 = arith.constant 0 : index
    %c0_63 = arith.constant 0 : index
    %c0_64 = arith.constant 0 : index
    %213 = vector.load %arg12[%c0_62, %c0_63, %c0_64] : memref<2x1x64xf32, #tpu.memory_space<vmem>>, vector<1x1x64xf32>
    %214 = vector.shape_cast %213 : vector<1x1x64xf32> to vector<1x64xf32>
    %215 = vector.broadcast %214 : vector<1x64xf32> to vector<128x64xf32>
    %216 = arith.mulf %212, %215 : vector<128x64xf32>
    %c0_65 = arith.constant 0 : index
    %c0_66 = arith.constant 0 : index
    %c0_67 = arith.constant 0 : index
    %217 = vector.load %arg13[%c0_65, %c0_66, %c0_67] : memref<2x1x64xf32, #tpu.memory_space<vmem>>, vector<1x1x64xf32>
    %218 = vector.shape_cast %217 : vector<1x1x64xf32> to vector<1x64xf32>
    %219 = vector.broadcast %218 : vector<1x64xf32> to vector<128x64xf32>
    %220 = arith.addf %216, %219 : vector<128x64xf32>
    %c0_68 = arith.constant 0 : index
    %c0_69 = arith.constant 0 : index
    %c0_70 = arith.constant 0 : index
    %221 = vector.load %arg14[%c0_68, %c0_69, %c0_70] : memref<2x64x256xf32, #tpu.memory_space<vmem>>, vector<1x64x256xf32>
    %222 = vector.shape_cast %221 : vector<1x64x256xf32> to vector<64x256xf32>
    %cst_71 = arith.constant dense<0.000000e+00> : vector<128x256xf32>
    %223 = tpu.matmul %220, %222, %cst_71 {dimension_numbers = #tpu.dot_dimension_numbers<[1], [0], [0], [1], [0, 0, 1, 1], [], []>} : vector<128x64xf32>, vector<64x256xf32>, vector<128x256xf32> -> vector<128x256xf32>
    %c0_72 = arith.constant 0 : index
    %c0_73 = arith.constant 0 : index
    %c0_74 = arith.constant 0 : index
    %224 = vector.load %arg15[%c0_72, %c0_73, %c0_74] : memref<2x1x256xf32, #tpu.memory_space<vmem>>, vector<1x1x256xf32>
    %225 = vector.shape_cast %224 : vector<1x1x256xf32> to vector<1x256xf32>
    %226 = vector.broadcast %225 : vector<1x256xf32> to vector<128x256xf32>
    %227 = arith.addf %223, %226 : vector<128x256xf32>
    %cst_75 = arith.constant 5.000000e-01 : f32
    %228 = vector.broadcast %cst_75 : f32 to vector<128x256xf32>
    %229 = arith.mulf %228, %227 : vector<128x256xf32>
    %cst_76 = arith.constant 0.707106769 : f32
    %230 = vector.broadcast %cst_76 : f32 to vector<128x256xf32>
    %231 = arith.mulf %227, %230 : vector<128x256xf32>
    %232 = math.erf %231 : vector<128x256xf32>
    %cst_77 = arith.constant 1.000000e+00 : f32
    %233 = vector.broadcast %cst_77 : f32 to vector<128x256xf32>
    %234 = arith.addf %233, %232 : vector<128x256xf32>
    %235 = arith.mulf %229, %234 : vector<128x256xf32>
    %c0_78 = arith.constant 0 : index
    %c0_79 = arith.constant 0 : index
    %c0_80 = arith.constant 0 : index
    %236 = vector.load %arg16[%c0_78, %c0_79, %c0_80] : memref<2x256x64xf32, #tpu.memory_space<vmem>>, vector<1x256x64xf32>
    %237 = vector.shape_cast %236 : vector<1x256x64xf32> to vector<256x64xf32>
    %cst_81 = arith.constant dense<0.000000e+00> : vector<128x64xf32>
    %238 = tpu.matmul %235, %237, %cst_81 {dimension_numbers = #tpu.dot_dimension_numbers<[1], [0], [0], [1], [0, 0, 1, 1], [], []>} : vector<128x256xf32>, vector<256x64xf32>, vector<128x64xf32> -> vector<128x64xf32>
    %239 = arith.addf %194, %238 : vector<128x64xf32>
    %c0_82 = arith.constant 0 : index
    %c0_83 = arith.constant 0 : index
    %c0_84 = arith.constant 0 : index
    %240 = vector.load %arg17[%c0_82, %c0_83, %c0_84] : memref<2x1x64xf32, #tpu.memory_space<vmem>>, vector<1x1x64xf32>
    %241 = vector.shape_cast %240 : vector<1x1x64xf32> to vector<1x64xf32>
    %242 = vector.broadcast %241 : vector<1x64xf32> to vector<128x64xf32>
    %243 = arith.addf %239, %242 : vector<128x64xf32>
    %cst_85 = arith.constant dense<0.000000e+00> : vector<128xf32>
    %244 = vector.multi_reduction <add>, %243, %cst_85 [1] : vector<128x64xf32> to vector<128xf32>
    %245 = vector.shape_cast %244 : vector<128xf32> to vector<128x1xf32>
    %cst_86 = arith.constant 6.400000e+01 : f32
    %246 = vector.broadcast %cst_86 : f32 to vector<128x1xf32>
    %247 = arith.divf %245, %246 : vector<128x1xf32>
    %248 = vector.broadcast %247 : vector<128x1xf32> to vector<128x64xf32>
    %249 = arith.subf %243, %248 : vector<128x64xf32>
    %250 = arith.mulf %249, %249 : vector<128x64xf32>
    %cst_87 = arith.constant dense<0.000000e+00> : vector<128xf32>
    %251 = vector.multi_reduction <add>, %250, %cst_87 [1] : vector<128x64xf32> to vector<128xf32>
    %252 = vector.shape_cast %251 : vector<128xf32> to vector<128x1xf32>
    %cst_88 = arith.constant 6.400000e+01 : f32
    %253 = vector.broadcast %cst_88 : f32 to vector<128x1xf32>
    %254 = arith.divf %252, %253 : vector<128x1xf32>
    %255 = vector.broadcast %247 : vector<128x1xf32> to vector<128x64xf32>
    %256 = arith.subf %243, %255 : vector<128x64xf32>
    %cst_89 = arith.constant 9.99999974E-6 : f32
    %257 = vector.broadcast %cst_89 : f32 to vector<128x1xf32>
    %258 = arith.addf %254, %257 : vector<128x1xf32>
    %259 = math.rsqrt %258 : vector<128x1xf32>
    %260 = vector.broadcast %259 : vector<128x1xf32> to vector<128x64xf32>
    %261 = arith.mulf %256, %260 : vector<128x64xf32>
    %c1_90 = arith.constant 1 : index
    %c0_91 = arith.constant 0 : index
    %c0_92 = arith.constant 0 : index
    %262 = vector.load %arg4[%c1_90, %c0_91, %c0_92] : memref<2x1x64xf32, #tpu.memory_space<vmem>>, vector<1x1x64xf32>
    %263 = vector.shape_cast %262 : vector<1x1x64xf32> to vector<1x64xf32>
    %264 = vector.broadcast %263 : vector<1x64xf32> to vector<128x64xf32>
    %265 = arith.mulf %261, %264 : vector<128x64xf32>
    %c1_93 = arith.constant 1 : index
    %c0_94 = arith.constant 0 : index
    %c0_95 = arith.constant 0 : index
    %266 = vector.load %arg5[%c1_93, %c0_94, %c0_95] : memref<2x1x64xf32, #tpu.memory_space<vmem>>, vector<1x1x64xf32>
    %267 = vector.shape_cast %266 : vector<1x1x64xf32> to vector<1x64xf32>
    %268 = vector.broadcast %267 : vector<1x64xf32> to vector<128x64xf32>
    %269 = arith.addf %265, %268 : vector<128x64xf32>
    %c1_96 = arith.constant 1 : index
    %c0_97 = arith.constant 0 : index
    %c0_98 = arith.constant 0 : index
    %270 = vector.load %arg6[%c1_96, %c0_97, %c0_98] : memref<2x64x192xf32, #tpu.memory_space<vmem>>, vector<1x64x192xf32>
    %271 = vector.shape_cast %270 : vector<1x64x192xf32> to vector<64x192xf32>
    %cst_99 = arith.constant dense<0.000000e+00> : vector<128x192xf32>
    %272 = tpu.matmul %269, %271, %cst_99 {dimension_numbers = #tpu.dot_dimension_numbers<[1], [0], [0], [1], [0, 0, 1, 1], [], []>} : vector<128x64xf32>, vector<64x192xf32>, vector<128x192xf32> -> vector<128x192xf32>
    %c1_100 = arith.constant 1 : index
    %c0_101 = arith.constant 0 : index
    %c0_102 = arith.constant 0 : index
    %273 = vector.load %arg7[%c1_100, %c0_101, %c0_102] : memref<2x1x192xf32, #tpu.memory_space<vmem>>, vector<1x1x192xf32>
    %274 = vector.shape_cast %273 : vector<1x1x192xf32> to vector<1x192xf32>
    %275 = vector.broadcast %274 : vector<1x192xf32> to vector<128x192xf32>
    %276 = arith.addf %272, %275 : vector<128x192xf32>
    %c1_103 = arith.constant 1 : index
    %c0_104 = arith.constant 0 : index
    %c0_105 = arith.constant 0 : index
    %277 = vector.load %arg9[%c1_103, %c0_104, %c0_105] : memref<2x1x64xf32, #tpu.memory_space<vmem>>, vector<1x1x64xf32>
    %278 = vector.shape_cast %277 : vector<1x1x64xf32> to vector<1x64xf32>
    %279 = vector.broadcast %278 : vector<1x64xf32> to vector<128x64xf32>
    %280 = arith.addf %243, %279 : vector<128x64xf32>
    %281 = vector.extract_strided_slice %276 {offsets = [0, 0], sizes = [128, 32], strides = [1, 1]} : vector<128x192xf32> to vector<128x32xf32>
    %282 = vector.extract_strided_slice %276 {offsets = [0, 32], sizes = [128, 32], strides = [1, 1]} : vector<128x192xf32> to vector<128x32xf32>
    %283 = vector.extract_strided_slice %276 {offsets = [0, 64], sizes = [128, 32], strides = [1, 1]} : vector<128x192xf32> to vector<128x32xf32>
    %cst_106 = arith.constant dense<0.000000e+00> : vector<128x128xf32>
    %284 = tpu.matmul %281, %282, %cst_106 {dimension_numbers = #tpu.dot_dimension_numbers<[1], [1], [0], [0], [0, 0, 1, 0], [], []>} : vector<128x32xf32>, vector<128x32xf32>, vector<128x128xf32> -> vector<128x128xf32>
    %c1_107 = arith.constant 1 : index
    %c0_108 = arith.constant 0 : index
    %c0_109 = arith.constant 0 : index
    %c0_110 = arith.constant 0 : index
    %285 = vector.load %arg3[%c1_107, %c0_108, %c0_109, %c0_110] : memref<2x2x128x128xf32, #tpu.memory_space<vmem>>, vector<1x1x128x128xf32>
    %286 = vector.shape_cast %285 : vector<1x1x128x128xf32> to vector<128x128xf32>
    %287 = arith.addf %284, %286 : vector<128x128xf32>
    %cst_111 = arith.constant dense<0xFF800000> : vector<128xf32>
    %288 = vector.multi_reduction <maximumf>, %287, %cst_111 [1] : vector<128x128xf32> to vector<128xf32>
    %289 = vector.shape_cast %288 : vector<128xf32> to vector<128x1xf32>
    %290 = vector.broadcast %289 : vector<128x1xf32> to vector<128x128xf32>
    %291 = arith.subf %287, %290 : vector<128x128xf32>
    %292 = math.exp %291 : vector<128x128xf32>
    %cst_112 = arith.constant dense<0.000000e+00> : vector<128xf32>
    %293 = vector.multi_reduction <add>, %292, %cst_112 [1] : vector<128x128xf32> to vector<128xf32>
    %294 = vector.shape_cast %293 : vector<128xf32> to vector<128x1xf32>
    %295 = tpu.reciprocal %294 {approx = true} : vector<128x1xf32> -> vector<128x1xf32>
    %296 = vector.broadcast %295 : vector<128x1xf32> to vector<128x128xf32>
    %297 = arith.mulf %292, %296 : vector<128x128xf32>
    %cst_113 = arith.constant dense<0.000000e+00> : vector<128x32xf32>
    %298 = tpu.matmul %297, %283, %cst_113 {dimension_numbers = #tpu.dot_dimension_numbers<[1], [0], [0], [1], [0, 0, 1, 1], [], []>} : vector<128x128xf32>, vector<128x32xf32>, vector<128x32xf32> -> vector<128x32xf32>
    %c1_114 = arith.constant 1 : index
    %c0_115 = arith.constant 0 : index
    %c0_116 = arith.constant 0 : index
    %c0_117 = arith.constant 0 : index
    %299 = vector.load %arg8[%c1_114, %c0_115, %c0_116, %c0_117] : memref<2x2x32x64xf32, #tpu.memory_space<vmem>>, vector<1x1x32x64xf32>
    %300 = vector.shape_cast %299 : vector<1x1x32x64xf32> to vector<32x64xf32>
    %cst_118 = arith.constant dense<0.000000e+00> : vector<128x64xf32>
    %301 = tpu.matmul %298, %300, %cst_118 {dimension_numbers = #tpu.dot_dimension_numbers<[1], [0], [0], [1], [0, 0, 1, 1], [], []>} : vector<128x32xf32>, vector<32x64xf32>, vector<128x64xf32> -> vector<128x64xf32>
    %302 = arith.addf %280, %301 : vector<128x64xf32>
    %303 = vector.extract_strided_slice %276 {offsets = [0, 96], sizes = [128, 32], strides = [1, 1]} : vector<128x192xf32> to vector<128x32xf32>
    %304 = vector.extract_strided_slice %276 {offsets = [0, 128], sizes = [128, 32], strides = [1, 1]} : vector<128x192xf32> to vector<128x32xf32>
    %305 = vector.extract_strided_slice %276 {offsets = [0, 160], sizes = [128, 32], strides = [1, 1]} : vector<128x192xf32> to vector<128x32xf32>
    %cst_119 = arith.constant dense<0.000000e+00> : vector<128x128xf32>
    %306 = tpu.matmul %303, %304, %cst_119 {dimension_numbers = #tpu.dot_dimension_numbers<[1], [1], [0], [0], [0, 0, 1, 0], [], []>} : vector<128x32xf32>, vector<128x32xf32>, vector<128x128xf32> -> vector<128x128xf32>
    %c1_120 = arith.constant 1 : index
    %c1_121 = arith.constant 1 : index
    %c0_122 = arith.constant 0 : index
    %c0_123 = arith.constant 0 : index
    %307 = vector.load %arg3[%c1_120, %c1_121, %c0_122, %c0_123] : memref<2x2x128x128xf32, #tpu.memory_space<vmem>>, vector<1x1x128x128xf32>
    %308 = vector.shape_cast %307 : vector<1x1x128x128xf32> to vector<128x128xf32>
    %309 = arith.addf %306, %308 : vector<128x128xf32>
    %cst_124 = arith.constant dense<0xFF800000> : vector<128xf32>
    %310 = vector.multi_reduction <maximumf>, %309, %cst_124 [1] : vector<128x128xf32> to vector<128xf32>
    %311 = vector.shape_cast %310 : vector<128xf32> to vector<128x1xf32>
    %312 = vector.broadcast %311 : vector<128x1xf32> to vector<128x128xf32>
    %313 = arith.subf %309, %312 : vector<128x128xf32>
    %314 = math.exp %313 : vector<128x128xf32>
    %cst_125 = arith.constant dense<0.000000e+00> : vector<128xf32>
    %315 = vector.multi_reduction <add>, %314, %cst_125 [1] : vector<128x128xf32> to vector<128xf32>
    %316 = vector.shape_cast %315 : vector<128xf32> to vector<128x1xf32>
    %317 = tpu.reciprocal %316 {approx = true} : vector<128x1xf32> -> vector<128x1xf32>
    %318 = vector.broadcast %317 : vector<128x1xf32> to vector<128x128xf32>
    %319 = arith.mulf %314, %318 : vector<128x128xf32>
    %cst_126 = arith.constant dense<0.000000e+00> : vector<128x32xf32>
    %320 = tpu.matmul %319, %305, %cst_126 {dimension_numbers = #tpu.dot_dimension_numbers<[1], [0], [0], [1], [0, 0, 1, 1], [], []>} : vector<128x128xf32>, vector<128x32xf32>, vector<128x32xf32> -> vector<128x32xf32>
    %c1_127 = arith.constant 1 : index
    %c1_128 = arith.constant 1 : index
    %c0_129 = arith.constant 0 : index
    %c0_130 = arith.constant 0 : index
    %321 = vector.load %arg8[%c1_127, %c1_128, %c0_129, %c0_130] : memref<2x2x32x64xf32, #tpu.memory_space<vmem>>, vector<1x1x32x64xf32>
    %322 = vector.shape_cast %321 : vector<1x1x32x64xf32> to vector<32x64xf32>
    %cst_131 = arith.constant dense<0.000000e+00> : vector<128x64xf32>
    %323 = tpu.matmul %320, %322, %cst_131 {dimension_numbers = #tpu.dot_dimension_numbers<[1], [0], [0], [1], [0, 0, 1, 1], [], []>} : vector<128x32xf32>, vector<32x64xf32>, vector<128x64xf32> -> vector<128x64xf32>
    %324 = arith.addf %302, %323 : vector<128x64xf32>
    %c1_132 = arith.constant 1 : index
    %c0_133 = arith.constant 0 : index
    %c0_134 = arith.constant 0 : index
    %c0_135 = arith.constant 0 : index
    %325 = vector.load %arg10[%c1_132, %c0_133, %c0_134, %c0_135] : memref<2x9x1x64xf32, #tpu.memory_space<vmem>>, vector<1x9x1x64xf32>
    %326 = vector.shape_cast %325 : vector<1x9x1x64xf32> to vector<9x1x64xf32>
    %cst_136 = arith.constant 0.000000e+00 : f32
    %327 = vector.broadcast %cst_136 : f32 to vector<128x64xf32>
    %328 = vector.extract_strided_slice %324 {offsets = [119, 0], sizes = [9, 64], strides = [1, 1]} : vector<128x64xf32> to vector<9x64xf32>
    %329 = vector.extract_strided_slice %324 {offsets = [0, 0], sizes = [119, 64], strides = [1, 1]} : vector<128x64xf32> to vector<119x64xf32>
    %330 = tpu.concatenate %328, %329 in 0 : vector<9x64xf32>, vector<119x64xf32> -> vector<128x64xf32>
    %331 = vector.extract_strided_slice %0 {offsets = [0, 0, 0], sizes = [1, 128, 1], strides = [1, 1, 1]} : vector<9x128x1xf32> to vector<1x128x1xf32>
    %332 = vector.shape_cast %331 : vector<1x128x1xf32> to vector<128x1xf32>
    %333 = vector.extract_strided_slice %326 {offsets = [0, 0, 0], sizes = [1, 1, 64], strides = [1, 1, 1]} : vector<9x1x64xf32> to vector<1x1x64xf32>
    %334 = vector.shape_cast %333 : vector<1x1x64xf32> to vector<1x64xf32>
    %335 = vector.broadcast %332 : vector<128x1xf32> to vector<128x64xf32>
    %336 = vector.broadcast %334 : vector<1x64xf32> to vector<128x64xf32>
    %337 = arith.mulf %335, %336 : vector<128x64xf32>
    %338 = arith.mulf %330, %337 : vector<128x64xf32>
    %339 = arith.addf %327, %338 : vector<128x64xf32>
    %340 = vector.extract_strided_slice %324 {offsets = [120, 0], sizes = [8, 64], strides = [1, 1]} : vector<128x64xf32> to vector<8x64xf32>
    %341 = vector.extract_strided_slice %324 {offsets = [0, 0], sizes = [120, 64], strides = [1, 1]} : vector<128x64xf32> to vector<120x64xf32>
    %342 = tpu.concatenate %340, %341 in 0 : vector<8x64xf32>, vector<120x64xf32> -> vector<128x64xf32>
    %343 = vector.extract_strided_slice %0 {offsets = [1, 0, 0], sizes = [1, 128, 1], strides = [1, 1, 1]} : vector<9x128x1xf32> to vector<1x128x1xf32>
    %344 = vector.shape_cast %343 : vector<1x128x1xf32> to vector<128x1xf32>
    %345 = vector.extract_strided_slice %326 {offsets = [1, 0, 0], sizes = [1, 1, 64], strides = [1, 1, 1]} : vector<9x1x64xf32> to vector<1x1x64xf32>
    %346 = vector.shape_cast %345 : vector<1x1x64xf32> to vector<1x64xf32>
    %347 = vector.broadcast %344 : vector<128x1xf32> to vector<128x64xf32>
    %348 = vector.broadcast %346 : vector<1x64xf32> to vector<128x64xf32>
    %349 = arith.mulf %347, %348 : vector<128x64xf32>
    %350 = arith.mulf %342, %349 : vector<128x64xf32>
    %351 = arith.addf %339, %350 : vector<128x64xf32>
    %352 = vector.extract_strided_slice %324 {offsets = [121, 0], sizes = [7, 64], strides = [1, 1]} : vector<128x64xf32> to vector<7x64xf32>
    %353 = vector.extract_strided_slice %324 {offsets = [0, 0], sizes = [121, 64], strides = [1, 1]} : vector<128x64xf32> to vector<121x64xf32>
    %354 = tpu.concatenate %352, %353 in 0 : vector<7x64xf32>, vector<121x64xf32> -> vector<128x64xf32>
    %355 = vector.extract_strided_slice %0 {offsets = [2, 0, 0], sizes = [1, 128, 1], strides = [1, 1, 1]} : vector<9x128x1xf32> to vector<1x128x1xf32>
    %356 = vector.shape_cast %355 : vector<1x128x1xf32> to vector<128x1xf32>
    %357 = vector.extract_strided_slice %326 {offsets = [2, 0, 0], sizes = [1, 1, 64], strides = [1, 1, 1]} : vector<9x1x64xf32> to vector<1x1x64xf32>
    %358 = vector.shape_cast %357 : vector<1x1x64xf32> to vector<1x64xf32>
    %359 = vector.broadcast %356 : vector<128x1xf32> to vector<128x64xf32>
    %360 = vector.broadcast %358 : vector<1x64xf32> to vector<128x64xf32>
    %361 = arith.mulf %359, %360 : vector<128x64xf32>
    %362 = arith.mulf %354, %361 : vector<128x64xf32>
    %363 = arith.addf %351, %362 : vector<128x64xf32>
    %364 = vector.extract_strided_slice %324 {offsets = [127, 0], sizes = [1, 64], strides = [1, 1]} : vector<128x64xf32> to vector<1x64xf32>
    %365 = vector.extract_strided_slice %324 {offsets = [0, 0], sizes = [127, 64], strides = [1, 1]} : vector<128x64xf32> to vector<127x64xf32>
    %366 = tpu.concatenate %364, %365 in 0 : vector<1x64xf32>, vector<127x64xf32> -> vector<128x64xf32>
    %367 = vector.extract_strided_slice %0 {offsets = [3, 0, 0], sizes = [1, 128, 1], strides = [1, 1, 1]} : vector<9x128x1xf32> to vector<1x128x1xf32>
    %368 = vector.shape_cast %367 : vector<1x128x1xf32> to vector<128x1xf32>
    %369 = vector.extract_strided_slice %326 {offsets = [3, 0, 0], sizes = [1, 1, 64], strides = [1, 1, 1]} : vector<9x1x64xf32> to vector<1x1x64xf32>
    %370 = vector.shape_cast %369 : vector<1x1x64xf32> to vector<1x64xf32>
    %371 = vector.broadcast %368 : vector<128x1xf32> to vector<128x64xf32>
    %372 = vector.broadcast %370 : vector<1x64xf32> to vector<128x64xf32>
    %373 = arith.mulf %371, %372 : vector<128x64xf32>
    %374 = arith.mulf %366, %373 : vector<128x64xf32>
    %375 = arith.addf %363, %374 : vector<128x64xf32>
    %376 = vector.extract_strided_slice %0 {offsets = [4, 0, 0], sizes = [1, 128, 1], strides = [1, 1, 1]} : vector<9x128x1xf32> to vector<1x128x1xf32>
    %377 = vector.shape_cast %376 : vector<1x128x1xf32> to vector<128x1xf32>
    %378 = vector.extract_strided_slice %326 {offsets = [4, 0, 0], sizes = [1, 1, 64], strides = [1, 1, 1]} : vector<9x1x64xf32> to vector<1x1x64xf32>
    %379 = vector.shape_cast %378 : vector<1x1x64xf32> to vector<1x64xf32>
    %380 = vector.broadcast %377 : vector<128x1xf32> to vector<128x64xf32>
    %381 = vector.broadcast %379 : vector<1x64xf32> to vector<128x64xf32>
    %382 = arith.mulf %380, %381 : vector<128x64xf32>
    %383 = arith.mulf %324, %382 : vector<128x64xf32>
    %384 = arith.addf %375, %383 : vector<128x64xf32>
    %385 = vector.extract_strided_slice %324 {offsets = [1, 0], sizes = [127, 64], strides = [1, 1]} : vector<128x64xf32> to vector<127x64xf32>
    %386 = vector.extract_strided_slice %324 {offsets = [0, 0], sizes = [1, 64], strides = [1, 1]} : vector<128x64xf32> to vector<1x64xf32>
    %387 = tpu.concatenate %385, %386 in 0 : vector<127x64xf32>, vector<1x64xf32> -> vector<128x64xf32>
    %388 = vector.extract_strided_slice %0 {offsets = [5, 0, 0], sizes = [1, 128, 1], strides = [1, 1, 1]} : vector<9x128x1xf32> to vector<1x128x1xf32>
    %389 = vector.shape_cast %388 : vector<1x128x1xf32> to vector<128x1xf32>
    %390 = vector.extract_strided_slice %326 {offsets = [5, 0, 0], sizes = [1, 1, 64], strides = [1, 1, 1]} : vector<9x1x64xf32> to vector<1x1x64xf32>
    %391 = vector.shape_cast %390 : vector<1x1x64xf32> to vector<1x64xf32>
    %392 = vector.broadcast %389 : vector<128x1xf32> to vector<128x64xf32>
    %393 = vector.broadcast %391 : vector<1x64xf32> to vector<128x64xf32>
    %394 = arith.mulf %392, %393 : vector<128x64xf32>
    %395 = arith.mulf %387, %394 : vector<128x64xf32>
    %396 = arith.addf %384, %395 : vector<128x64xf32>
    %397 = vector.extract_strided_slice %324 {offsets = [7, 0], sizes = [121, 64], strides = [1, 1]} : vector<128x64xf32> to vector<121x64xf32>
    %398 = vector.extract_strided_slice %324 {offsets = [0, 0], sizes = [7, 64], strides = [1, 1]} : vector<128x64xf32> to vector<7x64xf32>
    %399 = tpu.concatenate %397, %398 in 0 : vector<121x64xf32>, vector<7x64xf32> -> vector<128x64xf32>
    %400 = vector.extract_strided_slice %0 {offsets = [6, 0, 0], sizes = [1, 128, 1], strides = [1, 1, 1]} : vector<9x128x1xf32> to vector<1x128x1xf32>
    %401 = vector.shape_cast %400 : vector<1x128x1xf32> to vector<128x1xf32>
    %402 = vector.extract_strided_slice %326 {offsets = [6, 0, 0], sizes = [1, 1, 64], strides = [1, 1, 1]} : vector<9x1x64xf32> to vector<1x1x64xf32>
    %403 = vector.shape_cast %402 : vector<1x1x64xf32> to vector<1x64xf32>
    %404 = vector.broadcast %401 : vector<128x1xf32> to vector<128x64xf32>
    %405 = vector.broadcast %403 : vector<1x64xf32> to vector<128x64xf32>
    %406 = arith.mulf %404, %405 : vector<128x64xf32>
    %407 = arith.mulf %399, %406 : vector<128x64xf32>
    %408 = arith.addf %396, %407 : vector<128x64xf32>
    %409 = vector.extract_strided_slice %324 {offsets = [8, 0], sizes = [120, 64], strides = [1, 1]} : vector<128x64xf32> to vector<120x64xf32>
    %410 = vector.extract_strided_slice %324 {offsets = [0, 0], sizes = [8, 64], strides = [1, 1]} : vector<128x64xf32> to vector<8x64xf32>
    %411 = tpu.concatenate %409, %410 in 0 : vector<120x64xf32>, vector<8x64xf32> -> vector<128x64xf32>
    %412 = vector.extract_strided_slice %0 {offsets = [7, 0, 0], sizes = [1, 128, 1], strides = [1, 1, 1]} : vector<9x128x1xf32> to vector<1x128x1xf32>
    %413 = vector.shape_cast %412 : vector<1x128x1xf32> to vector<128x1xf32>
    %414 = vector.extract_strided_slice %326 {offsets = [7, 0, 0], sizes = [1, 1, 64], strides = [1, 1, 1]} : vector<9x1x64xf32> to vector<1x1x64xf32>
    %415 = vector.shape_cast %414 : vector<1x1x64xf32> to vector<1x64xf32>
    %416 = vector.broadcast %413 : vector<128x1xf32> to vector<128x64xf32>
    %417 = vector.broadcast %415 : vector<1x64xf32> to vector<128x64xf32>
    %418 = arith.mulf %416, %417 : vector<128x64xf32>
    %419 = arith.mulf %411, %418 : vector<128x64xf32>
    %420 = arith.addf %408, %419 : vector<128x64xf32>
    %421 = vector.extract_strided_slice %324 {offsets = [9, 0], sizes = [119, 64], strides = [1, 1]} : vector<128x64xf32> to vector<119x64xf32>
    %422 = vector.extract_strided_slice %324 {offsets = [0, 0], sizes = [9, 64], strides = [1, 1]} : vector<128x64xf32> to vector<9x64xf32>
    %423 = tpu.concatenate %421, %422 in 0 : vector<119x64xf32>, vector<9x64xf32> -> vector<128x64xf32>
    %424 = vector.extract_strided_slice %0 {offsets = [8, 0, 0], sizes = [1, 128, 1], strides = [1, 1, 1]} : vector<9x128x1xf32> to vector<1x128x1xf32>
    %425 = vector.shape_cast %424 : vector<1x128x1xf32> to vector<128x1xf32>
    %426 = vector.extract_strided_slice %326 {offsets = [8, 0, 0], sizes = [1, 1, 64], strides = [1, 1, 1]} : vector<9x1x64xf32> to vector<1x1x64xf32>
    %427 = vector.shape_cast %426 : vector<1x1x64xf32> to vector<1x64xf32>
    %428 = vector.broadcast %425 : vector<128x1xf32> to vector<128x64xf32>
    %429 = vector.broadcast %427 : vector<1x64xf32> to vector<128x64xf32>
    %430 = arith.mulf %428, %429 : vector<128x64xf32>
    %431 = arith.mulf %423, %430 : vector<128x64xf32>
    %432 = arith.addf %420, %431 : vector<128x64xf32>
    %c1_137 = arith.constant 1 : index
    %c0_138 = arith.constant 0 : index
    %c0_139 = arith.constant 0 : index
    %433 = vector.load %arg11[%c1_137, %c0_138, %c0_139] : memref<2x1x64xf32, #tpu.memory_space<vmem>>, vector<1x1x64xf32>
    %434 = vector.shape_cast %433 : vector<1x1x64xf32> to vector<1x64xf32>
    %435 = vector.broadcast %434 : vector<1x64xf32> to vector<128x64xf32>
    %436 = arith.addf %432, %435 : vector<128x64xf32>
    %cst_140 = arith.constant dense<0.000000e+00> : vector<128xf32>
    %437 = vector.multi_reduction <add>, %436, %cst_140 [1] : vector<128x64xf32> to vector<128xf32>
    %438 = vector.shape_cast %437 : vector<128xf32> to vector<128x1xf32>
    %cst_141 = arith.constant 6.400000e+01 : f32
    %439 = vector.broadcast %cst_141 : f32 to vector<128x1xf32>
    %440 = arith.divf %438, %439 : vector<128x1xf32>
    %441 = vector.broadcast %440 : vector<128x1xf32> to vector<128x64xf32>
    %442 = arith.subf %436, %441 : vector<128x64xf32>
    %443 = arith.mulf %442, %442 : vector<128x64xf32>
    %cst_142 = arith.constant dense<0.000000e+00> : vector<128xf32>
    %444 = vector.multi_reduction <add>, %443, %cst_142 [1] : vector<128x64xf32> to vector<128xf32>
    %445 = vector.shape_cast %444 : vector<128xf32> to vector<128x1xf32>
    %cst_143 = arith.constant 6.400000e+01 : f32
    %446 = vector.broadcast %cst_143 : f32 to vector<128x1xf32>
    %447 = arith.divf %445, %446 : vector<128x1xf32>
    %448 = vector.broadcast %440 : vector<128x1xf32> to vector<128x64xf32>
    %449 = arith.subf %436, %448 : vector<128x64xf32>
    %cst_144 = arith.constant 9.99999974E-6 : f32
    %450 = vector.broadcast %cst_144 : f32 to vector<128x1xf32>
    %451 = arith.addf %447, %450 : vector<128x1xf32>
    %452 = math.rsqrt %451 : vector<128x1xf32>
    %453 = vector.broadcast %452 : vector<128x1xf32> to vector<128x64xf32>
    %454 = arith.mulf %449, %453 : vector<128x64xf32>
    %c1_145 = arith.constant 1 : index
    %c0_146 = arith.constant 0 : index
    %c0_147 = arith.constant 0 : index
    %455 = vector.load %arg12[%c1_145, %c0_146, %c0_147] : memref<2x1x64xf32, #tpu.memory_space<vmem>>, vector<1x1x64xf32>
    %456 = vector.shape_cast %455 : vector<1x1x64xf32> to vector<1x64xf32>
    %457 = vector.broadcast %456 : vector<1x64xf32> to vector<128x64xf32>
    %458 = arith.mulf %454, %457 : vector<128x64xf32>
    %c1_148 = arith.constant 1 : index
    %c0_149 = arith.constant 0 : index
    %c0_150 = arith.constant 0 : index
    %459 = vector.load %arg13[%c1_148, %c0_149, %c0_150] : memref<2x1x64xf32, #tpu.memory_space<vmem>>, vector<1x1x64xf32>
    %460 = vector.shape_cast %459 : vector<1x1x64xf32> to vector<1x64xf32>
    %461 = vector.broadcast %460 : vector<1x64xf32> to vector<128x64xf32>
    %462 = arith.addf %458, %461 : vector<128x64xf32>
    %c1_151 = arith.constant 1 : index
    %c0_152 = arith.constant 0 : index
    %c0_153 = arith.constant 0 : index
    %463 = vector.load %arg14[%c1_151, %c0_152, %c0_153] : memref<2x64x256xf32, #tpu.memory_space<vmem>>, vector<1x64x256xf32>
    %464 = vector.shape_cast %463 : vector<1x64x256xf32> to vector<64x256xf32>
    %cst_154 = arith.constant dense<0.000000e+00> : vector<128x256xf32>
    %465 = tpu.matmul %462, %464, %cst_154 {dimension_numbers = #tpu.dot_dimension_numbers<[1], [0], [0], [1], [0, 0, 1, 1], [], []>} : vector<128x64xf32>, vector<64x256xf32>, vector<128x256xf32> -> vector<128x256xf32>
    %c1_155 = arith.constant 1 : index
    %c0_156 = arith.constant 0 : index
    %c0_157 = arith.constant 0 : index
    %466 = vector.load %arg15[%c1_155, %c0_156, %c0_157] : memref<2x1x256xf32, #tpu.memory_space<vmem>>, vector<1x1x256xf32>
    %467 = vector.shape_cast %466 : vector<1x1x256xf32> to vector<1x256xf32>
    %468 = vector.broadcast %467 : vector<1x256xf32> to vector<128x256xf32>
    %469 = arith.addf %465, %468 : vector<128x256xf32>
    %cst_158 = arith.constant 5.000000e-01 : f32
    %470 = vector.broadcast %cst_158 : f32 to vector<128x256xf32>
    %471 = arith.mulf %470, %469 : vector<128x256xf32>
    %cst_159 = arith.constant 0.707106769 : f32
    %472 = vector.broadcast %cst_159 : f32 to vector<128x256xf32>
    %473 = arith.mulf %469, %472 : vector<128x256xf32>
    %474 = math.erf %473 : vector<128x256xf32>
    %cst_160 = arith.constant 1.000000e+00 : f32
    %475 = vector.broadcast %cst_160 : f32 to vector<128x256xf32>
    %476 = arith.addf %475, %474 : vector<128x256xf32>
    %477 = arith.mulf %471, %476 : vector<128x256xf32>
    %c1_161 = arith.constant 1 : index
    %c0_162 = arith.constant 0 : index
    %c0_163 = arith.constant 0 : index
    %478 = vector.load %arg16[%c1_161, %c0_162, %c0_163] : memref<2x256x64xf32, #tpu.memory_space<vmem>>, vector<1x256x64xf32>
    %479 = vector.shape_cast %478 : vector<1x256x64xf32> to vector<256x64xf32>
    %cst_164 = arith.constant dense<0.000000e+00> : vector<128x64xf32>
    %480 = tpu.matmul %477, %479, %cst_164 {dimension_numbers = #tpu.dot_dimension_numbers<[1], [0], [0], [1], [0, 0, 1, 1], [], []>} : vector<128x256xf32>, vector<256x64xf32>, vector<128x64xf32> -> vector<128x64xf32>
    %481 = arith.addf %436, %480 : vector<128x64xf32>
    %c1_165 = arith.constant 1 : index
    %c0_166 = arith.constant 0 : index
    %c0_167 = arith.constant 0 : index
    %482 = vector.load %arg17[%c1_165, %c0_166, %c0_167] : memref<2x1x64xf32, #tpu.memory_space<vmem>>, vector<1x1x64xf32>
    %483 = vector.shape_cast %482 : vector<1x1x64xf32> to vector<1x64xf32>
    %484 = vector.broadcast %483 : vector<1x64xf32> to vector<128x64xf32>
    %485 = arith.addf %481, %484 : vector<128x64xf32>
    %c0_168 = arith.constant 0 : index
    %c0_169 = arith.constant 0 : index
    %486 = vector.load %arg18[%c0_168, %c0_169] : memref<128x64xf32, #tpu.memory_space<vmem>>, vector<128x64xf32>
    tpu.vector_store %arg18[%c0_168, %c0_169], %485 {strides = array<i32>} : memref<128x64xf32, #tpu.memory_space<vmem>>, vector<128x64xf32>,
    return
  }
  func.func @transform_0(%arg0: i32) -> (i32, i32) {
    %c0_i32 = arith.constant 0 : i32
    %c0_i32_0 = arith.constant 0 : i32
    %c0_i32_1 = arith.constant 0 : i32
    return %c0_i32, %c0_i32_0 : i32, i32
  }
  func.func @transform_1(%arg0: i32) -> (i32, i32, i32) {
    %c0_i32 = arith.constant 0 : i32
    %c0_i32_0 = arith.constant 0 : i32
    %c0_i32_1 = arith.constant 0 : i32
    %c0_i32_2 = arith.constant 0 : i32
    return %c0_i32, %c0_i32_0, %c0_i32_1 : i32, i32, i32
  }
  func.func @transform_2(%arg0: i32) -> (i32, i32, i32, i32) {
    %c0_i32 = arith.constant 0 : i32
    %c0_i32_0 = arith.constant 0 : i32
    %c0_i32_1 = arith.constant 0 : i32
    %c0_i32_2 = arith.constant 0 : i32
    %c0_i32_3 = arith.constant 0 : i32
    return %c0_i32, %c0_i32_0, %c0_i32_1, %c0_i32_2 : i32, i32, i32, i32
  }
  func.func @transform_3(%arg0: i32) -> (i32, i32, i32) {
    %c0_i32 = arith.constant 0 : i32
    %c0_i32_0 = arith.constant 0 : i32
    %c0_i32_1 = arith.constant 0 : i32
    %c0_i32_2 = arith.constant 0 : i32
    return %c0_i32, %c0_i32_0, %c0_i32_1 : i32, i32, i32
  }
  func.func @transform_4(%arg0: i32) -> (i32, i32, i32) {
    %c0_i32 = arith.constant 0 : i32
    %c0_i32_0 = arith.constant 0 : i32
    %c0_i32_1 = arith.constant 0 : i32
    %c0_i32_2 = arith.constant 0 : i32
    return %c0_i32, %c0_i32_0, %c0_i32_1 : i32, i32, i32
  }
  func.func @transform_5(%arg0: i32) -> (i32, i32, i32) {
    %c0_i32 = arith.constant 0 : i32
    %c0_i32_0 = arith.constant 0 : i32
    %c0_i32_1 = arith.constant 0 : i32
    %c0_i32_2 = arith.constant 0 : i32
    return %c0_i32, %c0_i32_0, %c0_i32_1 : i32, i32, i32
  }
  func.func @transform_6(%arg0: i32) -> (i32, i32, i32) {
    %c0_i32 = arith.constant 0 : i32
    %c0_i32_0 = arith.constant 0 : i32
    %c0_i32_1 = arith.constant 0 : i32
    %c0_i32_2 = arith.constant 0 : i32
    return %c0_i32, %c0_i32_0, %c0_i32_1 : i32, i32, i32
  }
  func.func @transform_7(%arg0: i32) -> (i32, i32, i32, i32) {
    %c0_i32 = arith.constant 0 : i32
    %c0_i32_0 = arith.constant 0 : i32
    %c0_i32_1 = arith.constant 0 : i32
    %c0_i32_2 = arith.constant 0 : i32
    %c0_i32_3 = arith.constant 0 : i32
    return %c0_i32, %c0_i32_0, %c0_i32_1, %c0_i32_2 : i32, i32, i32, i32
  }
  func.func @transform_8(%arg0: i32) -> (i32, i32, i32) {
    %c0_i32 = arith.constant 0 : i32
    %c0_i32_0 = arith.constant 0 : i32
    %c0_i32_1 = arith.constant 0 : i32
    %c0_i32_2 = arith.constant 0 : i32
    return %c0_i32, %c0_i32_0, %c0_i32_1 : i32, i32, i32
  }
  func.func @transform_9(%arg0: i32) -> (i32, i32, i32, i32) {
    %c0_i32 = arith.constant 0 : i32
    %c0_i32_0 = arith.constant 0 : i32
    %c0_i32_1 = arith.constant 0 : i32
    %c0_i32_2 = arith.constant 0 : i32
    %c0_i32_3 = arith.constant 0 : i32
    return %c0_i32, %c0_i32_0, %c0_i32_1, %c0_i32_2 : i32, i32, i32, i32
  }
  func.func @transform_10(%arg0: i32) -> (i32, i32, i32) {
    %c0_i32 = arith.constant 0 : i32
    %c0_i32_0 = arith.constant 0 : i32
    %c0_i32_1 = arith.constant 0 : i32
    %c0_i32_2 = arith.constant 0 : i32
    return %c0_i32, %c0_i32_0, %c0_i32_1 : i32, i32, i32
  }
  func.func @transform_11(%arg0: i32) -> (i32, i32, i32) {
    %c0_i32 = arith.constant 0 : i32
    %c0_i32_0 = arith.constant 0 : i32
    %c0_i32_1 = arith.constant 0 : i32
    %c0_i32_2 = arith.constant 0 : i32
    return %c0_i32, %c0_i32_0, %c0_i32_1 : i32, i32, i32
  }
  func.func @transform_12(%arg0: i32) -> (i32, i32, i32) {
    %c0_i32 = arith.constant 0 : i32
    %c0_i32_0 = arith.constant 0 : i32
    %c0_i32_1 = arith.constant 0 : i32
    %c0_i32_2 = arith.constant 0 : i32
    return %c0_i32, %c0_i32_0, %c0_i32_1 : i32, i32, i32
  }
  func.func @transform_13(%arg0: i32) -> (i32, i32, i32) {
    %c0_i32 = arith.constant 0 : i32
    %c0_i32_0 = arith.constant 0 : i32
    %c0_i32_1 = arith.constant 0 : i32
    %c0_i32_2 = arith.constant 0 : i32
    return %c0_i32, %c0_i32_0, %c0_i32_1 : i32, i32, i32
  }
  func.func @transform_14(%arg0: i32) -> (i32, i32, i32) {
    %c0_i32 = arith.constant 0 : i32
    %c0_i32_0 = arith.constant 0 : i32
    %c0_i32_1 = arith.constant 0 : i32
    %c0_i32_2 = arith.constant 0 : i32
    return %c0_i32, %c0_i32_0, %c0_i32_1 : i32, i32, i32
  }
  func.func @transform_15(%arg0: i32) -> (i32, i32, i32) {
    %c0_i32 = arith.constant 0 : i32
    %c0_i32_0 = arith.constant 0 : i32
    %c0_i32_1 = arith.constant 0 : i32
    %c0_i32_2 = arith.constant 0 : i32
    return %c0_i32, %c0_i32_0, %c0_i32_1 : i32, i32, i32
  }
  func.func @transform_16(%arg0: i32) -> (i32, i32, i32) {
    %c0_i32 = arith.constant 0 : i32
    %c0_i32_0 = arith.constant 0 : i32
    %c0_i32_1 = arith.constant 0 : i32
    %c0_i32_2 = arith.constant 0 : i32
    return %c0_i32, %c0_i32_0, %c0_i32_1 : i32, i32, i32
  }
  func.func @transform_17(%arg0: i32) -> (i32, i32) {
    %c0_i32 = arith.constant 0 : i32
    %c0_i32_0 = arith.constant 0 : i32
    %c0_i32_1 = arith.constant 0 : i32
    return %c0_i32, %c0_i32_0 : i32, i32
  }
}

</mosaic_0001>

<bundles_post_ra>
// kernel: basic_layer_forward.1
= control target key start
LH: loop header
LB: loop body
LE: loop exit
PB: predicated region body
PF: predicated region fallthrough
CT: control target
= control target key end

     0   :  { %s17166_s0 = inlined_call_operand.vmem [shape: f32[128,64], index: 0, kind: input, shape index: {}]   ;;  %s17167_s1 = inlined_call_operand.vmem [shape: f32[9,128,1], index: 1, kind: input, shape index: {}]   ;;  %s17168_s2 = inlined_call_operand.vmem [shape: f32[2,2,128,128], index: 2, kind: input, shape index: {}]   ;;  %s17169_s3 = inlined_call_operand.vmem [shape: f32[2,1,64], index: 3, kind: input, shape index: {}]   ;;  %s17170_s4 = inlined_call_operand.vmem [shape: f32[2,1,64], index: 4, kind: input, shape index: {}]   ;;  %s17171_s5 = inlined_call_operand.vmem [shape: f32[2,64,192], index: 5, kind: input, shape index: {}]   ;;  %s17172_s6 = inlined_call_operand.vmem [shape: f32[2,1,192], index: 6, kind: input, shape index: {}]   ;;  %s17173_s7 = inlined_call_operand.vmem [shape: f32[2,2,32,64], index: 7, kind: input, shape index: {}]   ;;  %s17174_s8 = inlined_call_operand.vmem [shape: f32[2,1,64], index: 8, kind: input, shape index: {}]   ;;  %s17175_s9 = inlined_call_operand.vmem [shape: f32[2,9,1,64], index: 9, kind: input, shape index: {}]   ;;  %s17176_s10 = inlined_call_operand.vmem [shape: f32[2,1,64], index: 10, kind: input, shape index: {}]   ;;  %s17177_s11 = inlined_call_operand.vmem [shape: f32[2,1,64], index: 11, kind: input, shape index: {}]   ;;  %s17178_s12 = inlined_call_operand.vmem [shape: f32[2,1,64], index: 12, kind: input, shape index: {}]   ;;  %s17179_s13 = inlined_call_operand.vmem [shape: f32[2,64,256], index: 13, kind: input, shape index: {}]   ;;  %s17180_s14 = inlined_call_operand.vmem [shape: f32[2,1,256], index: 14, kind: input, shape index: {}]   ;;  %s17181_s15 = inlined_call_operand.vmem [shape: f32[2,256,64], index: 15, kind: input, shape index: {}]   ;;  %s17182_s16 = inlined_call_operand.vmem [shape: f32[2,1,64], index: 16, kind: input, shape index: {}]   ;;  %s17183_s17 = inlined_call_operand.hbm [shape: f32[128,64], index: 17, kind: output, shape index: {}]  }
   0x1   :  { %17421 = sst [smem:[#allocation264_spill]] %s17166_s0 }
   0x2   :  { %17422 = sst [smem:[#allocation265_spill]] %s17167_s1 }
   0x3   :  { %s17423_s26 = sld [smem:[#allocation264_spill]]  ;;  %vm217_vm0 = vcmask 523264  }
   0x9   :  { %v201_v0 = vld [vmem:[%s17423_s26] sm:$0xff]  ;;  %v203_v1 = vld [vmem:[%s17423_s26 + $0x10] sm:$0xff]  ;;  %v202_v2 = vld [vmem:[%s17423_s26 + $0x8] sm:$0xff] }
   0xa   :  { %v218_v3 = vsel %vm217_vm0, %v201_v0, 0.0  ;;  %v224_v4 = vsel %vm217_vm0, %v203_v1, 0.0  ;;  %v204_v5 = vld [vmem:[%s17423_s26 + $0x18] sm:$0xff]  ;;  %v221_v6 = vsel %vm217_vm0, %v202_v2, 0.0  ;;  %v205_v8 = vld [vmem:[%s17423_s26 + $0x20] sm:$0xff]  ;;  %v206_v9 = vld [vmem:[%s17423_s26 + $0x28] sm:$0xff] }
   0xb   :  { %219 = vadd.xlane.f32.xlu0 %v218_v3  ;;  %225 = vadd.xlane.f32.xlu1 %v224_v4  ;;  %v227_v7 = vsel %vm217_vm0, %v204_v5, 0.0 }
   0xc   :  { %22 = vsyncpa [#allocation3], 0  ;;  %v230_v10 = vsel %vm217_vm0, %v205_v8, 0.0  ;;  %v233_v11 = vsel %vm217_vm0, %v206_v9, 0.0  ;;  %v10535_v12 = vld [vmem:[%s17423_s26 + $0x30] sm:$0xff]  ;;  %v10540_v13 = vld [vmem:[%s17423_s26 + $0x38] sm:$0xff] }
   0xd   :  { %v236_v14 = vsel %vm217_vm0, %v10535_v12, 0.0  ;;  %v239_v15 = vsel %vm217_vm0, %v10540_v13, 0.0  ;;  %v10549_v16 = vld [vmem:[%s17423_s26 + $0x40] sm:$0xff]  ;;  %v10554_v17 = vld [vmem:[%s17423_s26 + $0x48] sm:$0xff]  ;;  %v10563_v20 = vld [vmem:[%s17423_s26 + $0x50] sm:$0xff]  ;;  %vm797_vm1 = vcmask 261120  }
   0xe   :  { %v242_v18 = vsel %vm217_vm0, %v10549_v16, 0.0  ;;  %v245_v19 = vsel %vm217_vm0, %v10554_v17, 0.0  ;;  %v10568_v21 = vld [vmem:[%s17423_s26 + $0x58] sm:$0xff]  ;;  %v248_v22 = vsel %vm217_vm0, %v10563_v20, 0.0  ;;  %v10577_v24 = vld [vmem:[%s17423_s26 + $0x60] sm:$0xff]  ;;  %v10582_v25 = vld [vmem:[%s17423_s26 + $0x68] sm:$0xff] }
   0xf   :  { %222 = vadd.xlane.f32.xlu0 %v221_v6  ;;  %228 = vadd.xlane.f32.xlu1 %v227_v7  ;;  %v251_v23 = vsel %vm217_vm0, %v10568_v21, 0.0  ;;  %v254_v26 = vsel %vm217_vm0, %v10577_v24, 0.0  ;;  %v257_v27 = vsel %vm217_vm0, %v10582_v25, 0.0  ;;  %v10591_v28 = vld [vmem:[%s17423_s26 + $0x70] sm:$0xff]  ;;  %v10596_v29 = vld [vmem:[%s17423_s26 + $0x78] sm:$0xff]  ;;  %s10411_s24 = smov 96  }
  0x10   :  { %v260_v30 = vsel %vm217_vm0, %v10591_v28, 0.0  ;;  %v263_v31 = vsel %vm217_vm0, %v10596_v29, 0.0  ;;  %s10412_s25 = smov 64   ;;  %s10413_s20 = smov 32   ;;  %vm2393_vm2 = vcmask 1040384   ;;  %vm2727_vm3 = vcmask 1046528  }
  0x11   :  { %s17447_s19 = sld [smem:[#allocation265_spill]] }
  0x13   :  { %231 = vadd.xlane.f32.xlu0 %v230_v10  ;;  %234 = vadd.xlane.f32.xlu1 %v233_v11 }
  0x17   :  { %237 = vadd.xlane.f32.xlu0 %v236_v14  ;;  %240 = vadd.xlane.f32.xlu1 %v239_v15 }
  0x1b   :  { %243 = vadd.xlane.f32.xlu0 %v242_v18  ;;  %246 = vadd.xlane.f32.xlu1 %v245_v19 }
  0x1f   :  { %249 = vadd.xlane.f32.xlu0 %v248_v22  ;;  %252 = vadd.xlane.f32.xlu1 %v251_v23 }
  0x23   :  { %255 = vadd.xlane.f32.xlu0 %v254_v26  ;;  %258 = vadd.xlane.f32.xlu1 %v257_v27 }
  0x27   :  { %261 = vadd.xlane.f32.xlu0 %v260_v30  ;;  %264 = vadd.xlane.f32.xlu1 %v263_v31 }
  0x94   :  { %v220_v32 = vpop.xlane.xlu0 %219  ;;  %v226_v33 = vpop.xlane.xlu1 %225 }
  0x95   :  { %v267_v34 = vmul.f32 0.015625, %v220_v32  ;;  %v269_v35 = vmul.f32 0.015625, %v226_v33 }
  0x97   :  { %v10602_v36 = vsub.f32 %v201_v0, %v267_v34  ;;  %v10604_v37 = vsub.f32 %v203_v1, %v269_v35 }
  0x98   :  { %v223_v38 = vpop.xlane.xlu0 %222  ;;  %v229_v39 = vpop.xlane.xlu1 %228 }
  0x99   :  { %v268_v40 = vmul.f32 0.015625, %v223_v38  ;;  %v270_v41 = vmul.f32 0.015625, %v229_v39  ;;  %v299_v42 = vmul.f32 %v10602_v36, %v10602_v36  ;;  %v301_v43 = vmul.f32 %v10604_v37, %v10604_v37 }
  0x9b   :  { %v10610_v44 = vsub.f32 %v202_v2, %v268_v40  ;;  %v10612_v45 = vsub.f32 %v204_v5, %v270_v41  ;;  %v315_v46 = vsel %vm217_vm0, %v299_v42, 0.0  ;;  %v321_v49 = vsel %vm217_vm0, %v301_v43, 0.0  ;;  %v487_v40 = vld [vmem:[%s17171_s5 + $0x70] sm:$0xff] }
  0x9c   :  { %316 = vadd.xlane.f32.xlu0 %v315_v46  ;;  %v232_v47 = vpop.xlane.xlu0 %231  ;;  %v235_v48 = vpop.xlane.xlu1 %234 }
  0x9d   :  { %v271_v50 = vmul.f32 0.015625, %v232_v47  ;;  %v272_v51 = vmul.f32 0.015625, %v235_v48  ;;  %v300_v52 = vmul.f32 %v10610_v44, %v10610_v44  ;;  %v302_v53 = vmul.f32 %v10612_v45, %v10612_v45 }
  0x9f   :  { %v10620_v54 = vsub.f32 %v205_v8, %v271_v50  ;;  %v10622_v55 = vsub.f32 %v206_v9, %v272_v51  ;;  %v318_v56 = vsel %vm217_vm0, %v300_v52, 0.0  ;;  %v324_v59 = vsel %vm217_vm0, %v302_v53, 0.0  ;;  %v484_v50 = vld [vmem:[%s17171_s5 + $0x58] sm:$0xff] }
  0xa0   :  { %322 = vadd.xlane.f32.xlu0 %v321_v49  ;;  %319 = vadd.xlane.f32.xlu1 %v318_v56  ;;  %v238_v57 = vpop.xlane.xlu0 %237  ;;  %v241_v58 = vpop.xlane.xlu1 %240  ;;  %v485_v49 = vld [vmem:[%s17171_s5 + $0x60] sm:$0xff]  ;;  %v483_v56 = vld [vmem:[%s17171_s5 + $0x50] sm:$0xff] }
  0xa1   :  { %v273_v60 = vmul.f32 0.015625, %v238_v57  ;;  %v274_v61 = vmul.f32 0.015625, %v241_v58  ;;  %v303_v62 = vmul.f32 %v10620_v54, %v10620_v54  ;;  %v304_v63 = vmul.f32 %v10622_v55, %v10622_v55  ;;  %v482_v57 = vld [vmem:[%s17171_s5 + $0x48] sm:$0xff] }
  0xa3   :  { %v10631_v0 = vsub.f32 %v10535_v12, %v273_v60  ;;  %v10634_v1 = vsub.f32 %v10540_v13, %v274_v61  ;;  %v327_v2 = vsel %vm217_vm0, %v303_v62, 0.0  ;;  %v330_v5 = vsel %vm217_vm0, %v304_v63, 0.0  ;;  %v480_v61 = vld [vmem:[%s17171_s5 + $0x38] sm:$0xff]  ;;  %v479_v62 = vld [vmem:[%s17171_s5 + $0x30] sm:$0xff] }
  0xa4   :  { %325 = vadd.xlane.f32.xlu1 %v324_v59  ;;  %328 = vadd.xlane.f32.xlu0 %v327_v2  ;;  %v244_v3 = vpop.xlane.xlu0 %243  ;;  %v247_v4 = vpop.xlane.xlu1 %246  ;;  %v481_v59 = vld [vmem:[%s17171_s5 + $0x40] sm:$0xff]  ;;  %v478_v2 = vld [vmem:[%s17171_s5 + $0x28] sm:$0xff] }
  0xa5   :  { %v275_v6 = vmul.f32 0.015625, %v244_v3  ;;  %v276_v7 = vmul.f32 0.015625, %v247_v4  ;;  %v305_v8 = vmul.f32 %v10631_v0, %v10631_v0  ;;  %v306_v9 = vmul.f32 %v10634_v1, %v10634_v1  ;;  %v477_v3 = vld [vmem:[%s17171_s5 + $0x20] sm:$0xff]  ;;  %v476_v4 = vld [vmem:[%s17171_s5 + $0x18] sm:$0xff] }
  0xa7   :  { %v10643_v10 = vsub.f32 %v10549_v16, %v275_v6  ;;  %v10646_v11 = vsub.f32 %v10554_v17, %v276_v7  ;;  %v333_v12 = vsel %vm217_vm0, %v305_v8, 0.0  ;;  %v336_v15 = vsel %vm217_vm0, %v306_v9, 0.0  ;;  %v474_v6 = vld [vmem:[%s17171_s5 + $0x8] sm:$0xff]  ;;  %v473_v7 = vld [vmem:[%s17171_s5] sm:$0xff] }
  0xa8   :  { %331 = vadd.xlane.f32.xlu1 %v330_v5  ;;  %334 = vadd.xlane.f32.xlu0 %v333_v12  ;;  %v250_v13 = vpop.xlane.xlu0 %249  ;;  %v253_v14 = vpop.xlane.xlu1 %252  ;;  %v475_v5 = vld [vmem:[%s17171_s5 + $0x10] sm:$0xff]  ;;  %v17186_v8 = vmov 0.0  }
  0xa9   :  { %v277_v18 = vmul.f32 0.015625, %v250_v13  ;;  %v278_v19 = vmul.f32 0.015625, %v253_v14  ;;  %v307_v22 = vmul.f32 %v10643_v10, %v10643_v10  ;;  %v308_v16 = vmul.f32 %v10646_v11, %v10646_v11  ;;  %613 = vmatprep.mubr.f32.mxu0 %v17186_v8 }
  0xab   :  { %v10655_v23 = vsub.f32 %v10563_v20, %v277_v18  ;;  %v10658_v17 = vsub.f32 %v10568_v21, %v278_v19  ;;  %v339_v26 = vsel %vm217_vm0, %v307_v22, 0.0  ;;  %v342_v31 = vsel %vm217_vm0, %v308_v16, 0.0  ;;  %v488_v21 = vld [vmem:[%s17171_s5 + $0x78] sm:$0xff] }
  0xac   :  { %337 = vadd.xlane.f32.xlu1 %v336_v15  ;;  %340 = vadd.xlane.f32.xlu0 %v339_v26  ;;  %v256_v27 = vpop.xlane.xlu0 %255  ;;  %v259_v30 = vpop.xlane.xlu1 %258 }
  0xad   :  { %v279_v32 = vmul.f32 0.015625, %v256_v27  ;;  %v280_v33 = vmul.f32 0.015625, %v259_v30  ;;  %v309_v34 = vmul.f32 %v10655_v23, %v10655_v23  ;;  %v310_v20 = vmul.f32 %v10658_v17, %v10658_v17  ;;  %565 = vmatprep.subr.mxu0 %v488_v21 }
  0xae   :  { %566 = vmatpush1.msra.mxu0 %v487_v40 }
  0xaf   :  { %v10670_v35 = vsub.f32 %v10577_v24, %v279_v32  ;;  %v10673_v38 = vsub.f32 %v10582_v25, %v280_v33  ;;  %v345_v39 = vsel %vm217_vm0, %v309_v34, 0.0  ;;  %v348_v43 = vsel %vm217_vm0, %v310_v20, 0.0  ;;  %v486_v24 = vld [vmem:[%s17171_s5 + $0x68] sm:$0xff] }
  0xb0   :  { %343 = vadd.xlane.f32.xlu1 %v342_v31  ;;  %346 = vadd.xlane.f32.xlu0 %v345_v39  ;;  %v262_v41 = vpop.xlane.xlu0 %261  ;;  %v265_v42 = vpop.xlane.xlu1 %264 }
  0xb1   :  { %v281_v46 = vmul.f32 0.015625, %v262_v41  ;;  %v282_v25 = vmul.f32 0.015625, %v265_v42  ;;  %v311_v47 = vmul.f32 %v10670_v35, %v10670_v35  ;;  %v312_v48 = vmul.f32 %v10673_v38, %v10673_v38  ;;  %567 = vmatprep.subr.mxu0 %v486_v24 }
  0xb2   :  { %568 = vmatpush1.msra.mxu0 %v485_v49 }
  0xb3   :  { %v10694_v51 = vsub.f32 %v10591_v28, %v281_v46  ;;  %v10697_v52 = vsub.f32 %v10596_v29, %v282_v25  ;;  %v351_v53 = vsel %vm217_vm0, %v311_v47, 0.0  ;;  %v354_v58 = vsel %vm217_vm0, %v312_v48, 0.0  ;;  %569 = vmatprep.subr.mxu0 %v484_v50  ;;  %v10750_v48 = vld [vmem:[%s17170_s4] ss:$0 sm:$0xff] }
  0xb4   :  { %349 = vadd.xlane.f32.xlu1 %v348_v43  ;;  %352 = vadd.xlane.f32.xlu0 %v351_v53  ;;  %v10744_v43 = vld [vmem:[%s17169_s3] ss:$0 sm:$0xff] }
  0xb5   :  { %v313_v28 = vmul.f32 %v10694_v51, %v10694_v51  ;;  %v314_v29 = vmul.f32 %v10697_v52, %v10697_v52  ;;  %570 = vmatpush1.msra.mxu0 %v483_v56 }
  0xb6   :  { %571 = vmatprep.subr.mxu0 %v482_v57 }
  0xb7   :  { %v357_v60 = vsel %vm217_vm0, %v313_v28, 0.0  ;;  %v360_v63 = vsel %vm217_vm0, %v314_v29, 0.0  ;;  %572 = vmatpush1.msra.mxu0 %v481_v59 }
  0xb8   :  { %355 = vadd.xlane.f32.xlu1 %v354_v58  ;;  %358 = vadd.xlane.f32.xlu0 %v357_v60 }
  0xb9   :  { %573 = vmatprep.subr.mxu0 %v480_v61 }
  0xba   :  { %574 = vmatpush1.msra.mxu0 %v479_v62 }
  0xbb   :  { %575 = vmatprep.subr.mxu0 %v478_v2 }
  0xbc   :  { %361 = vadd.xlane.f32.xlu1 %v360_v63  ;;  %576 = vmatpush1.msra.mxu0 %v477_v3 }
  0xbd   :  { %577 = vmatprep.subr.mxu0 %v476_v4 }
  0xbe   :  { %578 = vmatpush1.msra.mxu0 %v475_v5 }
  0xbf   :  { %579 = vmatprep.subr.mxu0 %v474_v6 }
  0xc0   :  { %580 = vmatpush1.msra.mxu0 %v473_v7 }
 0x125   :  { %v317_v9 = vpop.xlane.xlu0 %316 }
 0x126   :  { %v363_v12 = vmul.f32 0.015625, %v317_v9 }
 0x128   :  { %v379_v13 = vadd.f32 1e-05, %v363_v12 }
 0x129   :  { %v320_v14 = vpop.xlane.xlu1 %319  ;;  %v323_v15 = vpop.xlane.xlu0 %322 }
 0x12a   :  { %9855 = vrsqrt.f32 %v379_v13  ;;  %v364_v18 = vmul.f32 0.015625, %v320_v14  ;;  %v365_v19 = vmul.f32 0.015625, %v323_v15 }
 0x12c   :  { %v380_v22 = vadd.f32 1e-05, %v364_v18  ;;  %v381_v16 = vadd.f32 1e-05, %v365_v19 }
 0x12d   :  { %v326_v26 = vpop.xlane.xlu1 %325  ;;  %v329_v27 = vpop.xlane.xlu0 %328 }
 0x12e   :  { %9857 = vrsqrt.f32 %v380_v22  ;;  %v366_v30 = vmul.f32 0.015625, %v326_v26  ;;  %v367_v31 = vmul.f32 0.015625, %v329_v27 }
 0x12f   :  { %9859 = vrsqrt.f32 %v381_v16 }
 0x130   :  { %v382_v32 = vadd.f32 1e-05, %v366_v30  ;;  %v383_v33 = vadd.f32 1e-05, %v367_v31 }
 0x131   :  { %v332_v34 = vpop.xlane.xlu1 %331  ;;  %v335_v20 = vpop.xlane.xlu0 %334 }
 0x132   :  { %9861 = vrsqrt.f32 %v382_v32  ;;  %v368_v21 = vmul.f32 0.015625, %v332_v34  ;;  %v369_v40 = vmul.f32 0.015625, %v335_v20 }
 0x133   :  { %9863 = vrsqrt.f32 %v383_v33 }
 0x134   :  { %v384_v39 = vadd.f32 1e-05, %v368_v21  ;;  %v385_v24 = vadd.f32 1e-05, %v369_v40 }
 0x135   :  { %v338_v41 = vpop.xlane.xlu1 %337  ;;  %v341_v25 = vpop.xlane.xlu0 %340 }
 0x136   :  { %9865 = vrsqrt.f32 %v384_v39  ;;  %v370_v46 = vmul.f32 0.015625, %v338_v41  ;;  %v371_v53 = vmul.f32 0.015625, %v341_v25 }
 0x137   :  { %v9856_v42 = vpop.eup %9855  ;;  %9867 = vrsqrt.f32 %v385_v24 }
 0x138   :  { %v411_v47 = vmul.f32 %v9856_v42, %v10602_v36  ;;  %v386_v57 = vadd.f32 1e-05, %v370_v46  ;;  %v387_v61 = vadd.f32 1e-05, %v371_v53 }
 0x139   :  { %v344_v58 = vpop.xlane.xlu1 %343  ;;  %v347_v63 = vpop.xlane.xlu0 %346 }
 0x13a   :  { %v434_v49 = vmul.f32 %v10744_v43, %v411_v47  ;;  %v372_v62 = vmul.f32 0.015625, %v344_v58  ;;  %9869 = vrsqrt.f32 %v386_v57  ;;  %v373_v5 = vmul.f32 0.015625, %v347_v63 }
 0x13b   :  { %v9858_v50 = vpop.eup %9857  ;;  %9871 = vrsqrt.f32 %v387_v61 }
 0x13c   :  { %v9860_v56 = vpop.eup %9859  ;;  %v457_v28 = vadd.f32 %v10750_v48, %v434_v49  ;;  %v412_v29 = vmul.f32 %v9858_v50, %v10610_v44 }
 0x13d   :  { %v413_v59 = vmul.f32 %v9860_v56, %v10604_v37  ;;  %v388_v37 = vadd.f32 1e-05, %v372_v62  ;;  %v350_v13 = vpop.xlane.xlu1 %349  ;;  %v353_v15 = vpop.xlane.xlu0 %352 }
 0x13e   :  { %8313 = vmatmul.mubr.msk.f32.vlgmr.msra.gmra.mxu0 %vm217_vm0, %v457_v28  ;;  %v435_v36 = vmul.f32 %v10744_v43, %v412_v29  ;;  %v374_v14 = vmul.f32 0.015625, %v350_v13 }
 0x13f   :  { %v9862_v60 = vpop.eup %9861  ;;  %619 = vmatprep.mubr.f32.mxu0 %v17186_v8  ;;  %v436_v3 = vmul.f32 %v10744_v43, %v413_v59  ;;  %9873 = vrsqrt.f32 %v388_v37 }
 0x140   :  { %v458_v2 = vadd.f32 %v10750_v48, %v435_v36  ;;  %v414_v4 = vmul.f32 %v9862_v60, %v10612_v45  ;;  %v9864_v44 = vpop.eup %9863  ;;  %v389_v45 = vadd.f32 1e-05, %v373_v5  ;;  %v390_v26 = vadd.f32 1e-05, %v374_v14 }
 0x141   :  { %v459_v6 = vadd.f32 %v10750_v48, %v436_v3  ;;  %v415_v9 = vmul.f32 %v9864_v44, %v10620_v54  ;;  %v375_v54 = vmul.f32 0.015625, %v353_v15  ;;  %v356_v27 = vpop.xlane.xlu1 %355  ;;  %v359_v20 = vpop.xlane.xlu0 %358  ;;  %v491_v14 = vlaneseq }
 0x142   :  { %8314 = vmatmul.mubr.msk.f32.gmra.mxu0 %vm217_vm0, %v458_v2  ;;  %v437_v7 = vmul.f32 %v10744_v43, %v414_v4  ;;  %9875 = vrsqrt.f32 %v389_v45 }
 0x143   :  { %625 = vmatprep.mubr.f32.mxu0 %v17186_v8  ;;  %v9866_v12 = vpop.eup %9865  ;;  %v438_v19 = vmul.f32 %v10744_v43, %v415_v9  ;;  %v391_v34 = vadd.f32 1e-05, %v375_v54  ;;  %9877 = vrsqrt.f32 %v390_v26  ;;  %v10830_v15 = vshrl.u32 %v491_v14, 7 }
 0x144   :  { %v460_v18 = vadd.f32 %v10750_v48, %v437_v7  ;;  %v416_v22 = vmul.f32 %v9866_v12, %v10622_v55  ;;  %v9868_v16 = vpop.eup %9867  ;;  %v376_v55 = vmul.f32 0.015625, %v356_v27 }
 0x145   :  { %v461_v30 = vadd.f32 %v10750_v48, %v438_v19  ;;  %v417_v32 = vmul.f32 %v9868_v16, %v10631_v0  ;;  %v377_v0 = vmul.f32 0.015625, %v359_v20  ;;  %9879 = vrsqrt.f32 %v391_v34  ;;  %v362_v49 = vpop.xlane.xlu1 %361 }
 0x146   :  { %8315 = vmatmul.mubr.msk.f32.gmra.mxu0 %vm217_vm0, %v459_v6  ;;  %v439_v31 = vmul.f32 %v10744_v43, %v416_v22  ;;  %v392_v42 = vadd.f32 1e-05, %v376_v55  ;;  %v378_v53 = vmul.f32 0.015625, %v362_v49 }
 0x147   :  { %631 = vmatprep.mubr.f32.mxu0 %v17186_v8  ;;  %v9870_v33 = vpop.eup %9869  ;;  %v440_v39 = vmul.f32 %v10744_v43, %v417_v32 }
 0x148   :  { %v462_v21 = vadd.f32 %v10750_v48, %v439_v31  ;;  %v418_v40 = vmul.f32 %v9870_v33, %v10634_v1  ;;  %v9872_v41 = vpop.eup %9871  ;;  %9881 = vrsqrt.f32 %v392_v42  ;;  %v393_v1 = vadd.f32 1e-05, %v377_v0 }
 0x149   :  { %v463_v46 = vadd.f32 %v10750_v48, %v440_v39  ;;  %v419_v47 = vmul.f32 %v9872_v41, %v10643_v10  ;;  %v394_v10 = vadd.f32 1e-05, %v378_v53 }
 0x14a   :  { %8316 = vmatmul.mubr.msk.f32.gmra.mxu0 %vm217_vm0, %v460_v18  ;;  %v441_v25 = vmul.f32 %v10744_v43, %v418_v40  ;;  %9883 = vrsqrt.f32 %v393_v1  ;;  %v10838_v18 = vld [vmem:[%s17172_s6] sm:$0x3] }
 0x14b   :  { %637 = vmatprep.mubr.f32.mxu0 %v17186_v8  ;;  %v442_v57 = vmul.f32 %v10744_v43, %v419_v47  ;;  %9885 = vrsqrt.f32 %v394_v10 }
 0x14c   :  { %v9874_v24 = vpop.eup %9873  ;;  %v464_v56 = vadd.f32 %v10750_v48, %v441_v25 }
 0x14d   :  { %v420_v58 = vmul.f32 %v9874_v24, %v10646_v11  ;;  %v465_v28 = vadd.f32 %v10750_v48, %v442_v57 }
 0x14e   :  { %8317 = vmatmul.mubr.msk.f32.gmra.mxu0 %vm217_vm0, %v461_v30 }
 0x14f   :  { %643 = vmatprep.mubr.f32.mxu0 %v17186_v8  ;;  %v9876_v50 = vpop.eup %9875  ;;  %v443_v29 = vmul.f32 %v10744_v43, %v420_v58 }
 0x150   :  { %v421_v59 = vmul.f32 %v9876_v50, %v10655_v23  ;;  %v9878_v36 = vpop.eup %9877 }
 0x151   :  { %v466_v11 = vadd.f32 %v10750_v48, %v443_v29  ;;  %v422_v61 = vmul.f32 %v9878_v36, %v10658_v17 }
 0x152   :  { %8318 = vmatmul.mubr.msk.f32.gmra.mxu0 %vm217_vm0, %v462_v21  ;;  %v444_v60 = vmul.f32 %v10744_v43, %v421_v59  ;;  %v9880_v62 = vpop.eup %9879 }
 0x153   :  { %649 = vmatprep.mubr.f32.mxu0 %v17186_v8  ;;  %v445_v2 = vmul.f32 %v10744_v43, %v422_v61  ;;  %v423_v3 = vmul.f32 %v9880_v62, %v10670_v35 }
 0x154   :  { %v467_v23 = vadd.f32 %v10750_v48, %v444_v60 }
 0x155   :  { %v9882_v63 = vpop.eup %9881  ;;  %v468_v44 = vadd.f32 %v10750_v48, %v445_v2  ;;  %v446_v17 = vmul.f32 %v10744_v43, %v423_v3 }
 0x156   :  { %8319 = vmatmul.mubr.msk.f32.gmra.mxu0 %vm217_vm0, %v463_v46  ;;  %v424_v37 = vmul.f32 %v9882_v63, %v10673_v38 }
 0x157   :  { %655 = vmatprep.mubr.f32.mxu0 %v17186_v8  ;;  %v9884_v4 = vpop.eup %9883  ;;  %v469_v5 = vadd.f32 %v10750_v48, %v446_v17 }
 0x158   :  { %v447_v6 = vmul.f32 %v10744_v43, %v424_v37  ;;  %v425_v35 = vmul.f32 %v9884_v4, %v10694_v51  ;;  %v9886_v7 = vpop.eup %9885 }
 0x159   :  { %v426_v38 = vmul.f32 %v9886_v7, %v10697_v52  ;;  %v10833_v52 = vsub.s32 0, %v10830_v15 }
 0x15a   :  { %8320 = vmatmul.mubr.msk.f32.gmra.mxu0 %vm217_vm0, %v464_v56  ;;  %v470_v9 = vadd.f32 %v10750_v48, %v447_v6  ;;  %v448_v12 = vmul.f32 %v10744_v43, %v425_v35 }
 0x15b   :  { %661 = vmatprep.mubr.f32.mxu0 %v17186_v8  ;;  %v449_v45 = vmul.f32 %v10744_v43, %v426_v38  ;;  %17424 = vst [vmem:[#allocation5_spill] sm:$0xff] %v10833_v52  ;;  %v494_v43 = vrot.slane %v10838_v18, %v10833_v52 }
 0x15c   :  { %v471_v13 = vadd.f32 %v10750_v48, %v448_v12 }
 0x15d   :  { %v472_v51 = vadd.f32 %v10750_v48, %v449_v45 }
 0x15e   :  { %8321 = vmatmul.mubr.msk.f32.gmra.mxu0 %vm217_vm0, %v465_v28 }
 0x15f   :  { %667 = vmatprep.mubr.f32.mxu0 %v17186_v8 }
 0x162   :  { %8322 = vmatmul.mubr.msk.f32.gmra.mxu0 %vm217_vm0, %v466_v11 }
 0x163   :  { %673 = vmatprep.mubr.f32.mxu0 %v17186_v8 }
 0x166   :  { %8323 = vmatmul.mubr.msk.f32.gmra.mxu0 %vm217_vm0, %v467_v23 }
 0x167   :  { %679 = vmatprep.mubr.f32.mxu0 %v17186_v8 }
 0x16a   :  { %8324 = vmatmul.mubr.msk.f32.gmra.mxu0 %vm217_vm0, %v468_v44 }
 0x16b   :  { %685 = vmatprep.mubr.f32.mxu0 %v17186_v8 }
 0x16e   :  { %8325 = vmatmul.mubr.msk.f32.gmra.mxu0 %vm217_vm0, %v469_v5 }
 0x16f   :  { %691 = vmatprep.mubr.f32.mxu0 %v17186_v8 }
 0x172   :  { %8326 = vmatmul.mubr.msk.f32.gmra.mxu0 %vm217_vm0, %v470_v9 }
 0x173   :  { %697 = vmatprep.mubr.f32.mxu0 %v17186_v8 }
 0x176   :  { %8327 = vmatmul.mubr.msk.f32.gmra.mxu0 %vm217_vm0, %v471_v13 }
 0x177   :  { %703 = vmatprep.mubr.f32.mxu0 %v17186_v8 }
 0x17a   :  { %8328 = vmatmul.mubr.msk.f32.gmra.mxu0 %vm217_vm0, %v472_v51 }
 0x1fe   :  { %v615_v19 = vpop.f32.mrf.mxu0 }
 0x1ff   :  { %v10842_v22 = vadd.f32 %v615_v19, %v494_v43 }
 0x200   :  { %v10844_v48 = vpop.f32.mrf.mxu0 }
 0x201   :  { %17425 = vst [vmem:[#allocation6_spill] sm:$0xff] %v10844_v48  ;;  %9269 = vmatprep.mubr.msk.f32.mxu1 %vm797_vm1, %v10842_v22 }
 0x202   :  { %v621_v16 = vpop.f32.mrf.mxu0 }
 0x203   :  { %v10848_v54 = vadd.f32 %v621_v16, %v494_v43 }
 0x204   :  { %v10850_v26 = vpop.f32.mrf.mxu0 }
 0x205   :  { %17426 = vst [vmem:[#allocation7_spill] sm:$0xff] %v10850_v26 }
 0x206   :  { %v627_v27 = vpop.f32.mrf.mxu0 }
 0x207   :  { %v10852_v30 = vadd.f32 %v627_v27, %v494_v43 }
 0x208   :  { %v10854_v31 = vpop.f32.mrf.mxu0 }
 0x209   :  { %17427 = vst [vmem:[#allocation8_spill] sm:$0xff] %v10854_v31 }
 0x20a   :  { %v633_v32 = vpop.f32.mrf.mxu0 }
 0x20b   :  { %v10856_v33 = vadd.f32 %v633_v32, %v494_v43 }
 0x20c   :  { %v10858_v34 = vpop.f32.mrf.mxu0 }
 0x20d   :  { %17428 = vst [vmem:[#allocation9_spill] sm:$0xff] %v10858_v34 }
 0x20e   :  { %v639_v55 = vpop.f32.mrf.mxu0 }
 0x20f   :  { %v10860_v20 = vadd.f32 %v639_v55, %v494_v43 }
 0x210   :  { %v10862_v21 = vpop.f32.mrf.mxu0 }
 0x211   :  { %17429 = vst [vmem:[#allocation10_spill] sm:$0xff] %v10862_v21 }
 0x212   :  { %v645_v39 = vpop.f32.mrf.mxu0 }
 0x213   :  { %v10920_v44 = vadd.f32 %v645_v39, %v494_v43 }
 0x214   :  { %v10864_v40 = vpop.f32.mrf.mxu0 }
 0x215   :  { %17430 = vst [vmem:[#allocation11_spill] sm:$0xff] %v10864_v40 }
 0x216   :  { %v651_v41 = vpop.f32.mrf.mxu0 }
 0x217   :  { %v10922_v17 = vadd.f32 %v651_v41, %v494_v43 }
 0x218   :  { %v10866_v42 = vpop.f32.mrf.mxu0 }
 0x219   :  { %17431 = vst [vmem:[#allocation12_spill] sm:$0xff] %v10866_v42 }
 0x21a   :  { %v657_v0 = vpop.f32.mrf.mxu0 }
 0x21b   :  { %v10912_v3 = vadd.f32 %v657_v0, %v494_v43 }
 0x21c   :  { %v10868_v24 = vpop.f32.mrf.mxu0 }
 0x21d   :  { %17432 = vst [vmem:[#allocation13_spill] sm:$0xff] %v10868_v24 }
 0x21e   :  { %v663_v46 = vpop.f32.mrf.mxu0 }
 0x21f   :  { %v10914_v4 = vadd.f32 %v663_v46, %v494_v43 }
 0x220   :  { %v10870_v25 = vpop.f32.mrf.mxu0 }
 0x222   :  { %v669_v47 = vpop.f32.mrf.mxu0 }
 0x223   :  { %v10904_v23 = vadd.f32 %v669_v47, %v494_v43 }
 0x224   :  { %v10872_v49 = vpop.f32.mrf.mxu0 }
 0x226   :  { %v675_v1 = vpop.f32.mrf.mxu0 }
 0x227   :  { %v10906_v2 = vadd.f32 %v675_v1, %v494_v43 }
 0x228   :  { %v10874_v50 = vpop.f32.mrf.mxu0 }
 0x22a   :  { %v681_v53 = vpop.f32.mrf.mxu0 }
 0x22b   :  { %v10896_v62 = vadd.f32 %v681_v53, %v494_v43 }
 0x22c   :  { %v10876_v56 = vpop.f32.mrf.mxu0 }
 0x22e   :  { %v687_v57 = vpop.f32.mrf.mxu0 }
 0x22f   :  { %v10898_v63 = vadd.f32 %v687_v57, %v494_v43 }
 0x230   :  { %v10878_v58 = vpop.f32.mrf.mxu0 }
 0x232   :  { %v693_v10 = vpop.f32.mrf.mxu0 }
 0x233   :  { %v10888_v60 = vadd.f32 %v693_v10, %v494_v43 }
 0x234   :  { %v10880_v28 = vpop.f32.mrf.mxu0 }
 0x236   :  { %v699_v29 = vpop.f32.mrf.mxu0 }
 0x237   :  { %v10882_v59 = vadd.f32 %v699_v29, %v494_v43 }
 0x238   :  { %v10884_v36 = vpop.f32.mrf.mxu0 }
 0x239   :  { %793 = vrot.lane.b32.xlu1 %v10882_v59, %s10411_s24 }
 0x23a   :  { %v705_v11 = vpop.f32.mrf.mxu0 }
 0x23b   :  { %v10890_v61 = vadd.f32 %v705_v11, %v494_v43  ;;  %v734_v11 = vld [vmem:[%s17168_s2 + $0x8] sm:$0xff] }
 0x23d   :  { %795 = vrot.lane.b32.xlu0 %v10890_v61, %s10411_s24  ;;  %791 = vrot.lane.b32.xlu1 %v10888_v60, %s10411_s24 }
 0x241   :  { %787 = vrot.lane.b32.xlu0 %v10896_v62, %s10411_s24  ;;  %789 = vrot.lane.b32.xlu1 %v10898_v63, %s10411_s24 }
 0x245   :  { %783 = vrot.lane.b32.xlu0 %v10904_v23, %s10411_s24  ;;  %785 = vrot.lane.b32.xlu1 %v10906_v2, %s10411_s24 }
 0x249   :  { %779 = vrot.lane.b32.xlu0 %v10912_v3, %s10411_s24  ;;  %781 = vrot.lane.b32.xlu1 %v10914_v4, %s10411_s24 }
 0x24d   :  { %775 = vrot.lane.b32.xlu0 %v10920_v44, %s10411_s24  ;;  %777 = vrot.lane.b32.xlu1 %v10922_v17, %s10411_s24 }
 0x251   :  { %771 = vrot.lane.b32.xlu0 %v10856_v33, %s10411_s24  ;;  %773 = vrot.lane.b32.xlu1 %v10860_v20, %s10411_s24 }
 0x255   :  { %767 = vrot.lane.b32.xlu0 %v10848_v54, %s10411_s24  ;;  %769 = vrot.lane.b32.xlu1 %v10852_v30, %s10411_s24 }
 0x259   :  { %1177 = vrot.lane.b32.xlu0 %v10888_v60, %s10412_s25  ;;  %765 = vrot.lane.b32.xlu1 %v10842_v22, %s10411_s24 }
 0x25d   :  { %1173 = vrot.lane.b32.xlu0 %v10896_v62, %s10412_s25  ;;  %1179 = vrot.lane.b32.xlu1 %v10882_v59, %s10412_s25 }
 0x261   :  { %1165 = vrot.lane.b32.xlu0 %v10912_v3, %s10412_s25  ;;  %1175 = vrot.lane.b32.xlu1 %v10898_v63, %s10412_s25 }
 0x265   :  { %1161 = vrot.lane.b32.xlu0 %v10920_v44, %s10412_s25  ;;  %1171 = vrot.lane.b32.xlu1 %v10906_v2, %s10412_s25 }
 0x269   :  { %1181 = vrot.lane.b32.xlu0 %v10890_v61, %s10412_s25  ;;  %1169 = vrot.lane.b32.xlu1 %v10904_v23, %s10412_s25 }
 0x26d   :  { %1167 = vrot.lane.b32.xlu1 %v10914_v4, %s10412_s25 }
 0x271   :  { %1163 = vrot.lane.b32.xlu1 %v10922_v17, %s10412_s25 }
 0x275   :  { %1159 = vrot.lane.b32.xlu1 %v10860_v20, %s10412_s25 }
 0x2ab   :  { %v794_v37 = vpop.permute.xlu1 %793 }
 0x2af   :  { %v796_v5 = vpop.permute.xlu0 %795  ;;  %v792_v6 = vpop.permute.xlu1 %791 }
 0x2b0   :  { %9237 = vmatprep.subr.msk.mxu1 %vm797_vm1, %v796_v5 }
 0x2b1   :  { %9238 = vmatpush3.xpose.msk.msra.mxu1 %vm797_vm1, %v796_v5  ;;  %v733_v5 = vld [vmem:[%s17168_s2] sm:$0xff] }
 0x2b2   :  { %9239 = vmatprep.subr.msk.mxu1 %vm797_vm1, %v794_v37 }
 0x2b3   :  { %v788_v35 = vpop.permute.xlu0 %787  ;;  %v790_v7 = vpop.permute.xlu1 %789 }
 0x2b5   :  { %9240 = vmatpush3.xpose.msk.msra.mxu1 %vm797_vm1, %v794_v37 }
 0x2b6   :  { %9241 = vmatprep.subr.msk.mxu1 %vm797_vm1, %v792_v6 }
 0x2b7   :  { %v784_v9 = vpop.permute.xlu0 %783  ;;  %v786_v12 = vpop.permute.xlu1 %785 }
 0x2b9   :  { %9242 = vmatpush3.xpose.msk.msra.mxu1 %vm797_vm1, %v792_v6 }
 0x2ba   :  { %9243 = vmatprep.subr.msk.mxu1 %vm797_vm1, %v790_v7 }
 0x2bb   :  { %v780_v38 = vpop.permute.xlu0 %779  ;;  %v782_v13 = vpop.permute.xlu1 %781 }
 0x2bd   :  { %9244 = vmatpush3.xpose.msk.msra.mxu1 %vm797_vm1, %v790_v7 }
 0x2be   :  { %9245 = vmatprep.subr.msk.mxu1 %vm797_vm1, %v788_v35 }
 0x2bf   :  { %v776_v45 = vpop.permute.xlu0 %775  ;;  %v778_v51 = vpop.permute.xlu1 %777 }
 0x2c1   :  { %9246 = vmatpush3.xpose.msk.msra.mxu1 %vm797_vm1, %v788_v35 }
 0x2c2   :  { %9247 = vmatprep.subr.msk.mxu1 %vm797_vm1, %v786_v12 }
 0x2c3   :  { %v772_v14 = vpop.permute.xlu0 %771  ;;  %v774_v43 = vpop.permute.xlu1 %773 }
 0x2c5   :  { %9248 = vmatpush3.xpose.msk.msra.mxu1 %vm797_vm1, %v786_v12 }
 0x2c6   :  { %9249 = vmatprep.subr.msk.mxu1 %vm797_vm1, %v784_v9 }
 0x2c7   :  { %v768_v19 = vpop.permute.xlu0 %767  ;;  %v770_v16 = vpop.permute.xlu1 %769 }
 0x2c9   :  { %9250 = vmatpush3.xpose.msk.msra.mxu1 %vm797_vm1, %v784_v9  ;;  %v736_v9 = vld [vmem:[%s17168_s2 + $0x18] sm:$0xff] }
 0x2ca   :  { %9251 = vmatprep.subr.msk.mxu1 %vm797_vm1, %v782_v13 }
 0x2cb   :  { %v1178_v27 = vpop.permute.xlu0 %1177  ;;  %v766_v32 = vpop.permute.xlu1 %765 }
 0x2cd   :  { %9252 = vmatpush3.xpose.msk.msra.mxu1 %vm797_vm1, %v782_v13  ;;  %v738_v13 = vld [vmem:[%s17168_s2 + $0x28] sm:$0xff] }
 0x2ce   :  { %9253 = vmatprep.subr.msk.mxu1 %vm797_vm1, %v780_v38 }
 0x2cf   :  { %v1174_v55 = vpop.permute.xlu0 %1173  ;;  %v1180_v39 = vpop.permute.xlu1 %1179 }
 0x2d1   :  { %9254 = vmatpush3.xpose.msk.msra.mxu1 %vm797_vm1, %v780_v38 }
 0x2d2   :  { %9255 = vmatprep.subr.msk.mxu1 %vm797_vm1, %v778_v51 }
 0x2d3   :  { %v1166_v41 = vpop.permute.xlu0 %1165  ;;  %v1176_v0 = vpop.permute.xlu1 %1175 }
 0x2d5   :  { %9256 = vmatpush3.xpose.msk.msra.mxu1 %vm797_vm1, %v778_v51 }
 0x2d6   :  { %9257 = vmatprep.subr.msk.mxu1 %vm797_vm1, %v776_v45 }
 0x2d7   :  { %v1162_v46 = vpop.permute.xlu0 %1161  ;;  %v1172_v47 = vpop.permute.xlu1 %1171 }
 0x2d9   :  { %9258 = vmatpush3.xpose.msk.msra.mxu1 %vm797_vm1, %v776_v45 }
 0x2da   :  { %9259 = vmatprep.subr.msk.mxu1 %vm797_vm1, %v774_v43 }
 0x2db   :  { %v1182_v1 = vpop.permute.xlu0 %1181  ;;  %v1170_v53 = vpop.permute.xlu1 %1169 }
 0x2dc   :  { %9293 = vmatprep.subr.mxu0 %v1182_v1 }
 0x2dd   :  { %9260 = vmatpush3.xpose.msk.msra.mxu1 %vm797_vm1, %v774_v43  ;;  %9294 = vmatpush3.msra.mxu0 %v1182_v1  ;;  %v739_v1 = vld [vmem:[%s17168_s2 + $0x30] sm:$0xff] }
 0x2de   :  { %9261 = vmatprep.subr.msk.mxu1 %vm797_vm1, %v772_v14  ;;  %9295 = vmatprep.subr.mxu0 %v1180_v39 }
 0x2df   :  { %9296 = vmatpush3.msra.mxu0 %v1180_v39  ;;  %v1168_v57 = vpop.permute.xlu1 %1167 }
 0x2e0   :  { %9297 = vmatprep.subr.mxu0 %v1178_v27 }
 0x2e1   :  { %9262 = vmatpush3.xpose.msk.msra.mxu1 %vm797_vm1, %v772_v14  ;;  %9298 = vmatpush3.msra.mxu0 %v1178_v27  ;;  %v735_v14 = vld [vmem:[%s17168_s2 + $0x10] sm:$0xff] }
 0x2e2   :  { %9263 = vmatprep.subr.msk.mxu1 %vm797_vm1, %v770_v16  ;;  %9299 = vmatprep.subr.mxu0 %v1176_v0 }
 0x2e3   :  { %9300 = vmatpush3.msra.mxu0 %v1176_v0  ;;  %v1164_v10 = vpop.permute.xlu1 %1163  ;;  %v742_v0 = vld [vmem:[%s17168_s2 + $0x48] sm:$0xff] }
 0x2e4   :  { %9301 = vmatprep.subr.mxu0 %v1174_v55 }
 0x2e5   :  { %9264 = vmatpush3.xpose.msk.msra.mxu1 %vm797_vm1, %v770_v16  ;;  %9302 = vmatpush3.msra.mxu0 %v1174_v55  ;;  %v740_v16 = vld [vmem:[%s17168_s2 + $0x38] sm:$0xff]  ;;  %v737_v55 = vld [vmem:[%s17168_s2 + $0x20] sm:$0xff] }
 0x2e6   :  { %9265 = vmatprep.subr.msk.mxu1 %vm797_vm1, %v768_v19  ;;  %9303 = vmatprep.subr.mxu0 %v1172_v47 }
 0x2e7   :  { %9304 = vmatpush3.msra.mxu0 %v1172_v47  ;;  %v1160_v29 = vpop.permute.xlu1 %1159 }
 0x2e8   :  { %9305 = vmatprep.subr.mxu0 %v1170_v53 }
 0x2e9   :  { %9266 = vmatpush3.xpose.msk.msra.mxu1 %vm797_vm1, %v768_v19  ;;  %9306 = vmatpush3.msra.mxu0 %v1170_v53 }
 0x2ea   :  { %9267 = vmatprep.subr.msk.mxu1 %vm797_vm1, %v766_v32  ;;  %9307 = vmatprep.subr.mxu0 %v1168_v57 }
 0x2eb   :  { %9308 = vmatpush3.msra.mxu0 %v1168_v57 }
 0x2ec   :  { %9309 = vmatprep.subr.mxu0 %v1166_v41 }
 0x2ed   :  { %9268 = vmatpush3.xpose.msk.msra.mxu1 %vm797_vm1, %v766_v32  ;;  %9310 = vmatpush3.msra.mxu0 %v1166_v41 }
 0x2ee   :  { %9311 = vmatprep.subr.mxu0 %v1164_v10 }
 0x2ef   :  { %9312 = vmatpush3.msra.mxu0 %v1164_v10  ;;  %v744_v10 = vld [vmem:[%s17168_s2 + $0x58] sm:$0xff] }
 0x2f0   :  { %9270 = vmatmul.mubr.msk.f32.vlgmr.msra.gmra.mxu1 %vm797_vm1, %v10848_v54  ;;  %9313 = vmatprep.subr.mxu0 %v1162_v46 }
 0x2f1   :  { %9272 = vmatprep.mubr.msk.f32.mxu1 %vm797_vm1, %v10852_v30  ;;  %9314 = vmatpush3.msra.mxu0 %v1162_v46 }
 0x2f2   :  { %9315 = vmatprep.subr.mxu0 %v1160_v29 }
 0x2f3   :  { %9316 = vmatpush3.msra.mxu0 %v1160_v29 }
 0x2f4   :  { %9273 = vmatmul.mubr.msk.f32.gmra.mxu1 %vm797_vm1, %v10856_v33 }
 0x2f5   :  { %9275 = vmatprep.mubr.msk.f32.mxu1 %vm797_vm1, %v10860_v20 }
 0x2f8   :  { %9276 = vmatmul.mubr.msk.f32.gmra.mxu1 %vm797_vm1, %v10920_v44 }
 0x2f9   :  { %9278 = vmatprep.mubr.msk.f32.mxu1 %vm797_vm1, %v10922_v17 }
 0x2fc   :  { %9279 = vmatmul.mubr.msk.f32.gmra.mxu1 %vm797_vm1, %v10912_v3 }
 0x2fd   :  { %9281 = vmatprep.mubr.msk.f32.mxu1 %vm797_vm1, %v10914_v4 }
 0x300   :  { %9282 = vmatmul.mubr.msk.f32.gmra.mxu1 %vm797_vm1, %v10904_v23 }
 0x301   :  { %9284 = vmatprep.mubr.msk.f32.mxu1 %vm797_vm1, %v10906_v2 }
 0x304   :  { %9285 = vmatmul.mubr.msk.f32.gmra.mxu1 %vm797_vm1, %v10896_v62 }
 0x305   :  { %9287 = vmatprep.mubr.msk.f32.mxu1 %vm797_vm1, %v10898_v63 }
 0x308   :  { %9288 = vmatmul.mubr.msk.f32.gmra.mxu1 %vm797_vm1, %v10888_v60 }
 0x309   :  { %9290 = vmatprep.mubr.msk.f32.mxu1 %vm797_vm1, %v10882_v59 }
 0x30c   :  { %9291 = vmatmul.mubr.msk.f32.gmra.mxu1 %vm797_vm1, %v10890_v61 }
 0x3b0   :  { %v9271_v37 = vpop.f32.mrf.mxu1 }
 0x3b1   :  { %v11030_v6 = vadd.f32 %v9271_v37, %v734_v11  ;;  %v741_v37 = vld [vmem:[%s17168_s2 + $0x40] sm:$0xff] }
 0x3b2   :  { %v928_v35 = vpop.f32.mrf.mxu1 }
 0x3b3   :  { %1009 = vmax.xlane.f32.xlu1 %v11030_v6  ;;  %v11033_v7 = vadd.f32 %v928_v35, %v733_v5 }
 0x3b4   :  { %v9274_v12 = vpop.f32.mrf.mxu1 }
 0x3b5   :  { %1007 = vmax.xlane.f32.xlu0 %v11033_v7  ;;  %v11042_v45 = vadd.f32 %v9274_v12, %v736_v9  ;;  %v746_v9 = vld [vmem:[%s17168_s2 + $0x68] sm:$0xff] }
 0x3b6   :  { %v938_v38 = vpop.f32.mrf.mxu1 }
 0x3b7   :  { %v11054_v27 = vadd.f32 %v938_v38, %v735_v14 }
 0x3b8   :  { %v9277_v51 = vpop.f32.mrf.mxu1 }
 0x3b9   :  { %v11047_v43 = vadd.f32 %v9277_v51, %v738_v13  ;;  %1013 = vmax.xlane.f32.xlu0 %v11042_v45  ;;  %v743_v13 = vld [vmem:[%s17168_s2 + $0x50] sm:$0xff] }
 0x3ba   :  { %v948_v19 = vpop.f32.mrf.mxu1 }
 0x3bb   :  { %1017 = vmax.xlane.f32.xlu1 %v11047_v43  ;;  %v11066_v46 = vadd.f32 %v948_v19, %v737_v55  ;;  %v748_v19 = vld [vmem:[%s17168_s2 + $0x78] sm:$0xff]  ;;  %v745_v55 = vld [vmem:[%s17168_s2 + $0x60] sm:$0xff] }
 0x3bc   :  { %v9280_v32 = vpop.f32.mrf.mxu1 }
 0x3bd   :  { %v11059_v39 = vadd.f32 %v9280_v32, %v740_v16  ;;  %1011 = vmax.xlane.f32.xlu0 %v11054_v27 }
 0x3be   :  { %v958_v41 = vpop.f32.mrf.mxu1 }
 0x3bf   :  { %1021 = vmax.xlane.f32.xlu1 %v11059_v39  ;;  %v11078_v29 = vadd.f32 %v958_v41, %v739_v1  ;;  %v747_v1 = vld [vmem:[%s17168_s2 + $0x70] sm:$0xff] }
 0x3c0   :  { %v9283_v47 = vpop.f32.mrf.mxu1 }
 0x3c1   :  { %v11071_v53 = vadd.f32 %v9283_v47, %v742_v0  ;;  %1015 = vmax.xlane.f32.xlu0 %v11066_v46 }
 0x3c2   :  { %v968_v57 = vpop.f32.mrf.mxu1 }
 0x3c3   :  { %1025 = vmax.xlane.f32.xlu1 %v11071_v53  ;;  %v11090_v12 = vadd.f32 %v968_v57, %v741_v37 }
 0x3c4   :  { %v9286_v11 = vpop.f32.mrf.mxu1 }
 0x3c5   :  { %v11083_v5 = vadd.f32 %v9286_v11, %v744_v10  ;;  %1019 = vmax.xlane.f32.xlu0 %v11078_v29 }
 0x3c6   :  { %v978_v35 = vpop.f32.mrf.mxu1 }
 0x3c7   :  { %1029 = vmax.xlane.f32.xlu1 %v11083_v5  ;;  %v11102_v16 = vadd.f32 %v978_v35, %v743_v13 }
 0x3c8   :  { %v9289_v38 = vpop.f32.mrf.mxu1 }
 0x3c9   :  { %v11095_v51 = vadd.f32 %v9289_v38, %v746_v9  ;;  %1023 = vmax.xlane.f32.xlu0 %v11090_v12 }
 0x3ca   :  { %v988_v14 = vpop.f32.mrf.mxu1 }
 0x3cb   :  { %1033 = vmax.xlane.f32.xlu1 %v11095_v51  ;;  %v11111_v0 = vadd.f32 %v988_v14, %v745_v55 }
 0x3cc   :  { %v9292_v32 = vpop.f32.mrf.mxu1 }
 0x3cd   :  { %v11107_v41 = vadd.f32 %v9292_v32, %v748_v19  ;;  %1027 = vmax.xlane.f32.xlu0 %v11102_v16 }
 0x3ce   :  { %v998_v47 = vpop.f32.mrf.mxu1 }
 0x3cf   :  { %1037 = vmax.xlane.f32.xlu1 %v11107_v41  ;;  %v11117_v57 = vadd.f32 %v998_v47, %v747_v1 }
 0x3d1   :  { %1031 = vmax.xlane.f32.xlu0 %v11111_v0 }
 0x3d5   :  { %1035 = vmax.xlane.f32.xlu0 %v11117_v57 }
 0x3e0   :  { %1155 = vrot.lane.b32.xlu1 %v10852_v30, %s10412_s25 }
 0x3eb   :  { %1157 = vrot.lane.b32.xlu0 %v10856_v33, %s10412_s25 }
 0x43c   :  { %v1010_v10 = vpop.xlane.xlu1 %1009 }
 0x43d   :  { %v1040_v11 = vsub.f32 %v11030_v6, %v1010_v10 }
 0x43e   :  { %v1008_v37 = vpop.xlane.xlu0 %1007 }
 0x43f   :  { %v1057_v35 = vmul.f32 1.442695, %v1040_v11  ;;  %v1039_v9 = vsub.f32 %v11033_v7, %v1008_v37 }
 0x441   :  { %9887 = vpow2.f32 %v1057_v35  ;;  %v1055_v38 = vmul.f32 1.442695, %v1039_v9 }
 0x442   :  { %v1014_v13 = vpop.xlane.xlu0 %1013 }
 0x443   :  { %9889 = vpow2.f32 %v1055_v38  ;;  %v1042_v31 = vsub.f32 %v11042_v45, %v1014_v13 }
 0x444   :  { %v1018_v14 = vpop.xlane.xlu1 %1017 }
 0x445   :  { %v1044_v34 = vsub.f32 %v11047_v43, %v1018_v14  ;;  %v1061_v40 = vmul.f32 1.442695, %v1042_v31 }
 0x446   :  { %v1012_v19 = vpop.xlane.xlu0 %1011 }
 0x447   :  { %v1041_v26 = vsub.f32 %v11054_v27, %v1012_v19 }
 0x448   :  { %v1022_v32 = vpop.xlane.xlu1 %1021 }
 0x449   :  { %v1059_v21 = vmul.f32 1.442695, %v1041_v26  ;;  %v1046_v42 = vsub.f32 %v11059_v39, %v1022_v32 }
 0x44a   :  { %v1016_v55 = vpop.xlane.xlu0 %1015 }
 0x44b   :  { %9891 = vpow2.f32 %v1059_v21 }
 0x44c   :  { %v1026_v47 = vpop.xlane.xlu1 %1025  ;;  %9893 = vpow2.f32 %v1061_v40 }
 0x44d   :  { %v1048_v24 = vsub.f32 %v11071_v53, %v1026_v47 }
 0x44e   :  { %v11126_v1 = vpop.eup %9887  ;;  %v1020_v8 = vpop.xlane.xlu0 %1019 }
 0x44f   :  { %17433 = vst [vmem:[#allocation14_spill] sm:$0xff] %v11126_v1  ;;  %1089 = vadd.xlane.f32.xlu0 %v11126_v1  ;;  %v1065_v1 = vmul.f32 1.442695, %v1044_v34  ;;  %v1045_v27 = vsub.f32 %v11078_v29, %v1020_v8  ;;  %v1073_v45 = vmul.f32 1.442695, %v1048_v24 }
 0x450   :  { %v11129_v52 = vpop.eup %9889  ;;  %v1030_v6 = vpop.xlane.xlu1 %1029 }
 0x451   :  { %17434 = vst [vmem:[#allocation15_spill] sm:$0xff] %v11129_v52  ;;  %1087 = vadd.xlane.f32.xlu1 %v11129_v52  ;;  %v1043_v52 = vsub.f32 %v11066_v46, %v1016_v55  ;;  %9895 = vpow2.f32 %v1065_v1  ;;  %v1050_v43 = vsub.f32 %v11083_v5, %v1030_v6  ;;  %v1067_v26 = vmul.f32 1.442695, %v1045_v27 }
 0x452   :  { %v1024_v7 = vpop.xlane.xlu0 %1023 }
 0x453   :  { %v1047_v31 = vsub.f32 %v11090_v12, %v1024_v7  ;;  %v1077_v34 = vmul.f32 1.442695, %v1050_v43  ;;  %v17441_v43 = vld [vmem:[#allocation10_spill] sm:$0xff] }
 0x454   :  { %v1034_v11 = vpop.xlane.xlu1 %1033 }
 0x455   :  { %v1052_v21 = vsub.f32 %v11095_v51, %v1034_v11  ;;  %v1071_v40 = vmul.f32 1.442695, %v1047_v31  ;;  %v17439_v11 = vld [vmem:[#allocation12_spill] sm:$0xff] }
 0x456   :  { %v1028_v10 = vpop.xlane.xlu0 %1027 }
 0x457   :  { %v1081_v8 = vmul.f32 1.442695, %v1052_v21  ;;  %v17442_v21 = vld [vmem:[#allocation9_spill] sm:$0xff] }
 0x458   :  { %v1038_v35 = vpop.xlane.xlu1 %1037  ;;  %v11147_v39 = vpop.eup %9891 }
 0x459   :  { %v11151_v24 = vpop.eup %9893 }
 0x45a   :  { %v1032_v37 = vpop.xlane.xlu0 %1031 }
 0x45b   :  { %v1051_v53 = vsub.f32 %v11111_v0, %v1032_v37 }
 0x45c   :  { %v1156_v48 = vpop.permute.xlu1 %1155 }
 0x45d   :  { %v1079_v51 = vmul.f32 1.442695, %v1051_v53 }
 0x45e   :  { %v1036_v9 = vpop.xlane.xlu0 %1035  ;;  %v11155_v29 = vpop.eup %9895 }
 0x462   :  { %1151 = vrot.lane.b32.xlu1 %v10842_v22, %s10412_s25  ;;  %v1158_v38 = vpop.permute.xlu0 %1157 }
 0x463   :  { %9317 = vmatprep.subr.mxu0 %v1158_v38 }
 0x464   :  { %9318 = vmatpush3.msra.mxu0 %v1158_v38  ;;  %v1069_v38 = vmul.f32 1.442695, %v1046_v42  ;;  %v1049_v42 = vsub.f32 %v11102_v16, %v1028_v10  ;;  %v1053_v16 = vsub.f32 %v11117_v57, %v1036_v9 }
 0x465   :  { %1153 = vrot.lane.b32.xlu0 %v10848_v54, %s10412_s25  ;;  %9319 = vmatprep.subr.mxu0 %v1156_v48 }
 0x466   :  { %9320 = vmatpush3.msra.mxu0 %v1156_v48  ;;  %v1063_v48 = vmul.f32 1.442695, %v1043_v52  ;;  %9897 = vpow2.f32 %v1069_v38  ;;  %v1054_v52 = vsub.f32 %v11107_v41, %v1038_v35  ;;  %v1075_v46 = vmul.f32 1.442695, %v1049_v42  ;;  %v17440_v38 = vld [vmem:[#allocation11_spill] sm:$0xff] }
 0x467   :  { %v1083_v13 = vmul.f32 1.442695, %v1053_v16 }
 0x468   :  { %9899 = vpow2.f32 %v1063_v48  ;;  %v1085_v5 = vmul.f32 1.442695, %v1054_v52 }
 0x469   :  { %9901 = vpow2.f32 %v1073_v45 }
 0x46a   :  { %9903 = vpow2.f32 %v1067_v26 }
 0x46b   :  { %9905 = vpow2.f32 %v1077_v34 }
 0x46c   :  { %9907 = vpow2.f32 %v1071_v40 }
 0x46d   :  { %9909 = vpow2.f32 %v1081_v8 }
 0x46e   :  { %9911 = vpow2.f32 %v1075_v46  ;;  %v17443_v46 = vld [vmem:[#allocation8_spill] sm:$0xff] }
 0x46f   :  { %9913 = vpow2.f32 %v1085_v5 }
 0x470   :  { %9915 = vpow2.f32 %v1079_v51 }
 0x471   :  { %9917 = vpow2.f32 %v1083_v13 }
 0x473   :  { %v11158_v12 = vpop.eup %9897 }
 0x475   :  { %v11162_v41 = vpop.eup %9899 }
 0x476   :  { %v11165_v0 = vpop.eup %9901 }
 0x477   :  { %v11168_v14 = vpop.eup %9903 }
 0x478   :  { %v11171_v19 = vpop.eup %9905 }
 0x479   :  { %v11174_v57 = vpop.eup %9907 }
 0x47a   :  { %v11177_v32 = vpop.eup %9909 }
 0x47b   :  { %v11180_v55 = vpop.eup %9911 }
 0x47c   :  { %v11183_v47 = vpop.eup %9913 }
 0x47d   :  { %v11186_v1 = vpop.eup %9915 }
 0x47e   :  { %v11189_v6 = vpop.eup %9917 }
 0x484   :  { %1091 = vadd.xlane.f32.xlu0 %v11147_v39 }
 0x486   :  { %1093 = vadd.xlane.f32.xlu1 %v11151_v24 }
 0x488   :  { %1097 = vadd.xlane.f32.xlu0 %v11155_v29 }
 0x48a   :  { %1101 = vadd.xlane.f32.xlu1 %v11158_v12 }
 0x48c   :  { %1095 = vadd.xlane.f32.xlu0 %v11162_v41 }
 0x48e   :  { %1105 = vadd.xlane.f32.xlu1 %v11165_v0 }
 0x490   :  { %1099 = vadd.xlane.f32.xlu0 %v11168_v14 }
 0x492   :  { %1109 = vadd.xlane.f32.xlu1 %v11171_v19 }
 0x494   :  { %1103 = vadd.xlane.f32.xlu0 %v11174_v57 }
 0x496   :  { %1113 = vadd.xlane.f32.xlu1 %v11177_v32 }
 0x498   :  { %1107 = vadd.xlane.f32.xlu0 %v11180_v55 }
 0x49a   :  { %1117 = vadd.xlane.f32.xlu1 %v11183_v47 }
 0x49c   :  { %1111 = vadd.xlane.f32.xlu0 %v11186_v1 }
 0x4a0   :  { %1115 = vadd.xlane.f32.xlu0 %v11189_v6 }
 0x4ab   :  { %1576 = vrot.lane.b32.xlu1 %v10848_v54, %s10413_s20  ;;  %v1347_v54 = vld [vmem:[%s17173_s7 + $0x18] sm:$0xff] }
 0x4ac   :  { %9349 = vmatprep.subr.mxu1 %v1347_v54 }
 0x4ad   :  { %9350 = vmatpush3.msra.mxu1 %v1347_v54 }
 0x4af   :  { %1578 = vrot.lane.b32.xlu1 %v10852_v30, %s10413_s20  ;;  %v1345_v30 = vld [vmem:[%s17173_s7 + $0x8] sm:$0xff] }
 0x4b3   :  { %1580 = vrot.lane.b32.xlu1 %v10856_v33, %s10413_s20  ;;  %v11226_v33 = vsub.s32 1, %v10830_v15 }
 0x4b5   :  { %17435 = vst [vmem:[#allocation16_spill] sm:$0xff] %v11226_v33 }
 0x4b6   :  { %1574 = vrot.lane.b32.xlu0 %v10842_v22, %s10413_s20  ;;  %v1346_v22 = vld [vmem:[%s17173_s7 + $0x10] sm:$0xff] }
 0x4b7   :  { %1584 = vrot.lane.b32.xlu1 %v10920_v44, %s10413_s20  ;;  %9351 = vmatprep.subr.mxu1 %v1346_v22 }
 0x4b8   :  { %9352 = vmatpush3.msra.mxu1 %v1346_v22  ;;  %v17444_v22 = vld [vmem:[#allocation7_spill] sm:$0xff] }
 0x4b9   :  { %9353 = vmatprep.subr.mxu1 %v1345_v30 }
 0x4ba   :  { %1582 = vrot.lane.b32.xlu0 %v10860_v20, %s10413_s20  ;;  %9354 = vmatpush3.msra.mxu1 %v1345_v30  ;;  %v1344_v20 = vld [vmem:[%s17173_s7] sm:$0xff] }
 0x4bb   :  { %1588 = vrot.lane.b32.xlu1 %v10912_v3, %s10413_s20  ;;  %9355 = vmatprep.subr.mxu1 %v1344_v20  ;;  %v17436_v3 = vld [vmem:[#allocation13_spill] sm:$0xff] }
 0x4bc   :  { %9356 = vmatpush3.msra.mxu1 %v1344_v20 }
 0x4be   :  { %1586 = vrot.lane.b32.xlu0 %v10922_v17, %s10413_s20  ;;  %v17437_v17 = vld [vmem:[#allocation15_spill] sm:$0xff] }
 0x4bf   :  { %1592 = vrot.lane.b32.xlu1 %v10904_v23, %s10413_s20 }
 0x4c2   :  { %1590 = vrot.lane.b32.xlu0 %v10914_v4, %s10413_s20 }
 0x4c3   :  { %1596 = vrot.lane.b32.xlu1 %v10896_v62, %s10413_s20  ;;  %v11237_v62 = vrot.slane %v10838_v18, %v11226_v33 }
 0x4c5   :  { %v702_v15 = vadd.f32 %v10884_v36, %v11237_v62  ;;  %v696_v18 = vadd.f32 %v10880_v28, %v11237_v62  ;;  %v678_v36 = vadd.f32 %v10874_v50, %v11237_v62  ;;  %v672_v50 = vadd.f32 %v10872_v49, %v11237_v62  ;;  %v17438_v49 = vld [vmem:[#allocation14_spill] sm:$0xff] }
 0x4c6   :  { %1594 = vrot.lane.b32.xlu0 %v10906_v2, %s10413_s20  ;;  %v11290_v37 = vadd.f32 %v17439_v11, %v11237_v62  ;;  %v11297_v48 = vadd.f32 %v17440_v38, %v11237_v62  ;;  %v11305_v26 = vadd.f32 %v17441_v43, %v11237_v62  ;;  %v11313_v40 = vadd.f32 %v17442_v21, %v11237_v62 }
 0x4c7   :  { %1600 = vrot.lane.b32.xlu1 %v10888_v60, %s10413_s20  ;;  %v707_v60 = vpop.f32.mrf.mxu0  ;;  %v11321_v53 = vadd.f32 %v17443_v46, %v11237_v62  ;;  %v11331_v30 = vadd.f32 %v17444_v22, %v11237_v62 }
 0x4c8   :  { %v708_v23 = vadd.f32 %v707_v60, %v11237_v62  ;;  %v17445_v60 = vld [vmem:[#allocation6_spill] sm:$0xff] }
 0x4ca   :  { %1598 = vrot.lane.b32.xlu0 %v10898_v63, %s10413_s20  ;;  %v690_v63 = vadd.f32 %v10878_v58, %v11237_v62  ;;  %v666_v58 = vadd.f32 %v10870_v25, %v11237_v62  ;;  %v660_v25 = vadd.f32 %v17436_v3, %v11237_v62 }
 0x4cb   :  { %1604 = vrot.lane.b32.xlu1 %v10890_v61, %s10413_s20 }
 0x4ce   :  { %1602 = vrot.lane.b32.xlu0 %v10882_v59, %s10413_s20  ;;  %v684_v59 = vadd.f32 %v10876_v56, %v11237_v62 }
 0x4cf   :  { %2003 = vrot.lane.b32.xlu1 %v702_v15, %s10411_s24 }
 0x4d2   :  { %2005 = vrot.lane.b32.xlu0 %v708_v23, %s10411_s24 }
 0x4d3   :  { %1999 = vrot.lane.b32.xlu1 %v690_v63, %s10411_s24 }
 0x4d6   :  { %2001 = vrot.lane.b32.xlu0 %v696_v18, %s10411_s24 }
 0x4d7   :  { %1995 = vrot.lane.b32.xlu1 %v678_v36, %s10411_s24 }
 0x4d8   :  { %v1090_v61 = vpop.xlane.xlu0 %1089 }
 0x4d9   :  { %9919 = vrcp.f32 %v1090_v61 }
 0x4da   :  { %1997 = vrot.lane.b32.xlu0 %v684_v59, %s10411_s24  ;;  %v1088_v2 = vpop.xlane.xlu1 %1087 }
 0x4db   :  { %9921 = vrcp.f32 %v1088_v2  ;;  %1991 = vrot.lane.b32.xlu1 %v666_v58, %s10411_s24 }
 0x4dc   :  { %v1154_v28 = vpop.permute.xlu0 %1153 }
 0x4dd   :  { %9321 = vmatprep.subr.mxu0 %v1154_v28 }
 0x4de   :  { %1993 = vrot.lane.b32.xlu0 %v672_v50, %s10411_s24  ;;  %9322 = vmatpush3.msra.mxu0 %v1154_v28  ;;  %v1152_v56 = vpop.permute.xlu1 %1151 }
 0x4df   :  { %9323 = vmatprep.subr.mxu0 %v1152_v56 }
 0x4e0   :  { %9324 = vmatpush3.msra.mxu0 %v1152_v56 }
 0x4e1   :  { %9381 = vmatprep.subr.msk.mxu0 %vm797_vm1, %v708_v23 }
 0x4e2   :  { %1989 = vrot.lane.b32.xlu0 %v660_v25, %s10411_s24 }
 0x4e6   :  { %v9920_v4 = vpop.eup %9919 }
 0x4e7   :  { %v1136_v10 = vmul.f32 %v9920_v4, %v17438_v49 }
 0x4e8   :  { %v9922_v44 = vpop.eup %9921 }
 0x4e9   :  { %v1135_v7 = vmul.f32 %v9922_v44, %v17437_v17 }
 0x4eb   :  { %9325 = vmatprep.mubr.f32.mxu0 %v1135_v7 }
 0x4ec   :  { %9326 = vmatmul.mubr.f32.vlgmr.msra.gmra.mxu0 %v1136_v10 }
 0x4ed   :  { %9382 = vmatpush3.xpose.msk.msra.mxu0 %vm797_vm1, %v708_v23 }
 0x4ee   :  { %9383 = vmatprep.subr.msk.mxu0 %vm797_vm1, %v702_v15 }
 0x4f1   :  { %9384 = vmatpush3.xpose.msk.msra.mxu0 %vm797_vm1, %v702_v15 }
 0x4f2   :  { %9385 = vmatprep.subr.msk.mxu0 %vm797_vm1, %v696_v18 }
 0x4f5   :  { %9386 = vmatpush3.xpose.msk.msra.mxu0 %vm797_vm1, %v696_v18 }
 0x4f6   :  { %9387 = vmatprep.subr.msk.mxu0 %vm797_vm1, %v690_v63 }
 0x4f9   :  { %9388 = vmatpush3.xpose.msk.msra.mxu0 %vm797_vm1, %v690_v63 }
 0x4fa   :  { %9389 = vmatprep.subr.msk.mxu0 %vm797_vm1, %v684_v59 }
 0x4fd   :  { %9390 = vmatpush3.xpose.msk.msra.mxu0 %vm797_vm1, %v684_v59 }
 0x4fe   :  { %9391 = vmatprep.subr.msk.mxu0 %vm797_vm1, %v678_v36 }
 0x501   :  { %9392 = vmatpush3.xpose.msk.msra.mxu0 %vm797_vm1, %v678_v36 }
 0x502   :  { %9393 = vmatprep.subr.msk.mxu0 %vm797_vm1, %v672_v50 }
 0x505   :  { %9394 = vmatpush3.xpose.msk.msra.mxu0 %vm797_vm1, %v672_v50 }
 0x506   :  { %9395 = vmatprep.subr.msk.mxu0 %vm797_vm1, %v666_v58 }
 0x509   :  { %9396 = vmatpush3.xpose.msk.msra.mxu0 %vm797_vm1, %v666_v58 }
 0x50a   :  { %9397 = vmatprep.subr.msk.mxu0 %vm797_vm1, %v660_v25 }
 0x50d   :  { %9398 = vmatpush3.xpose.msk.msra.mxu0 %vm797_vm1, %v660_v25  ;;  %v1092_v35 = vpop.xlane.xlu0 %1091 }
 0x50e   :  { %9923 = vrcp.f32 %v1092_v35  ;;  %9399 = vmatprep.subr.msk.mxu0 %vm797_vm1, %v11290_v37 }
 0x50f   :  { %v1094_v9 = vpop.xlane.xlu1 %1093 }
 0x510   :  { %9925 = vrcp.f32 %v1094_v9 }
 0x511   :  { %9400 = vmatpush3.xpose.msk.msra.mxu0 %vm797_vm1, %v11290_v37  ;;  %v1098_v27 = vpop.xlane.xlu0 %1097 }
 0x512   :  { %9401 = vmatprep.subr.msk.mxu0 %vm797_vm1, %v11297_v48  ;;  %9927 = vrcp.f32 %v1098_v27 }
 0x513   :  { %v1102_v45 = vpop.xlane.xlu1 %1101 }
 0x515   :  { %9402 = vmatpush3.xpose.msk.msra.mxu0 %vm797_vm1, %v11297_v48  ;;  %v1096_v31 = vpop.xlane.xlu0 %1095 }
 0x516   :  { %9929 = vrcp.f32 %v1096_v31  ;;  %9403 = vmatprep.subr.msk.mxu0 %vm797_vm1, %v11305_v26 }
 0x517   :  { %v1106_v34 = vpop.xlane.xlu1 %1105  ;;  %9931 = vrcp.f32 %v1102_v45 }
 0x519   :  { %9404 = vmatpush3.xpose.msk.msra.mxu0 %vm797_vm1, %v11305_v26  ;;  %v1100_v42 = vpop.xlane.xlu0 %1099 }
 0x51a   :  { %9933 = vrcp.f32 %v1100_v42  ;;  %9405 = vmatprep.subr.msk.mxu0 %vm797_vm1, %v11313_v40  ;;  %v17446_v42 = vmov 0.0  }
 0x51b   :  { %v9924_v8 = vpop.eup %9923  ;;  %v1110_v52 = vpop.xlane.xlu1 %1109  ;;  %9935 = vrcp.f32 %v1106_v34 }
 0x51c   :  { %v1137_v5 = vmul.f32 %v9924_v8, %v11147_v39 }
 0x51d   :  { %v9926_v51 = vpop.eup %9925  ;;  %9406 = vmatpush3.xpose.msk.msra.mxu0 %vm797_vm1, %v11313_v40  ;;  %v1104_v16 = vpop.xlane.xlu0 %1103 }
 0x51e   :  { %9937 = vrcp.f32 %v1104_v16  ;;  %9407 = vmatprep.subr.msk.mxu0 %vm797_vm1, %v11321_v53  ;;  %9328 = vmatprep.mubr.f32.mxu0 %v1137_v5  ;;  %v1138_v13 = vmul.f32 %v9926_v51, %v11151_v24  ;;  %v11339_v24 = vadd.f32 %v17445_v60, %v11237_v62 }
 0x51f   :  { %v1114_v54 = vpop.xlane.xlu1 %1113  ;;  %9939 = vrcp.f32 %v1110_v52  ;;  %v9928_v20 = vpop.eup %9927 }
 0x520   :  { %9329 = vmatmul.mubr.f32.gmra.mxu0 %v1138_v13  ;;  %v1140_v36 = vmul.f32 %v9928_v20, %v11155_v29 }
 0x521   :  { %9408 = vmatpush3.xpose.msk.msra.mxu0 %vm797_vm1, %v11321_v53  ;;  %v1108_v39 = vpop.xlane.xlu0 %1107 }
 0x522   :  { %9941 = vrcp.f32 %v1108_v39  ;;  %9409 = vmatprep.subr.msk.mxu0 %vm797_vm1, %v11331_v30 }
 0x523   :  { %v9930_v15 = vpop.eup %9929  ;;  %v1118_v23 = vpop.xlane.xlu1 %1117  ;;  %9943 = vrcp.f32 %v1114_v54 }
 0x524   :  { %v1139_v63 = vmul.f32 %v9930_v15, %v11162_v41  ;;  %v9932_v59 = vpop.eup %9931 }
 0x525   :  { %9410 = vmatpush3.xpose.msk.msra.mxu0 %vm797_vm1, %v11331_v30  ;;  %v1112_v18 = vpop.xlane.xlu0 %1111  ;;  %v1142_v58 = vmul.f32 %v9932_v59, %v11158_v12 }
 0x526   :  { %9945 = vrcp.f32 %v1112_v18  ;;  %9411 = vmatprep.subr.msk.mxu0 %vm797_vm1, %v11339_v24  ;;  %9331 = vmatprep.mubr.f32.mxu0 %v1139_v63 }
 0x527   :  { %v9934_v61 = vpop.eup %9933  ;;  %9332 = vmatmul.mubr.f32.gmra.mxu0 %v1140_v36  ;;  %9947 = vrcp.f32 %v1118_v23  ;;  %v1577_v50 = vpop.permute.xlu1 %1576 }
 0x528   :  { %v1141_v62 = vmul.f32 %v9934_v61, %v11168_v14  ;;  %v9936_v2 = vpop.eup %9935 }
 0x529   :  { %9412 = vmatpush3.xpose.msk.msra.mxu0 %vm797_vm1, %v11339_v24  ;;  %v1116_v41 = vpop.xlane.xlu0 %1115  ;;  %v1144_v3 = vmul.f32 %v9936_v2, %v11165_v0 }
 0x52a   :  { %9949 = vrcp.f32 %v1116_v41  ;;  %9334 = vmatprep.mubr.f32.mxu0 %v1141_v62 }
 0x52b   :  { %v9938_v29 = vpop.eup %9937  ;;  %9335 = vmatmul.mubr.f32.gmra.mxu0 %v1142_v58  ;;  %v1579_v4 = vpop.permute.xlu1 %1578 }
 0x52c   :  { %v1143_v28 = vmul.f32 %v9938_v29, %v11174_v57  ;;  %v9940_v25 = vpop.eup %9939  ;;  %v8379_v29 = vld [vmem:[%s17168_s2 + $0x88] sm:$0xff] }
 0x52d   :  { %v1575_v56 = vpop.permute.xlu0 %1574  ;;  %v1146_v12 = vmul.f32 %v9940_v25, %v11171_v19 }
 0x52e   :  { %9337 = vmatprep.mubr.f32.mxu0 %v1143_v28 }
 0x52f   :  { %v9942_v14 = vpop.eup %9941  ;;  %9338 = vmatmul.mubr.f32.gmra.mxu0 %v1144_v3  ;;  %v1581_v35 = vpop.permute.xlu1 %1580 }
 0x530   :  { %v1145_v44 = vmul.f32 %v9942_v14, %v11180_v55  ;;  %v9944_v7 = vpop.eup %9943 }
 0x531   :  { %v1583_v17 = vpop.permute.xlu0 %1582  ;;  %v1148_v11 = vmul.f32 %v9944_v7, %v11177_v32  ;;  %v8380_v7 = vld [vmem:[%s17168_s2 + $0x90] sm:$0xff] }
 0x532   :  { %9340 = vmatprep.mubr.f32.mxu0 %v1145_v44 }
 0x533   :  { %v9946_v49 = vpop.eup %9945  ;;  %9341 = vmatmul.mubr.f32.gmra.mxu0 %v1146_v12  ;;  %v1585_v19 = vpop.permute.xlu1 %1584 }
 0x534   :  { %v1147_v10 = vmul.f32 %v9946_v49, %v11186_v1  ;;  %v9948_v0 = vpop.eup %9947 }
 0x535   :  { %v1587_v57 = vpop.permute.xlu0 %1586  ;;  %v1150_v27 = vmul.f32 %v9948_v0, %v11183_v47 }
 0x536   :  { %9343 = vmatprep.mubr.f32.mxu0 %v1147_v10 }
 0x537   :  { %v9950_v9 = vpop.eup %9949  ;;  %9344 = vmatmul.mubr.f32.gmra.mxu0 %v1148_v11  ;;  %v1589_v1 = vpop.permute.xlu1 %1588  ;;  %v8382_v11 = vld [vmem:[%s17168_s2 + $0xa0] sm:$0xff] }
 0x538   :  { %v1149_v38 = vmul.f32 %v9950_v9, %v11189_v6 }
 0x539   :  { %v1591_v55 = vpop.permute.xlu0 %1590 }
 0x53a   :  { %9346 = vmatprep.mubr.f32.mxu0 %v1149_v38  ;;  %v8384_v38 = vld [vmem:[%s17168_s2 + $0xb0] sm:$0xff] }
 0x53b   :  { %9347 = vmatmul.mubr.f32.gmra.mxu0 %v1150_v27  ;;  %v1593_v47 = vpop.permute.xlu1 %1592 }
 0x53c   :  { %9413 = vmatprep.mubr.msk.f32.mxu0 %vm797_vm1, %v1575_v56  ;;  %v8378_v56 = vld [vmem:[%s17168_s2 + $0x80] sm:$0xff] }
 0x53d   :  { %v1595_v45 = vpop.permute.xlu0 %1594 }
 0x53f   :  { %9414 = vmatmul.mubr.msk.f32.vlgmr.msra.gmra.mxu0 %vm797_vm1, %v1577_v50  ;;  %v1597_v31 = vpop.permute.xlu1 %1596 }
 0x540   :  { %9416 = vmatprep.mubr.msk.f32.mxu0 %vm797_vm1, %v1579_v4  ;;  %v8381_v4 = vld [vmem:[%s17168_s2 + $0x98] sm:$0xff] }
 0x541   :  { %v1599_v32 = vpop.permute.xlu0 %1598 }
 0x543   :  { %9417 = vmatmul.mubr.msk.f32.gmra.mxu0 %vm797_vm1, %v1581_v35  ;;  %v1601_v34 = vpop.permute.xlu1 %1600 }
 0x544   :  { %9419 = vmatprep.mubr.msk.f32.mxu0 %vm797_vm1, %v1583_v17 }
 0x545   :  { %v1603_v6 = vpop.permute.xlu0 %1602 }
 0x547   :  { %9420 = vmatmul.mubr.msk.f32.gmra.mxu0 %vm797_vm1, %v1585_v19  ;;  %v1605_v21 = vpop.permute.xlu1 %1604 }
 0x548   :  { %9422 = vmatprep.mubr.msk.f32.mxu0 %vm797_vm1, %v1587_v57 }
 0x549   :  { %v2006_v43 = vpop.permute.xlu0 %2005 }
 0x54a   :  { %9437 = vmatprep.subr.mxu1 %v2006_v43 }
 0x54b   :  { %9423 = vmatmul.mubr.msk.f32.gmra.mxu0 %vm797_vm1, %v1589_v1  ;;  %v2004_v8 = vpop.permute.xlu1 %2003 }
 0x54c   :  { %9425 = vmatprep.mubr.msk.f32.mxu0 %vm797_vm1, %v1591_v55 }
 0x54d   :  { %v2002_v46 = vpop.permute.xlu0 %2001 }
 0x54f   :  { %9426 = vmatmul.mubr.msk.f32.gmra.mxu0 %vm797_vm1, %v1593_v47  ;;  %v2000_v51 = vpop.permute.xlu1 %1999  ;;  %v8388_v47 = vld [vmem:[%s17168_s2 + $0xd0] sm:$0xff] }
 0x550   :  { %9428 = vmatprep.mubr.msk.f32.mxu0 %vm797_vm1, %v1595_v45  ;;  %v8386_v45 = vld [vmem:[%s17168_s2 + $0xc0] sm:$0xff] }
 0x551   :  { %v1998_v16 = vpop.permute.xlu0 %1997 }
 0x553   :  { %9429 = vmatmul.mubr.msk.f32.gmra.mxu0 %vm797_vm1, %v1597_v31  ;;  %v1996_v13 = vpop.permute.xlu1 %1995 }
 0x554   :  { %9431 = vmatprep.mubr.msk.f32.mxu0 %vm797_vm1, %v1599_v32 }
 0x555   :  { %v1994_v54 = vpop.permute.xlu0 %1993 }
 0x557   :  { %9432 = vmatmul.mubr.msk.f32.gmra.mxu0 %vm797_vm1, %v1601_v34  ;;  %v1992_v22 = vpop.permute.xlu1 %1991 }
 0x558   :  { %9434 = vmatprep.mubr.msk.f32.mxu0 %vm797_vm1, %v1603_v6 }
 0x559   :  { %v1990_v39 = vpop.permute.xlu0 %1989 }
 0x55b   :  { %9435 = vmatmul.mubr.msk.f32.gmra.mxu0 %vm797_vm1, %v1605_v21 }
 0x55c   :  { %4130 = vmatprep.mubr.f32.mxu0 %v17446_v42 }
 0x5ac   :  { %v9327_v52 = vpop.f32.mrf.mxu0 }
 0x5ae   :  { %v1265_v5 = vpop.f32.mrf.mxu0 }
 0x5af   :  { %9357 = vmatprep.mubr.msk.f32.mxu1 %vm797_vm1, %v1265_v5 }
 0x5b0   :  { %9358 = vmatmul.mubr.msk.f32.vlgmr.msra.gmra.mxu1 %vm797_vm1, %v9327_v52 }
 0x5b1   :  { %9438 = vmatpush3.msra.mxu1 %v2006_v43 }
 0x5b2   :  { %9439 = vmatprep.subr.mxu1 %v2004_v8 }
 0x5b3   :  { %9440 = vmatpush3.msra.mxu1 %v2004_v8 }
 0x5b4   :  { %9441 = vmatprep.subr.mxu1 %v2002_v46 }
 0x5b5   :  { %9442 = vmatpush3.msra.mxu1 %v2002_v46  ;;  %v8392_v46 = vld [vmem:[%s17168_s2 + $0xf0] sm:$0xff] }
 0x5b6   :  { %9443 = vmatprep.subr.mxu1 %v2000_v51 }
 0x5b7   :  { %9444 = vmatpush3.msra.mxu1 %v2000_v51  ;;  %v8383_v51 = vld [vmem:[%s17168_s2 + $0xa8] sm:$0xff] }
 0x5b8   :  { %9445 = vmatprep.subr.mxu1 %v1998_v16 }
 0x5b9   :  { %9446 = vmatpush3.msra.mxu1 %v1998_v16 }
 0x5ba   :  { %9447 = vmatprep.subr.mxu1 %v1996_v13 }
 0x5bb   :  { %9448 = vmatpush3.msra.mxu1 %v1996_v13  ;;  %v8385_v13 = vld [vmem:[%s17168_s2 + $0xb8] sm:$0xff] }
 0x5bc   :  { %9449 = vmatprep.subr.mxu1 %v1994_v54 }
 0x5bd   :  { %9450 = vmatpush3.msra.mxu1 %v1994_v54 }
 0x5be   :  { %9451 = vmatprep.subr.mxu1 %v1992_v22 }
 0x5bf   :  { %9452 = vmatpush3.msra.mxu1 %v1992_v22  ;;  %v8387_v22 = vld [vmem:[%s17168_s2 + $0xc8] sm:$0xff] }
 0x5c0   :  { %9453 = vmatprep.subr.mxu1 %v1990_v39 }
 0x5c1   :  { %9454 = vmatpush3.msra.mxu1 %v1990_v39 }
 0x5e0   :  { %v9330_v20 = vpop.f32.mrf.mxu0 }
 0x5e2   :  { %v1275_v15 = vpop.f32.mrf.mxu0 }
 0x5e3   :  { %9360 = vmatprep.mubr.msk.f32.mxu1 %vm797_vm1, %v1275_v15 }
 0x5e4   :  { %9361 = vmatmul.mubr.msk.f32.gmra.mxu1 %vm797_vm1, %v9330_v20  ;;  %v8389_v20 = vld [vmem:[%s17168_s2 + $0xd8] sm:$0xff] }
 0x5e7   :  { %v9333_v60 = vpop.f32.mrf.mxu0 }
 0x5e9   :  { %v1285_v23 = vpop.f32.mrf.mxu0 }
 0x5ea   :  { %9363 = vmatprep.mubr.msk.f32.mxu1 %vm797_vm1, %v1285_v23  ;;  %v8393_v23 = vld [vmem:[%s17168_s2 + $0xf8] sm:$0xff] }
 0x5eb   :  { %v9336_v63 = vpop.f32.mrf.mxu0  ;;  %9364 = vmatmul.mubr.msk.f32.gmra.mxu1 %vm797_vm1, %v9333_v60  ;;  %v8391_v60 = vld [vmem:[%s17168_s2 + $0xe8] sm:$0xff] }
 0x5ed   :  { %v1295_v18 = vpop.f32.mrf.mxu0 }
 0x5ee   :  { %9366 = vmatprep.mubr.msk.f32.mxu1 %vm797_vm1, %v1295_v18 }
 0x5ef   :  { %v9339_v36 = vpop.f32.mrf.mxu0  ;;  %9367 = vmatmul.mubr.msk.f32.gmra.mxu1 %vm797_vm1, %v9336_v63  ;;  %v10414_v63 = vmov 0  }
 0x5f0   :  { %9854 = vset.pattern.permute.xlu1 %v10414_v63  ;;  %9853 = vset.pattern.permute.xlu0 %v10414_v63 }
 0x5f1   :  { %v1305_v59 = vpop.f32.mrf.mxu0 }
 0x5f2   :  { %9369 = vmatprep.mubr.msk.f32.mxu1 %vm797_vm1, %v1305_v59 }
 0x5f3   :  { %v9342_v61 = vpop.f32.mrf.mxu0  ;;  %9370 = vmatmul.mubr.msk.f32.gmra.mxu1 %vm797_vm1, %v9339_v36 }
 0x5f5   :  { %v1315_v62 = vpop.f32.mrf.mxu0 }
 0x5f6   :  { %9372 = vmatprep.mubr.msk.f32.mxu1 %vm797_vm1, %v1315_v62 }
 0x5f7   :  { %v9345_v41 = vpop.f32.mrf.mxu0  ;;  %9373 = vmatmul.mubr.msk.f32.gmra.mxu1 %vm797_vm1, %v9342_v61 }
 0x5f9   :  { %v1325_v58 = vpop.f32.mrf.mxu0 }
 0x5fa   :  { %9375 = vmatprep.mubr.msk.f32.mxu1 %vm797_vm1, %v1325_v58 }
 0x5fb   :  { %v9348_v2 = vpop.f32.mrf.mxu0  ;;  %9376 = vmatmul.mubr.msk.f32.gmra.mxu1 %vm797_vm1, %v9345_v41 }
 0x5fd   :  { %v1335_v50 = vpop.f32.mrf.mxu0 }
 0x5fe   :  { %9378 = vmatprep.mubr.msk.f32.mxu1 %vm797_vm1, %v1335_v50 }
 0x5ff   :  { %9379 = vmatmul.mubr.msk.f32.gmra.mxu1 %vm797_vm1, %v9348_v2  ;;  %v9415_v28 = vpop.f32.mrf.mxu0 }
 0x600   :  { %v11398_v3 = vadd.f32 %v9415_v28, %v8379_v29 }
 0x601   :  { %v1752_v25 = vpop.f32.mrf.mxu0 }
 0x602   :  { %v11400_v14 = vadd.f32 %v8378_v56, %v1752_v25  ;;  %1833 = vmax.xlane.f32.xlu1 %v11398_v3 }
 0x603   :  { %v9418_v44 = vpop.f32.mrf.mxu0 }
 0x604   :  { %1831 = vmax.xlane.f32.xlu0 %v11400_v14  ;;  %v11407_v12 = vadd.f32 %v9418_v44, %v8381_v4 }
 0x605   :  { %v1762_v17 = vpop.f32.mrf.mxu0 }
 0x606   :  { %v11413_v57 = vadd.f32 %v8380_v7, %v1762_v17 }
 0x607   :  { %v9421_v49 = vpop.f32.mrf.mxu0 }
 0x608   :  { %1837 = vmax.xlane.f32.xlu0 %v11407_v12  ;;  %v11457_v16 = vadd.f32 %v9421_v49, %v8383_v51 }
 0x609   :  { %v1772_v10 = vpop.f32.mrf.mxu0 }
 0x60a   :  { %v11419_v9 = vadd.f32 %v8382_v11, %v1772_v10 }
 0x60b   :  { %v9424_v0 = vpop.f32.mrf.mxu0 }
 0x60c   :  { %1835 = vmax.xlane.f32.xlu0 %v11413_v57  ;;  %v11463_v54 = vadd.f32 %v9424_v0, %v8385_v13 }
 0x60d   :  { %v1782_v35 = vpop.f32.mrf.mxu0 }
 0x60e   :  { %v11425_v19 = vadd.f32 %v8384_v38, %v1782_v35 }
 0x60f   :  { %v9427_v55 = vpop.f32.mrf.mxu0 }
 0x610   :  { %1839 = vmax.xlane.f32.xlu0 %v11419_v9  ;;  %v11471_v39 = vadd.f32 %v9427_v55, %v8387_v22 }
 0x611   :  { %v1792_v27 = vpop.f32.mrf.mxu0 }
 0x612   :  { %v11433_v6 = vadd.f32 %v8386_v45, %v1792_v27 }
 0x613   :  { %1987 = vrot.lane.b32.xlu1 %v11290_v37, %s10411_s24  ;;  %v9430_v32 = vpop.f32.mrf.mxu0  ;;  %v8390_v37 = vld [vmem:[%s17168_s2 + $0xe0] sm:$0xff] }
 0x614   :  { %1843 = vmax.xlane.f32.xlu0 %v11425_v19  ;;  %v11479_v15 = vadd.f32 %v9430_v32, %v8389_v20 }
 0x615   :  { %v1802_v1 = vpop.f32.mrf.mxu0 }
 0x616   :  { %v11439_v34 = vadd.f32 %v8388_v47, %v1802_v1 }
 0x617   :  { %v9433_v43 = vpop.f32.mrf.mxu0 }
 0x618   :  { %1847 = vmax.xlane.f32.xlu0 %v11433_v6 }
 0x619   :  { %v1812_v31 = vpop.f32.mrf.mxu0 }
 0x61a   :  { %v11445_v8 = vadd.f32 %v8390_v37, %v1812_v31 }
 0x61b   :  { %v9436_v21 = vpop.f32.mrf.mxu0 }
 0x61c   :  { %1851 = vmax.xlane.f32.xlu0 %v11439_v34 }
 0x61d   :  { %v1822_v52 = vpop.f32.mrf.mxu0 }
 0x61e   :  { %v11451_v5 = vadd.f32 %v8392_v46, %v1822_v52 }
 0x620   :  { %1855 = vmax.xlane.f32.xlu0 %v11445_v8 }
 0x624   :  { %1859 = vmax.xlane.f32.xlu0 %v11451_v5 }
 0x637   :  { %1841 = vmax.xlane.f32.xlu1 %v11457_v16 }
 0x63a   :  { %1985 = vrot.lane.b32.xlu0 %v11297_v48, %s10411_s24  ;;  %v11487_v48 = vadd.f32 %v9433_v43, %v8391_v60  ;;  %v73_v60 = vld [vmem:[%s17447_s19 + $0x80] sm:$0xff] }
 0x63b   :  { %1845 = vmax.xlane.f32.xlu1 %v11463_v54 }
 0x63e   :  { %1981 = vrot.lane.b32.xlu0 %v11313_v40, %s10411_s24  ;;  %v11493_v40 = vadd.f32 %v9436_v21, %v8393_v23 }
 0x63f   :  { %1849 = vmax.xlane.f32.xlu1 %v11471_v39 }
 0x642   :  { %1977 = vrot.lane.b32.xlu0 %v11331_v30, %s10411_s24 }
 0x643   :  { %1853 = vmax.xlane.f32.xlu1 %v11479_v15 }
 0x647   :  { %1857 = vmax.xlane.f32.xlu1 %v11487_v48 }
 0x64b   :  { %1861 = vmax.xlane.f32.xlu1 %v11493_v40 }
 0x65c   :  { %1983 = vrot.lane.b32.xlu1 %v11305_v26, %s10411_s24 }
 0x660   :  { %1979 = vrot.lane.b32.xlu1 %v11321_v53, %s10411_s24 }
 0x664   :  { %1975 = vrot.lane.b32.xlu1 %v11339_v24, %s10411_s24 }
 0x68b   :  { %v1834_v30 = vpop.xlane.xlu1 %1833 }
 0x68c   :  { %v1864_v18 = vsub.f32 %v11398_v3, %v1834_v30 }
 0x68d   :  { %v1832_v36 = vpop.xlane.xlu0 %1831 }
 0x68e   :  { %v1881_v59 = vmul.f32 1.442695, %v1864_v18  ;;  %v1863_v61 = vsub.f32 %v11400_v14, %v1832_v36 }
 0x68f   :  { %v1988_v62 = vpop.permute.xlu1 %1987 }
 0x690   :  { %9951 = vpow2.f32 %v1881_v59  ;;  %v1879_v41 = vmul.f32 1.442695, %v1863_v61  ;;  %9455 = vmatprep.subr.mxu1 %v1988_v62 }
 0x691   :  { %v1838_v58 = vpop.xlane.xlu0 %1837  ;;  %9456 = vmatpush3.msra.mxu1 %v1988_v62 }
 0x692   :  { %9953 = vpow2.f32 %v1879_v41  ;;  %v1866_v26 = vsub.f32 %v11407_v12, %v1838_v58 }
 0x694   :  { %v1885_v53 = vmul.f32 1.442695, %v1866_v26 }
 0x695   :  { %v1836_v2 = vpop.xlane.xlu0 %1835 }
 0x696   :  { %9955 = vpow2.f32 %v1885_v53  ;;  %v1865_v24 = vsub.f32 %v11413_v57, %v1836_v2  ;;  %v105_v2 = vld [vmem:[%s17447_s19 + $0x180] sm:$0xff] }
 0x698   :  { %v1883_v50 = vmul.f32 1.442695, %v1865_v24 }
 0x699   :  { %v1840_v29 = vpop.xlane.xlu0 %1839 }
 0x69a   :  { %9957 = vpow2.f32 %v1883_v50  ;;  %v1867_v28 = vsub.f32 %v11419_v9, %v1840_v29  ;;  %v90_v29 = vld [vmem:[%s17447_s19 + $0x108] sm:$0xff] }
 0x69c   :  { %v1887_v56 = vmul.f32 1.442695, %v1867_v28 }
 0x69d   :  { %v11507_v3 = vpop.eup %9951  ;;  %v1844_v25 = vpop.xlane.xlu0 %1843 }
 0x69e   :  { %9959 = vpow2.f32 %v1887_v56  ;;  %v1869_v14 = vsub.f32 %v11425_v19, %v1844_v25  ;;  %1913 = vadd.xlane.f32.xlu0 %v11507_v3  ;;  %v121_v56 = vld [vmem:[%s17447_s19 + $0x200] sm:$0xff]  ;;  %v59_v25 = vld [vmem:[%s17447_s19 + $0x10] sm:$0xff] }
 0x69f   :  { %v11511_v4 = vpop.eup %9953 }
 0x6a0   :  { %v1891_v44 = vmul.f32 1.442695, %v1869_v14  ;;  %1911 = vadd.xlane.f32.xlu1 %v11511_v4  ;;  %v106_v14 = vld [vmem:[%s17447_s19 + $0x188] sm:$0xff] }
 0x6a1   :  { %v1848_v17 = vpop.xlane.xlu0 %1847 }
 0x6a2   :  { %9961 = vpow2.f32 %v1891_v44  ;;  %v1871_v12 = vsub.f32 %v11433_v6, %v1848_v17  ;;  %v91_v44 = vld [vmem:[%s17447_s19 + $0x110] sm:$0xff]  ;;  %v153_v17 = vld [vmem:[%s17447_s19 + $0x300] sm:$0xff] }
 0x6a3   :  { %v11515_v7 = vpop.eup %9955 }
 0x6a4   :  { %v1895_v49 = vmul.f32 1.442695, %v1871_v12  ;;  %1917 = vadd.xlane.f32.xlu0 %v11515_v7  ;;  %v76_v12 = vld [vmem:[%s17447_s19 + $0x98] sm:$0xff] }
 0x6a5   :  { %v1852_v10 = vpop.xlane.xlu0 %1851 }
 0x6a6   :  { %9963 = vpow2.f32 %v1895_v49  ;;  %v1873_v57 = vsub.f32 %v11439_v34, %v1852_v10  ;;  %v57_v49 = vld [vmem:[%s17447_s19] sm:$0xff]  ;;  %v138_v10 = vld [vmem:[%s17447_s19 + $0x288] sm:$0xff] }
 0x6a7   :  { %v11519_v11 = vpop.eup %9957 }
 0x6a8   :  { %v1899_v0 = vmul.f32 1.442695, %v1873_v57  ;;  %1915 = vadd.xlane.f32.xlu1 %v11519_v11  ;;  %v75_v57 = vld [vmem:[%s17447_s19 + $0x90] sm:$0xff] }
 0x6a9   :  { %v1856_v35 = vpop.xlane.xlu0 %1855 }
 0x6aa   :  { %9965 = vpow2.f32 %v1899_v0  ;;  %v1875_v9 = vsub.f32 %v11445_v8, %v1856_v35  ;;  %v92_v0 = vld [vmem:[%s17447_s19 + $0x118] sm:$0xff]  ;;  %v137_v35 = vld [vmem:[%s17447_s19 + $0x280] sm:$0xff] }
 0x6ab   :  { %v11523_v38 = vpop.eup %9959 }
 0x6ac   :  { %v1903_v55 = vmul.f32 1.442695, %v1875_v9  ;;  %1919 = vadd.xlane.f32.xlu1 %v11523_v38  ;;  %v154_v9 = vld [vmem:[%s17447_s19 + $0x308] sm:$0xff] }
 0x6ad   :  { %v1860_v27 = vpop.xlane.xlu0 %1859 }
 0x6ae   :  { %9967 = vpow2.f32 %v1903_v55  ;;  %v1877_v19 = vsub.f32 %v11451_v5, %v1860_v27  ;;  %v122_v55 = vld [vmem:[%s17447_s19 + $0x208] sm:$0xff]  ;;  %v61_v27 = vld [vmem:[%s17447_s19 + $0x20] sm:$0xff] }
 0x6af   :  { %v11527_v45 = vpop.eup %9961 }
 0x6b0   :  { %v1907_v32 = vmul.f32 1.442695, %v1877_v19  ;;  %1923 = vadd.xlane.f32.xlu1 %v11527_v45  ;;  %v60_v19 = vld [vmem:[%s17447_s19 + $0x18] sm:$0xff] }
 0x6b1   :  { %v1986_v1 = vpop.permute.xlu0 %1985 }
 0x6b2   :  { %9969 = vpow2.f32 %v1907_v32  ;;  %9457 = vmatprep.subr.mxu1 %v1986_v1  ;;  %v108_v32 = vld [vmem:[%s17447_s19 + $0x198] sm:$0xff] }
 0x6b3   :  { %v11530_v6 = vpop.eup %9963  ;;  %9458 = vmatpush3.msra.mxu1 %v1986_v1  ;;  %v107_v1 = vld [vmem:[%s17447_s19 + $0x190] sm:$0xff] }
 0x6b4   :  { %1927 = vadd.xlane.f32.xlu1 %v11530_v6 }
 0x6b5   :  { %v1982_v61 = vpop.permute.xlu0 %1981 }
 0x6b7   :  { %v11533_v47 = vpop.eup %9965 }
 0x6b8   :  { %1931 = vadd.xlane.f32.xlu1 %v11533_v47 }
 0x6b9   :  { %v1978_v53 = vpop.permute.xlu0 %1977 }
 0x6bb   :  { %v11536_v43 = vpop.eup %9967 }
 0x6bc   :  { %1935 = vadd.xlane.f32.xlu1 %v11536_v43 }
 0x6bf   :  { %v11539_v31 = vpop.eup %9969 }
 0x6c0   :  { %1939 = vadd.xlane.f32.xlu1 %v11539_v31  ;;  %v1842_v34 = vpop.xlane.xlu1 %1841 }
 0x6c1   :  { %v1868_v37 = vsub.f32 %v11457_v16, %v1842_v34  ;;  %v170_v34 = vld [vmem:[%s17447_s19 + $0x388] sm:$0xff] }
 0x6c3   :  { %v1889_v21 = vmul.f32 1.442695, %v1868_v37  ;;  %v169_v37 = vld [vmem:[%s17447_s19 + $0x380] sm:$0xff] }
 0x6c4   :  { %v1846_v8 = vpop.xlane.xlu1 %1845 }
 0x6c5   :  { %9971 = vpow2.f32 %v1889_v21  ;;  %v1870_v52 = vsub.f32 %v11463_v54, %v1846_v8  ;;  %v124_v21 = vld [vmem:[%s17447_s19 + $0x218] sm:$0xff]  ;;  %v123_v8 = vld [vmem:[%s17447_s19 + $0x210] sm:$0xff] }
 0x6c7   :  { %v1893_v46 = vmul.f32 1.442695, %v1870_v52  ;;  %v186_v52 = vld [vmem:[%s17447_s19 + $0x408] sm:$0xff] }
 0x6c8   :  { %v1850_v5 = vpop.xlane.xlu1 %1849 }
 0x6c9   :  { %9973 = vpow2.f32 %v1893_v46  ;;  %v1872_v51 = vsub.f32 %v11471_v39, %v1850_v5  ;;  %v89_v39 = vld [vmem:[%s17447_s19 + $0x100] sm:$0xff]  ;;  %v78_v5 = vld [vmem:[%s17447_s19 + $0xa8] sm:$0xff] }
 0x6ca   :  { %v185_v46 = vld [vmem:[%s17447_s19 + $0x400] sm:$0xff] }
 0x6cb   :  { %v1897_v13 = vmul.f32 1.442695, %v1872_v51  ;;  %v77_v51 = vld [vmem:[%s17447_s19 + $0xa0] sm:$0xff] }
 0x6cc   :  { %v1854_v22 = vpop.xlane.xlu1 %1853 }
 0x6cd   :  { %9975 = vpow2.f32 %v1897_v13  ;;  %v1874_v20 = vsub.f32 %v11479_v15, %v1854_v22  ;;  %v140_v13 = vld [vmem:[%s17447_s19 + $0x298] sm:$0xff]  ;;  %v139_v22 = vld [vmem:[%s17447_s19 + $0x290] sm:$0xff] }
 0x6cf   :  { %v1901_v16 = vmul.f32 1.442695, %v1874_v20  ;;  %v94_v20 = vld [vmem:[%s17447_s19 + $0x128] sm:$0xff] }
 0x6d0   :  { %v1858_v23 = vpop.xlane.xlu1 %1857 }
 0x6d1   :  { %9977 = vpow2.f32 %v1901_v16  ;;  %v1876_v63 = vsub.f32 %v11487_v48, %v1858_v23  ;;  %2593 = vperm.xlu1 %9854, %v73_v60   ;;  %v58_v48 = vld [vmem:[%s17447_s19 + $0x8] sm:$0xff]  ;;  %v93_v60 = vld [vmem:[%s17447_s19 + $0x120] sm:$0xff] }
 0x6d2   :  { %v11550_v54 = vpop.eup %9971 }
 0x6d3   :  { %v1905_v30 = vmul.f32 1.442695, %v1876_v63  ;;  %1921 = vadd.xlane.f32.xlu0 %v11550_v54  ;;  %v156_v63 = vld [vmem:[%s17447_s19 + $0x318] sm:$0xff] }
 0x6d4   :  { %v1862_v15 = vpop.xlane.xlu1 %1861 }
 0x6d5   :  { %9979 = vpow2.f32 %v1905_v30  ;;  %v1878_v18 = vsub.f32 %v11493_v40, %v1862_v15  ;;  %2777 = vperm.xlu1 %9854, %v89_v39   ;;  %v74_v40 = vld [vmem:[%s17447_s19 + $0x88] sm:$0xff]  ;;  %v155_v39 = vld [vmem:[%s17447_s19 + $0x310] sm:$0xff] }
 0x6d6   :  { %v11557_v36 = vpop.eup %9973  ;;  %v63_v15 = vld [vmem:[%s17447_s19 + $0x30] sm:$0xff] }
 0x6d7   :  { %v1909_v59 = vmul.f32 1.442695, %v1878_v18  ;;  %1925 = vadd.xlane.f32.xlu0 %v11557_v36  ;;  %v62_v18 = vld [vmem:[%s17447_s19 + $0x28] sm:$0xff] }
 0x6d8   :  { %v1984_v62 = vpop.permute.xlu1 %1983 }
 0x6d9   :  { %9981 = vpow2.f32 %v1909_v59  ;;  %9459 = vmatprep.subr.mxu1 %v1984_v62  ;;  %2464 = vperm.xlu1 %9854, %v58_v48   ;;  %v110_v59 = vld [vmem:[%s17447_s19 + $0x1a8] sm:$0xff] }
 0x6da   :  { %v11563_v41 = vpop.eup %9975  ;;  %9460 = vmatpush3.msra.mxu1 %v1984_v62 }
 0x6db   :  { %1929 = vadd.xlane.f32.xlu0 %v11563_v41  ;;  %9461 = vmatprep.subr.mxu1 %v1982_v61 }
 0x6dc   :  { %9462 = vmatpush3.msra.mxu1 %v1982_v61  ;;  %v1980_v58 = vpop.permute.xlu1 %1979  ;;  %v109_v61 = vld [vmem:[%s17447_s19 + $0x1a0] sm:$0xff] }
 0x6dd   :  { %9463 = vmatprep.subr.mxu1 %v1980_v58  ;;  %2598 = vperm.xlu1 %9854, %v74_v40  }
 0x6de   :  { %v11569_v26 = vpop.eup %9977  ;;  %9464 = vmatpush3.msra.mxu1 %v1980_v58  ;;  %v172_v58 = vld [vmem:[%s17447_s19 + $0x398] sm:$0xff] }
 0x6df   :  { %1933 = vadd.xlane.f32.xlu0 %v11569_v26  ;;  %9465 = vmatprep.subr.mxu1 %v1978_v53 }
 0x6e0   :  { %9466 = vmatpush3.msra.mxu1 %v1978_v53  ;;  %v1976_v24 = vpop.permute.xlu1 %1975  ;;  %v171_v53 = vld [vmem:[%s17447_s19 + $0x390] sm:$0xff] }
 0x6e1   :  { %9467 = vmatprep.subr.mxu1 %v1976_v24  ;;  %2911 = vperm.xlu1 %9854, %v105_v2  }
 0x6e2   :  { %v11575_v50 = vpop.eup %9979  ;;  %9468 = vmatpush3.msra.mxu1 %v1976_v24 }
 0x6e3   :  { %1937 = vadd.xlane.f32.xlu0 %v11575_v50 }
 0x6e5   :  { %2782 = vperm.xlu1 %9854, %v90_v29  }
 0x6e6   :  { %v11581_v28 = vpop.eup %9981 }
 0x6e7   :  { %1941 = vadd.xlane.f32.xlu0 %v11581_v28 }
 0x6e9   :  { %3045 = vperm.xlu1 %9854, %v121_v56  }
 0x6ed   :  { %2469 = vperm.xlu1 %9854, %v59_v25   ;;  %v126_v25 = vld [vmem:[%s17447_s19 + $0x228] sm:$0xff] }
 0x6f1   :  { %2916 = vperm.xlu1 %9854, %v106_v14   ;;  %v125_v14 = vld [vmem:[%s17447_s19 + $0x220] sm:$0xff] }
 0x6f5   :  { %2787 = vperm.xlu1 %9854, %v91_v44  }
 0x6f9   :  { %3313 = vperm.xlu1 %9854, %v153_v17  }
 0x6fd   :  { %2608 = vperm.xlu1 %9854, %v76_v12   ;;  %2459 = vperm.xlu0 %9853, %v57_v49  }
 0x701   :  { %3184 = vperm.xlu1 %9854, %v138_v10   ;;  %2603 = vperm.xlu0 %9853, %v75_v57  }
 0x705   :  { %2792 = vperm.xlu1 %9854, %v92_v0   ;;  %3179 = vperm.xlu0 %9853, %v137_v35   ;;  %v80_v0 = vld [vmem:[%s17447_s19 + $0xb8] sm:$0xff]  ;;  %v79_v35 = vld [vmem:[%s17447_s19 + $0xb0] sm:$0xff] }
 0x709   :  { %3318 = vperm.xlu1 %9854, %v154_v9   ;;  %3050 = vperm.xlu0 %9853, %v122_v55  }
 0x70d   :  { %2479 = vperm.xlu1 %9854, %v61_v27   ;;  %2474 = vperm.xlu0 %9853, %v60_v19  }
 0x711   :  { %2926 = vperm.xlu1 %9854, %v108_v32   ;;  %2921 = vperm.xlu0 %9853, %v107_v1   ;;  %v96_v32 = vld [vmem:[%s17447_s19 + $0x138] sm:$0xff] }
 0x715   :  { %3452 = vperm.xlu1 %9854, %v170_v34   ;;  %3447 = vperm.xlu0 %9853, %v169_v37   ;;  %v158_v34 = vld [vmem:[%s17447_s19 + $0x328] sm:$0xff]  ;;  %v157_v37 = vld [vmem:[%s17447_s19 + $0x320] sm:$0xff] }
 0x719   :  { %3060 = vperm.xlu1 %9854, %v124_v21   ;;  %3055 = vperm.xlu0 %9853, %v123_v8   ;;  %v65_v8 = vld [vmem:[%s17447_s19 + $0x40] sm:$0xff] }
 0x71d   :  { %3586 = vperm.xlu1 %9854, %v186_v52   ;;  %3581 = vperm.xlu0 %9853, %v185_v46   ;;  %v64_v52 = vld [vmem:[%s17447_s19 + $0x38] sm:$0xff] }
 0x721   :  { %2618 = vperm.xlu1 %9854, %v78_v5   ;;  %2613 = vperm.xlu0 %9853, %v77_v51   ;;  %v112_v5 = vld [vmem:[%s17447_s19 + $0x1b8] sm:$0xff]  ;;  %v111_v51 = vld [vmem:[%s17447_s19 + $0x1b0] sm:$0xff] }
 0x725   :  { %3194 = vperm.xlu1 %9854, %v140_v13   ;;  %3189 = vperm.xlu0 %9853, %v139_v22   ;;  %v174_v22 = vld [vmem:[%s17447_s19 + $0x3a8] sm:$0xff] }
 0x727   :  { %v1914_v16 = vpop.xlane.xlu0 %1913 }
 0x728   :  { %9983 = vrcp.f32 %v1914_v16 }
 0x729   :  { %v1912_v23 = vpop.xlane.xlu1 %1911  ;;  %2802 = vperm.xlu1 %9854, %v94_v20   ;;  %2797 = vperm.xlu0 %9853, %v93_v60   ;;  %v173_v20 = vld [vmem:[%s17447_s19 + $0x3a0] sm:$0xff] }
 0x72a   :  { %9985 = vrcp.f32 %v1912_v23  ;;  %v128_v23 = vld [vmem:[%s17447_s19 + $0x238] sm:$0xff] }
 0x72d   :  { %3328 = vperm.xlu1 %9854, %v156_v63   ;;  %3323 = vperm.xlu0 %9853, %v155_v39   ;;  %v1918_v30 = vpop.xlane.xlu0 %1917  ;;  %v127_v63 = vld [vmem:[%s17447_s19 + $0x230] sm:$0xff] }
 0x72e   :  { %9987 = vrcp.f32 %v1918_v30 }
 0x731   :  { %v1916_v48 = vpop.xlane.xlu1 %1915  ;;  %2489 = vperm.xlu1 %9854, %v63_v15   ;;  %2484 = vperm.xlu0 %9853, %v62_v18   ;;  %v190_v15 = vld [vmem:[%s17447_s19 + $0x428] sm:$0xff]  ;;  %v189_v18 = vld [vmem:[%s17447_s19 + $0x420] sm:$0xff] }
 0x732   :  { %9989 = vrcp.f32 %v1916_v48 }
 0x735   :  { %v1920_v62 = vpop.xlane.xlu1 %1919  ;;  %2936 = vperm.xlu1 %9854, %v110_v59   ;;  %2931 = vperm.xlu0 %9853, %v109_v61   ;;  %v9984_v40 = vpop.eup %9983  ;;  %v82_v61 = vld [vmem:[%s17447_s19 + $0xc8] sm:$0xff] }
 0x736   :  { %9991 = vrcp.f32 %v1920_v62  ;;  %v1960_v56 = vmul.f32 %v9984_v40, %v11507_v3  ;;  %v187_v3 = vld [vmem:[%s17447_s19 + $0x410] sm:$0xff]  ;;  %v81_v62 = vld [vmem:[%s17447_s19 + $0xc0] sm:$0xff] }
 0x737   :  { %v9986_v2 = vpop.eup %9985 }
 0x738   :  { %v1959_v24 = vmul.f32 %v9986_v2, %v11511_v4  ;;  %v188_v4 = vld [vmem:[%s17447_s19 + $0x418] sm:$0xff] }
 0x739   :  { %v1924_v29 = vpop.xlane.xlu1 %1923  ;;  %3462 = vperm.xlu1 %9854, %v172_v58   ;;  %3457 = vperm.xlu0 %9853, %v171_v53  }
 0x73a   :  { %9469 = vmatprep.mubr.f32.mxu1 %v1959_v24  ;;  %9993 = vrcp.f32 %v1924_v29  ;;  %v144_v24 = vld [vmem:[%s17447_s19 + $0x2b8] sm:$0xff] }
 0x73b   :  { %9470 = vmatmul.mubr.f32.vlgmr.msra.gmra.mxu1 %v1960_v56  ;;  %v9988_v17 = vpop.eup %9987  ;;  %v143_v56 = vld [vmem:[%s17447_s19 + $0x2b0] sm:$0xff] }
 0x73c   :  { %v1962_v57 = vmul.f32 %v9988_v17, %v11515_v7  ;;  %v142_v7 = vld [vmem:[%s17447_s19 + $0x2a8] sm:$0xff] }
 0x73d   :  { %v1928_v44 = vpop.xlane.xlu1 %1927  ;;  %3070 = vperm.xlu1 %9854, %v126_v25   ;;  %3065 = vperm.xlu0 %9853, %v125_v14  }
 0x73f   :  { %v9990_v12 = vpop.eup %9989 }
 0x740   :  { %v1961_v49 = vmul.f32 %v9990_v12, %v11519_v11  ;;  %v141_v11 = vld [vmem:[%s17447_s19 + $0x2a0] sm:$0xff] }
 0x741   :  { %v1932_v10 = vpop.xlane.xlu1 %1931  ;;  %3596 = vperm.xlu1 %9854, %v188_v4   ;;  %3591 = vperm.xlu0 %9853, %v187_v3   ;;  %v97_v12 = vld [vmem:[%s17447_s19 + $0x140] sm:$0xff] }
 0x742   :  { %9472 = vmatprep.mubr.f32.mxu1 %v1961_v49 }
 0x743   :  { %v9992_v9 = vpop.eup %9991  ;;  %9473 = vmatmul.mubr.f32.gmra.mxu1 %v1962_v57 }
 0x744   :  { %v1963_v55 = vmul.f32 %v9992_v9, %v11523_v38  ;;  %v95_v38 = vld [vmem:[%s17447_s19 + $0x130] sm:$0xff] }
 0x745   :  { %v1936_v27 = vpop.xlane.xlu1 %1935  ;;  %2628 = vperm.xlu1 %9854, %v80_v0   ;;  %2623 = vperm.xlu0 %9853, %v79_v35   ;;  %v160_v0 = vld [vmem:[%s17447_s19 + $0x338] sm:$0xff]  ;;  %v159_v35 = vld [vmem:[%s17447_s19 + $0x330] sm:$0xff] }
 0x746   :  { %9475 = vmatprep.mubr.f32.mxu1 %v1963_v55 }
 0x747   :  { %v9994_v58 = vpop.eup %9993 }
 0x748   :  { %v1965_v14 = vmul.f32 %v9994_v58, %v11527_v45  ;;  %v84_v58 = vld [vmem:[%s17447_s19 + $0xd8] sm:$0xff] }
 0x749   :  { %v1940_v19 = vpop.xlane.xlu1 %1939  ;;  %3204 = vperm.xlu1 %9854, %v142_v7   ;;  %3199 = vperm.xlu0 %9853, %v141_v11   ;;  %v67_v7 = vld [vmem:[%s17447_s19 + $0x50] sm:$0xff] }
 0x74d   :  { %v11730_v1 = vpop.permute.xlu1 %2593  ;;  %2812 = vperm.xlu1 %9854, %v96_v32   ;;  %2807 = vperm.xlu0 %9853, %v95_v38  }
 0x74e   :  { %17448 = vst [vmem:[#allocation13_spill] sm:$0xff] %v11730_v1 }
 0x751   :  { %v11738_v21 = vpop.permute.xlu1 %2777  ;;  %3338 = vperm.xlu1 %9854, %v158_v34   ;;  %3333 = vperm.xlu0 %9853, %v157_v37   ;;  %v8428_v34 = vld [vmem:[%s17173_s7 + $0x30] sm:$0xff] }
 0x752   :  { %17449 = vst [vmem:[#allocation15_spill] sm:$0xff] %v11738_v21 }
 0x755   :  { %2499 = vperm.xlu1 %9854, %v65_v8   ;;  %v11746_v46 = vpop.permute.xlu1 %2464  ;;  %2494 = vperm.xlu0 %9853, %v64_v52  }
 0x756   :  { %17450 = vst [vmem:[#allocation14_spill] sm:$0xff] %v11746_v46 }
 0x759   :  { %2946 = vperm.xlu1 %9854, %v112_v5   ;;  %v11754_v13 = vpop.permute.xlu1 %2598  ;;  %2941 = vperm.xlu0 %9853, %v111_v51  }
 0x75a   :  { %17451 = vst [vmem:[#allocation12_spill] sm:$0xff] %v11754_v13 }
 0x75c   :  { %v1922_v60 = vpop.xlane.xlu0 %1921 }
 0x75d   :  { %9995 = vrcp.f32 %v1922_v60  ;;  %3472 = vperm.xlu1 %9854, %v174_v22   ;;  %v11762_v16 = vpop.permute.xlu1 %2911  ;;  %3467 = vperm.xlu0 %9853, %v173_v20   ;;  %v8427_v22 = vld [vmem:[%s17173_s7 + $0x28] sm:$0xff] }
 0x75e   :  { %17452 = vst [vmem:[#allocation11_spill] sm:$0xff] %v11762_v16  ;;  %9997 = vrcp.f32 %v1928_v44 }
 0x760   :  { %v1926_v39 = vpop.xlane.xlu0 %1925 }
 0x761   :  { %9999 = vrcp.f32 %v1926_v39  ;;  %3080 = vperm.xlu1 %9854, %v128_v23   ;;  %v11770_v30 = vpop.permute.xlu1 %2782  ;;  %3075 = vperm.xlu0 %9853, %v127_v63   ;;  %v8426_v23 = vld [vmem:[%s17173_s7 + $0x20] sm:$0xff] }
 0x762   :  { %17453 = vst [vmem:[#allocation10_spill] sm:$0xff] %v11770_v30  ;;  %10001 = vrcp.f32 %v1932_v10 }
 0x764   :  { %v1930_v48 = vpop.xlane.xlu0 %1929 }
 0x765   :  { %10003 = vrcp.f32 %v1930_v48  ;;  %3606 = vperm.xlu1 %9854, %v190_v15   ;;  %v11778_v59 = vpop.permute.xlu1 %3045  ;;  %3601 = vperm.xlu0 %9853, %v189_v18   ;;  %v129_v15 = vld [vmem:[%s17447_s19 + $0x240] sm:$0xff] }
 0x766   :  { %17454 = vst [vmem:[#allocation9_spill] sm:$0xff] %v11778_v59  ;;  %10005 = vrcp.f32 %v1936_v27 }
 0x768   :  { %v1934_v40 = vpop.xlane.xlu0 %1933 }
 0x769   :  { %10007 = vrcp.f32 %v1934_v40  ;;  %2638 = vperm.xlu1 %9854, %v82_v61   ;;  %v11786_v53 = vpop.permute.xlu1 %2469  ;;  %2633 = vperm.xlu0 %9853, %v81_v62   ;;  %v192_v61 = vld [vmem:[%s17447_s19 + $0x438] sm:$0xff]  ;;  %v191_v62 = vld [vmem:[%s17447_s19 + $0x430] sm:$0xff] }
 0x76a   :  { %17455 = vst [vmem:[#allocation8_spill] sm:$0xff] %v11786_v53  ;;  %v9996_v2 = vpop.eup %9995  ;;  %10009 = vrcp.f32 %v1940_v19 }
 0x76b   :  { %v1964_v29 = vmul.f32 %v9996_v2, %v11550_v54  ;;  %v9998_v44 = vpop.eup %9997  ;;  %v98_v54 = vld [vmem:[%s17447_s19 + $0x148] sm:$0xff]  ;;  %v83_v2 = vld [vmem:[%s17447_s19 + $0xd0] sm:$0xff] }
 0x76c   :  { %v1938_v25 = vpop.xlane.xlu0 %1937  ;;  %v1967_v49 = vmul.f32 %v9998_v44, %v11530_v6 }
 0x76d   :  { %10011 = vrcp.f32 %v1938_v25  ;;  %9476 = vmatmul.mubr.f32.gmra.mxu1 %v1964_v29  ;;  %3214 = vperm.xlu1 %9854, %v144_v24   ;;  %v11796_v4 = vpop.permute.xlu1 %2916  ;;  %v145_v25 = vld [vmem:[%s17447_s19 + $0x2c0] sm:$0xff] }
 0x76e   :  { %v10000_v17 = vpop.eup %9999  ;;  %17456 = vst [vmem:[#allocation7_spill] sm:$0xff] %v11796_v4  ;;  %3209 = vperm.xlu0 %9853, %v143_v56   ;;  %9478 = vmatprep.mubr.f32.mxu1 %v1965_v14  ;;  %v146_v56 = vld [vmem:[%s17447_s19 + $0x2c8] sm:$0xff] }
 0x76f   :  { %v1966_v3 = vmul.f32 %v10000_v17, %v11557_v36  ;;  %v10002_v10 = vpop.eup %10001  ;;  %v100_v17 = vld [vmem:[%s17447_s19 + $0x158] sm:$0xff] }
 0x770   :  { %v1942_v45 = vpop.xlane.xlu0 %1941  ;;  %v1969_v6 = vmul.f32 %v10002_v10, %v11533_v47  ;;  %v66_v47 = vld [vmem:[%s17447_s19 + $0x48] sm:$0xff] }
 0x771   :  { %10013 = vrcp.f32 %v1942_v45  ;;  %9479 = vmatmul.mubr.f32.gmra.mxu1 %v1966_v3  ;;  %2822 = vperm.xlu1 %9854, %v98_v54   ;;  %v11813_v9 = vpop.permute.xlu1 %2787  ;;  %v99_v54 = vld [vmem:[%s17447_s19 + $0x150] sm:$0xff]  ;;  %v161_v45 = vld [vmem:[%s17447_s19 + $0x340] sm:$0xff] }
 0x772   :  { %v10004_v57 = vpop.eup %10003  ;;  %2817 = vperm.xlu0 %9853, %v97_v12   ;;  %9481 = vmatprep.mubr.f32.mxu1 %v1967_v49  ;;  %17457 = vst [vmem:[#allocation6_spill] sm:$0xff] %v11813_v9  ;;  %v162_v12 = vld [vmem:[%s17447_s19 + $0x348] sm:$0xff] }
 0x773   :  { %v1968_v36 = vmul.f32 %v10004_v57, %v11563_v41  ;;  %v10006_v55 = vpop.eup %10005  ;;  %v8429_v41 = vld [vmem:[%s17173_s7 + $0x38] sm:$0xff]  ;;  %v69_v57 = vld [vmem:[%s17447_s19 + $0x60] sm:$0xff] }
 0x774   :  { %9493 = vmatprep.subr.mxu1 %v8429_v41  ;;  %v1971_v32 = vmul.f32 %v10006_v55, %v11536_v43  ;;  %v113_v43 = vld [vmem:[%s17447_s19 + $0x1c0] sm:$0xff]  ;;  %v115_v55 = vld [vmem:[%s17447_s19 + $0x1d0] sm:$0xff] }
 0x775   :  { %9482 = vmatmul.mubr.f32.gmra.mxu1 %v1968_v36  ;;  %3348 = vperm.xlu1 %9854, %v160_v0   ;;  %v11832_v8 = vpop.permute.xlu1 %3313  ;;  %v68_v0 = vld [vmem:[%s17447_s19 + $0x58] sm:$0xff] }
 0x776   :  { %v10008_v27 = vpop.eup %10007  ;;  %3343 = vperm.xlu0 %9853, %v159_v35   ;;  %9484 = vmatprep.mubr.f32.mxu1 %v1969_v6  ;;  %17459 = vst [vmem:[#allocation18_spill] sm:$0xff] %v11832_v8  ;;  %v116_v35 = vld [vmem:[%s17447_s19 + $0x1d8] sm:$0xff] }
 0x777   :  { %v1970_v11 = vmul.f32 %v10008_v27, %v11569_v26  ;;  %9494 = vmatpush3.msra.mxu1 %v8429_v41  ;;  %v10010_v38 = vpop.eup %10009  ;;  %v114_v26 = vld [vmem:[%s17447_s19 + $0x1c8] sm:$0xff] }
 0x778   :  { %v11826_v19 = vpop.permute.xlu0 %2459  ;;  %9495 = vmatprep.subr.mxu1 %v8428_v34  ;;  %v1973_v51 = vmul.f32 %v10010_v38, %v11539_v31  ;;  %v175_v31 = vld [vmem:[%s17447_s19 + $0x3b0] sm:$0xff]  ;;  %v178_v27 = vld [vmem:[%s17447_s19 + $0x3c8] sm:$0xff] }
 0x779   :  { %17458 = vst [vmem:[#allocation17_spill] sm:$0xff] %v11826_v19  ;;  %9485 = vmatmul.mubr.f32.gmra.mxu1 %v1970_v11  ;;  %2509 = vperm.xlu1 %9854, %v67_v7   ;;  %v11857_v63 = vpop.permute.xlu1 %2608  ;;  %v177_v7 = vld [vmem:[%s17447_s19 + $0x3c0] sm:$0xff] }
 0x77a   :  { %v10012_v37 = vpop.eup %10011  ;;  %2504 = vperm.xlu0 %9853, %v66_v47   ;;  %9487 = vmatprep.mubr.f32.mxu1 %v1971_v32  ;;  %17461 = vst [vmem:[#allocation20_spill] sm:$0xff] %v11857_v63  ;;  %v132_v47 = vld [vmem:[%s17447_s19 + $0x258] sm:$0xff]  ;;  %v131_v32 = vld [vmem:[%s17447_s19 + $0x250] sm:$0xff] }
 0x77b   :  { %v1972_v52 = vmul.f32 %v10012_v37, %v11575_v50  ;;  %9496 = vmatpush3.msra.mxu1 %v8428_v34  ;;  %v176_v50 = vld [vmem:[%s17447_s19 + $0x3b8] sm:$0xff]  ;;  %v194_v34 = vld [vmem:[%s17447_s19 + $0x448] sm:$0xff] }
 0x77c   :  { %v11841_v5 = vpop.permute.xlu0 %2603  ;;  %9497 = vmatprep.subr.mxu1 %v8427_v22 }
 0x77d   :  { %17460 = vst [vmem:[#allocation19_spill] sm:$0xff] %v11841_v5  ;;  %9488 = vmatmul.mubr.f32.gmra.mxu1 %v1972_v52  ;;  %2956 = vperm.xlu1 %9854, %v114_v26   ;;  %v11869_v48 = vpop.permute.xlu1 %3184  ;;  %v193_v26 = vld [vmem:[%s17447_s19 + $0x440] sm:$0xff]  ;;  %v86_v52 = vld [vmem:[%s17447_s19 + $0xe8] sm:$0xff] }
 0x77e   :  { %v10014_v20 = vpop.eup %10013  ;;  %2951 = vperm.xlu0 %9853, %v113_v43   ;;  %9490 = vmatprep.mubr.f32.mxu1 %v1973_v51  ;;  %17464 = vst [vmem:[#allocation23_spill] sm:$0xff] %v11869_v48  ;;  %v85_v43 = vld [vmem:[%s17447_s19 + $0xe0] sm:$0xff] }
 0x77f   :  { %v1974_v60 = vmul.f32 %v10014_v20, %v11581_v28  ;;  %9498 = vmatpush3.msra.mxu1 %v8427_v22  ;;  %v130_v28 = vld [vmem:[%s17447_s19 + $0x248] sm:$0xff]  ;;  %v148_v20 = vld [vmem:[%s17447_s19 + $0x2d8] sm:$0xff] }
 0x780   :  { %v11859_v39 = vpop.permute.xlu0 %3179  ;;  %9499 = vmatprep.subr.mxu1 %v8426_v23 }
 0x781   :  { %17462 = vst [vmem:[#allocation21_spill] sm:$0xff] %v11859_v39  ;;  %9491 = vmatmul.mubr.f32.gmra.mxu1 %v1974_v60  ;;  %3482 = vperm.xlu1 %9854, %v176_v50   ;;  %v11885_v24 = vpop.permute.xlu1 %2792  ;;  %v147_v50 = vld [vmem:[%s17447_s19 + $0x2d0] sm:$0xff] }
 0x782   :  { %3477 = vperm.xlu0 %9853, %v175_v31   ;;  %9500 = vmatpush3.msra.mxu1 %v8426_v23  ;;  %17466 = vst [vmem:[#allocation25_spill] sm:$0xff] %v11885_v24  ;;  %v102_v31 = vld [vmem:[%s17447_s19 + $0x168] sm:$0xff] }
 0x784   :  { %v11867_v18 = vpop.permute.xlu0 %3050 }
 0x785   :  { %17463 = vst [vmem:[#allocation22_spill] sm:$0xff] %v11867_v18  ;;  %3090 = vperm.xlu1 %9854, %v130_v28   ;;  %v11897_v44 = vpop.permute.xlu1 %3318  ;;  %v101_v28 = vld [vmem:[%s17447_s19 + $0x160] sm:$0xff] }
 0x786   :  { %3085 = vperm.xlu0 %9853, %v129_v15   ;;  %17469 = vst [vmem:[#allocation28_spill] sm:$0xff] %v11897_v44  ;;  %v164_v15 = vld [vmem:[%s17447_s19 + $0x358] sm:$0xff] }
 0x788   :  { %v11877_v40 = vpop.permute.xlu0 %2474 }
 0x789   :  { %17465 = vst [vmem:[#allocation24_spill] sm:$0xff] %v11877_v40  ;;  %3616 = vperm.xlu1 %9854, %v192_v61   ;;  %v11913_v49 = vpop.permute.xlu1 %2479  ;;  %v163_v61 = vld [vmem:[%s17447_s19 + $0x350] sm:$0xff] }
 0x78a   :  { %3611 = vperm.xlu0 %9853, %v191_v62   ;;  %17471 = vst [vmem:[#allocation30_spill] sm:$0xff] %v11913_v49 }
 0x78c   :  { %v11887_v29 = vpop.permute.xlu0 %2921 }
 0x78d   :  { %17467 = vst [vmem:[#allocation26_spill] sm:$0xff] %v11887_v29  ;;  %2648 = vperm.xlu1 %9854, %v84_v58   ;;  %v11923_v36 = vpop.permute.xlu1 %2926 }
 0x78e   :  { %2643 = vperm.xlu0 %9853, %v83_v2   ;;  %17473 = vst [vmem:[#allocation32_spill] sm:$0xff] %v11923_v36  ;;  %v71_v2 = vld [vmem:[%s17447_s19 + $0x70] sm:$0xff] }
 0x790   :  { %v11895_v14 = vpop.permute.xlu0 %3447 }
 0x791   :  { %17468 = vst [vmem:[#allocation27_spill] sm:$0xff] %v11895_v14  ;;  %3224 = vperm.xlu1 %9854, %v146_v56   ;;  %v11939_v41 = vpop.permute.xlu1 %3452  ;;  %v70_v56 = vld [vmem:[%s17447_s19 + $0x68] sm:$0xff] }
 0x792   :  { %3219 = vperm.xlu0 %9853, %v145_v25   ;;  %17475 = vst [vmem:[#allocation34_spill] sm:$0xff] %v11939_v41  ;;  %v12001_v25 = vpop.f32.mrf.mxu1 }
 0x794   :  { %v11905_v3 = vpop.permute.xlu0 %3055 }
 0x795   :  { %17470 = vst [vmem:[#allocation29_spill] sm:$0xff] %v11905_v3  ;;  %2832 = vperm.xlu1 %9854, %v100_v17   ;;  %v11949_v38 = vpop.permute.xlu1 %3060 }
 0x796   :  { %2827 = vperm.xlu0 %9853, %v99_v54   ;;  %17477 = vst [vmem:[#allocation36_spill] sm:$0xff] %v11949_v38  ;;  %v118_v54 = vld [vmem:[%s17447_s19 + $0x1e8] sm:$0xff] }
 0x798   :  { %v11915_v10 = vpop.permute.xlu0 %3581 }
 0x799   :  { %17472 = vst [vmem:[#allocation31_spill] sm:$0xff] %v11915_v10  ;;  %3358 = vperm.xlu1 %9854, %v162_v12   ;;  %v11965_v51 = vpop.permute.xlu1 %3586 }
 0x79a   :  { %3353 = vperm.xlu0 %9853, %v161_v45   ;;  %17479 = vst [vmem:[#allocation38_spill] sm:$0xff] %v11965_v51  ;;  %v117_v45 = vld [vmem:[%s17447_s19 + $0x1e0] sm:$0xff] }
 0x79c   :  { %v11928_v6 = vpop.permute.xlu0 %2613 }
 0x79d   :  { %2519 = vperm.xlu1 %9854, %v69_v57   ;;  %17474 = vst [vmem:[#allocation33_spill] sm:$0xff] %v11928_v6  ;;  %v11975_v60 = vpop.permute.xlu1 %2618  ;;  %v12013_v57 = vpop.f32.mrf.mxu1 }
 0x79e   :  { %2514 = vperm.xlu0 %9853, %v68_v0   ;;  %17481 = vst [vmem:[#allocation40_spill] sm:$0xff] %v11975_v60  ;;  %v180_v0 = vld [vmem:[%s17447_s19 + $0x3d8] sm:$0xff] }
 0x7a0   :  { %v11941_v11 = vpop.permute.xlu0 %3189 }
 0x7a1   :  { %2966 = vperm.xlu1 %9854, %v116_v35   ;;  %17476 = vst [vmem:[#allocation35_spill] sm:$0xff] %v11941_v11  ;;  %v11991_v62 = vpop.permute.xlu1 %3194  ;;  %v12018_v35 = vpop.f32.mrf.mxu1 }
 0x7a2   :  { %2961 = vperm.xlu0 %9853, %v115_v55   ;;  %17483 = vst [vmem:[#allocation42_spill] sm:$0xff] %v11991_v62  ;;  %v179_v55 = vld [vmem:[%s17447_s19 + $0x3d0] sm:$0xff] }
 0x7a4   :  { %v11954_v37 = vpop.permute.xlu0 %2797 }
 0x7a5   :  { %3492 = vperm.xlu1 %9854, %v178_v27   ;;  %17478 = vst [vmem:[#allocation37_spill] sm:$0xff] %v11954_v37  ;;  %v12003_v17 = vpop.permute.xlu1 %2802 }
 0x7a6   :  { %3487 = vperm.xlu0 %9853, %v177_v7   ;;  %17485 = vst [vmem:[#allocation44_spill] sm:$0xff] %v12003_v17 }
 0x7a8   :  { %v11967_v22 = vpop.permute.xlu0 %3323 }
 0x7a9   :  { %3100 = vperm.xlu1 %9854, %v132_v47   ;;  %17480 = vst [vmem:[#allocation39_spill] sm:$0xff] %v11967_v22  ;;  %v12023_v27 = vpop.permute.xlu1 %3328  ;;  %v134_v47 = vld [vmem:[%s17447_s19 + $0x268] sm:$0xff] }
 0x7aa   :  { %3095 = vperm.xlu0 %9853, %v131_v32   ;;  %17487 = vst [vmem:[#allocation46_spill] sm:$0xff] %v12023_v27  ;;  %v12030_v32 = vpop.f32.mrf.mxu1  ;;  %v10373_v27 = vld [vmem:[%s17423_s26 + $0x38] sm:$0xff] }
 0x7ac   :  { %v11980_v23 = vpop.permute.xlu0 %2484 }
 0x7ad   :  { %3626 = vperm.xlu1 %9854, %v194_v34   ;;  %17482 = vst [vmem:[#allocation41_spill] sm:$0xff] %v11980_v23  ;;  %v133_v34 = vld [vmem:[%s17447_s19 + $0x260] sm:$0xff] }
 0x7ae   :  { %3621 = vperm.xlu0 %9853, %v193_v26   ;;  %v12035_v26 = vpop.f32.mrf.mxu1 }
 0x7b0   :  { %v11993_v58 = vpop.permute.xlu0 %2931 }
 0x7b1   :  { %2658 = vperm.xlu1 %9854, %v86_v52   ;;  %17484 = vst [vmem:[#allocation43_spill] sm:$0xff] %v11993_v58  ;;  %v12037_v52 = vpop.permute.xlu1 %2489 }
 0x7b2   :  { %2653 = vperm.xlu0 %9853, %v85_v43   ;;  %17489 = vst [vmem:[#allocation48_spill] sm:$0xff] %v12037_v52  ;;  %v196_v43 = vld [vmem:[%s17447_s19 + $0x458] sm:$0xff] }
 0x7b4   :  { %v12008_v12 = vpop.permute.xlu0 %3457 }
 0x7b5   :  { %3234 = vperm.xlu1 %9854, %v148_v20   ;;  %17486 = vst [vmem:[#allocation45_spill] sm:$0xff] %v12008_v12 }
 0x7b6   :  { %3229 = vperm.xlu0 %9853, %v147_v50   ;;  %v195_v50 = vld [vmem:[%s17447_s19 + $0x450] sm:$0xff] }
 0x7b8   :  { %v12025_v7 = vpop.permute.xlu0 %3065 }
 0x7b9   :  { %2842 = vperm.xlu1 %9854, %v102_v31   ;;  %17488 = vst [vmem:[#allocation47_spill] sm:$0xff] %v12025_v7  ;;  %v12047_v31 = vpop.f32.mrf.mxu1 }
 0x7ba   :  { %2837 = vperm.xlu0 %9853, %v101_v28   ;;  %v88_v28 = vld [vmem:[%s17447_s19 + $0xf8] sm:$0xff] }
 0x7bc   :  { %v12042_v20 = vpop.permute.xlu0 %3591 }
 0x7bd   :  { %3368 = vperm.xlu1 %9854, %v164_v15   ;;  %17490 = vst [vmem:[#allocation49_spill] sm:$0xff] %v12042_v20  ;;  %v87_v15 = vld [vmem:[%s17447_s19 + $0xf0] sm:$0xff] }
 0x7be   :  { %3363 = vperm.xlu0 %9853, %v163_v61   ;;  %v12055_v61 = vpop.permute.xlu1 %2936 }
 0x7bf   :  { %17491 = vst [vmem:[#allocation50_spill] sm:$0xff] %v12055_v61 }
 0x7c1   :  { %2529 = vperm.xlu1 %9854, %v71_v2   ;;  %v12057_v2 = vpop.f32.mrf.mxu1 }
 0x7c2   :  { %2524 = vperm.xlu0 %9853, %v70_v56   ;;  %v12059_v56 = vpop.permute.xlu0 %2623 }
 0x7c3   :  { %17492 = vst [vmem:[#allocation51_spill] sm:$0xff] %v12059_v56 }
 0x7c5   :  { %2976 = vperm.xlu1 %9854, %v118_v54   ;;  %v150_v54 = vld [vmem:[%s17447_s19 + $0x2e8] sm:$0xff] }
 0x7c6   :  { %2971 = vperm.xlu0 %9853, %v117_v45   ;;  %v149_v45 = vld [vmem:[%s17447_s19 + $0x2e0] sm:$0xff] }
 0x7c9   :  { %3502 = vperm.xlu1 %9854, %v180_v0   ;;  %v12067_v0 = vpop.f32.mrf.mxu1 }
 0x7ca   :  { %3497 = vperm.xlu0 %9853, %v179_v55   ;;  %v12069_v55 = vpop.permute.xlu1 %3462 }
 0x7cb   :  { %17493 = vst [vmem:[#allocation52_spill] sm:$0xff] %v12069_v55 }
 0x7cd   :  { %3110 = vperm.xlu1 %9854, %v134_v47   ;;  %v104_v47 = vld [vmem:[%s17447_s19 + $0x178] sm:$0xff] }
 0x7ce   :  { %3105 = vperm.xlu0 %9853, %v133_v34   ;;  %v12074_v34 = vpop.permute.xlu0 %3199 }
 0x7cf   :  { %17494 = vst [vmem:[#allocation53_spill] sm:$0xff] %v12074_v34 }
 0x7d1   :  { %3636 = vperm.xlu1 %9854, %v196_v43   ;;  %v103_v43 = vld [vmem:[%s17447_s19 + $0x170] sm:$0xff] }
 0x7d2   :  { %3631 = vperm.xlu0 %9853, %v195_v50   ;;  %v12079_v50 = vpop.f32.mrf.mxu1  ;;  %v12091_v33 = vpop.permute.xlu0 %2807 }
 0x7d3   :  { %17496 = vst [vmem:[#allocation55_spill] sm:$0xff] %v12091_v33  ;;  %v182_v33 = vld [vmem:[%s17447_s19 + $0x3e8] sm:$0xff] }
 0x7d5   :  { %2668 = vperm.xlu1 %9854, %v88_v28   ;;  %v166_v28 = vld [vmem:[%s17447_s19 + $0x368] sm:$0xff] }
 0x7d6   :  { %2663 = vperm.xlu0 %9853, %v87_v15   ;;  %v165_v15 = vld [vmem:[%s17447_s19 + $0x360] sm:$0xff] }
 0x7d9   :  { %3244 = vperm.xlu1 %9854, %v150_v54   ;;  %v12087_v54 = vpop.permute.xlu1 %3070 }
 0x7da   :  { %3239 = vperm.xlu0 %9853, %v149_v45   ;;  %17495 = vst [vmem:[#allocation54_spill] sm:$0xff] %v12087_v54  ;;  %v12089_v45 = vpop.f32.mrf.mxu1 }
 0x7dc   :  { %v12099_v42 = vpop.f32.mrf.mxu1 }
 0x7dd   :  { %2852 = vperm.xlu1 %9854, %v104_v47   ;;  %v120_v47 = vld [vmem:[%s17447_s19 + $0x1f8] sm:$0xff]  ;;  %v12101_v34 = vpop.permute.xlu1 %3596 }
 0x7de   :  { %2847 = vperm.xlu0 %9853, %v103_v43   ;;  %v72_v43 = vld [vmem:[%s17447_s19 + $0x78] sm:$0xff]  ;;  %17497 = vst [vmem:[#allocation56_spill] sm:$0xff] %v12101_v34  ;;  %v12111_v56 = vpop.f32.mrf.mxu1 }
 0x7e0   :  { %v12121_v20 = vpop.f32.mrf.mxu1 }
 0x7e1   :  { %3378 = vperm.xlu1 %9854, %v166_v28   ;;  %v12106_v28 = vpop.permute.xlu0 %3333  ;;  %v12119_v34 = vpop.permute.xlu1 %2628 }
 0x7e2   :  { %3373 = vperm.xlu0 %9853, %v165_v15   ;;  %17498 = vst [vmem:[#allocation57_spill] sm:$0xff] %v12106_v28  ;;  %v119_v15 = vld [vmem:[%s17447_s19 + $0x1f0] sm:$0xff]  ;;  %17499 = vst [vmem:[#allocation58_spill] sm:$0xff] %v12119_v34  ;;  %v12131_v54 = vpop.f32.mrf.mxu1 }
 0x7e4   :  { %v12143_v34 = vpop.f32.mrf.mxu1 }
 0x7e5   :  { %2986 = vperm.xlu1 %9854, %v120_v47   ;;  %v167_v47 = vld [vmem:[%s17447_s19 + $0x370] sm:$0xff]  ;;  %v12123_v28 = vpop.permute.xlu0 %2494  ;;  %v12133_v7 = vpop.permute.xlu1 %3204 }
 0x7e6   :  { %2534 = vperm.xlu0 %9853, %v72_v43   ;;  %v181_v43 = vld [vmem:[%s17447_s19 + $0x3e0] sm:$0xff]  ;;  %17500 = vst [vmem:[#allocation59_spill] sm:$0xff] %v12123_v28  ;;  %17501 = vst [vmem:[#allocation60_spill] sm:$0xff] %v12133_v7  ;;  %v168_v28 = vld [vmem:[%s17447_s19 + $0x378] sm:$0xff]  ;;  %v12153_v55 = vpop.f32.mrf.mxu1 }
 0x7e9   :  { %3512 = vperm.xlu1 %9854, %v182_v33   ;;  %v152_v33 = vld [vmem:[%s17447_s19 + $0x2f8] sm:$0xff]  ;;  %v12151_v7 = vpop.permute.xlu1 %2812 }
 0x7ea   :  { %2981 = vperm.xlu0 %9853, %v119_v15   ;;  %v135_v15 = vld [vmem:[%s17447_s19 + $0x270] sm:$0xff]  ;;  %17503 = vst [vmem:[#allocation62_spill] sm:$0xff] %v12151_v7 }
 0x7ed   :  { %3383 = vperm.xlu1 %9854, %v167_v47   ;;  %v12138_v47 = vpop.permute.xlu0 %2941  ;;  %v12160_v58 = vpop.permute.xlu1 %3338 }
 0x7ee   :  { %3507 = vperm.xlu0 %9853, %v181_v43   ;;  %17502 = vst [vmem:[#allocation61_spill] sm:$0xff] %v12138_v47  ;;  %v197_v43 = vld [vmem:[%s17447_s19 + $0x460] sm:$0xff]  ;;  %17505 = vst [vmem:[#allocation64_spill] sm:$0xff] %v12160_v58 }
 0x7f1   :  { %3254 = vperm.xlu1 %9854, %v152_v33   ;;  %v184_v33 = vld [vmem:[%s17447_s19 + $0x3f8] sm:$0xff]  ;;  %v12155_v47 = vpop.permute.xlu0 %3467  ;;  %v12172_v7 = vpop.permute.xlu1 %2499 }
 0x7f2   :  { %3115 = vperm.xlu0 %9853, %v135_v15   ;;  %v151_v15 = vld [vmem:[%s17447_s19 + $0x2f0] sm:$0xff]  ;;  %17504 = vst [vmem:[#allocation63_spill] sm:$0xff] %v12155_v47  ;;  %17507 = vst [vmem:[#allocation66_spill] sm:$0xff] %v12172_v7 }
 0x7f3   :  { %v183_v47 = vld [vmem:[%s17447_s19 + $0x3f0] sm:$0xff] }
 0x7f5   :  { %3388 = vperm.xlu1 %9854, %v168_v28   ;;  %v136_v28 = vld [vmem:[%s17447_s19 + $0x278] sm:$0xff]  ;;  %v12163_v12 = vpop.permute.xlu0 %3075 }
 0x7f6   :  { %3641 = vperm.xlu0 %9853, %v197_v43   ;;  %17506 = vst [vmem:[#allocation65_spill] sm:$0xff] %v12163_v12  ;;  %v200_v12 = vld [vmem:[%s17447_s19 + $0x478] sm:$0xff] }
 0x7f9   :  { %3522 = vperm.xlu1 %9854, %v184_v33   ;;  %v198_v33 = vld [vmem:[%s17447_s19 + $0x468] sm:$0xff]  ;;  %v12174_v58 = vpop.permute.xlu0 %3601 }
 0x7fa   :  { %3249 = vperm.xlu0 %9853, %v151_v15   ;;  %17508 = vst [vmem:[#allocation67_spill] sm:$0xff] %v12174_v58 }
 0x7fb   :  { %v9471_v61 = vpop.f32.mrf.mxu1 }
 0x7fd   :  { %v2089_v43 = vpop.f32.mrf.mxu1 }
 0x7fe   :  { %3120 = vperm.xlu0 %9853, %v136_v28   ;;  %9501 = vmatprep.mubr.msk.f32.mxu1 %vm797_vm1, %v2089_v43  ;;  %v12181_v43 = vpop.permute.xlu1 %2946 }
 0x7ff   :  { %9502 = vmatmul.mubr.msk.f32.vlgmr.msra.gmra.mxu1 %vm797_vm1, %v9471_v61  ;;  %v199_v61 = vld [vmem:[%s17447_s19 + $0x470] sm:$0xff]  ;;  %17509 = vst [vmem:[#allocation68_spill] sm:$0xff] %v12181_v43 }
 0x802   :  { %3646 = vperm.xlu0 %9853, %v198_v33   ;;  %v12183_v33 = vpop.permute.xlu0 %2633  ;;  %v12188_v58 = vpop.permute.xlu1 %3472 }
 0x803   :  { %v9474_v15 = vpop.f32.mrf.mxu1  ;;  %17510 = vst [vmem:[#allocation69_spill] sm:$0xff] %v12183_v33  ;;  %17511 = vst [vmem:[#allocation70_spill] sm:$0xff] %v12188_v58 }
 0x805   :  { %v2099_v28 = vpop.f32.mrf.mxu1 }
 0x806   :  { %3517 = vperm.xlu0 %9853, %v183_v47   ;;  %9504 = vmatprep.mubr.msk.f32.mxu1 %vm797_vm1, %v2099_v28  ;;  %v12190_v47 = vpop.permute.xlu0 %3209  ;;  %v12192_v28 = vpop.permute.xlu1 %3080 }
 0x807   :  { %9505 = vmatmul.mubr.msk.f32.gmra.mxu1 %vm797_vm1, %v9474_v15  ;;  %17512 = vst [vmem:[#allocation71_spill] sm:$0xff] %v12190_v47  ;;  %17513 = vst [vmem:[#allocation72_spill] sm:$0xff] %v12192_v28 }
 0x80a   :  { %3651 = vperm.xlu0 %9853, %v199_v61   ;;  %v12194_v15 = vpop.permute.xlu0 %2817  ;;  %v12196_v7 = vpop.permute.xlu1 %3606 }
 0x80b   :  { %17514 = vst [vmem:[#allocation73_spill] sm:$0xff] %v12194_v15  ;;  %17515 = vst [vmem:[#allocation74_spill] sm:$0xff] %v12196_v7 }
 0x80e   :  { %3656 = vperm.xlu0 %9853, %v200_v12   ;;  %v12198_v52 = vpop.permute.xlu0 %3343  ;;  %v12200_v61 = vpop.permute.xlu1 %2638 }
 0x80f   :  { %17516 = vst [vmem:[#allocation75_spill] sm:$0xff] %v12198_v52  ;;  %17517 = vst [vmem:[#allocation76_spill] sm:$0xff] %v12200_v61 }
 0x812   :  { %v12202_v33 = vpop.permute.xlu0 %2504  ;;  %v12204_v43 = vpop.permute.xlu1 %3214 }
 0x813   :  { %17518 = vst [vmem:[#allocation77_spill] sm:$0xff] %v12202_v33  ;;  %17519 = vst [vmem:[#allocation78_spill] sm:$0xff] %v12204_v43 }
 0x816   :  { %v12206_v23 = vpop.permute.xlu0 %2951  ;;  %v12208_v58 = vpop.permute.xlu1 %2822 }
 0x817   :  { %17520 = vst [vmem:[#allocation79_spill] sm:$0xff] %v12206_v23  ;;  %17521 = vst [vmem:[#allocation80_spill] sm:$0xff] %v12208_v58 }
 0x81a   :  { %v12210_v47 = vpop.permute.xlu0 %3477  ;;  %v12214_v7 = vpop.permute.xlu1 %3348 }
 0x81b   :  { %17522 = vst [vmem:[#allocation81_spill] sm:$0xff] %v12210_v47  ;;  %17523 = vst [vmem:[#allocation82_spill] sm:$0xff] %v12214_v7 }
 0x81e   :  { %v12217_v33 = vpop.permute.xlu0 %3085 }
 0x81f   :  { %17524 = vst [vmem:[#allocation83_spill] sm:$0xff] %v12217_v33 }
 0x822   :  { %v12224_v58 = vpop.permute.xlu0 %3611 }
 0x823   :  { %17526 = vst [vmem:[#allocation85_spill] sm:$0xff] %v12224_v58 }
 0x82d   :  { %v9477_v12 = vpop.f32.mrf.mxu1 }
 0x82f   :  { %v2109_v28 = vpop.f32.mrf.mxu1 }
 0x830   :  { %9507 = vmatprep.mubr.msk.f32.mxu1 %vm797_vm1, %v2109_v28  ;;  %v12222_v28 = vpop.permute.xlu1 %2509 }
 0x831   :  { %v9480_v15 = vpop.f32.mrf.mxu1  ;;  %9508 = vmatmul.mubr.msk.f32.gmra.mxu1 %vm797_vm1, %v9477_v12  ;;  %17525 = vst [vmem:[#allocation84_spill] sm:$0xff] %v12222_v28 }
 0x833   :  { %v2119_v52 = vpop.f32.mrf.mxu1 }
 0x834   :  { %9510 = vmatprep.mubr.msk.f32.mxu1 %vm797_vm1, %v2119_v52  ;;  %v12228_v33 = vpop.permute.xlu1 %2956 }
 0x835   :  { %v9483_v43 = vpop.f32.mrf.mxu1  ;;  %9511 = vmatmul.mubr.msk.f32.gmra.mxu1 %vm797_vm1, %v9480_v15  ;;  %17527 = vst [vmem:[#allocation86_spill] sm:$0xff] %v12228_v33  ;;  %v12231_v15 = vpop.permute.xlu0 %2643 }
 0x836   :  { %17528 = vst [vmem:[#allocation87_spill] sm:$0xff] %v12231_v15 }
 0x837   :  { %v2129_v23 = vpop.f32.mrf.mxu1 }
 0x838   :  { %9513 = vmatprep.mubr.msk.f32.mxu1 %vm797_vm1, %v2129_v23  ;;  %v12236_v58 = vpop.permute.xlu1 %3482 }
 0x839   :  { %v9486_v47 = vpop.f32.mrf.mxu1  ;;  %9514 = vmatmul.mubr.msk.f32.gmra.mxu1 %vm797_vm1, %v9483_v43  ;;  %17529 = vst [vmem:[#allocation88_spill] sm:$0xff] %v12236_v58 }
 0x83b   :  { %v2139_v12 = vpop.f32.mrf.mxu1 }
 0x83c   :  { %9516 = vmatprep.mubr.msk.f32.mxu1 %vm797_vm1, %v2139_v12  ;;  %v12238_v12 = vpop.permute.xlu0 %3219 }
 0x83d   :  { %v9489_v7 = vpop.f32.mrf.mxu1  ;;  %9517 = vmatmul.mubr.msk.f32.gmra.mxu1 %vm797_vm1, %v9486_v47  ;;  %17530 = vst [vmem:[#allocation89_spill] sm:$0xff] %v12238_v12  ;;  %v12240_v47 = vpop.permute.xlu1 %3090 }
 0x83e   :  { %17531 = vst [vmem:[#allocation90_spill] sm:$0xff] %v12240_v47 }
 0x83f   :  { %v2149_v52 = vpop.f32.mrf.mxu1 }
 0x840   :  { %9519 = vmatprep.mubr.msk.f32.mxu1 %vm797_vm1, %v2149_v52  ;;  %v12242_v28 = vpop.permute.xlu0 %2827 }
 0x841   :  { %v9492_v23 = vpop.f32.mrf.mxu1  ;;  %9520 = vmatmul.mubr.msk.f32.gmra.mxu1 %vm797_vm1, %v9489_v7  ;;  %17532 = vst [vmem:[#allocation91_spill] sm:$0xff] %v12242_v28  ;;  %v12244_v33 = vpop.permute.xlu1 %3616 }
 0x842   :  { %17533 = vst [vmem:[#allocation92_spill] sm:$0xff] %v12244_v33 }
 0x843   :  { %v2159_v43 = vpop.f32.mrf.mxu1 }
 0x844   :  { %9522 = vmatprep.mubr.msk.f32.mxu1 %vm797_vm1, %v2159_v43  ;;  %v12246_v52 = vpop.permute.xlu0 %3353 }
 0x845   :  { %9523 = vmatmul.mubr.msk.f32.gmra.mxu1 %vm797_vm1, %v9492_v23  ;;  %17534 = vst [vmem:[#allocation93_spill] sm:$0xff] %v12246_v52  ;;  %v12248_v15 = vpop.permute.xlu1 %2648 }
 0x846   :  { %17535 = vst [vmem:[#allocation94_spill] sm:$0xff] %v12248_v15 }
 0x848   :  { %v12250_v7 = vpop.permute.xlu0 %2514 }
 0x849   :  { %17536 = vst [vmem:[#allocation95_spill] sm:$0xff] %v12250_v7  ;;  %v12252_v61 = vpop.permute.xlu1 %3224 }
 0x84a   :  { %17537 = vst [vmem:[#allocation96_spill] sm:$0xff] %v12252_v61 }
 0x84c   :  { %v12254_v43 = vpop.permute.xlu0 %2961 }
 0x84d   :  { %17538 = vst [vmem:[#allocation97_spill] sm:$0xff] %v12254_v43  ;;  %v12256_v23 = vpop.permute.xlu1 %2832 }
 0x84e   :  { %17539 = vst [vmem:[#allocation98_spill] sm:$0xff] %v12256_v23 }
 0x850   :  { %v12258_v58 = vpop.permute.xlu0 %3487 }
 0x851   :  { %17540 = vst [vmem:[#allocation99_spill] sm:$0xff] %v12258_v58  ;;  %v12260_v12 = vpop.permute.xlu1 %3358 }
 0x852   :  { %17541 = vst [vmem:[#allocation100_spill] sm:$0xff] %v12260_v12 }
 0x854   :  { %v12262_v47 = vpop.permute.xlu0 %3095 }
 0x855   :  { %17542 = vst [vmem:[#allocation101_spill] sm:$0xff] %v12262_v47  ;;  %v12264_v28 = vpop.permute.xlu1 %2519 }
 0x856   :  { %17543 = vst [vmem:[#allocation102_spill] sm:$0xff] %v12264_v28 }
 0x858   :  { %v12266_v33 = vpop.permute.xlu0 %3621 }
 0x859   :  { %17544 = vst [vmem:[#allocation103_spill] sm:$0xff] %v12266_v33  ;;  %v12268_v52 = vpop.permute.xlu1 %2966 }
 0x85a   :  { %17545 = vst [vmem:[#allocation104_spill] sm:$0xff] %v12268_v52 }
 0x85c   :  { %v12270_v15 = vpop.permute.xlu0 %2653 }
 0x85d   :  { %17546 = vst [vmem:[#allocation105_spill] sm:$0xff] %v12270_v15  ;;  %v12272_v7 = vpop.permute.xlu1 %3492 }
 0x85e   :  { %17547 = vst [vmem:[#allocation106_spill] sm:$0xff] %v12272_v7 }
 0x860   :  { %v12274_v61 = vpop.permute.xlu0 %3229 }
 0x861   :  { %17548 = vst [vmem:[#allocation107_spill] sm:$0xff] %v12274_v61  ;;  %v12276_v43 = vpop.permute.xlu1 %3100 }
 0x862   :  { %17549 = vst [vmem:[#allocation108_spill] sm:$0xff] %v12276_v43 }
 0x864   :  { %v12278_v23 = vpop.permute.xlu0 %2837 }
 0x865   :  { %17550 = vst [vmem:[#allocation109_spill] sm:$0xff] %v12278_v23  ;;  %v12280_v58 = vpop.permute.xlu1 %3626 }
 0x866   :  { %17551 = vst [vmem:[#allocation110_spill] sm:$0xff] %v12280_v58 }
 0x868   :  { %v12282_v12 = vpop.permute.xlu0 %3363 }
 0x869   :  { %17552 = vst [vmem:[#allocation111_spill] sm:$0xff] %v12282_v12  ;;  %v12284_v47 = vpop.permute.xlu1 %2658 }
 0x86a   :  { %17553 = vst [vmem:[#allocation112_spill] sm:$0xff] %v12284_v47 }
 0x86c   :  { %v12286_v28 = vpop.permute.xlu0 %2524 }
 0x86d   :  { %17554 = vst [vmem:[#allocation113_spill] sm:$0xff] %v12286_v28  ;;  %v12288_v33 = vpop.permute.xlu1 %3234 }
 0x86e   :  { %17555 = vst [vmem:[#allocation114_spill] sm:$0xff] %v12288_v33 }
 0x870   :  { %v12290_v52 = vpop.permute.xlu0 %2971 }
 0x871   :  { %17556 = vst [vmem:[#allocation115_spill] sm:$0xff] %v12290_v52  ;;  %v12292_v15 = vpop.permute.xlu1 %2842 }
 0x872   :  { %17557 = vst [vmem:[#allocation116_spill] sm:$0xff] %v12292_v15 }
 0x874   :  { %v12294_v7 = vpop.permute.xlu0 %3497 }
 0x875   :  { %17558 = vst [vmem:[#allocation117_spill] sm:$0xff] %v12294_v7  ;;  %v12296_v61 = vpop.permute.xlu1 %3368 }
 0x876   :  { %17559 = vst [vmem:[#allocation118_spill] sm:$0xff] %v12296_v61  ;;  %v10372_v61 = vld [vmem:[%s17423_s26 + $0x20] sm:$0xff] }
 0x878   :  { %v12298_v43 = vpop.permute.xlu0 %3105 }
 0x879   :  { %17560 = vst [vmem:[#allocation119_spill] sm:$0xff] %v12298_v43  ;;  %v12300_v23 = vpop.permute.xlu1 %2529  ;;  %v8329_v43 = vld [vmem:[%s17174_s8] ss:$0 sm:$0xff] }
 0x87a   :  { %17561 = vst [vmem:[#allocation120_spill] sm:$0xff] %v12300_v23  ;;  %v10371_v23 = vld [vmem:[%s17423_s26 + $0x28] sm:$0xff] }
 0x87c   :  { %v12302_v58 = vpop.permute.xlu0 %3631 }
 0x87d   :  { %17562 = vst [vmem:[#allocation121_spill] sm:$0xff] %v12302_v58  ;;  %v12304_v12 = vpop.permute.xlu1 %2976  ;;  %v10367_v58 = vld [vmem:[%s17423_s26 + $0x8] sm:$0xff] }
 0x87e   :  { %17563 = vst [vmem:[#allocation122_spill] sm:$0xff] %v12304_v12  ;;  %v718_v7 = vadd.f32 %v10367_v58, %v8329_v43  ;;  %v722_v58 = vadd.f32 %v10371_v23, %v8329_v43  ;;  %v10375_v23 = vld [vmem:[%s17423_s26 + $0x48] sm:$0xff] }
 0x87f   :  { %v726_v37 = vadd.f32 %v10375_v23, %v8329_v43  ;;  %v10379_v23 = vld [vmem:[%s17423_s26 + $0x68] sm:$0xff] }
 0x880   :  { %v12306_v47 = vpop.permute.xlu0 %2663  ;;  %v730_v51 = vadd.f32 %v10379_v23, %v8329_v43  ;;  %v1542_v38 = vadd.f32 %v12001_v25, %v718_v7  ;;  %v10382_v23 = vld [vmem:[%s17423_s26 + $0x70] sm:$0xff] }
 0x881   :  { %17564 = vst [vmem:[#allocation123_spill] sm:$0xff] %v12306_v47  ;;  %v12308_v28 = vpop.permute.xlu1 %3502  ;;  %v10368_v47 = vld [vmem:[%s17423_s26] sm:$0xff]  ;;  %v731_v41 = vadd.f32 %v10382_v23, %v8329_v43 }
 0x882   :  { %17565 = vst [vmem:[#allocation124_spill] sm:$0xff] %v12308_v28  ;;  %v717_v28 = vadd.f32 %v10368_v47, %v8329_v43  ;;  %v721_v47 = vadd.f32 %v10372_v61, %v8329_v43  ;;  %v10376_v61 = vld [vmem:[%s17423_s26 + $0x40] sm:$0xff] }
 0x883   :  { %v725_v62 = vadd.f32 %v10376_v61, %v8329_v43  ;;  %v10380_v61 = vld [vmem:[%s17423_s26 + $0x60] sm:$0xff] }
 0x884   :  { %v12310_v33 = vpop.permute.xlu0 %3239  ;;  %v729_v10 = vadd.f32 %v10380_v61, %v8329_v43  ;;  %v1541_v3 = vadd.f32 %v12013_v57, %v717_v28  ;;  %v12376_v61 = vadd.f32 %v12035_v26, %v722_v58  ;;  %v12379_v29 = vadd.f32 %v12047_v31, %v721_v47  ;;  %v12393_v28 = vld [vmem:[%s17175_s9 + $0x1] ss:$0 sm:$0xff]  ;;  %v12403_v26 = vld [vmem:[%s17175_s9] ss:$0 sm:$0xff] }
 0x885   :  { %17566 = vst [vmem:[#allocation125_spill] sm:$0xff] %v12310_v33  ;;  %v12312_v52 = vpop.permute.xlu1 %3110  ;;  %v10369_v33 = vld [vmem:[%s17423_s26 + $0x18] sm:$0xff]  ;;  %v12498_v47 = vmul.f32 %v12403_v26, %v11826_v19 }
 0x886   :  { %17567 = vst [vmem:[#allocation126_spill] sm:$0xff] %v12312_v52  ;;  %v720_v52 = vadd.f32 %v10369_v33, %v8329_v43  ;;  %v724_v33 = vadd.f32 %v10373_v27, %v8329_v43  ;;  %v10377_v27 = vld [vmem:[%s17423_s26 + $0x58] sm:$0xff] }
 0x887   :  { %17586 = vst [vmem:[#allocation145_spill] sm:$0xff] %v12498_v47 }
 0x888   :  { %v12314_v15 = vpop.permute.xlu0 %2847  ;;  %v12382_v25 = vadd.f32 %v12057_v2, %v724_v33 }
 0x889   :  { %17568 = vst [vmem:[#allocation127_spill] sm:$0xff] %v12314_v15  ;;  %v10370_v15 = vld [vmem:[%s17423_s26 + $0x10] sm:$0xff]  ;;  %v12340_v17 = vpop.permute.xlu1 %3636 }
 0x88a   :  { %v719_v12 = vadd.f32 %v10370_v15, %v8329_v43  ;;  %17569 = vst [vmem:[#allocation128_spill] sm:$0xff] %v12340_v17  ;;  %v10374_v15 = vld [vmem:[%s17423_s26 + $0x30] sm:$0xff]  ;;  %v728_v17 = vadd.f32 %v10377_v27, %v8329_v43  ;;  %v10381_v27 = vld [vmem:[%s17423_s26 + $0x78] sm:$0xff] }
 0x88b   :  { %v723_v22 = vadd.f32 %v10374_v15, %v8329_v43  ;;  %v10378_v15 = vld [vmem:[%s17423_s26 + $0x50] sm:$0xff] }
 0x88c   :  { %v12354_v60 = vpop.permute.xlu0 %3373  ;;  %v727_v6 = vadd.f32 %v10378_v15, %v8329_v43  ;;  %v1544_v15 = vadd.f32 %v12018_v35, %v720_v52  ;;  %v1543_v36 = vadd.f32 %v12030_v32, %v719_v12  ;;  %v12388_v35 = vadd.f32 %v12079_v50, %v726_v37  ;;  %v12398_v32 = vld [vmem:[%s17175_s9 + $0x2] ss:$0 sm:$0xff]  ;;  %v12424_v12 = vld [vmem:[%s17175_s9 + $0x3] ss:$0 sm:$0xff] }
 0x88d   :  { %17570 = vst [vmem:[#allocation129_spill] sm:$0xff] %v12354_v60  ;;  %v732_v60 = vadd.f32 %v10381_v27, %v8329_v43  ;;  %v12385_v57 = vadd.f32 %v12067_v0, %v723_v22  ;;  %v12410_v37 = vadd.f32 %v12089_v45, %v725_v62  ;;  %v12413_v2 = vadd.f32 %v12099_v42, %v728_v17 }
 0x88e   :  { %17571 = vst [vmem:[#allocation130_spill] sm:$0xff] %v12388_v35  ;;  %v12416_v0 = vadd.f32 %v12111_v56, %v727_v6  ;;  %v12419_v50 = vadd.f32 %v12121_v20, %v730_v51  ;;  %v12435_v42 = vadd.f32 %v12153_v55, %v731_v41  ;;  %v12440_v6 = vld [vmem:[%s17175_s9 + $0x4] ss:$0 sm:$0xff]  ;;  %v12447_v62 = vmul.f32 %v12393_v28, %v11730_v1  ;;  %v12477_v55 = vld [vmem:[%s17175_s9 + $0x5] ss:$0 sm:$0xff] }
 0x88f   :  { %17573 = vst [vmem:[#allocation132_spill] sm:$0xff] %v12410_v37  ;;  %17574 = vst [vmem:[#allocation133_spill] sm:$0xff] %v12413_v2  ;;  %v12455_v41 = vmul.f32 %v12403_v26, %v11746_v46  ;;  %v12464_v17 = vmul.f32 %v12393_v28, %v11754_v13  ;;  %v12468_v20 = vmul.f32 %v12424_v12, %v11762_v16  ;;  %v17591_v13 = vld [vmem:[#allocation27_spill] sm:$0xff]  ;;  %v17609_v2 = vld [vmem:[#allocation37_spill] sm:$0xff] }
 0x890   :  { %17575 = vst [vmem:[#allocation134_spill] sm:$0xff] %v12416_v0  ;;  %17576 = vst [vmem:[#allocation135_spill] sm:$0xff] %v12419_v50  ;;  %v12472_v56 = vmul.f32 %v12398_v32, %v11770_v30  ;;  %v12482_v45 = vmul.f32 %v12440_v6, %v11778_v59  ;;  %v2545_v52 = vmul.f32 %v12403_v26, %v11786_v53  ;;  %v17603_v50 = vld [vmem:[#allocation33_spill] sm:$0xff]  ;;  %v17611_v37 = vld [vmem:[#allocation39_spill] sm:$0xff] }
 0x891   :  { %17580 = vst [vmem:[#allocation139_spill] sm:$0xff] %v12435_v42  ;;  %17582 = vst [vmem:[#allocation141_spill] sm:$0xff] %v12447_v62  ;;  %v12488_v7 = vmul.f32 %v12424_v12, %v11796_v4  ;;  %v2863_v43 = vmul.f32 %v12398_v32, %v11813_v9  ;;  %v2680_v4 = vmul.f32 %v12393_v28, %v11857_v63  ;;  %v17598_v62 = vld [vmem:[#allocation36_spill] sm:$0xff] }
 0x892   :  { %17584 = vst [vmem:[#allocation143_spill] sm:$0xff] %v12455_v41  ;;  %17585 = vst [vmem:[#allocation144_spill] sm:$0xff] %v12468_v20  ;;  %v2679_v9 = vmul.f32 %v12393_v28, %v11841_v5  ;;  %v12517_v19 = vmul.f32 %v12477_v55, %v11859_v39  ;;  %v2546_v39 = vmul.f32 %v12403_v26, %v11877_v40  ;;  %v17596_v20 = vld [vmem:[#allocation34_spill] sm:$0xff] }
 0x893   :  { %v12539_v63 = vmul.f32 %v12403_v26, %v11913_v49  ;;  %v17590_v49 = vld [vmem:[#allocation32_spill] sm:$0xff]  ;;  %v3132_v41 = vmul.f32 %v12440_v6, %v17598_v62  ;;  %v12611_v0 = vmul.f32 %v12393_v28, %v17603_v50  ;;  %v12627_v50 = vmul.f32 %v12398_v32, %v17609_v2  ;;  %v17617_v2 = vld [vmem:[#allocation41_spill] sm:$0xff] }
 0x894   :  { %v2998_v16 = vmul.f32 %v12424_v12, %v17590_v49 }
 0x895   :  { %17610 = vst [vmem:[#allocation153_spill] sm:$0xff] %v12627_v50  ;;  %v12645_v50 = vmul.f32 %v12403_v26, %v17617_v2  ;;  %v17626_v2 = vld [vmem:[#allocation50_spill] sm:$0xff] }
 0x897   :  { %17618 = vst [vmem:[#allocation157_spill] sm:$0xff] %v12645_v50  ;;  %v17769_v50 = vld [vmem:[#allocation120_spill] sm:$0xff] }
 0x8bf   :  { %v9503_v11 = vpop.f32.mrf.mxu1 }
 0x8c0   :  { %v12405_v22 = vadd.f32 %v9503_v11, %v1542_v38  ;;  %v12426_v11 = vpop.permute.xlu1 %2668  ;;  %v12442_v38 = vpop.permute.xlu0 %2534 }
 0x8c1   :  { %v2287_v14 = vpop.f32.mrf.mxu1  ;;  %17577 = vst [vmem:[#allocation136_spill] sm:$0xff] %v12426_v11  ;;  %17581 = vst [vmem:[#allocation140_spill] sm:$0xff] %v12442_v38 }
 0x8c2   :  { %v12407_v31 = vadd.f32 %v2287_v14, %v1541_v3  ;;  %v12429_v14 = vadd.f32 %v12131_v54, %v729_v10  ;;  %v12432_v3 = vadd.f32 %v12143_v34, %v732_v60  ;;  %v12451_v10 = vmul.f32 %v12398_v32, %v11738_v21  ;;  %v12460_v60 = vld [vmem:[%s17175_s9 + $0x6] ss:$0 sm:$0xff] }
 0x8c3   :  { %v2414_v34 = vrot.slane %v12405_v22, 7  ;;  %v12494_v58 = vmul.f32 %v12460_v60, %v11832_v8  ;;  %v12513_v8 = vmul.f32 %v12477_v55, %v11869_v48 }
 0x8c4   :  { %17572 = vst [vmem:[#allocation131_spill] sm:$0xff] %v12407_v31  ;;  %17578 = vst [vmem:[#allocation137_spill] sm:$0xff] %v12429_v14  ;;  %v17301_v51 = vrot.slane %v12407_v31, 7  ;;  %v12519_v53 = vpop.permute.xlu1 %3244  ;;  %v12531_v5 = vpop.permute.xlu0 %2981 }
 0x8c5   :  { %17579 = vst [vmem:[#allocation138_spill] sm:$0xff] %v12432_v3  ;;  %17583 = vst [vmem:[#allocation142_spill] sm:$0xff] %v12451_v10 }
 0x8c6   :  { %v12503_v33 = vsel %vm2393_vm2, %v17301_v51, %v2414_v34  ;;  %17587 = vst [vmem:[#allocation146_spill] sm:$0xff] %v12519_v53  ;;  %v12529_v51 = vmul.f32 %v12460_v60, %v11897_v44  ;;  %17588 = vst [vmem:[#allocation147_spill] sm:$0xff] %v12531_v5  ;;  %v12547_v44 = vld [vmem:[%s17175_s9 + $0x7] ss:$0 sm:$0xff] }
 0x8c7   :  { %v9506_v54 = vpop.f32.mrf.mxu1  ;;  %v12586_v10 = vmul.f32 %v12547_v44, %v17596_v20  ;;  %v17601_v20 = vld [vmem:[#allocation31_spill] sm:$0xff] }
 0x8c8   :  { %v12505_v27 = vadd.f32 %v9506_v54, %v1544_v15  ;;  %v2864_v15 = vmul.f32 %v12398_v32, %v11885_v24  ;;  %v12525_v54 = vmul.f32 %v12440_v6, %v11867_v18  ;;  %v17589_v24 = vld [vmem:[#allocation26_spill] sm:$0xff]  ;;  %v2561_v18 = vmul.f32 %v2545_v52, %v12503_v33  ;;  %v12592_v42 = vpop.permute.xlu0 %3507 }
 0x8c9   :  { %v2297_v23 = vpop.f32.mrf.mxu1  ;;  %v2997_v59 = vmul.f32 %v12424_v12, %v17589_v24  ;;  %v12557_v24 = vmul.f32 %v12547_v44, %v17591_v13  ;;  %v2695_v52 = vmul.f32 %v2679_v9, %v12405_v22  ;;  %v12577_v9 = vld [vmem:[%s17175_s9 + $0x8] ss:$0 sm:$0xff]  ;;  %v12579_v13 = vpop.permute.xlu1 %2852  ;;  %17599 = vst [vmem:[#allocation150_spill] sm:$0xff] %v12592_v42 }
 0x8ca   :  { %v12533_v48 = vadd.f32 %v2297_v23, %v1543_v36  ;;  %v17592_v23 = vrot.slane %v12405_v22, 1  ;;  %v17593_v1 = vrot.slane %v12505_v27, 1  ;;  %17594 = vst [vmem:[#allocation148_spill] sm:$0xff] %v12577_v9  ;;  %17595 = vst [vmem:[#allocation149_spill] sm:$0xff] %v12579_v13  ;;  %v17600_v3 = vrot.slane %v12505_v27, 7 }
 0x8cb   :  { %v12603_v14 = vmul.f32 %v12577_v9, %v17601_v20  ;;  %v17607_v20 = vld [vmem:[#allocation42_spill] sm:$0xff] }
 0x8cc   :  { %v2416_v40 = vrot.slane %v12533_v48, 7  ;;  %v2731_v30 = vrot.slane %v12533_v48, 1  ;;  %v2696_v46 = vmul.f32 %v2680_v4, %v12533_v48 }
 0x8ce   :  { %v12562_v36 = vsel %vm2393_vm2, %v2414_v34, %v2416_v40  ;;  %v12567_v21 = vsel %vm2727_vm3, %v17592_v23, %v2731_v30  ;;  %v12572_v49 = vsel %vm2727_vm3, %v2731_v30, %v17593_v1  ;;  %v2711_v23 = vadd.f32 %v2695_v52, %v2561_v18  ;;  %v17597_v1 = vld [vmem:[#allocation29_spill] sm:$0xff] }
 0x8cf   :  { %v2562_v34 = vmul.f32 %v2546_v39, %v12562_v36  ;;  %v2879_v47 = vmul.f32 %v2863_v43, %v12567_v21  ;;  %v3131_v30 = vmul.f32 %v12440_v6, %v17597_v1  ;;  %v12597_v39 = vsel %vm2393_vm2, %v2416_v40, %v17600_v3  ;;  %v17602_v1 = vld [vmem:[#allocation38_spill] sm:$0xff]  ;;  %v17604_v40 = vld [vmem:[#allocation35_spill] sm:$0xff] }
 0x8d0   :  { %v2880_v18 = vmul.f32 %v2864_v15, %v12572_v49  ;;  %v3013_v52 = vmul.f32 %v2997_v59, %v12562_v36  ;;  %v12607_v62 = vmul.f32 %v12577_v9, %v17602_v1  ;;  %v3014_v59 = vmul.f32 %v2998_v16, %v12597_v39 }
 0x8d1   :  { %v2712_v4 = vadd.f32 %v2696_v46, %v2562_v34  ;;  %v2895_v43 = vadd.f32 %v2879_v47, %v2711_v23  ;;  %v3265_v46 = vmul.f32 %v12477_v55, %v17604_v40  ;;  %v3147_v3 = vmul.f32 %v3131_v30, %v12533_v48  ;;  %v17605_v34 = vld [vmem:[#allocation40_spill] sm:$0xff]  ;;  %v12631_v30 = vpop.permute.xlu1 %3378 }
 0x8d2   :  { %v12619_v23 = vmul.f32 %v12393_v28, %v17605_v34  ;;  %v12623_v1 = vmul.f32 %v12477_v55, %v17607_v20  ;;  %v3399_v40 = vmul.f32 %v12460_v60, %v17611_v37  ;;  %17612 = vst [vmem:[#allocation154_spill] sm:$0xff] %v12631_v30  ;;  %v3148_v16 = vmul.f32 %v3132_v41, %v12505_v27  ;;  %v17615_v20 = vld [vmem:[#allocation46_spill] sm:$0xff]  ;;  %v17619_v37 = vld [vmem:[#allocation48_spill] sm:$0xff]  ;;  %v12651_v41 = vpop.permute.xlu0 %3115 }
 0x8d3   :  { %v2896_v47 = vadd.f32 %v2880_v18, %v2712_v4  ;;  %v3029_v15 = vadd.f32 %v3013_v52, %v2895_v43  ;;  %v3281_v4 = vmul.f32 %v3265_v46, %v12572_v49  ;;  %v17613_v52 = vld [vmem:[#allocation44_spill] sm:$0xff]  ;;  %v12649_v35 = vmul.f32 %v12403_v26, %v17619_v37  ;;  %17621 = vst [vmem:[#allocation159_spill] sm:$0xff] %v12651_v41  ;;  %v17622_v46 = vld [vmem:[#allocation45_spill] sm:$0xff] }
 0x8d4   :  { %17606 = vst [vmem:[#allocation151_spill] sm:$0xff] %v12619_v23  ;;  %17608 = vst [vmem:[#allocation152_spill] sm:$0xff] %v12623_v1  ;;  %v12637_v34 = vmul.f32 %v12398_v32, %v17613_v52  ;;  %v12641_v1 = vmul.f32 %v12460_v60, %v17615_v20  ;;  %v17624_v20 = vld [vmem:[#allocation43_spill] sm:$0xff]  ;;  %v17628_v37 = vld [vmem:[#allocation52_spill] sm:$0xff] }
 0x8d5   :  { %v3163_v18 = vadd.f32 %v3147_v3, %v3029_v15  ;;  %v3030_v43 = vadd.f32 %v3014_v59, %v2896_v47  ;;  %17620 = vst [vmem:[#allocation158_spill] sm:$0xff] %v12649_v35  ;;  %v3533_v3 = vmul.f32 %v12547_v44, %v17622_v46  ;;  %v3415_v59 = vmul.f32 %v3399_v40, %v12597_v39 }
 0x8d6   :  { %17614 = vst [vmem:[#allocation155_spill] sm:$0xff] %v12637_v34  ;;  %17616 = vst [vmem:[#allocation156_spill] sm:$0xff] %v12641_v1  ;;  %v12660_v52 = vmul.f32 %v12424_v12, %v17624_v20  ;;  %v12664_v1 = vmul.f32 %v12424_v12, %v17626_v2  ;;  %v12668_v35 = vmul.f32 %v12547_v44, %v17628_v37  ;;  %v17630_v34 = vld [vmem:[#allocation47_spill] sm:$0xff]  ;;  %v17635_v20 = vld [vmem:[#allocation56_spill] sm:$0xff] }
 0x8d7   :  { %v3297_v47 = vadd.f32 %v3281_v4, %v3163_v18  ;;  %v12656_v15 = vadd.f32 %v3148_v16, %v3030_v43  ;;  %v12672_v46 = vmul.f32 %v12440_v6, %v17630_v34  ;;  %v17632_v4 = vld [vmem:[#allocation54_spill] sm:$0xff]  ;;  %v17633_v16 = vld [vmem:[#allocation49_spill] sm:$0xff]  ;;  %v3549_v2 = vmul.f32 %v3533_v3, %v12505_v27  ;;  %v17637_v37 = vld [vmem:[#allocation51_spill] sm:$0xff] }
 0x8d8   :  { %17625 = vst [vmem:[#allocation161_spill] sm:$0xff] %v12660_v52  ;;  %17627 = vst [vmem:[#allocation162_spill] sm:$0xff] %v12664_v1  ;;  %v12676_v40 = vmul.f32 %v12440_v6, %v17632_v4  ;;  %v12680_v18 = vmul.f32 %v12577_v9, %v17633_v16  ;;  %v12685_v1 = vmul.f32 %v12577_v9, %v17635_v20  ;;  %v17638_v34 = vld [vmem:[#allocation58_spill] sm:$0xff]  ;;  %v17640_v4 = vld [vmem:[#allocation53_spill] sm:$0xff] }
 0x8d9   :  { %17623 = vst [vmem:[#allocation160_spill] sm:$0xff] %v12656_v15  ;;  %17629 = vst [vmem:[#allocation163_spill] sm:$0xff] %v12668_v35  ;;  %v3431_v43 = vadd.f32 %v3415_v59, %v3297_v47  ;;  %v12689_v52 = vmul.f32 %v12393_v28, %v17637_v37  ;;  %v12693_v35 = vmul.f32 %v12393_v28, %v17638_v34  ;;  %v17642_v16 = vld [vmem:[#allocation60_spill] sm:$0xff]  ;;  %v17644_v3 = vld [vmem:[#allocation55_spill] sm:$0xff] }
 0x8da   :  { %17631 = vst [vmem:[#allocation164_spill] sm:$0xff] %v12672_v46  ;;  %17634 = vst [vmem:[#allocation165_spill] sm:$0xff] %v12680_v18  ;;  %v12697_v15 = vmul.f32 %v12477_v55, %v17640_v4  ;;  %v12701_v47 = vmul.f32 %v12477_v55, %v17642_v16  ;;  %v12705_v59 = vmul.f32 %v12398_v32, %v17644_v3  ;;  %v17646_v20 = vld [vmem:[#allocation62_spill] sm:$0xff]  ;;  %v17650_v18 = vld [vmem:[#allocation57_spill] sm:$0xff] }
 0x8db   :  { %17636 = vst [vmem:[#allocation166_spill] sm:$0xff] %v12685_v1  ;;  %17639 = vst [vmem:[#allocation167_spill] sm:$0xff] %v12693_v35  ;;  %v12709_v37 = vmul.f32 %v12398_v32, %v17646_v20  ;;  %v12711_v1 = vpop.permute.xlu1 %2986  ;;  %v12713_v34 = vadd.f32 %v3549_v2, %v3431_v43  ;;  %v12717_v4 = vmul.f32 %v12460_v60, %v17650_v18  ;;  %v17659_v2 = vld [vmem:[#allocation61_spill] sm:$0xff]  ;;  %v17661_v18 = vld [vmem:[#allocation68_spill] sm:$0xff] }
 0x8dc   :  { %17641 = vst [vmem:[#allocation168_spill] sm:$0xff] %v12697_v15  ;;  %17643 = vst [vmem:[#allocation169_spill] sm:$0xff] %v12701_v47  ;;  %v17652_v15 = vld [vmem:[#allocation64_spill] sm:$0xff]  ;;  %v17654_v47 = vld [vmem:[#allocation59_spill] sm:$0xff]  ;;  %v12735_v43 = vmul.f32 %v12424_v12, %v17659_v2 }
 0x8dd   :  { %17645 = vst [vmem:[#allocation170_spill] sm:$0xff] %v12705_v59  ;;  %17647 = vst [vmem:[#allocation171_spill] sm:$0xff] %v12709_v37  ;;  %v12721_v16 = vmul.f32 %v12460_v60, %v17652_v15  ;;  %v12725_v3 = vmul.f32 %v12403_v26, %v17654_v47  ;;  %v17656_v59 = vld [vmem:[#allocation66_spill] sm:$0xff]  ;;  %v12731_v37 = vpop.permute.xlu0 %3641  ;;  %v17663_v15 = vld [vmem:[#allocation63_spill] sm:$0xff] }
 0x8de   :  { %17648 = vst [vmem:[#allocation172_spill] sm:$0xff] %v12711_v1  ;;  %17649 = vst [vmem:[#allocation173_spill] sm:$0xff] %v12713_v34  ;;  %v12729_v20 = vmul.f32 %v12403_v26, %v17656_v59  ;;  %v17665_v47 = vld [vmem:[#allocation70_spill] sm:$0xff]  ;;  %v17667_v59 = vld [vmem:[#allocation65_spill] sm:$0xff] }
 0x8df   :  { %17651 = vst [vmem:[#allocation174_spill] sm:$0xff] %v12717_v4  ;;  %17653 = vst [vmem:[#allocation175_spill] sm:$0xff] %v12721_v16  ;;  %v12739_v4 = vmul.f32 %v12424_v12, %v17661_v18  ;;  %v12743_v16 = vmul.f32 %v12547_v44, %v17663_v15  ;;  %v12747_v34 = vmul.f32 %v12547_v44, %v17665_v47  ;;  %v17675_v35 = vld [vmem:[#allocation69_spill] sm:$0xff]  ;;  %v17719_v46 = vld [vmem:[#allocation96_spill] sm:$0xff] }
 0x8e0   :  { %17655 = vst [vmem:[#allocation176_spill] sm:$0xff] %v12725_v3  ;;  %17657 = vst [vmem:[#allocation177_spill] sm:$0xff] %v12729_v20  ;;  %v12751_v20 = vmul.f32 %v12440_v6, %v17667_v59  ;;  %v17669_v3 = vld [vmem:[#allocation72_spill] sm:$0xff]  ;;  %v12767_v47 = vmul.f32 %v12393_v28, %v17675_v35 }
 0x8e1   :  { %17658 = vst [vmem:[#allocation178_spill] sm:$0xff] %v12731_v37  ;;  %17660 = vst [vmem:[#allocation179_spill] sm:$0xff] %v12735_v43  ;;  %v12755_v2 = vmul.f32 %v12440_v6, %v17669_v3  ;;  %v17671_v43 = vld [vmem:[#allocation67_spill] sm:$0xff] }
 0x8e2   :  { %17662 = vst [vmem:[#allocation180_spill] sm:$0xff] %v12739_v4  ;;  %17664 = vst [vmem:[#allocation181_spill] sm:$0xff] %v12743_v16  ;;  %v12759_v18 = vmul.f32 %v12577_v9, %v17671_v43  ;;  %v17673_v4 = vld [vmem:[#allocation74_spill] sm:$0xff] }
 0x8e3   :  { %17666 = vst [vmem:[#allocation182_spill] sm:$0xff] %v12747_v34  ;;  %17668 = vst [vmem:[#allocation183_spill] sm:$0xff] %v12751_v20  ;;  %v12763_v15 = vmul.f32 %v12577_v9, %v17673_v4  ;;  %v17677_v34 = vld [vmem:[#allocation76_spill] sm:$0xff]  ;;  %v17679_v20 = vld [vmem:[#allocation71_spill] sm:$0xff] }
 0x8e4   :  { %17670 = vst [vmem:[#allocation184_spill] sm:$0xff] %v12755_v2  ;;  %17672 = vst [vmem:[#allocation185_spill] sm:$0xff] %v12759_v18  ;;  %v12771_v59 = vmul.f32 %v12393_v28, %v17677_v34  ;;  %v12775_v3 = vmul.f32 %v12477_v55, %v17679_v20  ;;  %v17681_v2 = vld [vmem:[#allocation78_spill] sm:$0xff]  ;;  %v17683_v18 = vld [vmem:[#allocation73_spill] sm:$0xff] }
 0x8e5   :  { %17674 = vst [vmem:[#allocation186_spill] sm:$0xff] %v12763_v15  ;;  %17676 = vst [vmem:[#allocation187_spill] sm:$0xff] %v12767_v47  ;;  %v12779_v43 = vmul.f32 %v12477_v55, %v17681_v2  ;;  %v12783_v4 = vmul.f32 %v12398_v32, %v17683_v18  ;;  %v17685_v15 = vld [vmem:[#allocation80_spill] sm:$0xff]  ;;  %v17687_v47 = vld [vmem:[#allocation75_spill] sm:$0xff] }
 0x8e6   :  { %17678 = vst [vmem:[#allocation188_spill] sm:$0xff] %v12771_v59  ;;  %17680 = vst [vmem:[#allocation189_spill] sm:$0xff] %v12775_v3  ;;  %v12787_v35 = vmul.f32 %v12398_v32, %v17685_v15  ;;  %v12791_v34 = vmul.f32 %v12460_v60, %v17687_v47  ;;  %v17689_v59 = vld [vmem:[#allocation82_spill] sm:$0xff]  ;;  %v17691_v3 = vld [vmem:[#allocation77_spill] sm:$0xff] }
 0x8e7   :  { %17682 = vst [vmem:[#allocation190_spill] sm:$0xff] %v12779_v43  ;;  %17684 = vst [vmem:[#allocation191_spill] sm:$0xff] %v12783_v4  ;;  %v12795_v20 = vmul.f32 %v12460_v60, %v17689_v59  ;;  %v12799_v2 = vmul.f32 %v12403_v26, %v17691_v3  ;;  %v17693_v43 = vld [vmem:[#allocation84_spill] sm:$0xff]  ;;  %v17695_v4 = vld [vmem:[#allocation79_spill] sm:$0xff] }
 0x8e8   :  { %17686 = vst [vmem:[#allocation192_spill] sm:$0xff] %v12787_v35  ;;  %17688 = vst [vmem:[#allocation193_spill] sm:$0xff] %v12791_v34  ;;  %v12803_v18 = vmul.f32 %v12403_v26, %v17693_v43  ;;  %v12807_v15 = vmul.f32 %v12424_v12, %v17695_v4  ;;  %v17697_v35 = vld [vmem:[#allocation86_spill] sm:$0xff]  ;;  %v12813_v34 = vpop.permute.xlu1 %3512  ;;  %v17700_v59 = vld [vmem:[#allocation81_spill] sm:$0xff] }
 0x8e9   :  { %17690 = vst [vmem:[#allocation194_spill] sm:$0xff] %v12795_v20  ;;  %17692 = vst [vmem:[#allocation195_spill] sm:$0xff] %v12799_v2  ;;  %v12811_v47 = vmul.f32 %v12424_v12, %v17697_v35  ;;  %v12817_v20 = vmul.f32 %v12547_v44, %v17700_v59  ;;  %v17702_v3 = vld [vmem:[#allocation88_spill] sm:$0xff]  ;;  %v17704_v43 = vld [vmem:[#allocation83_spill] sm:$0xff]  ;;  %v12831_v35 = vpop.permute.xlu0 %3249 }
 0x8ea   :  { %17694 = vst [vmem:[#allocation196_spill] sm:$0xff] %v12803_v18  ;;  %17696 = vst [vmem:[#allocation197_spill] sm:$0xff] %v12807_v15  ;;  %v12821_v2 = vmul.f32 %v12547_v44, %v17702_v3  ;;  %v12825_v18 = vmul.f32 %v12440_v6, %v17704_v43  ;;  %v17706_v4 = vld [vmem:[#allocation90_spill] sm:$0xff]  ;;  %v17711_v59 = vld [vmem:[#allocation92_spill] sm:$0xff] }
 0x8eb   :  { %17698 = vst [vmem:[#allocation198_spill] sm:$0xff] %v12811_v47  ;;  %17699 = vst [vmem:[#allocation199_spill] sm:$0xff] %v12813_v34  ;;  %v12829_v15 = vmul.f32 %v12440_v6, %v17706_v4  ;;  %v17709_v47 = vld [vmem:[#allocation85_spill] sm:$0xff]  ;;  %v17713_v3 = vld [vmem:[#allocation87_spill] sm:$0xff] }
 0x8ec   :  { %17701 = vst [vmem:[#allocation200_spill] sm:$0xff] %v12817_v20  ;;  %17703 = vst [vmem:[#allocation201_spill] sm:$0xff] %v12821_v2  ;;  %v12835_v16 = vmul.f32 %v12577_v9, %v17709_v47  ;;  %v12839_v20 = vmul.f32 %v12577_v9, %v17711_v59  ;;  %v12843_v2 = vmul.f32 %v12393_v28, %v17713_v3  ;;  %v17715_v43 = vld [vmem:[#allocation94_spill] sm:$0xff]  ;;  %v17717_v4 = vld [vmem:[#allocation89_spill] sm:$0xff] }
 0x8ed   :  { %17705 = vst [vmem:[#allocation202_spill] sm:$0xff] %v12825_v18  ;;  %17707 = vst [vmem:[#allocation203_spill] sm:$0xff] %v12829_v15  ;;  %v12847_v18 = vmul.f32 %v12393_v28, %v17715_v43  ;;  %v12851_v15 = vmul.f32 %v12477_v55, %v17717_v4  ;;  %v12855_v47 = vmul.f32 %v12477_v55, %v17719_v46 }
 0x8ee   :  { %17708 = vst [vmem:[#allocation204_spill] sm:$0xff] %v12831_v35  ;;  %17710 = vst [vmem:[#allocation205_spill] sm:$0xff] %v12835_v16  ;;  %v17721_v16 = vld [vmem:[#allocation91_spill] sm:$0xff] }
 0x8ef   :  { %17712 = vst [vmem:[#allocation206_spill] sm:$0xff] %v12839_v20  ;;  %17714 = vst [vmem:[#allocation207_spill] sm:$0xff] %v12843_v2  ;;  %v12859_v59 = vmul.f32 %v12398_v32, %v17721_v16  ;;  %v17723_v20 = vld [vmem:[#allocation98_spill] sm:$0xff]  ;;  %v17725_v2 = vld [vmem:[#allocation93_spill] sm:$0xff] }
 0x8f0   :  { %17716 = vst [vmem:[#allocation208_spill] sm:$0xff] %v12847_v18  ;;  %17718 = vst [vmem:[#allocation209_spill] sm:$0xff] %v12851_v15  ;;  %v12863_v3 = vmul.f32 %v12398_v32, %v17723_v20  ;;  %v12867_v43 = vmul.f32 %v12460_v60, %v17725_v2  ;;  %v17727_v18 = vld [vmem:[#allocation100_spill] sm:$0xff]  ;;  %v17729_v15 = vld [vmem:[#allocation95_spill] sm:$0xff] }
 0x8f1   :  { %17720 = vst [vmem:[#allocation210_spill] sm:$0xff] %v12855_v47  ;;  %17722 = vst [vmem:[#allocation211_spill] sm:$0xff] %v12859_v59  ;;  %v12871_v4 = vmul.f32 %v12460_v60, %v17727_v18  ;;  %v12875_v46 = vmul.f32 %v12403_v26, %v17729_v15  ;;  %v17731_v47 = vld [vmem:[#allocation102_spill] sm:$0xff]  ;;  %v17733_v59 = vld [vmem:[#allocation97_spill] sm:$0xff] }
 0x8f2   :  { %17724 = vst [vmem:[#allocation212_spill] sm:$0xff] %v12863_v3  ;;  %17726 = vst [vmem:[#allocation213_spill] sm:$0xff] %v12867_v43  ;;  %v12879_v16 = vmul.f32 %v12403_v26, %v17731_v47  ;;  %v12883_v20 = vmul.f32 %v12424_v12, %v17733_v59  ;;  %v17735_v3 = vld [vmem:[#allocation104_spill] sm:$0xff]  ;;  %v17737_v43 = vld [vmem:[#allocation99_spill] sm:$0xff] }
 0x8f3   :  { %17728 = vst [vmem:[#allocation214_spill] sm:$0xff] %v12871_v4  ;;  %17730 = vst [vmem:[#allocation215_spill] sm:$0xff] %v12875_v46  ;;  %v12887_v2 = vmul.f32 %v12424_v12, %v17735_v3  ;;  %v12891_v18 = vmul.f32 %v12547_v44, %v17737_v43  ;;  %v17739_v4 = vld [vmem:[#allocation106_spill] sm:$0xff]  ;;  %v17741_v46 = vld [vmem:[#allocation101_spill] sm:$0xff] }
 0x8f4   :  { %17732 = vst [vmem:[#allocation216_spill] sm:$0xff] %v12879_v16  ;;  %17734 = vst [vmem:[#allocation217_spill] sm:$0xff] %v12883_v20  ;;  %v12895_v15 = vmul.f32 %v12547_v44, %v17739_v4  ;;  %v12899_v47 = vmul.f32 %v12440_v6, %v17741_v46  ;;  %v17743_v16 = vld [vmem:[#allocation108_spill] sm:$0xff]  ;;  %v17745_v20 = vld [vmem:[#allocation103_spill] sm:$0xff] }
 0x8f5   :  { %17736 = vst [vmem:[#allocation218_spill] sm:$0xff] %v12887_v2  ;;  %17738 = vst [vmem:[#allocation219_spill] sm:$0xff] %v12891_v18  ;;  %v12903_v59 = vmul.f32 %v12440_v6, %v17743_v16  ;;  %v12907_v3 = vmul.f32 %v12577_v9, %v17745_v20  ;;  %v17747_v2 = vld [vmem:[#allocation110_spill] sm:$0xff]  ;;  %v12913_v18 = vpop.permute.xlu1 %3383  ;;  %v17750_v4 = vld [vmem:[#allocation105_spill] sm:$0xff] }
 0x8f6   :  { %17740 = vst [vmem:[#allocation220_spill] sm:$0xff] %v12895_v15  ;;  %17742 = vst [vmem:[#allocation221_spill] sm:$0xff] %v12899_v47  ;;  %v12911_v43 = vmul.f32 %v12577_v9, %v17747_v2  ;;  %v12917_v15 = vmul.f32 %v12393_v28, %v17750_v4  ;;  %v17752_v46 = vld [vmem:[#allocation112_spill] sm:$0xff]  ;;  %v17754_v16 = vld [vmem:[#allocation107_spill] sm:$0xff]  ;;  %v12931_v2 = vpop.permute.xlu0 %3120 }
 0x8f7   :  { %17744 = vst [vmem:[#allocation222_spill] sm:$0xff] %v12903_v59  ;;  %17746 = vst [vmem:[#allocation223_spill] sm:$0xff] %v12907_v3  ;;  %v12921_v47 = vmul.f32 %v12393_v28, %v17752_v46  ;;  %v12925_v59 = vmul.f32 %v12477_v55, %v17754_v16  ;;  %v17756_v20 = vld [vmem:[#allocation114_spill] sm:$0xff]  ;;  %v17761_v4 = vld [vmem:[#allocation116_spill] sm:$0xff] }
 0x8f8   :  { %17748 = vst [vmem:[#allocation224_spill] sm:$0xff] %v12911_v43  ;;  %17749 = vst [vmem:[#allocation225_spill] sm:$0xff] %v12913_v18  ;;  %v12929_v3 = vmul.f32 %v12477_v55, %v17756_v20  ;;  %v17759_v43 = vld [vmem:[#allocation109_spill] sm:$0xff]  ;;  %v17763_v46 = vld [vmem:[#allocation111_spill] sm:$0xff] }
 0x8f9   :  { %17751 = vst [vmem:[#allocation226_spill] sm:$0xff] %v12917_v15  ;;  %17753 = vst [vmem:[#allocation227_spill] sm:$0xff] %v12921_v47  ;;  %v12935_v23 = vmul.f32 %v12398_v32, %v17759_v43  ;;  %v12939_v15 = vmul.f32 %v12398_v32, %v17761_v4  ;;  %v12943_v47 = vmul.f32 %v12460_v60, %v17763_v46  ;;  %v17765_v16 = vld [vmem:[#allocation118_spill] sm:$0xff]  ;;  %v17767_v20 = vld [vmem:[#allocation113_spill] sm:$0xff] }
 0x8fa   :  { %17755 = vst [vmem:[#allocation228_spill] sm:$0xff] %v12925_v59  ;;  %17757 = vst [vmem:[#allocation229_spill] sm:$0xff] %v12929_v3  ;;  %v12947_v59 = vmul.f32 %v12460_v60, %v17765_v16  ;;  %v12951_v3 = vmul.f32 %v12403_v26, %v17767_v20  ;;  %v12955_v43 = vmul.f32 %v12403_v26, %v17769_v50 }
 0x8fb   :  { %17758 = vst [vmem:[#allocation230_spill] sm:$0xff] %v12931_v2  ;;  %17760 = vst [vmem:[#allocation231_spill] sm:$0xff] %v12935_v23  ;;  %v17771_v23 = vld [vmem:[#allocation115_spill] sm:$0xff] }
 0x8fc   :  { %17762 = vst [vmem:[#allocation232_spill] sm:$0xff] %v12939_v15  ;;  %17764 = vst [vmem:[#allocation233_spill] sm:$0xff] %v12943_v47  ;;  %v12959_v4 = vmul.f32 %v12424_v12, %v17771_v23  ;;  %v17773_v15 = vld [vmem:[#allocation122_spill] sm:$0xff]  ;;  %v17775_v47 = vld [vmem:[#allocation117_spill] sm:$0xff] }
 0x8fd   :  { %17766 = vst [vmem:[#allocation234_spill] sm:$0xff] %v12947_v59  ;;  %17768 = vst [vmem:[#allocation235_spill] sm:$0xff] %v12951_v3  ;;  %v12963_v46 = vmul.f32 %v12424_v12, %v17773_v15  ;;  %v12967_v16 = vmul.f32 %v12547_v44, %v17775_v47  ;;  %v17777_v59 = vld [vmem:[#allocation124_spill] sm:$0xff]  ;;  %v17779_v3 = vld [vmem:[#allocation119_spill] sm:$0xff] }
 0x8fe   :  { %17770 = vst [vmem:[#allocation236_spill] sm:$0xff] %v12955_v43  ;;  %17772 = vst [vmem:[#allocation237_spill] sm:$0xff] %v12959_v4  ;;  %v12971_v20 = vmul.f32 %v12547_v44, %v17777_v59  ;;  %v12975_v50 = vmul.f32 %v12440_v6, %v17779_v3  ;;  %v17781_v43 = vld [vmem:[#allocation126_spill] sm:$0xff]  ;;  %v17782_v4 = vld [vmem:[#allocation121_spill] sm:$0xff]  ;;  %v12996_v3 = vmul.f32 %v12393_v28, %v12426_v11 }
 0x8ff   :  { %17774 = vst [vmem:[#allocation238_spill] sm:$0xff] %v12963_v46  ;;  %17776 = vst [vmem:[#allocation239_spill] sm:$0xff] %v12967_v16  ;;  %v12979_v23 = vmul.f32 %v12440_v6, %v17781_v43  ;;  %v12983_v15 = vmul.f32 %v12577_v9, %v17782_v4  ;;  %v17784_v46 = vld [vmem:[#allocation128_spill] sm:$0xff]  ;;  %v17786_v16 = vld [vmem:[#allocation123_spill] sm:$0xff]  ;;  %v13004_v4 = vmul.f32 %v12477_v55, %v12519_v53 }
 0x900   :  { %17778 = vst [vmem:[#allocation240_spill] sm:$0xff] %v12971_v20  ;;  %17780 = vst [vmem:[#allocation241_spill] sm:$0xff] %v12975_v50  ;;  %v12987_v47 = vmul.f32 %v12577_v9, %v17784_v46  ;;  %v12991_v59 = vmul.f32 %v12393_v28, %v17786_v16  ;;  %v17787_v43 = vld [vmem:[#allocation125_spill] sm:$0xff]  ;;  %v17790_v46 = vld [vmem:[#allocation127_spill] sm:$0xff]  ;;  %v13010_v16 = vpop.permute.xlu1 %3254  ;;  %v13014_v20 = vmul.f32 %v12398_v32, %v12579_v13 }
 0x901   :  { %17783 = vst [vmem:[#allocation242_spill] sm:$0xff] %v12983_v15  ;;  %v13000_v50 = vmul.f32 %v12477_v55, %v17787_v43  ;;  %17789 = vst [vmem:[#allocation245_spill] sm:$0xff] %v13004_v4  ;;  %v17794_v28 = vld [vmem:[#allocation129_spill] sm:$0xff]  ;;  %v13022_v43 = vmul.f32 %v12460_v60, %v12631_v30  ;;  %v13026_v53 = vmul.f32 %v12403_v26, %v12442_v38 }
 0x902   :  { %17785 = vst [vmem:[#allocation243_spill] sm:$0xff] %v12987_v47  ;;  %v13008_v47 = vmul.f32 %v12398_v32, %v17790_v46  ;;  %17792 = vst [vmem:[#allocation247_spill] sm:$0xff] %v13010_v16  ;;  %v13018_v11 = vmul.f32 %v12460_v60, %v17794_v28  ;;  %v13028_v46 = vpop.permute.xlu0 %3646  ;;  %v13032_v4 = vmul.f32 %v12424_v12, %v12711_v1  ;;  %v17856_v15 = vld [vmem:[#allocation221_spill] sm:$0xff] }
 0x903   :  { %17788 = vst [vmem:[#allocation244_spill] sm:$0xff] %v13000_v50  ;;  %17793 = vst [vmem:[#allocation248_spill] sm:$0xff] %v13014_v20  ;;  %v13036_v32 = vmul.f32 %v12424_v12, %v12531_v5  ;;  %v13040_v28 = vmul.f32 %v12547_v44, %v12813_v34  ;;  %v13044_v30 = vmul.f32 %v12547_v44, %v12592_v42  ;;  %v17805_v5 = vrot.slane %v12405_v22, 1  ;;  %v9509_v44 = vpop.f32.mrf.mxu1 }
 0x904   :  { %17791 = vst [vmem:[#allocation246_spill] sm:$0xff] %v13008_v47  ;;  %17795 = vst [vmem:[#allocation249_spill] sm:$0xff] %v13018_v11  ;;  %v13048_v26 = vmul.f32 %v12460_v60, %v12913_v18  ;;  %v13052_v1 = vmul.f32 %v12440_v6, %v12651_v41  ;;  %v13056_v12 = vmul.f32 %v12477_v55, %v13010_v16  ;;  %v17806_v34 = vrot.slane %v12407_v31, 1 }
 0x905   :  { %17796 = vst [vmem:[#allocation250_spill] sm:$0xff] %v13022_v43  ;;  %17797 = vst [vmem:[#allocation251_spill] sm:$0xff] %v13028_v46  ;;  %v13067_v60 = vmul.f32 %v12577_v9, %v12731_v37  ;;  %v13071_v41 = vmul.f32 %v12477_v55, %v12831_v35  ;;  %v13075_v16 = vmul.f32 %v12440_v6, %v12931_v2  ;;  %v2307_v35 = vpop.f32.mrf.mxu1 }
 0x906   :  { %17798 = vst [vmem:[#allocation252_spill] sm:$0xff] %v13032_v4  ;;  %17799 = vst [vmem:[#allocation253_spill] sm:$0xff] %v13036_v32  ;;  %v13063_v38 = vsel %vm2727_vm3, %v17806_v34, %v17805_v5  ;;  %v13079_v18 = vmul.f32 %v12577_v9, %v13028_v46  ;;  %v13083_v5 = vmul.f32 %v12525_v54, %v12405_v22  ;;  %v17825_v9 = vld [vmem:[#allocation132_spill] sm:$0xff] }
 0x907   :  { %17800 = vst [vmem:[#allocation254_spill] sm:$0xff] %v13040_v28  ;;  %17801 = vst [vmem:[#allocation255_spill] sm:$0xff] %v13044_v30  ;;  %v13087_v34 = vmul.f32 %v12464_v17, %v12407_v31  ;;  %v13091_v55 = vmul.f32 %v12482_v45, %v12407_v31  ;;  %v13095_v6 = vmul.f32 %v12557_v24, %v12405_v22  ;;  %v9512_v22 = vpop.f32.mrf.mxu1  ;;  %v17834_v28 = vld [vmem:[#allocation133_spill] sm:$0xff] }
 0x908   :  { %17802 = vst [vmem:[#allocation256_spill] sm:$0xff] %v13048_v26  ;;  %17803 = vst [vmem:[#allocation257_spill] sm:$0xff] %v13052_v1  ;;  %v13099_v46 = vmul.f32 %v12472_v56, %v13063_v38  ;;  %v13102_v54 = vadd.f32 %v9509_v44, %v12376_v61  ;;  %v13106_v17 = vmul.f32 %v12488_v7, %v12503_v33  ;;  %v17839_v30 = vld [vmem:[#allocation173_spill] sm:$0xff] }
 0x909   :  { %17804 = vst [vmem:[#allocation258_spill] sm:$0xff] %v13056_v12  ;;  %17807 = vst [vmem:[#allocation259_spill] sm:$0xff] %v13063_v38  ;;  %v2563_v45 = vmul.f32 %v12539_v63, %v12597_v39  ;;  %v2697_v2 = vmul.f32 %v12611_v0, %v12505_v27  ;;  %v13113_v24 = vadd.f32 %v2307_v35, %v12379_v29  ;;  %v17813_v39 = vrot.slane %v12505_v27, 1 }
 0x90a   :  { %17808 = vst [vmem:[#allocation260_spill] sm:$0xff] %v13067_v60  ;;  %17809 = vst [vmem:[#allocation261_spill] sm:$0xff] %v13071_v41  ;;  %v13117_v56 = vmul.f32 %v12517_v19, %v13063_v38  ;;  %v13121_v61 = vmul.f32 %v12494_v58, %v12503_v33  ;;  %v13125_v7 = vmul.f32 %v12513_v8, %v12567_v21  ;;  %v2317_v8 = vpop.f32.mrf.mxu1  ;;  %v17828_v60 = vld [vmem:[#allocation165_spill] sm:$0xff] }
 0x90b   :  { %17810 = vst [vmem:[#allocation262_spill] sm:$0xff] %v13075_v16  ;;  %17811 = vst [vmem:[#allocation263_spill] sm:$0xff] %v13079_v18  ;;  %v13129_v63 = vmul.f32 %v12529_v51, %v12562_v36  ;;  %v13133_v29 = vmul.f32 %v12586_v10, %v12533_v48  ;;  %v13137_v19 = vmul.f32 %v12607_v62, %v12572_v49  ;;  %v17331_v35 = vrot.slane %v13113_v24, 7 }
 0x90c   :  { %v2735_v0 = vrot.slane %v13113_v24, 1  ;;  %v13142_v58 = vadd.f32 %v9512_v22, %v12382_v25  ;;  %v13146_v51 = vmul.f32 %v12603_v14, %v12567_v21  ;;  %v13151_v48 = vmul.f32 %v12689_v52, %v13102_v54  ;;  %v9515_v36 = vpop.f32.mrf.mxu1  ;;  %v17816_v22 = vld [vmem:[#allocation164_spill] sm:$0xff] }
 0x90d   :  { %v2713_v62 = vadd.f32 %v2697_v2, %v2563_v45  ;;  %v13156_v10 = vmul.f32 %v12676_v40, %v13102_v54  ;;  %v17812_v25 = vrot.slane %v12505_v27, 7  ;;  %v13166_v14 = vadd.f32 %v2317_v8, %v12385_v57  ;;  %v17814_v2 = vld [vmem:[#allocation157_spill] sm:$0xff]  ;;  %v17815_v40 = vld [vmem:[#allocation151_spill] sm:$0xff] }
 0x90e   :  { %v2736_v52 = vsel %vm2727_vm3, %v17813_v39, %v2735_v0  ;;  %v2698_v45 = vmul.f32 %v17815_v40, %v13113_v24  ;;  %v13177_v33 = vmul.f32 %v17816_v22, %v13113_v24  ;;  %v17818_v27 = vld [vmem:[#allocation187_spill] sm:$0xff]  ;;  %v2327_v40 = vpop.f32.mrf.mxu1  ;;  %v17820_v22 = vld [vmem:[#allocation184_spill] sm:$0xff]  ;;  %v17822_v57 = vrot.slane %v13102_v54, 1 }
 0x90f   :  { %v13163_v21 = vsel %vm2393_vm2, %v17812_v25, %v17331_v35  ;;  %v17817_v25 = vld [vmem:[#allocation181_spill] sm:$0xff]  ;;  %v13186_v8 = vmul.f32 %v17818_v27, %v13142_v58  ;;  %v17337_v39 = vrot.slane %v13166_v14, 7  ;;  %v13195_v42 = vmul.f32 %v17820_v22, %v13142_v58 }
 0x910   :  { %v2564_v44 = vmul.f32 %v17814_v2, %v13163_v21  ;;  %v13181_v35 = vmul.f32 %v17817_v25, %v13102_v54  ;;  %v17819_v2 = vld [vmem:[#allocation130_spill] sm:$0xff]  ;;  %v17821_v25 = vld [vmem:[#allocation153_spill] sm:$0xff]  ;;  %v13201_v38 = vsel %vm2727_vm3, %v2735_v0, %v17822_v57  ;;  %v17823_v27 = vrot.slane %v13102_v54, 7  ;;  %v9518_v26 = vpop.f32.mrf.mxu1  ;;  %v17827_v57 = vld [vmem:[#allocation183_spill] sm:$0xff] }
 0x911   :  { %v13190_v49 = vadd.f32 %v9515_v36, %v17819_v2  ;;  %v2881_v13 = vmul.f32 %v17821_v25, %v2736_v52  ;;  %v17824_v2 = vld [vmem:[#allocation167_spill] sm:$0xff]  ;;  %v13213_v22 = vadd.f32 %v2327_v40, %v17825_v9  ;;  %v17826_v25 = vld [vmem:[#allocation152_spill] sm:$0xff]  ;;  %v13221_v41 = vmul.f32 %v17827_v57, %v13166_v14 }
 0x912   :  { %v13208_v36 = vsel %vm2393_vm2, %v17823_v27, %v17337_v39  ;;  %v2700_v37 = vmul.f32 %v17824_v2, %v13166_v14  ;;  %v3282_v12 = vmul.f32 %v17826_v25, %v2736_v52  ;;  %v13216_v18 = vadd.f32 %v2698_v45, %v2564_v44  ;;  %v17829_v39 = vld [vmem:[#allocation176_spill] sm:$0xff]  ;;  %v17830_v9 = vld [vmem:[#allocation207_spill] sm:$0xff]  ;;  %v2337_v45 = vpop.f32.mrf.mxu1  ;;  %v17837_v2 = vld [vmem:[#allocation134_spill] sm:$0xff] }
 0x913   :  { %v3683_v27 = vmul.f32 %v17828_v60, %v2736_v52  ;;  %v2566_v16 = vmul.f32 %v17829_v39, %v13208_v36  ;;  %v13229_v40 = vmul.f32 %v17830_v9, %v13190_v49  ;;  %v17338_v44 = vrot.slane %v13213_v22, 7  ;;  %v17832_v0 = vld [vmem:[#allocation203_spill] sm:$0xff] }
 0x914   :  { %v13235_v57 = vmul.f32 %v17832_v0, %v13190_v49  ;;  %v13238_v60 = vadd.f32 %v9518_v26, %v17834_v28  ;;  %v13240_v52 = vadd.f32 %v2881_v13, %v2713_v62  ;;  %v17836_v39 = vrot.slane %v13142_v58, 7  ;;  %v9521_v25 = vpop.f32.mrf.mxu1  ;;  %v17840_v0 = vld [vmem:[#allocation155_spill] sm:$0xff]  ;;  %v17841_v28 = vld [vmem:[#allocation188_spill] sm:$0xff]  ;;  %v17842_v62 = vld [vmem:[#allocation202_spill] sm:$0xff] }
 0x915   :  { %17831 = vst [vmem:[#allocation157_spill] sm:$0xff] %v13229_v40  ;;  %v13250_v4 = vadd.f32 %v2337_v45, %v17837_v2  ;;  %v3699_v1 = vadd.f32 %v3683_v27, %v17839_v30  ;;  %v2882_v32 = vmul.f32 %v17840_v0, %v13201_v38  ;;  %v2702_v13 = vmul.f32 %v17841_v28, %v13213_v22  ;;  %v17845_v2 = vld [vmem:[#allocation195_spill] sm:$0xff]  ;;  %v17847_v26 = vld [vmem:[#allocation226_spill] sm:$0xff]  ;;  %v17855_v28 = vld [vmem:[#allocation137_spill] sm:$0xff] }
 0x916   :  { %17833 = vst [vmem:[#allocation151_spill] sm:$0xff] %v13235_v57  ;;  %17835 = vst [vmem:[#allocation164_spill] sm:$0xff] %v13238_v60  ;;  %v13247_v9 = vsel %vm2393_vm2, %v17836_v39, %v17338_v44  ;;  %v13260_v43 = vmul.f32 %v17842_v62, %v13213_v22  ;;  %v17844_v39 = vld [vmem:[#allocation160_spill] sm:$0xff]  ;;  %v13263_v11 = vadd.f32 %v2700_v37, %v2566_v16  ;;  %v17846_v27 = vld [vmem:[#allocation135_spill] sm:$0xff]  ;;  %v2347_v20 = vpop.f32.mrf.mxu1 }
 0x917   :  { %17838 = vst [vmem:[#allocation181_spill] sm:$0xff] %v13250_v4  ;;  %v3298_v44 = vadd.f32 %v3282_v12, %v17844_v39  ;;  %v2568_v45 = vmul.f32 %v17845_v2, %v13247_v9  ;;  %v17339_v30 = vrot.slane %v13250_v4, 7  ;;  %v13269_v0 = vadd.f32 %v9521_v25, %v17846_v27  ;;  %v17849_v37 = vld [vmem:[#allocation156_spill] sm:$0xff]  ;;  %v17850_v12 = vld [vmem:[#allocation222_spill] sm:$0xff] }
 0x918   :  { %17843 = vst [vmem:[#allocation187_spill] sm:$0xff] %v13260_v43  ;;  %v13274_v50 = vmul.f32 %v17847_v26, %v13238_v60  ;;  %v3416_v16 = vmul.f32 %v17849_v37, %v13163_v21  ;;  %v13281_v39 = vmul.f32 %v17850_v12, %v13238_v60  ;;  %v17852_v25 = vrot.slane %v13190_v49, 7  ;;  %v17854_v27 = vld [vmem:[#allocation208_spill] sm:$0xff]  ;;  %v9524_v62 = vpop.f32.mrf.mxu1  ;;  %v17875_v43 = vld [vmem:[#allocation235_spill] sm:$0xff] }
 0x919   :  { %v2704_v26 = vmul.f32 %v17854_v27, %v13250_v4  ;;  %v13293_v47 = vadd.f32 %v2347_v20, %v17855_v28  ;;  %v13298_v12 = vmul.f32 %v17856_v15, %v13250_v4  ;;  %v13308_v27 = vadd.f32 %v2702_v13, %v2568_v45 }
 0x91a   :  { %17848 = vst [vmem:[#allocation130_spill] sm:$0xff] %v13274_v50  ;;  %17851 = vst [vmem:[#allocation184_spill] sm:$0xff] %v13281_v39  ;;  %v13288_v2 = vsel %vm2393_vm2, %v17852_v25, %v17339_v30  ;;  %v17858_v39 = vld [vmem:[#allocation138_spill] sm:$0xff]  ;;  %v13306_v25 = vld [vmem:[%s17176_s10] ss:$0 sm:$0xff]  ;;  %v3432_v30 = vadd.f32 %v3416_v16, %v3298_v44  ;;  %v13313_v28 = vmul.f32 %v12991_v59, %v13269_v0  ;;  %v2357_v37 = vpop.f32.mrf.mxu1  ;;  %v17863_v13 = vrot.slane %v13238_v60, 7 }
 0x91b   :  { %17853 = vst [vmem:[#allocation153_spill] sm:$0xff] %v13288_v2  ;;  %17857 = vst [vmem:[#allocation167_spill] sm:$0xff] %v13298_v12  ;;  %v13301_v50 = vadd.f32 %v9524_v62, %v17858_v39  ;;  %v17342_v15 = vrot.slane %v13293_v47, 7  ;;  %v17862_v62 = vld [vmem:[#allocation215_spill] sm:$0xff]  ;;  %v13332_v20 = vadd.f32 %v13306_v25, %v3699_v1 }
 0x91c   :  { %17860 = vst [vmem:[#allocation152_spill] sm:$0xff] %v13308_v27  ;;  %17861 = vst [vmem:[#allocation183_spill] sm:$0xff] %v13313_v28  ;;  %v2570_v39 = vmul.f32 %v17862_v62, %v13288_v2  ;;  %v17864_v59 = vld [vmem:[#allocation139_spill] sm:$0xff]  ;;  %v13338_v28 = vmul.f32 %v12979_v23, %v13269_v0 }
 0x91d   :  { %17859 = vst [vmem:[#allocation132_spill] sm:$0xff] %v13301_v50  ;;  %v2395_v57 = vrot.slane %v13301_v50, 7  ;;  %v13326_v45 = vsel %vm2393_vm2, %v17863_v13, %v17342_v15  ;;  %v13329_v16 = vadd.f32 %v2357_v37, %v17864_v59  ;;  %17865 = vst [vmem:[#allocation165_spill] sm:$0xff] %v13332_v20  ;;  %v17866_v62 = vld [vmem:[#allocation163_spill] sm:$0xff]  ;;  %v17869_v13 = vrot.slane %v12407_v31, 7 }
 0x91e   :  { %v3550_v12 = vmul.f32 %v17866_v62, %v13113_v24  ;;  %17867 = vst [vmem:[#allocation176_spill] sm:$0xff] %v13338_v28  ;;  %v17868_v44 = vld [vmem:[#allocation227_spill] sm:$0xff]  ;;  %v17872_v15 = vrot.slane %v12407_v31, 1  ;;  %v17873_v62 = vrot.slane %v13301_v50, 1  ;;  %v13358_v40 = vadd.f32 %v2704_v26, %v2570_v39  ;;  %v17880_v26 = vld [vmem:[#allocation166_spill] sm:$0xff] }
 0x91f   :  { %v2706_v2 = vmul.f32 %v17868_v44, %v13293_v47  ;;  %v13346_v37 = vsel %vm2393_vm2, %v2395_v57, %v17869_v13  ;;  %v17871_v1 = vld [vmem:[#allocation143_spill] sm:$0xff]  ;;  %v2394_v28 = vrot.slane %v13329_v16, 7  ;;  %v2572_v60 = vmul.f32 %v17875_v43, %v13326_v45  ;;  %v17876_v13 = vld [vmem:[#allocation241_spill] sm:$0xff]  ;;  %v17881_v43 = vld [vmem:[#allocation142_spill] sm:$0xff] }
 0x920   :  { %17870 = vst [vmem:[#allocation207_spill] sm:$0xff] %v13346_v37  ;;  %v2560_v59 = vmul.f32 %v17871_v1, %v13346_v37  ;;  %v13355_v23 = vsel %vm2727_vm3, %v17873_v62, %v17872_v15  ;;  %v3566_v44 = vadd.f32 %v3550_v12, %v3432_v30  ;;  %v13364_v4 = vmul.f32 %v17876_v13, %v13293_v47  ;;  %v17878_v1 = vld [vmem:[#allocation141_spill] sm:$0xff]  ;;  %v17882_v62 = vld [vmem:[#allocation144_spill] sm:$0xff] }
 0x921   :  { %17874 = vst [vmem:[#allocation203_spill] sm:$0xff] %v13355_v23  ;;  %v2693_v31 = vmul.f32 %v17878_v1, %v13301_v50  ;;  %v13370_v15 = vsel %vm2393_vm2, %v2394_v28, %v2395_v57  ;;  %v13374_v30 = vsel %vm217_vm0, %v13332_v20, 0.0  ;;  %v3684_v12 = vmul.f32 %v17880_v26, %v13201_v38  ;;  %v17883_v1 = vld [vmem:[#allocation145_spill] sm:$0xff] }
 0x922   :  { %17877 = vst [vmem:[#allocation133_spill] sm:$0xff] %v13364_v4  ;;  %v2710_v27 = vadd.f32 %v13087_v34, %v2560_v59  ;;  %17879 = vst [vmem:[#allocation134_spill] sm:$0xff] %v13370_v15  ;;  %v2877_v39 = vmul.f32 %v17881_v43, %v13355_v23  ;;  %v3011_v13 = vmul.f32 %v17882_v62, %v13346_v37  ;;  %v17884_v57 = vrot.slane %v13269_v0, 7 }
 0x923   :  { %v2559_v4 = vmul.f32 %v17883_v1, %v13370_v15  ;;  %v2898_v34 = vadd.f32 %v2882_v32, %v13216_v18  ;;  %v3700_v50 = vadd.f32 %v3684_v12, %v3566_v44  ;;  %v17885_v26 = vrot.slane %v13102_v54, 7  ;;  %v17887_v1 = vld [vmem:[#allocation158_spill] sm:$0xff] }
 0x924   :  { %v13388_v59 = vsel %vm2393_vm2, %v17884_v57, %v2394_v28  ;;  %v2894_v20 = vadd.f32 %v13099_v46, %v2710_v27  ;;  %v17886_v43 = vrot.slane %v13113_v24, 7  ;;  %v13396_v62 = vadd.f32 %v2706_v2, %v2572_v60  ;;  %v17890_v60 = vld [vmem:[#allocation161_spill] sm:$0xff]  ;;  %v17891_v44 = vld [vmem:[#allocation162_spill] sm:$0xff]  ;;  %v17892_v57 = vld [vmem:[#allocation168_spill] sm:$0xff] }
 0x925   :  { %v2709_v37 = vadd.f32 %v2693_v31, %v2559_v4  ;;  %v17888_v18 = vrot.slane %v13166_v14, 1  ;;  %v17889_v32 = vrot.slane %v13102_v54, 1  ;;  %v13406_v46 = vmul.f32 %v12996_v3, %v13329_v16 }
 0x926   :  { %v2423_v23 = vsel %vm2393_vm2, %v17886_v43, %v17885_v26  ;;  %v2755_v27 = vrot.slane %v13329_v16, 1  ;;  %v3028_v24 = vadd.f32 %v13106_v17, %v2894_v20  ;;  %v3015_v2 = vmul.f32 %v17890_v60, %v13163_v21  ;;  %v17893_v43 = vld [vmem:[#allocation170_spill] sm:$0xff] }
 0x927   :  { %v2565_v15 = vmul.f32 %v17887_v1, %v2423_v23  ;;  %v2740_v28 = vsel %vm2727_vm3, %v17889_v32, %v17888_v18  ;;  %v13414_v31 = vmul.f32 %v13026_v53, %v13388_v59  ;;  %v2893_v4 = vadd.f32 %v2877_v39, %v2709_v37  ;;  %v17896_v32 = vld [vmem:[#allocation169_spill] sm:$0xff] }
 0x928   :  { %v13417_v54 = vadd.f32 %v13306_v25, %v3700_v50  ;;  %v3016_v12 = vmul.f32 %v17891_v44, %v2423_v23  ;;  %v3162_v3 = vadd.f32 %v13083_v5, %v3028_v24  ;;  %v3283_v26 = vmul.f32 %v17892_v57, %v13201_v38  ;;  %v17897_v24 = vld [vmem:[#allocation171_spill] sm:$0xff] }
 0x929   :  { %v2883_v17 = vmul.f32 %v17893_v43, %v2740_v28  ;;  %v3031_v20 = vadd.f32 %v3015_v2, %v13240_v52  ;;  %v3027_v21 = vadd.f32 %v3011_v13, %v2893_v4  ;;  %v2715_v1 = vadd.f32 %v13151_v48, %v2565_v15  ;;  %v17898_v15 = vld [vmem:[#allocation174_spill] sm:$0xff] }
 0x92a   :  { %v17894_v53 = vrot.slane %v13142_v58, 1  ;;  %v17895_v37 = vmov %v17888_v18  ;;  %v3032_v39 = vadd.f32 %v3016_v12, %v2898_v34  ;;  %v3296_v18 = vadd.f32 %v13125_v7, %v3162_v3  ;;  %v17899_v3 = vld [vmem:[#allocation175_spill] sm:$0xff] }
 0x92b   :  { %v3165_v5 = vadd.f32 %v13177_v33, %v3031_v20  ;;  %v3284_v38 = vmul.f32 %v17896_v32, %v2740_v28  ;;  %v3161_v52 = vadd.f32 %v13091_v55, %v3027_v21  ;;  %v13438_v48 = vsel %vm217_vm0, %v13417_v54, 0.0  ;;  %v17907_v32 = vld [vmem:[#allocation185_spill] sm:$0xff] }
 0x92c   :  { %v2742_v50 = vsel %vm2727_vm3, %v17895_v37, %v17894_v53  ;;  %v3417_v13 = vmul.f32 %v17898_v15, %v2423_v23  ;;  %v3166_v2 = vadd.f32 %v13156_v10, %v3032_v39  ;;  %v3430_v34 = vadd.f32 %v13129_v63, %v3296_v18  ;;  %v17902_v63 = vld [vmem:[#allocation182_spill] sm:$0xff]  ;;  %v17906_v39 = vld [vmem:[#allocation179_spill] sm:$0xff] }
 0x92d   :  { %v2884_v60 = vmul.f32 %v17897_v24, %v2742_v50  ;;  %v2899_v4 = vadd.f32 %v2883_v17, %v2715_v1  ;;  %v3299_v7 = vadd.f32 %v3283_v26, %v3165_v5  ;;  %v3295_v44 = vadd.f32 %v13117_v56, %v3161_v52  ;;  %v17909_v15 = vld [vmem:[#allocation191_spill] sm:$0xff] }
 0x92e   :  { %v3300_v12 = vadd.f32 %v3284_v38, %v3166_v2  ;;  %v3418_v55 = vmul.f32 %v17899_v3, %v13208_v36  ;;  %v17900_v57 = vrot.slane %v13142_v58, 7  ;;  %v17901_v43 = vrot.slane %v13166_v14, 7  ;;  %v17908_v38 = vld [vmem:[#allocation186_spill] sm:$0xff] }
 0x92f   :  { %v2900_v33 = vadd.f32 %v2884_v60, %v13263_v11  ;;  %v3564_v10 = vadd.f32 %v13133_v29, %v3430_v34  ;;  %v3433_v20 = vadd.f32 %v3417_v13, %v3299_v7  ;;  %v3552_v26 = vmul.f32 %v17902_v63, %v13166_v14  ;;  %v17910_v7 = vld [vmem:[#allocation189_spill] sm:$0xff] }
 0x930   :  { %v2427_v23 = vsel %vm2393_vm2, %v17901_v43, %v17900_v57  ;;  %v17903_v11 = vrot.slane %v13213_v22, 1  ;;  %v17904_v56 = vmov %v17894_v53  ;;  %v3429_v21 = vadd.f32 %v13121_v61, %v3295_v44  ;;  %v17905_v53 = vld [vmem:[#allocation177_spill] sm:$0xff]  ;;  %v17911_v44 = vld [vmem:[#allocation180_spill] sm:$0xff] }
 0x931   :  { %v3434_v1 = vadd.f32 %v3418_v55, %v3300_v12  ;;  %v2567_v37 = vmul.f32 %v17905_v53, %v2427_v23  ;;  %v3017_v18 = vmul.f32 %v17906_v39, %v13208_v36  ;;  %v3698_v29 = vadd.f32 %v13137_v19, %v3564_v10  ;;  %v17912_v55 = vld [vmem:[#allocation190_spill] sm:$0xff]  ;;  %v17915_v63 = vld [vmem:[#allocation193_spill] sm:$0xff] }
 0x932   :  { %v2744_v17 = vsel %vm2727_vm3, %v17904_v56, %v17903_v11  ;;  %v3567_v5 = vadd.f32 %v13181_v35, %v3433_v20  ;;  %v3685_v14 = vmul.f32 %v17907_v32, %v2740_v28  ;;  %v3686_v24 = vmul.f32 %v17908_v38, %v2742_v50  ;;  %v17916_v56 = vld [vmem:[#allocation192_spill] sm:$0xff] }
 0x933   :  { %v3563_v60 = vadd.f32 %v13095_v6, %v3429_v21  ;;  %v3568_v52 = vadd.f32 %v3552_v26, %v3434_v1  ;;  %v2885_v13 = vmul.f32 %v17909_v15, %v2744_v17  ;;  %v3033_v61 = vadd.f32 %v3017_v18, %v2899_v4  ;;  %v17918_v18 = vld [vmem:[#allocation205_spill] sm:$0xff]  ;;  %v17923_v15 = vld [vmem:[#allocation196_spill] sm:$0xff] }
 0x934   :  { %v13471_v2 = vadd.f32 %v13306_v25, %v3698_v29  ;;  %v3701_v34 = vadd.f32 %v3685_v14, %v3567_v5  ;;  %v3285_v36 = vmul.f32 %v17910_v7, %v2742_v50  ;;  %v3018_v19 = vmul.f32 %v17911_v44, %v2427_v23  ;;  %v17919_v5 = vld [vmem:[#allocation194_spill] sm:$0xff]  ;;  %v17920_v14 = vld [vmem:[#allocation152_spill] sm:$0xff]  ;;  %v17927_v7 = vld [vmem:[#allocation197_spill] sm:$0xff] }
 0x935   :  { %v3697_v35 = vadd.f32 %v13146_v51, %v3563_v60  ;;  %v3702_v12 = vadd.f32 %v3686_v24, %v3568_v52  ;;  %v2717_v28 = vadd.f32 %v13186_v8, %v2567_v37  ;;  %v3167_v3 = vadd.f32 %v13221_v41, %v3033_v61  ;;  %v17917_v37 = vld [vmem:[#allocation200_spill] sm:$0xff] }
 0x936   :  { %v3739_v6 = vsel %vm217_vm0, %v13471_v2, 0.0  ;;  %v3286_v4 = vmul.f32 %v17912_v55, %v2744_v17  ;;  %v17913_v57 = vrot.slane %v13190_v49, 1  ;;  %v17914_v43 = vmov %v17903_v11  ;;  %v17930_v55 = vld [vmem:[#allocation211_spill] sm:$0xff] }
 0x937   :  { %v3034_v10 = vadd.f32 %v3018_v19, %v2900_v33  ;;  %3740 = vadd.xlane.f32.xlu0 %v3739_v6  ;;  %v13487_v51 = vadd.f32 %v13306_v25, %v3697_v35  ;;  %v2901_v20 = vadd.f32 %v2885_v13, %v2717_v28  ;;  %v3301_v8 = vadd.f32 %v3285_v36, %v3167_v3  ;;  %v17924_v13 = vld [vmem:[#allocation181_spill] sm:$0xff]  ;;  %v17929_v3 = vld [vmem:[#allocation206_spill] sm:$0xff] }
 0x938   :  { %v2746_v50 = vsel %vm2727_vm3, %v17914_v43, %v17913_v57  ;;  %v3419_v41 = vmul.f32 %v17915_v63, %v2427_v23  ;;  %v13491_v26 = vadd.f32 %v13306_v25, %v3701_v34  ;;  %v13494_v11 = vadd.f32 %v13306_v25, %v3702_v12 }
 0x939   :  { %v2886_v21 = vmul.f32 %v17916_v56, %v2746_v50  ;;  %v3168_v1 = vadd.f32 %v13195_v42, %v3034_v10  ;;  %v3736_v33 = vsel %vm217_vm0, %v13487_v51, 0.0  ;;  %v3553_v39 = vmul.f32 %v17917_v37, %v13142_v58 }
 0x93a   :  { %v3435_v53 = vadd.f32 %v3419_v41, %v3301_v8  ;;  %v3687_v29 = vmul.f32 %v17918_v18, %v2744_v17  ;;  %3737 = vadd.xlane.f32.xlu1 %v3736_v33  ;;  %v3420_v32 = vmul.f32 %v17919_v5, %v13247_v9  ;;  %v17921_v24 = vrot.slane %v13190_v49, 7  ;;  %v17932_v8 = vld [vmem:[#allocation198_spill] sm:$0xff]  ;;  %v17933_v41 = vld [vmem:[#allocation164_spill] sm:$0xff]  ;;  %v17936_v33 = vld [vmem:[#allocation157_spill] sm:$0xff] }
 0x93b   :  { %v3302_v23 = vadd.f32 %v3286_v4, %v3168_v1  ;;  %v2902_v38 = vadd.f32 %v2886_v21, %v17920_v14  ;;  %v17922_v42 = vrot.slane %v13213_v22, 7  ;;  %3743 = vadd.xlane.f32.xlu0 %v13374_v30  ;;  %v17925_v17 = vrot.slane %v17924_v13, 1  ;;  %v17928_v30 = vld [vmem:[#allocation201_spill] sm:$0xff] }
 0x93c   :  { %v3569_v52 = vadd.f32 %v3553_v39, %v3435_v53  ;;  %v17926_v61 = vmov %v17913_v57  ;;  %v3019_v36 = vmul.f32 %v17927_v7, %v13247_v9  ;;  %v3748_v44 = vsel %vm217_vm0, %v13491_v26, 0.0  ;;  %v17931_v9 = vld [vmem:[#allocation209_spill] sm:$0xff] }
 0x93d   :  { %v2431_v60 = vsel %vm2393_vm2, %v17922_v42, %v17921_v24  ;;  %v2748_v34 = vsel %vm2727_vm3, %v17926_v61, %v17925_v17  ;;  %v3751_v19 = vsel %vm217_vm0, %v13494_v11, 0.0  ;;  %v3436_v35 = vadd.f32 %v3420_v32, %v3302_v23  ;;  %v17940_v23 = vld [vmem:[#allocation213_spill] sm:$0xff]  ;;  %v17941_v42 = vld [vmem:[#allocation219_spill] sm:$0xff] }
 0x93e   :  { %v2569_v58 = vmul.f32 %v17923_v15, %v2431_v60  ;;  %v3554_v12 = vmul.f32 %v17928_v30, %v13213_v22  ;;  %v3703_v28 = vadd.f32 %v3687_v29, %v3569_v52  ;;  %v3688_v6 = vmul.f32 %v17929_v3, %v2746_v50  ;;  %3746 = vadd.xlane.f32.xlu1 %v13438_v48  ;;  %v17938_v48 = vld [vmem:[#allocation212_spill] sm:$0xff]  ;;  %v17942_v61 = vld [vmem:[#allocation151_spill] sm:$0xff] }
 0x93f   :  { %v2887_v4 = vmul.f32 %v17930_v55, %v2748_v34  ;;  %v3035_v57 = vadd.f32 %v3019_v36, %v2901_v20  ;;  %v3287_v10 = vmul.f32 %v17931_v9, %v2746_v50  ;;  %v3020_v63 = vmul.f32 %v17932_v8, %v2431_v60  ;;  %3749 = vadd.xlane.f32.xlu0 %v3748_v44  ;;  %v17937_v20 = vld [vmem:[#allocation187_spill] sm:$0xff]  ;;  %v17939_v50 = vld [vmem:[#allocation210_spill] sm:$0xff]  ;;  %v17952_v9 = vld [vmem:[#allocation220_spill] sm:$0xff] }
 0x940   :  { %v3570_v43 = vadd.f32 %v3554_v12, %v3436_v35  ;;  %v17934_v56 = vrot.slane %v17933_v41, 1  ;;  %v17935_v21 = vmov %v17925_v17  ;;  %v13537_v22 = vadd.f32 %v13306_v25, %v3703_v28  ;;  %v17948_v12 = vld [vmem:[#allocation153_spill] sm:$0xff] }
 0x941   :  { %v2719_v53 = vadd.f32 %v17936_v33, %v2569_v58  ;;  %v3169_v37 = vadd.f32 %v17937_v20, %v3035_v57  ;;  %v3288_v29 = vmul.f32 %v17939_v50, %v2748_v34  ;;  %v3421_v5 = vmul.f32 %v17940_v23, %v2431_v60  ;;  %v17949_v28 = vld [vmem:[#allocation217_spill] sm:$0xff]  ;;  %v17951_v57 = vld [vmem:[#allocation214_spill] sm:$0xff]  ;;  %v17954_v20 = vld [vmem:[#allocation228_spill] sm:$0xff] }
 0x942   :  { %v2750_v1 = vsel %vm2727_vm3, %v17935_v21, %v17934_v56  ;;  %v3704_v18 = vadd.f32 %v3688_v6, %v3570_v43  ;;  %v3036_v32 = vadd.f32 %v3020_v63, %v2902_v38  ;;  %v3555_v52 = vmul.f32 %v17941_v42, %v13190_v49  ;;  %3752 = vadd.xlane.f32.xlu1 %v3751_v19  ;;  %v17945_v49 = vld [vmem:[#allocation216_spill] sm:$0xff]  ;;  %v17950_v6 = vld [vmem:[#allocation223_spill] sm:$0xff] }
 0x943   :  { %v2888_v39 = vmul.f32 %v17938_v48, %v2750_v1  ;;  %v2903_v14 = vadd.f32 %v2887_v4, %v2719_v53  ;;  %v3303_v24 = vadd.f32 %v3287_v10, %v3169_v37  ;;  %v3754_v58 = vsel %vm217_vm0, %v13537_v22, 0.0  ;;  %v17955_v48 = vld [vmem:[#allocation231_spill] sm:$0xff] }
 0x944   :  { %v13550_v17 = vadd.f32 %v13306_v25, %v3704_v18  ;;  %v3170_v7 = vadd.f32 %v17942_v61, %v3036_v32  ;;  %v17943_v36 = vrot.slane %v17933_v41, 7  ;;  %v17944_v38 = vrot.slane %v17924_v13, 7  ;;  %3755 = vadd.xlane.f32.xlu0 %v3754_v58  ;;  %v17962_v61 = vld [vmem:[#allocation232_spill] sm:$0xff] }
 0x945   :  { %v2904_v15 = vadd.f32 %v2888_v39, %v13358_v40  ;;  %v3437_v44 = vadd.f32 %v3421_v5, %v3303_v24  ;;  %v17946_v40 = vrot.slane %v13293_v47, 1  ;;  %v17947_v19 = vmov %v17934_v56  ;;  %v17953_v56 = vld [vmem:[#allocation224_spill] sm:$0xff]  ;;  %v17956_v39 = vld [vmem:[#allocation218_spill] sm:$0xff]  ;;  %v17958_v5 = vld [vmem:[#allocation167_spill] sm:$0xff] }
 0x946   :  { %v2435_v60 = vsel %vm2393_vm2, %v17944_v38, %v17943_v36  ;;  %v3021_v3 = vmul.f32 %v17949_v28, %v17948_v12  ;;  %v3689_v55 = vmul.f32 %v17950_v6, %v2748_v34  ;;  %v3304_v4 = vadd.f32 %v3288_v29, %v3170_v7  ;;  %v17957_v29 = vld [vmem:[#allocation130_spill] sm:$0xff]  ;;  %v17965_v28 = vld [vmem:[#allocation184_spill] sm:$0xff] }
 0x947   :  { %v2571_v35 = vmul.f32 %v17945_v49, %v2435_v60  ;;  %v2752_v30 = vsel %vm2727_vm3, %v17947_v19, %v17946_v40  ;;  %v3422_v43 = vmul.f32 %v17951_v57, %v17948_v12  ;;  %v3556_v10 = vmul.f32 %v17952_v9, %v17924_v13 }
 0x948   :  { %v3757_v8 = vsel %vm217_vm0, %v13550_v17, 0.0  ;;  %v3571_v63 = vadd.f32 %v3555_v52, %v3437_v44  ;;  %v3690_v21 = vmul.f32 %v17953_v56, %v2750_v1  ;;  %v3037_v33 = vadd.f32 %v3021_v3, %v2903_v14  ;;  %v17961_v52 = vld [vmem:[#allocation229_spill] sm:$0xff] }
 0x949   :  { %3758 = vadd.xlane.f32.xlu1 %v3757_v8  ;;  %v3438_v53 = vadd.f32 %v3422_v43, %v3304_v4  ;;  %v3289_v37 = vmul.f32 %v17954_v20, %v2750_v1  ;;  %v2889_v34 = vmul.f32 %v17955_v48, %v2752_v30  ;;  %v3022_v18 = vmul.f32 %v17956_v39, %v2435_v60  ;;  %v17963_v44 = vld [vmem:[#allocation233_spill] sm:$0xff]  ;;  %v17972_v20 = vld [vmem:[#allocation240_spill] sm:$0xff]  ;;  %v13617_v39 = vpop.permute.xlu0 %3517 }
 0x94a   :  { %v3705_v50 = vadd.f32 %v3689_v55, %v3571_v63  ;;  %v2721_v23 = vadd.f32 %v17957_v29, %v2571_v35  ;;  %v3171_v13 = vadd.f32 %v17958_v5, %v3037_v33  ;;  %v17959_v32 = vrot.slane %v13269_v0, 1  ;;  %v17964_v35 = vld [vmem:[#allocation239_spill] sm:$0xff]  ;;  %v17970_v63 = vld [vmem:[#allocation236_spill] sm:$0xff]  ;;  %v17971_v33 = vld [vmem:[#allocation242_spill] sm:$0xff]  ;;  %17974 = vst [vmem:[#allocation173_spill] sm:$0xff] %v13617_v39 }
 0x94b   :  { %v17960_v24 = vmov %v17946_v40  ;;  %v3572_v14 = vadd.f32 %v3556_v10, %v3438_v53  ;;  %v3290_v58 = vmul.f32 %v17961_v52, %v2752_v30  ;;  %v3038_v7 = vadd.f32 %v3022_v18, %v2904_v15  ;;  %v17969_v10 = vld [vmem:[#allocation234_spill] sm:$0xff]  ;;  %v17973_v48 = vld [vmem:[#allocation237_spill] sm:$0xff] }
 0x94c   :  { %v2754_v42 = vsel %vm2727_vm3, %v17960_v24, %v17959_v32  ;;  %v13587_v36 = vadd.f32 %v13306_v25, %v3705_v50  ;;  %v3305_v38 = vadd.f32 %v3289_v37, %v3171_v13  ;;  %v3423_v49 = vmul.f32 %v17963_v44, %v2435_v60  ;;  %v17975_v29 = vld [vmem:[#allocation246_spill] sm:$0xff]  ;;  %v17977_v24 = vld [vmem:[#allocation243_spill] sm:$0xff] }
 0x94d   :  { %v2890_v1 = vmul.f32 %v17962_v61, %v2754_v42  ;;  %v3557_v40 = vmul.f32 %v17964_v35, %v17933_v41  ;;  %v3706_v19 = vadd.f32 %v3690_v21, %v3572_v14  ;;  %v2905_v12 = vadd.f32 %v2889_v34, %v2721_v23  ;;  %v17976_v5 = vld [vmem:[#allocation238_spill] sm:$0xff]  ;;  %v17979_v61 = vld [vmem:[#allocation132_spill] sm:$0xff] }
 0x94e   :  { %v3172_v3 = vadd.f32 %v17965_v28, %v3038_v7  ;;  %v3760_v55 = vsel %vm217_vm0, %v13587_v36, 0.0  ;;  %v3439_v4 = vadd.f32 %v3423_v49, %v3305_v38  ;;  %v17966_v15 = vrot.slane %v13269_v0, 7  ;;  %v17981_v49 = vld [vmem:[#allocation244_spill] sm:$0xff] }
 0x94f   :  { %v2906_v6 = vadd.f32 %v2890_v1, %v13396_v62  ;;  %v17967_v57 = vrot.slane %v13293_v47, 7  ;;  %v17968_v41 = vmov %v17959_v32  ;;  %3761 = vadd.xlane.f32.xlu0 %v3760_v55  ;;  %v13607_v9 = vadd.f32 %v13306_v25, %v3706_v19  ;;  %v17985_v55 = vld [vmem:[#allocation245_spill] sm:$0xff] }
 0x950   :  { %v2756_v60 = vsel %vm2727_vm3, %v17968_v41, %v2755_v27  ;;  %v3306_v62 = vadd.f32 %v3290_v58, %v3172_v3  ;;  %v3424_v8 = vmul.f32 %v17969_v10, %v13326_v45  ;;  %v3573_v21 = vadd.f32 %v3557_v40, %v3439_v4  ;;  %v17983_v40 = vld [vmem:[#allocation248_spill] sm:$0xff]  ;;  %v17987_v41 = vld [vmem:[#allocation249_spill] sm:$0xff] }
 0x951   :  { %v2439_v43 = vsel %vm2393_vm2, %v17967_v57, %v17966_v15  ;;  %v3691_v53 = vmul.f32 %v17971_v33, %v2752_v30  ;;  %v3558_v37 = vmul.f32 %v17972_v20, %v13293_v47  ;;  %v3023_v34 = vmul.f32 %v17973_v48, %v13326_v45  ;;  %v17978_v45 = vld [vmem:[#allocation183_spill] sm:$0xff]  ;;  %v17986_v15 = vld [vmem:[#allocation176_spill] sm:$0xff]  ;;  %v17990_v33 = vld [vmem:[#allocation253_spill] sm:$0xff] }
 0x952   :  { %v2573_v56 = vmul.f32 %v17970_v63, %v2439_v43  ;;  %v3763_v18 = vsel %vm217_vm0, %v13607_v9, 0.0  ;;  %v3440_v50 = vadd.f32 %v3424_v8, %v3306_v62  ;;  %v2891_v23 = vmul.f32 %v17975_v29, %v2756_v60  ;;  %v17991_v20 = vld [vmem:[#allocation257_spill] sm:$0xff] }
 0x953   :  { %v3024_v13 = vmul.f32 %v17976_v5, %v2439_v43  ;;  %v2724_v32 = vadd.f32 %v13406_v46, %v13414_v31  ;;  %3764 = vadd.xlane.f32.xlu1 %v3763_v18  ;;  %v3707_v30 = vadd.f32 %v3691_v53, %v3573_v21  ;;  %v3692_v47 = vmul.f32 %v17977_v24, %v2754_v42  ;;  %v17982_v31 = vld [vmem:[#allocation133_spill] sm:$0xff]  ;;  %v17993_v18 = vld [vmem:[#allocation134_spill] sm:$0xff] }
 0x954   :  { %v3039_v14 = vadd.f32 %v3023_v34, %v2905_v12  ;;  %v3574_v52 = vadd.f32 %v3558_v37, %v3440_v50  ;;  %v2723_v58 = vadd.f32 %v17978_v45, %v2573_v56  ;;  %v17980_v1 = vrot.slane %v17979_v61, 1  ;;  %v13638_v12 = vpop.permute.xlu1 %3388  ;;  %v17989_v56 = vld [vmem:[#allocation250_spill] sm:$0xff]  ;;  %v17994_v50 = vld [vmem:[#allocation252_spill] sm:$0xff] }
 0x955   :  { %v3040_v38 = vadd.f32 %v3024_v13, %v2906_v6  ;;  %v13633_v44 = vadd.f32 %v13306_v25, %v3707_v30  ;;  %v3291_v46 = vmul.f32 %v17981_v49, %v2754_v42  ;;  %17984 = vst [vmem:[#allocation155_spill] sm:$0xff] %v13638_v12  ;;  %v3292_v4 = vmul.f32 %v17985_v55, %v2756_v60  ;;  %v13645_v42 = vpop.permute.xlu0 %3651  ;;  %v17995_v13 = vld [vmem:[#allocation254_spill] sm:$0xff]  ;;  %v18000_v49 = vld [vmem:[#allocation263_spill] sm:$0xff]  ;;  %v10384_v55 = vld [vmem:[%s17175_s9 + $0x7] ss:$0 sm:$0xff] }
 0x956   :  { %v2757_v7 = vsel %vm2727_vm3, %v2755_v27, %v17980_v1  ;;  %v3173_v35 = vadd.f32 %v17982_v31, %v3039_v14  ;;  %v3708_v28 = vadd.f32 %v3692_v47, %v3574_v52  ;;  %v2907_v3 = vadd.f32 %v2891_v23, %v2723_v58  ;;  %17988 = vst [vmem:[#allocation188_spill] sm:$0xff] %v13645_v42  ;;  %v17997_v14 = vld [vmem:[#allocation260_spill] sm:$0xff]  ;;  %v17999_v58 = vld [vmem:[#allocation261_spill] sm:$0xff] }
 0x957   :  { %v2892_v19 = vmul.f32 %v17983_v40, %v2757_v7  ;;  %v3174_v57 = vadd.f32 %v17986_v15, %v3040_v38  ;;  %v3766_v27 = vsel %vm217_vm0, %v13633_v44, 0.0  ;;  %v3425_v62 = vmul.f32 %v17987_v41, %v2439_v43  ;;  %v17992_v43 = vld [vmem:[#allocation255_spill] sm:$0xff] }
 0x958   :  { %v3307_v6 = vadd.f32 %v3291_v46, %v3173_v35  ;;  %3767 = vadd.xlane.f32.xlu0 %v3766_v27  ;;  %v13648_v8 = vadd.f32 %v13306_v25, %v3708_v28  ;;  %v3426_v21 = vmul.f32 %v17989_v56, %v13388_v59  ;;  %v3025_v53 = vmul.f32 %v17990_v33, %v13388_v59  ;;  %v17996_v59 = vld [vmem:[#allocation262_spill] sm:$0xff]  ;;  %v18001_v28 = vld [vmem:[#allocation203_spill] sm:$0xff]  ;;  %v18004_v27 = vld [vmem:[#allocation256_spill] sm:$0xff] }
 0x959   :  { %v2908_v10 = vadd.f32 %v2892_v19, %v2724_v32  ;;  %v3308_v63 = vadd.f32 %v3292_v4, %v3174_v57  ;;  %v3159_v37 = vmul.f32 %v17991_v20, %v13329_v16  ;;  %v3559_v34 = vmul.f32 %v17992_v43, %v13269_v0  ;;  %v13667_v0 = vpop.permute.xlu1 %3522  ;;  %v13681_v15 = vpop.permute.xlu0 %3656 }
 0x95a   :  { %v3441_v48 = vadd.f32 %v3425_v62, %v3307_v6  ;;  %v3026_v29 = vmul.f32 %v17994_v50, %v17993_v18  ;;  %v3769_v23 = vsel %vm217_vm0, %v13648_v8, 0.0  ;;  %v3560_v32 = vmul.f32 %v17995_v13, %v13329_v16  ;;  %17998 = vst [vmem:[#allocation202_spill] sm:$0xff] %v13667_v0  ;;  %v10383_v16 = vld [vmem:[%s17175_s9 + $0x6] ss:$0 sm:$0xff]  ;;  %18003 = vst [vmem:[#allocation160_spill] sm:$0xff] %v13681_v15  ;;  %v18007_v50 = vld [vmem:[#allocation131_spill] sm:$0xff] }
 0x95b   :  { %v3442_v5 = vadd.f32 %v3426_v21, %v3308_v63  ;;  %v3041_v30 = vadd.f32 %v3025_v53, %v2907_v3  ;;  %v3160_v24 = vmul.f32 %v17996_v59, %v17979_v61  ;;  %3770 = vadd.xlane.f32.xlu1 %v3769_v23  ;;  %v3693_v52 = vmul.f32 %v17997_v14, %v2756_v60  ;;  %v18002_v3 = vld [vmem:[#allocation258_spill] sm:$0xff]  ;;  %v18005_v63 = vld [vmem:[#allocation207_spill] sm:$0xff]  ;;  %v18006_v21 = vld [vmem:[#allocation148_spill] sm:$0xff] }
 0x95c   :  { %v3575_v47 = vadd.f32 %v3559_v34, %v3441_v48  ;;  %v3042_v45 = vadd.f32 %v3026_v29, %v2908_v10  ;;  %v3293_v1 = vmul.f32 %v17999_v58, %v2757_v7  ;;  %v3694_v46 = vmul.f32 %v18000_v49, %v2757_v7  ;;  %v10385_v48 = vld [vmem:[%s17175_s9 + $0x8] ss:$0 sm:$0xff]  ;;  %v4005_v58 = vld [vmem:[%s17179_s13 + $0x78] sm:$0xff] }
 0x95d   :  { %v3576_v38 = vadd.f32 %v3560_v32, %v3442_v5  ;;  %v3175_v31 = vadd.f32 %v3159_v37, %v3041_v30  ;;  %v3412_v35 = vmul.f32 %v10383_v16, %v13638_v12  ;;  %v3294_v60 = vmul.f32 %v18002_v3, %v18001_v28  ;;  %v18008_v32 = vld [vmem:[#allocation259_spill] sm:$0xff]  ;;  %4082 = vmatprep.subr.mxu0 %v4005_v58 }
 0x95e   :  { %v3709_v40 = vadd.f32 %v3693_v52, %v3575_v47  ;;  %v3176_v19 = vadd.f32 %v3160_v24, %v3042_v45  ;;  %v3545_v4 = vmul.f32 %v10384_v55, %v13617_v39  ;;  %v3427_v6 = vmul.f32 %v18004_v27, %v17993_v18 }
 0x95f   :  { %v3710_v7 = vadd.f32 %v3694_v46, %v3576_v38  ;;  %v3309_v57 = vadd.f32 %v3293_v1, %v3175_v31  ;;  %v3546_v41 = vmul.f32 %v10384_v55, %v13667_v0  ;;  %v3428_v56 = vmul.f32 %v3412_v35, %v18005_v63  ;;  %v4004_v1 = vld [vmem:[%s17179_s13 + $0x70] sm:$0xff]  ;;  %v4002_v38 = vld [vmem:[%s17179_s13 + $0x60] sm:$0xff] }
 0x960   :  { %v13687_v62 = vadd.f32 %v13306_v25, %v3709_v40  ;;  %v3310_v10 = vadd.f32 %v3294_v60, %v3176_v19  ;;  %v3679_v33 = vmul.f32 %v18006_v21, %v13645_v42  ;;  %v3561_v37 = vmul.f32 %v3545_v4, %v17979_v61  ;;  %4083 = vmatpush1.msra.mxu0 %v4004_v1  ;;  %v18009_v60 = vld [vmem:[#allocation165_spill] sm:$0xff] }
 0x961   :  { %v13693_v53 = vadd.f32 %v13306_v25, %v3710_v7  ;;  %v3443_v20 = vadd.f32 %v3427_v6, %v3309_v57  ;;  %v3680_v43 = vmul.f32 %v10385_v48, %v13681_v15  ;;  %v3562_v29 = vmul.f32 %v3546_v41, %v18007_v50 }
 0x962   :  { %v3772_v34 = vsel %vm217_vm0, %v13687_v62, 0.0  ;;  %v3444_v18 = vadd.f32 %v3428_v56, %v3310_v10  ;;  %v3695_v13 = vmul.f32 %v3679_v33, %v18001_v28 }
 0x963   :  { %3773 = vadd.xlane.f32.xlu0 %v3772_v34  ;;  %v3775_v23 = vsel %vm217_vm0, %v13693_v53, 0.0  ;;  %v3577_v5 = vadd.f32 %v3561_v37, %v3443_v20  ;;  %v3696_v30 = vmul.f32 %v3680_v43, %v18008_v32 }
 0x964   :  { %3776 = vadd.xlane.f32.xlu1 %v3775_v23  ;;  %v3578_v61 = vadd.f32 %v3562_v29, %v3444_v18 }
 0x965   :  { %v3711_v59 = vadd.f32 %v3695_v13, %v3577_v5 }
 0x966   :  { %v3712_v24 = vadd.f32 %v3696_v30, %v3578_v61 }
 0x967   :  { %v13708_v47 = vadd.f32 %v13306_v25, %v3711_v59 }
 0x968   :  { %v13711_v14 = vadd.f32 %v13306_v25, %v3712_v24  ;;  %v4003_v25 = vld [vmem:[%s17179_s13 + $0x68] sm:$0xff] }
 0x969   :  { %v3778_v52 = vsel %vm217_vm0, %v13708_v47, 0.0  ;;  %4084 = vmatprep.subr.mxu0 %v4003_v25 }
 0x96a   :  { %3779 = vadd.xlane.f32.xlu0 %v3778_v52  ;;  %v3781_v45 = vsel %vm217_vm0, %v13711_v14, 0.0  ;;  %4085 = vmatpush1.msra.mxu0 %v4002_v38 }
 0x96b   :  { %3782 = vadd.xlane.f32.xlu1 %v3781_v45 }
 0x9c0   :  { %v3741_v49 = vpop.xlane.xlu0 %3740 }
 0x9c1   :  { %v3785_v46 = vmul.f32 0.015625, %v3741_v49 }
 0x9c3   :  { %v13730_v31 = vsub.f32 %v13471_v2, %v3785_v46  ;;  %v3738_v16 = vpop.xlane.xlu1 %3737 }
 0x9c4   :  { %v3784_v35 = vmul.f32 0.015625, %v3738_v16  ;;  %v3744_v40 = vpop.xlane.xlu0 %3743 }
 0x9c5   :  { %v3786_v19 = vmul.f32 0.015625, %v3744_v40  ;;  %v3817_v28 = vmul.f32 %v13730_v31, %v13730_v31 }
 0x9c6   :  { %v13735_v3 = vsub.f32 %v13487_v51, %v3784_v35 }
 0x9c7   :  { %v13738_v55 = vsub.f32 %v18009_v60, %v3786_v19  ;;  %v3747_v4 = vpop.xlane.xlu1 %3746  ;;  %v3835_v7 = vsel %vm217_vm0, %v3817_v28, 0.0 }
 0x9c8   :  { %v3787_v57 = vmul.f32 0.015625, %v3747_v4  ;;  %3836 = vadd.xlane.f32.xlu1 %v3835_v7  ;;  %v3750_v27 = vpop.xlane.xlu0 %3749  ;;  %v3816_v6 = vmul.f32 %v13735_v3, %v13735_v3 }
 0x9c9   :  { %v3788_v41 = vmul.f32 0.015625, %v3750_v27  ;;  %v3818_v56 = vmul.f32 %v13738_v55, %v13738_v55 }
 0x9ca   :  { %v13744_v10 = vsub.f32 %v13417_v54, %v3787_v57  ;;  %v3832_v63 = vsel %vm217_vm0, %v3816_v6, 0.0 }
 0x9cb   :  { %v13750_v21 = vsub.f32 %v13491_v26, %v3788_v41  ;;  %v3753_v33 = vpop.xlane.xlu1 %3752  ;;  %3833 = vadd.xlane.f32.xlu0 %v3832_v63  ;;  %v3838_v50 = vsel %vm217_vm0, %v3818_v56, 0.0 }
 0x9cc   :  { %v3789_v20 = vmul.f32 0.015625, %v3753_v33  ;;  %v3819_v48 = vmul.f32 %v13744_v10, %v13744_v10 }
 0x9cd   :  { %v3756_v37 = vpop.xlane.xlu0 %3755  ;;  %v3820_v29 = vmul.f32 %v13750_v21, %v13750_v21 }
 0x9ce   :  { %v3790_v43 = vmul.f32 0.015625, %v3756_v37  ;;  %v13755_v34 = vsub.f32 %v13494_v11, %v3789_v20  ;;  %v3841_v18 = vsel %vm217_vm0, %v3819_v48, 0.0 }
 0x9cf   :  { %3842 = vadd.xlane.f32.xlu1 %v3841_v18  ;;  %3839 = vadd.xlane.f32.xlu0 %v3838_v50  ;;  %v3844_v59 = vsel %vm217_vm0, %v3820_v29, 0.0  ;;  %v4001_v50 = vld [vmem:[%s17179_s13 + $0x58] sm:$0xff]  ;;  %v4000_v29 = vld [vmem:[%s17179_s13 + $0x50] sm:$0xff] }
 0x9d0   :  { %v13762_v23 = vsub.f32 %v13537_v22, %v3790_v43  ;;  %v3821_v61 = vmul.f32 %v13755_v34, %v13755_v34  ;;  %4086 = vmatprep.subr.mxu0 %v4001_v50  ;;  %v4401_v50 = vld [vmem:[%s17181_s15 + $0x70] sm:$0xff] }
 0x9d1   :  { %4087 = vmatpush1.msra.mxu0 %v4000_v29  ;;  %v4416_v29 = vld [vmem:[%s17181_s15 + $0xe8] sm:$0xff] }
 0x9d2   :  { %v3759_v5 = vpop.xlane.xlu1 %3758  ;;  %v3847_v30 = vsel %vm217_vm0, %v3821_v61, 0.0  ;;  %v3822_v24 = vmul.f32 %v13762_v23, %v13762_v23  ;;  %v3998_v61 = vld [vmem:[%s17179_s13 + $0x40] sm:$0xff] }
 0x9d3   :  { %v3791_v13 = vmul.f32 0.015625, %v3759_v5  ;;  %3848 = vadd.xlane.f32.xlu1 %v3847_v30  ;;  %3845 = vadd.xlane.f32.xlu0 %v3844_v59  ;;  %v3999_v5 = vld [vmem:[%s17179_s13 + $0x48] sm:$0xff]  ;;  %v3997_v59 = vld [vmem:[%s17179_s13 + $0x38] sm:$0xff] }
 0x9d4   :  { %v3850_v25 = vsel %vm217_vm0, %v3822_v24, 0.0  ;;  %4088 = vmatprep.subr.mxu0 %v3999_v5  ;;  %v4400_v5 = vld [vmem:[%s17181_s15 + $0x68] sm:$0xff] }
 0x9d5   :  { %v13767_v32 = vsub.f32 %v13550_v17, %v3791_v13  ;;  %4089 = vmatpush1.msra.mxu0 %v3998_v61 }
 0x9d6   :  { %4090 = vmatprep.subr.mxu0 %v3997_v59 }
 0x9d7   :  { %v3823_v52 = vmul.f32 %v13767_v32, %v13767_v32  ;;  %3851 = vadd.xlane.f32.xlu0 %v3850_v25 }
 0x9d8   :  { %v3762_v45 = vpop.xlane.xlu0 %3761 }
 0x9d9   :  { %v3792_v58 = vmul.f32 0.015625, %v3762_v45  ;;  %v3853_v1 = vsel %vm217_vm0, %v3823_v52, 0.0  ;;  %v3996_v52 = vld [vmem:[%s17179_s13 + $0x30] sm:$0xff] }
 0x9da   :  { %3854 = vadd.xlane.f32.xlu1 %v3853_v1  ;;  %4091 = vmatpush1.msra.mxu0 %v3996_v52 }
 0x9db   :  { %v13778_v38 = vsub.f32 %v13587_v36, %v3792_v58  ;;  %v3995_v58 = vld [vmem:[%s17179_s13 + $0x28] sm:$0xff] }
 0x9dc   :  { %v3765_v49 = vpop.xlane.xlu1 %3764  ;;  %4092 = vmatprep.subr.mxu0 %v3995_v58 }
 0x9dd   :  { %v3793_v46 = vmul.f32 0.015625, %v3765_v49  ;;  %v3824_v16 = vmul.f32 %v13778_v38, %v13778_v38  ;;  %v3994_v49 = vld [vmem:[%s17179_s13 + $0x20] sm:$0xff] }
 0x9de   :  { %4093 = vmatpush1.msra.mxu0 %v3994_v49 }
 0x9df   :  { %v13783_v35 = vsub.f32 %v13607_v9, %v3793_v46  ;;  %v3856_v40 = vsel %vm217_vm0, %v3824_v16, 0.0 }
 0x9e0   :  { %3857 = vadd.xlane.f32.xlu0 %v3856_v40 }
 0x9e1   :  { %v3768_v19 = vpop.xlane.xlu0 %3767  ;;  %v3825_v28 = vmul.f32 %v13783_v35, %v13783_v35 }
 0x9e2   :  { %v3794_v4 = vmul.f32 0.015625, %v3768_v19  ;;  %v3993_v19 = vld [vmem:[%s17179_s13 + $0x18] sm:$0xff] }
 0x9e3   :  { %v3859_v7 = vsel %vm217_vm0, %v3825_v28, 0.0  ;;  %4094 = vmatprep.subr.mxu0 %v3993_v19 }
 0x9e4   :  { %v13790_v57 = vsub.f32 %v13633_v44, %v3794_v4  ;;  %v3771_v27 = vpop.xlane.xlu1 %3770  ;;  %3860 = vadd.xlane.f32.xlu1 %v3859_v7  ;;  %v3992_v4 = vld [vmem:[%s17179_s13 + $0x10] sm:$0xff] }
 0x9e5   :  { %v3795_v6 = vmul.f32 0.015625, %v3771_v27  ;;  %4095 = vmatpush1.msra.mxu0 %v3992_v4 }
 0x9e6   :  { %v3826_v41 = vmul.f32 %v13790_v57, %v13790_v57 }
 0x9e7   :  { %v13795_v63 = vsub.f32 %v13648_v8, %v3795_v6 }
 0x9e8   :  { %v3862_v56 = vsel %vm217_vm0, %v3826_v41, 0.0 }
 0x9e9   :  { %v3827_v33 = vmul.f32 %v13795_v63, %v13795_v63  ;;  %3863 = vadd.xlane.f32.xlu0 %v3862_v56 }
 0x9eb   :  { %v3865_v37 = vsel %vm217_vm0, %v3827_v33, 0.0 }
 0x9ec   :  { %v3774_v20 = vpop.xlane.xlu0 %3773  ;;  %3866 = vadd.xlane.f32.xlu1 %v3865_v37  ;;  %v3990_v37 = vld [vmem:[%s17179_s13] sm:$0xff] }
 0x9ed   :  { %v3796_v48 = vmul.f32 0.015625, %v3774_v20  ;;  %v3777_v43 = vpop.xlane.xlu1 %3776  ;;  %v3991_v20 = vld [vmem:[%s17179_s13 + $0x8] sm:$0xff] }
 0x9ee   :  { %v3797_v18 = vmul.f32 0.015625, %v3777_v43  ;;  %4096 = vmatprep.subr.mxu0 %v3991_v20  ;;  %v4402_v43 = vld [vmem:[%s17181_s15 + $0x78] sm:$0xff] }
 0x9ef   :  { %v13811_v13 = vsub.f32 %v13687_v62, %v3796_v48  ;;  %4097 = vmatpush1.msra.mxu0 %v3990_v37  ;;  %v4418_v48 = vld [vmem:[%s17181_s15 + $0xf8] sm:$0xff] }
 0x9f0   :  { %v13817_v30 = vsub.f32 %v13693_v53, %v3797_v18  ;;  %v4417_v18 = vld [vmem:[%s17181_s15 + $0xf0] sm:$0xff]  ;;  %8909 = vmatprep.subr.mxu1 %v4418_v48 }
 0x9f1   :  { %v3828_v24 = vmul.f32 %v13811_v13, %v13811_v13  ;;  %8910 = vmatpush3.msra.mxu1 %v4402_v43 }
 0x9f2   :  { %v3829_v45 = vmul.f32 %v13817_v30, %v13817_v30  ;;  %8911 = vmatprep.subr.mxu1 %v4417_v18 }
 0x9f3   :  { %v3780_v1 = vpop.xlane.xlu0 %3779  ;;  %v3868_v25 = vsel %vm217_vm0, %v3828_v24, 0.0  ;;  %8912 = vmatpush3.msra.mxu1 %v4401_v50 }
 0x9f4   :  { %v3798_v46 = vmul.f32 0.015625, %v3780_v1  ;;  %v3783_v16 = vpop.xlane.xlu1 %3782  ;;  %v3871_v40 = vsel %vm217_vm0, %v3829_v45, 0.0  ;;  %3869 = vadd.xlane.f32.xlu0 %v3868_v25  ;;  %8913 = vmatprep.subr.mxu1 %v4416_v29 }
 0x9f5   :  { %v3799_v28 = vmul.f32 0.015625, %v3783_v16  ;;  %3872 = vadd.xlane.f32.xlu1 %v3871_v40  ;;  %8914 = vmatpush3.msra.mxu1 %v4400_v5 }
 0x9f6   :  { %v13844_v7 = vsub.f32 %v13708_v47, %v3798_v46 }
 0x9f7   :  { %v13847_v27 = vsub.f32 %v13711_v14, %v3799_v28 }
 0x9f8   :  { %v3830_v6 = vmul.f32 %v13844_v7, %v13844_v7 }
 0x9f9   :  { %v3831_v41 = vmul.f32 %v13847_v27, %v13847_v27 }
 0x9fa   :  { %v3874_v56 = vsel %vm217_vm0, %v3830_v6, 0.0 }
 0x9fb   :  { %v3877_v33 = vsel %vm217_vm0, %v3831_v41, 0.0  ;;  %3875 = vadd.xlane.f32.xlu0 %v3874_v56 }
 0x9fc   :  { %3878 = vadd.xlane.f32.xlu1 %v3877_v33 }
 0xa51   :  { %v3837_v61 = vpop.xlane.xlu1 %3836 }
 0xa52   :  { %v3881_v59 = vmul.f32 0.015625, %v3837_v61 }
 0xa54   :  { %v3897_v24 = vadd.f32 1e-05, %v3881_v59  ;;  %v3834_v52 = vpop.xlane.xlu0 %3833  ;;  %v13884_v59 = vld [vmem:[%s17177_s11] ss:$0 sm:$0xff] }
 0xa55   :  { %v3880_v45 = vmul.f32 0.015625, %v3834_v52 }
 0xa56   :  { %10015 = vrsqrt.f32 %v3897_v24 }
 0xa57   :  { %v3896_v58 = vadd.f32 1e-05, %v3880_v45 }
 0xa58   :  { %v3843_v1 = vpop.xlane.xlu1 %3842  ;;  %v3840_v25 = vpop.xlane.xlu0 %3839 }
 0xa59   :  { %10017 = vrsqrt.f32 %v3896_v58  ;;  %v3883_v49 = vmul.f32 0.015625, %v3843_v1  ;;  %v3882_v46 = vmul.f32 0.015625, %v3840_v25  ;;  %v13890_v58 = vld [vmem:[%s17178_s12] ss:$0 sm:$0xff] }
 0xa5b   :  { %v3899_v16 = vadd.f32 1e-05, %v3883_v49  ;;  %v3898_v40 = vadd.f32 1e-05, %v3882_v46 }
 0xa5c   :  { %v3849_v19 = vpop.xlane.xlu1 %3848  ;;  %v3846_v28 = vpop.xlane.xlu0 %3845 }
 0xa5d   :  { %v3884_v4 = vmul.f32 0.015625, %v3846_v28  ;;  %10019 = vrsqrt.f32 %v3898_v40  ;;  %v3885_v6 = vmul.f32 0.015625, %v3849_v19  ;;  %v18010_v40 = vmov 0.0  }
 0xa5e   :  { %10021 = vrsqrt.f32 %v3899_v16 }
 0xa5f   :  { %v3900_v41 = vadd.f32 1e-05, %v3884_v4  ;;  %v3901_v33 = vadd.f32 1e-05, %v3885_v6 }
 0xa60   :  { %v3852_v56 = vpop.xlane.xlu0 %3851 }
 0xa61   :  { %10023 = vrsqrt.f32 %v3900_v41  ;;  %v3886_v37 = vmul.f32 0.015625, %v3852_v56 }
 0xa62   :  { %10025 = vrsqrt.f32 %v3901_v33 }
 0xa63   :  { %v3855_v20 = vpop.xlane.xlu1 %3854  ;;  %v10016_v48 = vpop.eup %10015  ;;  %v3902_v29 = vadd.f32 1e-05, %v3886_v37 }
 0xa64   :  { %v3887_v18 = vmul.f32 0.015625, %v3855_v20  ;;  %v3929_v61 = vmul.f32 %v10016_v48, %v13730_v31 }
 0xa65   :  { %10027 = vrsqrt.f32 %v3902_v29 }
 0xa66   :  { %v10018_v43 = vpop.eup %10017  ;;  %v3903_v52 = vadd.f32 1e-05, %v3887_v18  ;;  %v3952_v31 = vmul.f32 %v13884_v59, %v3929_v61 }
 0xa67   :  { %v3928_v50 = vmul.f32 %v10018_v43, %v13735_v3 }
 0xa68   :  { %10029 = vrsqrt.f32 %v3903_v52  ;;  %v3975_v4 = vadd.f32 %v13890_v58, %v3952_v31 }
 0xa69   :  { %v3858_v5 = vpop.xlane.xlu0 %3857  ;;  %v3951_v24 = vmul.f32 %v13884_v59, %v3928_v50 }
 0xa6a   :  { %v3888_v45 = vmul.f32 0.015625, %v3858_v5  ;;  %v10020_v1 = vpop.eup %10019 }
 0xa6b   :  { %v3974_v3 = vadd.f32 %v13890_v58, %v3951_v24  ;;  %v10022_v25 = vpop.eup %10021  ;;  %v3930_v46 = vmul.f32 %v10020_v1, %v13738_v55 }
 0xa6c   :  { %v3904_v16 = vadd.f32 1e-05, %v3888_v45  ;;  %v3931_v41 = vmul.f32 %v10022_v25, %v13744_v10 }
 0xa6d   :  { %v3861_v49 = vpop.xlane.xlu1 %3860  ;;  %8458 = vmatmul.mubr.msk.f32.vlgmr.msra.gmra.mxu0 %vm217_vm0, %v3974_v3  ;;  %v3953_v6 = vmul.f32 %v13884_v59, %v3930_v46 }
 0xa6e   :  { %4136 = vmatprep.mubr.f32.mxu0 %v18010_v40  ;;  %v3889_v19 = vmul.f32 0.015625, %v3861_v49  ;;  %v10024_v56 = vpop.eup %10023  ;;  %10031 = vrsqrt.f32 %v3904_v16  ;;  %v3954_v48 = vmul.f32 %v13884_v59, %v3931_v41 }
 0xa6f   :  { %v10026_v55 = vpop.eup %10025  ;;  %v3976_v37 = vadd.f32 %v13890_v58, %v3953_v6  ;;  %v3932_v43 = vmul.f32 %v10024_v56, %v13750_v21 }
 0xa70   :  { %v3905_v20 = vadd.f32 1e-05, %v3889_v19  ;;  %v3933_v10 = vmul.f32 %v10026_v55, %v13755_v34  ;;  %v3977_v5 = vadd.f32 %v13890_v58, %v3954_v48 }
 0xa71   :  { %8459 = vmatmul.mubr.msk.f32.gmra.mxu0 %vm217_vm0, %v3975_v4  ;;  %v3955_v61 = vmul.f32 %v13884_v59, %v3932_v43 }
 0xa72   :  { %v3864_v28 = vpop.xlane.xlu0 %3863  ;;  %4142 = vmatprep.mubr.f32.mxu0 %v18010_v40  ;;  %10033 = vrsqrt.f32 %v3905_v20  ;;  %v10028_v24 = vpop.eup %10027  ;;  %v3956_v21 = vmul.f32 %v13884_v59, %v3933_v10 }
 0xa73   :  { %v3890_v33 = vmul.f32 0.015625, %v3864_v28  ;;  %v3978_v34 = vadd.f32 %v13890_v58, %v3955_v61  ;;  %v3934_v31 = vmul.f32 %v10028_v24, %v13762_v23 }
 0xa74   :  { %v3979_v49 = vadd.f32 %v13890_v58, %v3956_v21 }
 0xa75   :  { %v3867_v18 = vpop.xlane.xlu1 %3866  ;;  %8460 = vmatmul.mubr.msk.f32.gmra.mxu0 %vm217_vm0, %v3976_v37  ;;  %v3906_v50 = vadd.f32 1e-05, %v3890_v33  ;;  %v10030_v45 = vpop.eup %10029  ;;  %v3957_v4 = vmul.f32 %v13884_v59, %v3934_v31 }
 0xa76   :  { %4148 = vmatprep.mubr.f32.mxu0 %v18010_v40  ;;  %v3891_v29 = vmul.f32 0.015625, %v3867_v18  ;;  %v3935_v46 = vmul.f32 %v10030_v45, %v13767_v32 }
 0xa77   :  { %10035 = vrsqrt.f32 %v3906_v50  ;;  %v3980_v32 = vadd.f32 %v13890_v58, %v3957_v4 }
 0xa78   :  { %v3907_v1 = vadd.f32 1e-05, %v3891_v29  ;;  %v3958_v23 = vmul.f32 %v13884_v59, %v3935_v46 }
 0xa79   :  { %8461 = vmatmul.mubr.msk.f32.gmra.mxu0 %vm217_vm0, %v3977_v5 }
 0xa7a   :  { %4154 = vmatprep.mubr.f32.mxu0 %v18010_v40  ;;  %10037 = vrsqrt.f32 %v3907_v1  ;;  %v3981_v37 = vadd.f32 %v13890_v58, %v3958_v23 }
 0xa7b   :  { %v10032_v16 = vpop.eup %10031 }
 0xa7c   :  { %v3936_v41 = vmul.f32 %v10032_v16, %v13778_v38 }
 0xa7d   :  { %v3870_v52 = vpop.xlane.xlu0 %3869  ;;  %8462 = vmatmul.mubr.msk.f32.gmra.mxu0 %vm217_vm0, %v3978_v34 }
 0xa7e   :  { %v3892_v3 = vmul.f32 0.015625, %v3870_v52  ;;  %v3873_v25 = vpop.xlane.xlu1 %3872  ;;  %4160 = vmatprep.mubr.f32.mxu0 %v18010_v40  ;;  %v3959_v48 = vmul.f32 %v13884_v59, %v3936_v41  ;;  %v4399_v41 = vld [vmem:[%s17181_s15 + $0x60] sm:$0xff] }
 0xa7f   :  { %v3893_v19 = vmul.f32 0.015625, %v3873_v25  ;;  %v10034_v55 = vpop.eup %10033 }
 0xa80   :  { %v3908_v28 = vadd.f32 1e-05, %v3892_v3  ;;  %v3937_v38 = vmul.f32 %v10034_v55, %v13783_v35  ;;  %v3982_v10 = vadd.f32 %v13890_v58, %v3959_v48  ;;  %v4396_v55 = vld [vmem:[%s17181_s15 + $0x48] sm:$0xff]  ;;  %v4410_v48 = vld [vmem:[%s17181_s15 + $0xb8] sm:$0xff] }
 0xa81   :  { %8463 = vmatmul.mubr.msk.f32.gmra.mxu0 %vm217_vm0, %v3979_v49  ;;  %v3909_v56 = vadd.f32 1e-05, %v3893_v19 }
 0xa82   :  { %4166 = vmatprep.mubr.f32.mxu0 %v18010_v40  ;;  %10039 = vrsqrt.f32 %v3908_v28  ;;  %v3960_v5 = vmul.f32 %v13884_v59, %v3937_v38  ;;  %v4408_v38 = vld [vmem:[%s17181_s15 + $0xa8] sm:$0xff] }
 0xa83   :  { %10041 = vrsqrt.f32 %v3909_v56  ;;  %v4413_v56 = vld [vmem:[%s17181_s15 + $0xd0] sm:$0xff] }
 0xa84   :  { %v3876_v6 = vpop.xlane.xlu0 %3875  ;;  %v10036_v43 = vpop.eup %10035  ;;  %v3983_v35 = vadd.f32 %v13890_v58, %v3960_v5  ;;  %v4391_v5 = vld [vmem:[%s17181_s15 + $0x20] sm:$0xff] }
 0xa85   :  { %v3894_v33 = vmul.f32 0.015625, %v3876_v6  ;;  %v3879_v20 = vpop.xlane.xlu1 %3878  ;;  %8464 = vmatmul.mubr.msk.f32.gmra.mxu0 %vm217_vm0, %v3980_v32  ;;  %v3938_v61 = vmul.f32 %v10036_v43, %v13790_v57  ;;  %v4412_v32 = vld [vmem:[%s17181_s15 + $0xc8] sm:$0xff]  ;;  %v4394_v43 = vld [vmem:[%s17181_s15 + $0x38] sm:$0xff] }
 0xa86   :  { %4172 = vmatprep.mubr.f32.mxu0 %v18010_v40  ;;  %v3895_v18 = vmul.f32 0.015625, %v3879_v20  ;;  %v4411_v20 = vld [vmem:[%s17181_s15 + $0xc0] sm:$0xff] }
 0xa87   :  { %v3910_v50 = vadd.f32 1e-05, %v3894_v33  ;;  %v10038_v24 = vpop.eup %10037  ;;  %v3961_v52 = vmul.f32 %v13884_v59, %v3938_v61  ;;  %v4397_v33 = vld [vmem:[%s17181_s15 + $0x50] sm:$0xff]  ;;  %v4406_v61 = vld [vmem:[%s17181_s15 + $0x98] sm:$0xff] }
 0xa88   :  { %v3911_v29 = vadd.f32 1e-05, %v3895_v18  ;;  %v3939_v21 = vmul.f32 %v10038_v24, %v13795_v63  ;;  %v4409_v18 = vld [vmem:[%s17181_s15 + $0xb0] sm:$0xff]  ;;  %v4390_v24 = vld [vmem:[%s17181_s15 + $0x18] sm:$0xff] }
 0xa89   :  { %8465 = vmatmul.mubr.msk.f32.gmra.mxu0 %vm217_vm0, %v3981_v37  ;;  %10043 = vrsqrt.f32 %v3910_v50  ;;  %v3984_v1 = vadd.f32 %v13890_v58, %v3961_v52  ;;  %v4395_v37 = vld [vmem:[%s17181_s15 + $0x40] sm:$0xff]  ;;  %v4393_v50 = vld [vmem:[%s17181_s15 + $0x30] sm:$0xff] }
 0xa8a   :  { %4178 = vmatprep.mubr.f32.mxu0 %v18010_v40  ;;  %10045 = vrsqrt.f32 %v3911_v29  ;;  %v3962_v57 = vmul.f32 %v13884_v59, %v3939_v21  ;;  %v4407_v29 = vld [vmem:[%s17181_s15 + $0xa0] sm:$0xff]  ;;  %v4389_v52 = vld [vmem:[%s17181_s15 + $0x10] sm:$0xff]  ;;  %v4404_v21 = vld [vmem:[%s17181_s15 + $0x88] sm:$0xff] }
 0xa8c   :  { %v3985_v31 = vadd.f32 %v13890_v58, %v3962_v57  ;;  %v4387_v57 = vld [vmem:[%s17181_s15] sm:$0xff] }
 0xa8d   :  { %8466 = vmatmul.mubr.msk.f32.gmra.mxu0 %vm217_vm0, %v3982_v10  ;;  %v4392_v10 = vld [vmem:[%s17181_s15 + $0x28] sm:$0xff] }
 0xa8e   :  { %4184 = vmatprep.mubr.f32.mxu0 %v18010_v40 }
 0xa8f   :  { %v10040_v45 = vpop.eup %10039 }
 0xa90   :  { %v3940_v3 = vmul.f32 %v10040_v45, %v13811_v13  ;;  %v10042_v34 = vpop.eup %10041  ;;  %v4388_v45 = vld [vmem:[%s17181_s15 + $0x8] sm:$0xff] }
 0xa91   :  { %8467 = vmatmul.mubr.msk.f32.gmra.mxu0 %vm217_vm0, %v3983_v35  ;;  %v3941_v25 = vmul.f32 %v10042_v34, %v13817_v30  ;;  %v4405_v35 = vld [vmem:[%s17181_s15 + $0x90] sm:$0xff]  ;;  %v18011_v34 = vld [vmem:[#allocation5_spill] sm:$0xff] }
 0xa92   :  { %4190 = vmatprep.mubr.f32.mxu0 %v18010_v40  ;;  %v3963_v63 = vmul.f32 %v13884_v59, %v3940_v3  ;;  %v4006_v3 = vld [vmem:[%s17180_s14] sm:$0x3] }
 0xa93   :  { %v3964_v13 = vmul.f32 %v13884_v59, %v3941_v25 }
 0xa94   :  { %v3986_v46 = vadd.f32 %v13890_v58, %v3963_v63  ;;  %v18012_v63 = vld [vmem:[#allocation16_spill] sm:$0xff] }
 0xa95   :  { %8468 = vmatmul.mubr.msk.f32.gmra.mxu0 %vm217_vm0, %v3984_v1  ;;  %v3987_v28 = vadd.f32 %v13890_v58, %v3964_v13  ;;  %v4403_v1 = vld [vmem:[%s17181_s15 + $0x80] sm:$0xff]  ;;  %v14054_v25 = vrot.slane %v4006_v3, %v18012_v63 }
 0xa96   :  { %4196 = vmatprep.mubr.f32.mxu0 %v18010_v40  ;;  %v10044_v49 = vpop.eup %10043 }
 0xa97   :  { %v3942_v16 = vmul.f32 %v10044_v49, %v13844_v7  ;;  %v10046_v19 = vpop.eup %10045 }
 0xa98   :  { %v3943_v4 = vmul.f32 %v10046_v19, %v13847_v27  ;;  %v4415_v27 = vld [vmem:[%s17181_s15 + $0xe0] sm:$0xff] }
 0xa99   :  { %8469 = vmatmul.mubr.msk.f32.gmra.mxu0 %vm217_vm0, %v3985_v31  ;;  %v3965_v30 = vmul.f32 %v13884_v59, %v3942_v16  ;;  %8915 = vmatprep.subr.mxu1 %v4415_v27  ;;  %v14051_v31 = vrot.slane %v4006_v3, %v18011_v34 }
 0xa9a   :  { %4202 = vmatprep.mubr.f32.mxu0 %v18010_v40  ;;  %v3966_v23 = vmul.f32 %v13884_v59, %v3943_v4  ;;  %v4414_v59 = vld [vmem:[%s17181_s15 + $0xd8] sm:$0xff]  ;;  %8916 = vmatpush3.msra.mxu1 %v4399_v41 }
 0xa9b   :  { %v3988_v6 = vadd.f32 %v13890_v58, %v3965_v30  ;;  %8917 = vmatprep.subr.mxu1 %v4414_v59 }
 0xa9c   :  { %v3989_v7 = vadd.f32 %v13890_v58, %v3966_v23  ;;  %v4398_v58 = vld [vmem:[%s17181_s15 + $0x58] sm:$0xff] }
 0xa9d   :  { %8470 = vmatmul.mubr.msk.f32.gmra.mxu0 %vm217_vm0, %v3986_v46  ;;  %8918 = vmatpush3.msra.mxu1 %v4398_v58 }
 0xa9e   :  { %4208 = vmatprep.mubr.f32.mxu0 %v18010_v40  ;;  %8919 = vmatprep.subr.mxu1 %v4413_v56 }
 0xa9f   :  { %8920 = vmatpush3.msra.mxu1 %v4397_v33 }
 0xaa0   :  { %8921 = vmatprep.subr.mxu1 %v4412_v32 }
 0xaa1   :  { %8471 = vmatmul.mubr.msk.f32.gmra.mxu0 %vm217_vm0, %v3987_v28  ;;  %8922 = vmatpush3.msra.mxu1 %v4396_v55 }
 0xaa2   :  { %4214 = vmatprep.mubr.f32.mxu0 %v18010_v40  ;;  %8923 = vmatprep.subr.mxu1 %v4411_v20 }
 0xaa3   :  { %8924 = vmatpush3.msra.mxu1 %v4395_v37 }
 0xaa4   :  { %8925 = vmatprep.subr.mxu1 %v4410_v48 }
 0xaa5   :  { %8472 = vmatmul.mubr.msk.f32.gmra.mxu0 %vm217_vm0, %v3988_v6  ;;  %8926 = vmatpush3.msra.mxu1 %v4394_v43 }
 0xaa6   :  { %4220 = vmatprep.mubr.f32.mxu0 %v18010_v40  ;;  %8927 = vmatprep.subr.mxu1 %v4409_v18 }
 0xaa7   :  { %8928 = vmatpush3.msra.mxu1 %v4393_v50 }
 0xaa8   :  { %8929 = vmatprep.subr.mxu1 %v4408_v38 }
 0xaa9   :  { %8473 = vmatmul.mubr.msk.f32.gmra.mxu0 %vm217_vm0, %v3989_v7  ;;  %8930 = vmatpush3.msra.mxu1 %v4392_v10 }
 0xaaa   :  { %5001 = vmatprep.mubr.f32.mxu0 %v18010_v40  ;;  %8931 = vmatprep.subr.mxu1 %v4407_v29 }
 0xaab   :  { %8932 = vmatpush3.msra.mxu1 %v4391_v5 }
 0xaac   :  { %8933 = vmatprep.subr.mxu1 %v4406_v61 }
 0xaad   :  { %8934 = vmatpush3.msra.mxu1 %v4390_v24 }
 0xaae   :  { %8935 = vmatprep.subr.mxu1 %v4405_v35 }
 0xaaf   :  { %8936 = vmatpush3.msra.mxu1 %v4389_v52 }
 0xab0   :  { %8937 = vmatprep.subr.mxu1 %v4404_v21 }
 0xab1   :  { %8938 = vmatpush3.msra.mxu1 %v4388_v45 }
 0xab2   :  { %8939 = vmatprep.subr.mxu1 %v4403_v1 }
 0xab3   :  { %8940 = vmatpush3.msra.mxu1 %v4387_v57 }
 0xb2d   :  { %v4132_v49 = vpop.f32.mrf.mxu0 }
 0xb2e   :  { %v4133_v46 = vadd.f32 %v4132_v49, %v14051_v31 }
 0xb2f   :  { %v4134_v13 = vpop.f32.mrf.mxu0 }
 0xb30   :  { %v4259_v16 = vmul.f32 0.70710677, %v4133_v46  ;;  %v4135_v19 = vadd.f32 %v4134_v13, %v14054_v25  ;;  %v4227_v3 = vmul.f32 0.5, %v4133_v46 }
 0xb31   :  { %v4138_v28 = vpop.f32.mrf.mxu0 }
 0xb32   :  { %10047 = verf.f32 %v4259_v16  ;;  %v4260_v30 = vmul.f32 0.70710677, %v4135_v19  ;;  %v4139_v4 = vadd.f32 %v4138_v28, %v14051_v31  ;;  %v4228_v21 = vmul.f32 0.5, %v4135_v19 }
 0xb33   :  { %v4140_v6 = vpop.f32.mrf.mxu0 }
 0xb34   :  { %10049 = verf.f32 %v4260_v30  ;;  %v4261_v23 = vmul.f32 0.70710677, %v4139_v4  ;;  %v4141_v7 = vadd.f32 %v4140_v6, %v14054_v25 }
 0xb35   :  { %v4144_v27 = vpop.f32.mrf.mxu0 }
 0xb36   :  { %10051 = verf.f32 %v4261_v23  ;;  %v4262_v41 = vmul.f32 0.70710677, %v4141_v7  ;;  %v4145_v59 = vadd.f32 %v4144_v27, %v14051_v31 }
 0xb37   :  { %v4146_v58 = vpop.f32.mrf.mxu0 }
 0xb38   :  { %10053 = verf.f32 %v4262_v41  ;;  %v4263_v56 = vmul.f32 0.70710677, %v4145_v59  ;;  %v4147_v33 = vadd.f32 %v4146_v58, %v14054_v25 }
 0xb39   :  { %v4150_v32 = vpop.f32.mrf.mxu0 }
 0xb3a   :  { %10055 = verf.f32 %v4263_v56  ;;  %v4264_v55 = vmul.f32 0.70710677, %v4147_v33  ;;  %v14063_v20 = vadd.f32 %v4150_v32, %v14051_v31  ;;  %v4230_v56 = vmul.f32 0.5, %v4141_v7 }
 0xb3b   :  { %v4152_v37 = vpop.f32.mrf.mxu0 }
 0xb3c   :  { %10057 = verf.f32 %v4264_v55  ;;  %v4265_v48 = vmul.f32 0.70710677, %v14063_v20  ;;  %v14067_v43 = vadd.f32 %v4152_v37, %v14054_v25  ;;  %v4229_v37 = vmul.f32 0.5, %v4139_v4 }
 0xb3d   :  { %v4156_v18 = vpop.f32.mrf.mxu0  ;;  %v4232_v4 = vmul.f32 0.5, %v4147_v33 }
 0xb3e   :  { %10059 = verf.f32 %v4265_v48  ;;  %v4266_v50 = vmul.f32 0.70710677, %v14067_v43  ;;  %v14071_v38 = vadd.f32 %v4156_v18, %v14051_v31 }
 0xb3f   :  { %v10048_v10 = vpop.eup %10047  ;;  %v4158_v29 = vpop.f32.mrf.mxu0 }
 0xb40   :  { %10061 = verf.f32 %v4266_v50  ;;  %v4267_v5 = vmul.f32 0.70710677, %v14071_v38  ;;  %v4323_v24 = vadd.f32 1.0, %v10048_v10  ;;  %v14075_v35 = vadd.f32 %v4158_v29, %v14054_v25 }
 0xb41   :  { %v10050_v61 = vpop.eup %10049  ;;  %v4162_v52 = vpop.f32.mrf.mxu0 }
 0xb42   :  { %10063 = verf.f32 %v4267_v5  ;;  %v14078_v45 = vadd.f32 %v4162_v52, %v14051_v31  ;;  %v4324_v1 = vadd.f32 1.0, %v10050_v61  ;;  %v4268_v49 = vmul.f32 0.70710677, %v14075_v35 }
 0xb43   :  { %v10052_v57 = vpop.eup %10051  ;;  %v4164_v13 = vpop.f32.mrf.mxu0  ;;  %v4355_v23 = vmul.f32 %v4323_v24, %v4227_v3 }
 0xb44   :  { %v4269_v16 = vmul.f32 0.70710677, %v14078_v45  ;;  %v14083_v28 = vadd.f32 %v4164_v13, %v14054_v25  ;;  %v4356_v30 = vmul.f32 %v4324_v1, %v4228_v21  ;;  %10065 = verf.f32 %v4268_v49 }
 0xb45   :  { %v10054_v6 = vpop.eup %10053  ;;  %v4168_v19 = vpop.f32.mrf.mxu0  ;;  %v4325_v46 = vadd.f32 1.0, %v10052_v57  ;;  %v4231_v21 = vmul.f32 0.5, %v4145_v59 }
 0xb46   :  { %10067 = verf.f32 %v4269_v16  ;;  %v4270_v27 = vmul.f32 0.70710677, %v14083_v28  ;;  %v14087_v41 = vadd.f32 %v4168_v19, %v14051_v31  ;;  %4483 = vmatprep.mubr.f32.mxu1 %v4356_v30  ;;  %v4326_v55 = vadd.f32 1.0, %v10054_v6 }
 0xb47   :  { %v10056_v58 = vpop.eup %10055  ;;  %v4170_v32 = vpop.f32.mrf.mxu0  ;;  %4484 = vmatmul.mubr.f32.vlgmr.msra.gmra.mxu1 %v4355_v23  ;;  %v4357_v7 = vmul.f32 %v4325_v46, %v4229_v37 }
 0xb48   :  { %10069 = verf.f32 %v4270_v27  ;;  %v4271_v48 = vmul.f32 0.70710677, %v14087_v41  ;;  %v14091_v18 = vadd.f32 %v4170_v32, %v14054_v25  ;;  %v4358_v29 = vmul.f32 %v4326_v55, %v4230_v56 }
 0xb49   :  { %v10058_v50 = vpop.eup %10057  ;;  %v4174_v10 = vpop.f32.mrf.mxu0  ;;  %v4327_v5 = vadd.f32 1.0, %v10056_v58  ;;  %v4234_v27 = vmul.f32 0.5, %v14067_v43  ;;  %v4233_v56 = vmul.f32 0.5, %v14063_v20  ;;  %v4235_v20 = vmul.f32 0.5, %v14071_v38 }
 0xb4a   :  { %10071 = verf.f32 %v4271_v48  ;;  %v4272_v61 = vmul.f32 0.70710677, %v14091_v18  ;;  %v14095_v24 = vadd.f32 %v4174_v10, %v14051_v31  ;;  %4488 = vmatprep.mubr.f32.mxu1 %v4358_v29  ;;  %v4328_v57 = vadd.f32 1.0, %v10058_v50 }
 0xb4b   :  { %v10060_v52 = vpop.eup %10059  ;;  %v4176_v1 = vpop.f32.mrf.mxu0  ;;  %4489 = vmatmul.mubr.f32.gmra.mxu1 %v4357_v7  ;;  %v4359_v6 = vmul.f32 %v4327_v5, %v4231_v21  ;;  %v4236_v7 = vmul.f32 0.5, %v14075_v35 }
 0xb4c   :  { %10073 = verf.f32 %v4272_v61  ;;  %v4273_v3 = vmul.f32 0.70710677, %v14095_v24  ;;  %v14099_v49 = vadd.f32 %v4176_v1, %v14054_v25  ;;  %v4360_v30 = vmul.f32 %v4328_v57, %v4232_v4 }
 0xb4d   :  { %v10062_v13 = vpop.eup %10061  ;;  %v4180_v16 = vpop.f32.mrf.mxu0  ;;  %v4329_v33 = vadd.f32 1.0, %v10060_v52 }
 0xb4e   :  { %10075 = verf.f32 %v4273_v3  ;;  %v4274_v23 = vmul.f32 0.70710677, %v14099_v49  ;;  %v14103_v59 = vadd.f32 %v4180_v16, %v14051_v31  ;;  %4493 = vmatprep.mubr.f32.mxu1 %v4360_v30  ;;  %v4330_v58 = vadd.f32 1.0, %v10062_v13 }
 0xb4f   :  { %v10064_v19 = vpop.eup %10063  ;;  %v4182_v46 = vpop.f32.mrf.mxu0  ;;  %4494 = vmatmul.mubr.f32.gmra.mxu1 %v4359_v6  ;;  %v4361_v5 = vmul.f32 %v4329_v33, %v4233_v56 }
 0xb50   :  { %10077 = verf.f32 %v4274_v23  ;;  %v4275_v32 = vmul.f32 0.70710677, %v14103_v59  ;;  %v14109_v55 = vadd.f32 %v4182_v46, %v14054_v25  ;;  %v4362_v48 = vmul.f32 %v4330_v58, %v4234_v27 }
 0xb51   :  { %v4186_v37 = vpop.f32.mrf.mxu0  ;;  %v4331_v50 = vadd.f32 1.0, %v10064_v19  ;;  %v10066_v10 = vpop.eup %10065  ;;  %v4238_v23 = vmul.f32 0.5, %v14083_v28  ;;  %v4237_v27 = vmul.f32 0.5, %v14078_v45  ;;  %v4239_v45 = vmul.f32 0.5, %v14087_v41 }
 0xb52   :  { %10079 = verf.f32 %v4275_v32  ;;  %v4276_v29 = vmul.f32 0.70710677, %v14109_v55  ;;  %v14113_v43 = vadd.f32 %v4186_v37, %v14051_v31  ;;  %4498 = vmatprep.mubr.f32.mxu1 %v4362_v48  ;;  %v4332_v21 = vadd.f32 1.0, %v10066_v10 }
 0xb53   :  { %v10068_v61 = vpop.eup %10067  ;;  %v4188_v52 = vpop.f32.mrf.mxu0  ;;  %4499 = vmatmul.mubr.f32.gmra.mxu1 %v4361_v5  ;;  %v4363_v16 = vmul.f32 %v4331_v50, %v4235_v20  ;;  %v4240_v5 = vmul.f32 0.5, %v14091_v18 }
 0xb54   :  { %10081 = verf.f32 %v4276_v29  ;;  %v4277_v4 = vmul.f32 0.70710677, %v14113_v43  ;;  %v14119_v1 = vadd.f32 %v4188_v52, %v14054_v25  ;;  %v4364_v13 = vmul.f32 %v4332_v21, %v4236_v7 }
 0xb55   :  { %v10070_v57 = vpop.eup %10069  ;;  %v4192_v3 = vpop.f32.mrf.mxu0  ;;  %v4333_v35 = vadd.f32 1.0, %v10068_v61 }
 0xb56   :  { %10083 = verf.f32 %v4277_v4  ;;  %v4278_v30 = vmul.f32 0.70710677, %v14119_v1  ;;  %v14123_v38 = vadd.f32 %v4192_v3, %v14051_v31  ;;  %4503 = vmatprep.mubr.f32.mxu1 %v4364_v13  ;;  %v4334_v19 = vadd.f32 1.0, %v10070_v57 }
 0xb57   :  { %v10072_v6 = vpop.eup %10071  ;;  %v4194_v33 = vpop.f32.mrf.mxu0  ;;  %4504 = vmatmul.mubr.f32.gmra.mxu1 %v4363_v16  ;;  %v4365_v10 = vmul.f32 %v4333_v35, %v4237_v27 }
 0xb58   :  { %10085 = verf.f32 %v4278_v30  ;;  %v4279_v46 = vmul.f32 0.70710677, %v14123_v38  ;;  %v14129_v58 = vadd.f32 %v4194_v33, %v14054_v25  ;;  %v4366_v37 = vmul.f32 %v4334_v19, %v4238_v23 }
 0xb59   :  { %v10074_v56 = vpop.eup %10073  ;;  %v4198_v32 = vpop.f32.mrf.mxu0  ;;  %v4335_v48 = vadd.f32 1.0, %v10072_v6  ;;  %v4242_v30 = vmul.f32 0.5, %v14099_v49  ;;  %v4241_v23 = vmul.f32 0.5, %v14095_v24  ;;  %v4243_v24 = vmul.f32 0.5, %v14103_v59 }
 0xb5a   :  { %10087 = verf.f32 %v4279_v46  ;;  %v4280_v50 = vmul.f32 0.70710677, %v14129_v58  ;;  %v14133_v28 = vadd.f32 %v4198_v32, %v14051_v31  ;;  %4508 = vmatprep.mubr.f32.mxu1 %v4366_v37  ;;  %v4336_v20 = vadd.f32 1.0, %v10074_v56 }
 0xb5b   :  { %v10076_v29 = vpop.eup %10075  ;;  %v4200_v61 = vpop.f32.mrf.mxu0  ;;  %4509 = vmatmul.mubr.f32.gmra.mxu1 %v4365_v10  ;;  %v4367_v3 = vmul.f32 %v4335_v48, %v4239_v45  ;;  %v4244_v10 = vmul.f32 0.5, %v14109_v55 }
 0xb5c   :  { %10089 = verf.f32 %v4280_v50  ;;  %v4281_v7 = vmul.f32 0.70710677, %v14133_v28  ;;  %v14139_v52 = vadd.f32 %v4200_v61, %v14054_v25  ;;  %v4368_v57 = vmul.f32 %v4336_v20, %v4240_v5 }
 0xb5d   :  { %v10078_v21 = vpop.eup %10077  ;;  %v4204_v4 = vpop.f32.mrf.mxu0  ;;  %v4337_v18 = vadd.f32 1.0, %v10076_v29 }
 0xb5e   :  { %10091 = verf.f32 %v4281_v7  ;;  %v4282_v13 = vmul.f32 0.70710677, %v14139_v52  ;;  %v14143_v41 = vadd.f32 %v4204_v4, %v14051_v31  ;;  %4513 = vmatprep.mubr.f32.mxu1 %v4368_v57  ;;  %v4338_v6 = vadd.f32 1.0, %v10078_v21 }
 0xb5f   :  { %v10080_v16 = vpop.eup %10079  ;;  %v4206_v35 = vpop.f32.mrf.mxu0  ;;  %4514 = vmatmul.mubr.f32.gmra.mxu1 %v4367_v3  ;;  %v4369_v48 = vmul.f32 %v4337_v18, %v4241_v23 }
 0xb60   :  { %10093 = verf.f32 %v4282_v13  ;;  %v4283_v33 = vmul.f32 0.70710677, %v14143_v41  ;;  %v14149_v19 = vadd.f32 %v4206_v35, %v14054_v25  ;;  %v4370_v56 = vmul.f32 %v4338_v6, %v4242_v30 }
 0xb61   :  { %v10082_v27 = vpop.eup %10081  ;;  %v4210_v46 = vpop.f32.mrf.mxu0  ;;  %v4339_v32 = vadd.f32 1.0, %v10080_v16  ;;  %v4246_v13 = vmul.f32 0.5, %v14119_v1  ;;  %v4245_v30 = vmul.f32 0.5, %v14113_v43  ;;  %v4248_v43 = vmul.f32 0.5, %v14129_v58 }
 0xb62   :  { %10095 = verf.f32 %v4283_v33  ;;  %v4284_v37 = vmul.f32 0.70710677, %v14149_v19  ;;  %v14153_v49 = vadd.f32 %v4210_v46, %v14051_v31  ;;  %4518 = vmatprep.mubr.f32.mxu1 %v4370_v56  ;;  %v4340_v45 = vadd.f32 1.0, %v10082_v27 }
 0xb63   :  { %v10084_v50 = vpop.eup %10083  ;;  %v4212_v29 = vpop.f32.mrf.mxu0  ;;  %4519 = vmatmul.mubr.f32.gmra.mxu1 %v4369_v48  ;;  %v4371_v4 = vmul.f32 %v4339_v32, %v4243_v24  ;;  %v4247_v48 = vmul.f32 0.5, %v14123_v38  ;;  %v4249_v58 = vmul.f32 0.5, %v14133_v28 }
 0xb64   :  { %10097 = verf.f32 %v4284_v37  ;;  %v4285_v5 = vmul.f32 0.70710677, %v14153_v49  ;;  %v4213_v61 = vadd.f32 %v4212_v29, %v14054_v25  ;;  %v4372_v21 = vmul.f32 %v4340_v45, %v4244_v10 }
 0xb65   :  { %v10086_v20 = vpop.eup %10085  ;;  %v4216_v7 = vpop.f32.mrf.mxu0  ;;  %v4341_v59 = vadd.f32 1.0, %v10084_v50 }
 0xb66   :  { %10099 = verf.f32 %v4285_v5  ;;  %v4286_v57 = vmul.f32 0.70710677, %v4213_v61  ;;  %v14160_v3 = vadd.f32 %v4216_v7, %v14051_v31  ;;  %4523 = vmatprep.mubr.f32.mxu1 %v4372_v21  ;;  %v4342_v16 = vadd.f32 1.0, %v10086_v20 }
 0xb67   :  { %v10088_v55 = vpop.eup %10087  ;;  %v4218_v18 = vpop.f32.mrf.mxu0  ;;  %4524 = vmatmul.mubr.f32.gmra.mxu1 %v4371_v4  ;;  %v4373_v1 = vmul.f32 %v4341_v59, %v4245_v30  ;;  %v4250_v5 = vmul.f32 0.5, %v14139_v52 }
 0xb68   :  { %10101 = verf.f32 %v4286_v57  ;;  %v4287_v35 = vmul.f32 0.70710677, %v14160_v3  ;;  %v4219_v6 = vadd.f32 %v4218_v18, %v14054_v25  ;;  %v4374_v27 = vmul.f32 %v4342_v16, %v4246_v13 }
 0xb69   :  { %v10090_v23 = vpop.eup %10089  ;;  %v4222_v33 = vpop.f32.mrf.mxu0  ;;  %v4343_v46 = vadd.f32 1.0, %v10088_v55  ;;  %v4251_v16 = vmul.f32 0.5, %v14143_v41 }
 0xb6a   :  { %10103 = verf.f32 %v4287_v35  ;;  %v4288_v56 = vmul.f32 0.70710677, %v4219_v6  ;;  %v4223_v32 = vadd.f32 %v4222_v33, %v14051_v31  ;;  %4528 = vmatprep.mubr.f32.mxu1 %v4374_v27  ;;  %v4344_v24 = vadd.f32 1.0, %v10090_v23 }
 0xb6b   :  { %v10092_v37 = vpop.eup %10091  ;;  %v4224_v50 = vpop.f32.mrf.mxu0  ;;  %4529 = vmatmul.mubr.f32.gmra.mxu1 %v4373_v1  ;;  %v4375_v7 = vmul.f32 %v4343_v46, %v4247_v48  ;;  %v4254_v23 = vmul.f32 0.5, %v4213_v61 }
 0xb6c   :  { %10105 = verf.f32 %v4288_v56  ;;  %v4289_v10 = vmul.f32 0.70710677, %v4223_v32  ;;  %v4225_v29 = vadd.f32 %v4224_v50, %v14054_v25  ;;  %v4376_v20 = vmul.f32 %v4344_v24, %v4248_v43 }
 0xb6d   :  { %v10094_v45 = vpop.eup %10093  ;;  %v4345_v4 = vadd.f32 1.0, %v10092_v37  ;;  %v4252_v25 = vmul.f32 0.5, %v14149_v19  ;;  %v4253_v56 = vmul.f32 0.5, %v14153_v49  ;;  %v4256_v37 = vmul.f32 0.5, %v4219_v6 }
 0xb6e   :  { %10107 = verf.f32 %v4289_v10  ;;  %v4290_v31 = vmul.f32 0.70710677, %v4225_v29  ;;  %v4346_v21 = vadd.f32 1.0, %v10094_v45  ;;  %4533 = vmatprep.mubr.f32.mxu1 %v4376_v20  ;;  %v4255_v24 = vmul.f32 0.5, %v14160_v3  ;;  %v14179_v3 = vld [vmem:[%s17182_s16] ss:$0 sm:$0xff] }
 0xb6f   :  { %v10096_v38 = vpop.eup %10095  ;;  %4534 = vmatmul.mubr.f32.gmra.mxu1 %v4375_v7  ;;  %v4377_v55 = vmul.f32 %v4345_v4, %v4249_v58  ;;  %v4258_v45 = vmul.f32 0.5, %v4225_v29  ;;  %v4257_v49 = vmul.f32 0.5, %v4223_v32 }
 0xb70   :  { %10109 = verf.f32 %v4290_v31  ;;  %v4378_v57 = vmul.f32 %v4346_v21, %v4250_v5  ;;  %v4347_v52 = vadd.f32 1.0, %v10096_v38 }
 0xb71   :  { %v10098_v59 = vpop.eup %10097 }
 0xb72   :  { %4538 = vmatprep.mubr.f32.mxu1 %v4378_v57  ;;  %v4348_v13 = vadd.f32 1.0, %v10098_v59  ;;  %v4379_v33 = vmul.f32 %v4347_v52, %v4251_v16 }
 0xb73   :  { %v10100_v18 = vpop.eup %10099  ;;  %4539 = vmatmul.mubr.f32.gmra.mxu1 %v4377_v55 }
 0xb74   :  { %v4380_v30 = vmul.f32 %v4348_v13, %v4252_v25  ;;  %v4349_v27 = vadd.f32 1.0, %v10100_v18 }
 0xb75   :  { %v10102_v35 = vpop.eup %10101 }
 0xb76   :  { %4543 = vmatprep.mubr.f32.mxu1 %v4380_v30  ;;  %v4350_v28 = vadd.f32 1.0, %v10102_v35  ;;  %v4381_v48 = vmul.f32 %v4349_v27, %v4253_v56 }
 0xb77   :  { %v10104_v46 = vpop.eup %10103  ;;  %4544 = vmatmul.mubr.f32.gmra.mxu1 %v4379_v33 }
 0xb78   :  { %v4382_v19 = vmul.f32 %v4350_v28, %v4254_v23  ;;  %v4351_v50 = vadd.f32 1.0, %v10104_v46 }
 0xb79   :  { %v10106_v1 = vpop.eup %10105 }
 0xb7a   :  { %4548 = vmatprep.mubr.f32.mxu1 %v4382_v19  ;;  %v4352_v43 = vadd.f32 1.0, %v10106_v1  ;;  %v4383_v5 = vmul.f32 %v4351_v50, %v4255_v24 }
 0xb7b   :  { %v10108_v41 = vpop.eup %10107  ;;  %4549 = vmatmul.mubr.f32.gmra.mxu1 %v4381_v48 }
 0xb7c   :  { %v4384_v61 = vmul.f32 %v4352_v43, %v4256_v37  ;;  %v4353_v7 = vadd.f32 1.0, %v10108_v41 }
 0xb7d   :  { %v10110_v10 = vpop.eup %10109 }
 0xb7e   :  { %4553 = vmatprep.mubr.f32.mxu1 %v4384_v61  ;;  %v4354_v20 = vadd.f32 1.0, %v10110_v10  ;;  %v4385_v6 = vmul.f32 %v4353_v7, %v4257_v49 }
 0xb7f   :  { %4554 = vmatmul.mubr.f32.gmra.mxu1 %v4383_v5 }
 0xb80   :  { %v4386_v31 = vmul.f32 %v4354_v20, %v4258_v45 }
 0xb82   :  { %4558 = vmatprep.mubr.f32.mxu1 %v4386_v31 }
 0xb83   :  { %4559 = vmatmul.mubr.f32.gmra.mxu1 %v4385_v6 }
 0xc07   :  { %v8941_v21 = vpop.f32.mrf.mxu1 }
 0xc09   :  { %v8942_v4 = vpop.f32.mrf.mxu1 }
 0xc0a   :  { %v8943_v38 = vadd.f32 %v8942_v4, %v8941_v21 }
 0xc0b   :  { %v8944_v58 = vpop.f32.mrf.mxu1 }
 0xc0c   :  { %v4564_v29 = vadd.f32 %v8943_v38, %v13487_v51 }
 0xc0d   :  { %v8945_v32 = vpop.f32.mrf.mxu1 }
 0xc0e   :  { %v14183_v57 = vadd.f32 %v14179_v3, %v4564_v29  ;;  %v8946_v59 = vadd.f32 %v8945_v32, %v8944_v58 }
 0xc0f   :  { %v8947_v25 = vpop.f32.mrf.mxu1 }
 0xc10   :  { %18013 = vst [vmem:[#allocation195_spill] sm:$0xff] %v14183_v57  ;;  %v4603_v55 = vsel %vm217_vm0, %v14183_v57, 0.0  ;;  %v4565_v13 = vadd.f32 %v8946_v59, %v13471_v2 }
 0xc11   :  { %4604 = vadd.xlane.f32.xlu0 %v4603_v55  ;;  %v8948_v52 = vpop.f32.mrf.mxu1 }
 0xc12   :  { %v14189_v18 = vadd.f32 %v14179_v3, %v4565_v13  ;;  %v8949_v16 = vadd.f32 %v8948_v52, %v8947_v25 }
 0xc13   :  { %v8950_v30 = vpop.f32.mrf.mxu1 }
 0xc14   :  { %18014 = vst [vmem:[#allocation135_spill] sm:$0xff] %v14189_v18  ;;  %v4566_v51 = vadd.f32 %v8949_v16, %v18009_v60  ;;  %v4606_v35 = vsel %vm217_vm0, %v14189_v18, 0.0 }
 0xc15   :  { %4607 = vadd.xlane.f32.xlu1 %v4606_v35  ;;  %v8951_v23 = vpop.f32.mrf.mxu1 }
 0xc16   :  { %v14195_v33 = vadd.f32 %v14179_v3, %v4566_v51  ;;  %v8952_v28 = vadd.f32 %v8951_v23, %v8950_v30 }
 0xc17   :  { %v8953_v27 = vpop.f32.mrf.mxu1 }
 0xc18   :  { %18015 = vst [vmem:[#allocation226_spill] sm:$0xff] %v14195_v33  ;;  %v4567_v2 = vadd.f32 %v8952_v28, %v13417_v54  ;;  %v4609_v46 = vsel %vm217_vm0, %v14195_v33, 0.0 }
 0xc19   :  { %4610 = vadd.xlane.f32.xlu0 %v4609_v46  ;;  %v8954_v56 = vpop.f32.mrf.mxu1 }
 0xc1a   :  { %v14201_v19 = vadd.f32 %v14179_v3, %v4567_v2  ;;  %v8955_v60 = vadd.f32 %v8954_v56, %v8953_v27 }
 0xc1b   :  { %v8956_v1 = vpop.f32.mrf.mxu1 }
 0xc1c   :  { %18016 = vst [vmem:[#allocation156_spill] sm:$0xff] %v14201_v19  ;;  %v4568_v37 = vadd.f32 %v8955_v60, %v13491_v26  ;;  %v4612_v48 = vsel %vm217_vm0, %v14201_v19, 0.0 }
 0xc1d   :  { %4613 = vadd.xlane.f32.xlu1 %v4612_v48  ;;  %v8957_v43 = vpop.f32.mrf.mxu1 }
 0xc1e   :  { %v14207_v50 = vadd.f32 %v14179_v3, %v4568_v37  ;;  %v8958_v54 = vadd.f32 %v8957_v43, %v8956_v1 }
 0xc1f   :  { %v8959_v41 = vpop.f32.mrf.mxu1 }
 0xc20   :  { %18017 = vst [vmem:[#allocation222_spill] sm:$0xff] %v14207_v50  ;;  %v4569_v24 = vadd.f32 %v8958_v54, %v13494_v11  ;;  %v4615_v61 = vsel %vm217_vm0, %v14207_v50, 0.0 }
 0xc21   :  { %4616 = vadd.xlane.f32.xlu0 %v4615_v61  ;;  %v8960_v10 = vpop.f32.mrf.mxu1 }
 0xc22   :  { %v14213_v45 = vadd.f32 %v14179_v3, %v4569_v24  ;;  %v8961_v26 = vadd.f32 %v8960_v10, %v8959_v41 }
 0xc23   :  { %v8962_v5 = vpop.f32.mrf.mxu1 }
 0xc24   :  { %18018 = vst [vmem:[#allocation208_spill] sm:$0xff] %v14213_v45  ;;  %v4570_v20 = vadd.f32 %v8961_v26, %v13537_v22  ;;  %v4618_v7 = vsel %vm217_vm0, %v14213_v45, 0.0 }
 0xc25   :  { %4619 = vadd.xlane.f32.xlu1 %v4618_v7  ;;  %v8963_v49 = vpop.f32.mrf.mxu1 }
 0xc26   :  { %v14219_v31 = vadd.f32 %v14179_v3, %v4570_v20  ;;  %v8964_v11 = vadd.f32 %v8963_v49, %v8962_v5 }
 0xc27   :  { %v8965_v6 = vpop.f32.mrf.mxu1 }
 0xc28   :  { %18019 = vst [vmem:[#allocation137_spill] sm:$0xff] %v14219_v31  ;;  %v4571_v21 = vadd.f32 %v8964_v11, %v13550_v17  ;;  %v4621_v4 = vsel %vm217_vm0, %v14219_v31, 0.0 }
 0xc29   :  { %4622 = vadd.xlane.f32.xlu0 %v4621_v4  ;;  %v8966_v38 = vpop.f32.mrf.mxu1 }
 0xc2a   :  { %v14225_v29 = vadd.f32 %v14179_v3, %v4571_v21  ;;  %v8967_v22 = vadd.f32 %v8966_v38, %v8965_v6 }
 0xc2b   :  { %v8968_v58 = vpop.f32.mrf.mxu1 }
 0xc2c   :  { %18020 = vst [vmem:[#allocation221_spill] sm:$0xff] %v14225_v29  ;;  %v4572_v32 = vadd.f32 %v8967_v22, %v13587_v36  ;;  %v4624_v59 = vsel %vm217_vm0, %v14225_v29, 0.0 }
 0xc2d   :  { %4625 = vadd.xlane.f32.xlu1 %v4624_v59  ;;  %v8969_v25 = vpop.f32.mrf.mxu1  ;;  %v8490_v59 = vld [vmem:[%s17171_s5 + $0xd8] sm:$0xff] }
 0xc2e   :  { %v14231_v55 = vadd.f32 %v14179_v3, %v4572_v32  ;;  %v8970_v17 = vadd.f32 %v8969_v25, %v8968_v58  ;;  %v8494_v58 = vld [vmem:[%s17171_s5 + $0xf8] sm:$0xff]  ;;  %v8493_v32 = vld [vmem:[%s17171_s5 + $0xf0] sm:$0xff] }
 0xc2f   :  { %v8971_v13 = vpop.f32.mrf.mxu1  ;;  %4953 = vmatprep.subr.mxu0 %v8494_v58  ;;  %v8489_v25 = vld [vmem:[%s17171_s5 + $0xd0] sm:$0xff] }
 0xc30   :  { %18021 = vst [vmem:[#allocation138_spill] sm:$0xff] %v14231_v55  ;;  %v4573_v52 = vadd.f32 %v8970_v17, %v13607_v9  ;;  %v4627_v16 = vsel %vm217_vm0, %v14231_v55, 0.0  ;;  %4954 = vmatpush1.msra.mxu0 %v8493_v32  ;;  %v8488_v17 = vld [vmem:[%s17171_s5 + $0xc8] sm:$0xff] }
 0xc31   :  { %4628 = vadd.xlane.f32.xlu0 %v4627_v16  ;;  %v8972_v30 = vpop.f32.mrf.mxu1  ;;  %v8485_v16 = vld [vmem:[%s17171_s5 + $0xb0] sm:$0xff] }
 0xc32   :  { %v14237_v51 = vadd.f32 %v14179_v3, %v4573_v52  ;;  %v8973_v36 = vadd.f32 %v8972_v30, %v8971_v13  ;;  %v8487_v13 = vld [vmem:[%s17171_s5 + $0xc0] sm:$0xff]  ;;  %v8486_v52 = vld [vmem:[%s17171_s5 + $0xb8] sm:$0xff] }
 0xc33   :  { %v8974_v35 = vpop.f32.mrf.mxu1 }
 0xc34   :  { %18022 = vst [vmem:[#allocation215_spill] sm:$0xff] %v14237_v51  ;;  %v4574_v23 = vadd.f32 %v8973_v36, %v13633_v44  ;;  %v4630_v28 = vsel %vm217_vm0, %v14237_v51, 0.0 }
 0xc35   :  { %4631 = vadd.xlane.f32.xlu1 %v4630_v28  ;;  %v8975_v27 = vpop.f32.mrf.mxu1 }
 0xc36   :  { %v14243_v2 = vadd.f32 %v14179_v3, %v4574_v23  ;;  %v8976_v9 = vadd.f32 %v8975_v27, %v8974_v35 }
 0xc37   :  { %v8977_v46 = vpop.f32.mrf.mxu1 }
 0xc38   :  { %18023 = vst [vmem:[#allocation139_spill] sm:$0xff] %v14243_v2  ;;  %v4575_v56 = vadd.f32 %v8976_v9, %v13648_v8  ;;  %v4633_v60 = vsel %vm217_vm0, %v14243_v2, 0.0 }
 0xc39   :  { %4634 = vadd.xlane.f32.xlu0 %v4633_v60  ;;  %v8978_v1 = vpop.f32.mrf.mxu1 }
 0xc3a   :  { %v14249_v37 = vadd.f32 %v14179_v3, %v4575_v56  ;;  %v8979_v44 = vadd.f32 %v8978_v1, %v8977_v46 }
 0xc3b   :  { %v8980_v48 = vpop.f32.mrf.mxu1 }
 0xc3c   :  { %18024 = vst [vmem:[#allocation163_spill] sm:$0xff] %v14249_v37  ;;  %v4576_v43 = vadd.f32 %v8979_v44, %v13687_v62  ;;  %v4636_v54 = vsel %vm217_vm0, %v14249_v37, 0.0 }
 0xc3d   :  { %4637 = vadd.xlane.f32.xlu1 %v4636_v54  ;;  %v8981_v41 = vpop.f32.mrf.mxu1 }
 0xc3e   :  { %v14255_v24 = vadd.f32 %v14179_v3, %v4576_v43  ;;  %v8982_v8 = vadd.f32 %v8981_v41, %v8980_v48 }
 0xc3f   :  { %v8983_v61 = vpop.f32.mrf.mxu1 }
 0xc40   :  { %18025 = vst [vmem:[#allocation227_spill] sm:$0xff] %v14255_v24  ;;  %v4577_v10 = vadd.f32 %v8982_v8, %v13693_v53  ;;  %v4639_v26 = vsel %vm217_vm0, %v14255_v24, 0.0 }
 0xc41   :  { %4640 = vadd.xlane.f32.xlu0 %v4639_v26  ;;  %v8984_v5 = vpop.f32.mrf.mxu1 }
 0xc42   :  { %v14261_v20 = vadd.f32 %v14179_v3, %v4577_v10  ;;  %v8985_v62 = vadd.f32 %v8984_v5, %v8983_v61 }
 0xc43   :  { %v8986_v7 = vpop.f32.mrf.mxu1 }
 0xc44   :  { %18026 = vst [vmem:[#allocation143_spill] sm:$0xff] %v14261_v20  ;;  %v4578_v49 = vadd.f32 %v8985_v62, %v13708_v47  ;;  %v4642_v11 = vsel %vm217_vm0, %v14261_v20, 0.0 }
 0xc45   :  { %4643 = vadd.xlane.f32.xlu1 %v4642_v11  ;;  %v8987_v6 = vpop.f32.mrf.mxu1 }
 0xc46   :  { %v14267_v21 = vadd.f32 %v14179_v3, %v4578_v49  ;;  %v8988_v53 = vadd.f32 %v8987_v6, %v8986_v7 }
 0xc48   :  { %18027 = vst [vmem:[#allocation235_spill] sm:$0xff] %v14267_v21  ;;  %v4579_v4 = vadd.f32 %v8988_v53, %v13711_v14  ;;  %v4645_v38 = vsel %vm217_vm0, %v14267_v21, 0.0  ;;  %v8492_v14 = vld [vmem:[%s17171_s5 + $0xe8] sm:$0xff] }
 0xc49   :  { %4646 = vadd.xlane.f32.xlu0 %v4645_v38  ;;  %4955 = vmatprep.subr.mxu0 %v8492_v14 }
 0xc4a   :  { %v14273_v22 = vadd.f32 %v14179_v3, %v4579_v4  ;;  %v8491_v3 = vld [vmem:[%s17171_s5 + $0xe0] sm:$0xff] }
 0xc4b   :  { %4956 = vmatpush1.msra.mxu0 %v8491_v3 }
 0xc4c   :  { %18028 = vst [vmem:[#allocation241_spill] sm:$0xff] %v14273_v22  ;;  %v4648_v47 = vsel %vm217_vm0, %v14273_v22, 0.0  ;;  %4957 = vmatprep.subr.mxu0 %v8490_v59 }
 0xc4d   :  { %4649 = vadd.xlane.f32.xlu1 %v4648_v47  ;;  %4958 = vmatpush1.msra.mxu0 %v8489_v25 }
 0xc4e   :  { %4959 = vmatprep.subr.mxu0 %v8488_v17 }
 0xc4f   :  { %4960 = vmatpush1.msra.mxu0 %v8487_v13 }
 0xc50   :  { %4961 = vmatprep.subr.mxu0 %v8486_v52 }
 0xc51   :  { %4962 = vmatpush1.msra.mxu0 %v8485_v16 }
 0xc9a   :  { %v4605_v30 = vpop.xlane.xlu0 %4604 }
 0xc9b   :  { %v4651_v36 = vmul.f32 0.015625, %v4605_v30 }
 0xc9d   :  { %v14308_v35 = vsub.f32 %v14183_v57, %v4651_v36 }
 0xc9e   :  { %v4608_v23 = vpop.xlane.xlu1 %4607 }
 0xc9f   :  { %v4683_v28 = vmul.f32 %v14308_v35, %v14308_v35  ;;  %v4652_v27 = vmul.f32 0.015625, %v4608_v23 }
 0xca1   :  { %v4699_v9 = vsel %vm217_vm0, %v4683_v28, 0.0  ;;  %v14314_v46 = vsub.f32 %v14189_v18, %v4652_v27 }
 0xca2   :  { %4700 = vadd.xlane.f32.xlu0 %v4699_v9  ;;  %v4611_v56 = vpop.xlane.xlu0 %4610 }
 0xca3   :  { %v4653_v60 = vmul.f32 0.015625, %v4611_v56  ;;  %v4684_v1 = vmul.f32 %v14314_v46, %v14314_v46  ;;  %v8484_v56 = vld [vmem:[%s17171_s5 + $0xa8] sm:$0xff] }
 0xca4   :  { %4963 = vmatprep.subr.mxu0 %v8484_v56 }
 0xca5   :  { %v14319_v44 = vsub.f32 %v14195_v33, %v4653_v60  ;;  %v4702_v48 = vsel %vm217_vm0, %v4684_v1, 0.0  ;;  %v8483_v60 = vld [vmem:[%s17171_s5 + $0xa0] sm:$0xff]  ;;  %v8482_v1 = vld [vmem:[%s17171_s5 + $0x98] sm:$0xff] }
 0xca6   :  { %v4614_v43 = vpop.xlane.xlu1 %4613  ;;  %4703 = vadd.xlane.f32.xlu1 %v4702_v48  ;;  %v8481_v48 = vld [vmem:[%s17171_s5 + $0x90] sm:$0xff]  ;;  %4964 = vmatpush1.msra.mxu0 %v8483_v60 }
 0xca7   :  { %v4654_v54 = vmul.f32 0.015625, %v4614_v43  ;;  %v4685_v41 = vmul.f32 %v14319_v44, %v14319_v44  ;;  %4965 = vmatprep.subr.mxu0 %v8482_v1 }
 0xca8   :  { %4966 = vmatpush1.msra.mxu0 %v8481_v48 }
 0xca9   :  { %v14325_v8 = vsub.f32 %v14201_v19, %v4654_v54  ;;  %v4705_v61 = vsel %vm217_vm0, %v4685_v41, 0.0  ;;  %v8480_v41 = vld [vmem:[%s17171_s5 + $0x88] sm:$0xff] }
 0xcaa   :  { %4706 = vadd.xlane.f32.xlu0 %v4705_v61  ;;  %v4617_v10 = vpop.xlane.xlu0 %4616  ;;  %4967 = vmatprep.subr.mxu0 %v8480_v41 }
 0xcab   :  { %v4655_v26 = vmul.f32 0.015625, %v4617_v10  ;;  %v4686_v5 = vmul.f32 %v14325_v8, %v14325_v8  ;;  %v8479_v10 = vld [vmem:[%s17171_s5 + $0x80] sm:$0xff] }
 0xcac   :  { %4968 = vmatpush1.msra.mxu0 %v8479_v10 }
 0xcad   :  { %v14331_v62 = vsub.f32 %v14207_v50, %v4655_v26  ;;  %v4708_v7 = vsel %vm217_vm0, %v4686_v5, 0.0 }
 0xcae   :  { %v4620_v49 = vpop.xlane.xlu1 %4619  ;;  %4709 = vadd.xlane.f32.xlu1 %v4708_v7 }
 0xcaf   :  { %v4656_v11 = vmul.f32 0.015625, %v4620_v49  ;;  %v4687_v6 = vmul.f32 %v14331_v62, %v14331_v62 }
 0xcb1   :  { %v14337_v53 = vsub.f32 %v14213_v45, %v4656_v11  ;;  %v4711_v4 = vsel %vm217_vm0, %v4687_v6, 0.0 }
 0xcb2   :  { %4712 = vadd.xlane.f32.xlu0 %v4711_v4  ;;  %v4623_v38 = vpop.xlane.xlu0 %4622 }
 0xcb3   :  { %v4657_v47 = vmul.f32 0.015625, %v4623_v38  ;;  %v4688_v58 = vmul.f32 %v14337_v53, %v14337_v53 }
 0xcb5   :  { %v14343_v32 = vsub.f32 %v14219_v31, %v4657_v47  ;;  %v4714_v14 = vsel %vm217_vm0, %v4688_v58, 0.0 }
 0xcb6   :  { %v4626_v3 = vpop.xlane.xlu1 %4625  ;;  %4715 = vadd.xlane.f32.xlu1 %v4714_v14 }
 0xcb7   :  { %v4658_v59 = vmul.f32 0.015625, %v4626_v3  ;;  %v4689_v25 = vmul.f32 %v14343_v32, %v14343_v32 }
 0xcb9   :  { %v14349_v17 = vsub.f32 %v14225_v29, %v4658_v59  ;;  %v4717_v13 = vsel %vm217_vm0, %v4689_v25, 0.0 }
 0xcba   :  { %4718 = vadd.xlane.f32.xlu0 %v4717_v13  ;;  %v4629_v52 = vpop.xlane.xlu0 %4628 }
 0xcbb   :  { %v4659_v16 = vmul.f32 0.015625, %v4629_v52  ;;  %v4690_v30 = vmul.f32 %v14349_v17, %v14349_v17 }
 0xcbd   :  { %v14355_v36 = vsub.f32 %v14231_v55, %v4659_v16  ;;  %v4720_v23 = vsel %vm217_vm0, %v4690_v30, 0.0 }
 0xcbe   :  { %v4632_v28 = vpop.xlane.xlu1 %4631  ;;  %4721 = vadd.xlane.f32.xlu1 %v4720_v23 }
 0xcbf   :  { %v4660_v27 = vmul.f32 0.015625, %v4632_v28  ;;  %v4691_v9 = vmul.f32 %v14355_v36, %v14355_v36 }
 0xcc1   :  { %v14373_v43 = vsub.f32 %v14237_v51, %v4660_v27  ;;  %v4723_v54 = vsel %vm217_vm0, %v4691_v9, 0.0 }
 0xcc2   :  { %4724 = vadd.xlane.f32.xlu0 %v4723_v54  ;;  %v4635_v61 = vpop.xlane.xlu0 %4634 }
 0xcc3   :  { %v4661_v26 = vmul.f32 0.015625, %v4635_v61  ;;  %v4692_v5 = vmul.f32 %v14373_v43, %v14373_v43 }
 0xcc5   :  { %v14385_v7 = vsub.f32 %v14243_v2, %v4661_v26  ;;  %v4726_v49 = vsel %vm217_vm0, %v4692_v5, 0.0 }
 0xcc6   :  { %v4638_v11 = vpop.xlane.xlu1 %4637  ;;  %4727 = vadd.xlane.f32.xlu1 %v4726_v49 }
 0xcc7   :  { %v4662_v6 = vmul.f32 0.015625, %v4638_v11  ;;  %v4693_v4 = vmul.f32 %v14385_v7, %v14385_v7 }
 0xcc9   :  { %v14391_v38 = vsub.f32 %v14249_v37, %v4662_v6  ;;  %v4729_v47 = vsel %vm217_vm0, %v4693_v4, 0.0 }
 0xcca   :  { %4730 = vadd.xlane.f32.xlu0 %v4729_v47  ;;  %v4641_v58 = vpop.xlane.xlu0 %4640 }
 0xccb   :  { %v4663_v14 = vmul.f32 0.015625, %v4641_v58  ;;  %v4694_v3 = vmul.f32 %v14391_v38, %v14391_v38 }
 0xccd   :  { %v14397_v59 = vsub.f32 %v14255_v24, %v4663_v14  ;;  %v4732_v25 = vsel %vm217_vm0, %v4694_v3, 0.0 }
 0xcce   :  { %v4644_v13 = vpop.xlane.xlu1 %4643  ;;  %4733 = vadd.xlane.f32.xlu1 %v4732_v25 }
 0xccf   :  { %v4664_v52 = vmul.f32 0.015625, %v4644_v13  ;;  %v4695_v16 = vmul.f32 %v14397_v59, %v14397_v59 }
 0xcd1   :  { %v14403_v30 = vsub.f32 %v14261_v20, %v4664_v52  ;;  %v4735_v23 = vsel %vm217_vm0, %v4695_v16, 0.0 }
 0xcd2   :  { %4736 = vadd.xlane.f32.xlu0 %v4735_v23  ;;  %v4647_v28 = vpop.xlane.xlu0 %4646 }
 0xcd3   :  { %v4665_v27 = vmul.f32 0.015625, %v4647_v28  ;;  %v4696_v9 = vmul.f32 %v14403_v30, %v14403_v30  ;;  %v14424_v28 = vld [vmem:[%s17169_s3 + $0x1] ss:$0 sm:$0xff] }
 0xcd5   :  { %v14409_v56 = vsub.f32 %v14267_v21, %v4665_v27  ;;  %v4738_v60 = vsel %vm217_vm0, %v4696_v9, 0.0 }
 0xcd6   :  { %4739 = vadd.xlane.f32.xlu1 %v4738_v60  ;;  %v4650_v1 = vpop.xlane.xlu1 %4649 }
 0xcd7   :  { %v4666_v48 = vmul.f32 0.015625, %v4650_v1  ;;  %v4697_v54 = vmul.f32 %v14409_v56, %v14409_v56  ;;  %v14430_v1 = vld [vmem:[%s17170_s4 + $0x1] ss:$0 sm:$0xff] }
 0xcd9   :  { %v14415_v41 = vsub.f32 %v14273_v22, %v4666_v48  ;;  %v4741_v61 = vsel %vm217_vm0, %v4697_v54, 0.0 }
 0xcda   :  { %4742 = vadd.xlane.f32.xlu0 %v4741_v61 }
 0xcdb   :  { %v4698_v10 = vmul.f32 %v14415_v41, %v14415_v41 }
 0xcdd   :  { %v4744_v26 = vsel %vm217_vm0, %v4698_v10, 0.0 }
 0xcde   :  { %4745 = vadd.xlane.f32.xlu1 %v4744_v26 }
 0xd2b   :  { %v4701_v5 = vpop.xlane.xlu0 %4700 }
 0xd2c   :  { %v4747_v49 = vmul.f32 0.015625, %v4701_v5 }
 0xd2e   :  { %v4763_v11 = vadd.f32 1e-05, %v4747_v49 }
 0xd2f   :  { %v4704_v6 = vpop.xlane.xlu1 %4703 }
 0xd30   :  { %10111 = vrsqrt.f32 %v4763_v11  ;;  %v4748_v4 = vmul.f32 0.015625, %v4704_v6 }
 0xd32   :  { %v4764_v47 = vadd.f32 1e-05, %v4748_v4 }
 0xd33   :  { %v4707_v58 = vpop.xlane.xlu0 %4706 }
 0xd34   :  { %10113 = vrsqrt.f32 %v4764_v47  ;;  %v4749_v14 = vmul.f32 0.015625, %v4707_v58 }
 0xd36   :  { %v4765_v3 = vadd.f32 1e-05, %v4749_v14 }
 0xd37   :  { %v4710_v25 = vpop.xlane.xlu1 %4709 }
 0xd38   :  { %10115 = vrsqrt.f32 %v4765_v3  ;;  %v4750_v13 = vmul.f32 0.015625, %v4710_v25 }
 0xd3a   :  { %v4766_v52 = vadd.f32 1e-05, %v4750_v13 }
 0xd3b   :  { %v4713_v16 = vpop.xlane.xlu0 %4712 }
 0xd3c   :  { %10117 = vrsqrt.f32 %v4766_v52  ;;  %v4751_v27 = vmul.f32 0.015625, %v4713_v16 }
 0xd3d   :  { %v10112_v23 = vpop.eup %10111 }
 0xd3e   :  { %v4795_v9 = vmul.f32 %v10112_v23, %v14308_v35  ;;  %v4767_v60 = vadd.f32 1e-05, %v4751_v27 }
 0xd3f   :  { %v4716_v54 = vpop.xlane.xlu1 %4715 }
 0xd40   :  { %v4819_v48 = vmul.f32 %v14424_v28, %v4795_v9  ;;  %10119 = vrsqrt.f32 %v4767_v60  ;;  %v4752_v61 = vmul.f32 0.015625, %v4716_v54 }
 0xd41   :  { %v10114_v10 = vpop.eup %10113 }
 0xd42   :  { %v4843_v26 = vadd.f32 %v14430_v1, %v4819_v48  ;;  %v4768_v5 = vadd.f32 1e-05, %v4752_v61  ;;  %v4796_v49 = vmul.f32 %v10114_v10, %v14314_v46 }
 0xd43   :  { %v4719_v11 = vpop.xlane.xlu0 %4718 }
 0xd44   :  { %8496 = vmatmul.mubr.msk.f32.vlgmr.msra.gmra.mxu0 %vm217_vm0, %v4843_v26  ;;  %10121 = vrsqrt.f32 %v4768_v5  ;;  %v4753_v35 = vmul.f32 0.015625, %v4719_v11  ;;  %v4820_v6 = vmul.f32 %v14424_v28, %v4796_v49 }
 0xd45   :  { %5007 = vmatprep.mubr.f32.mxu0 %v18010_v40  ;;  %v10116_v4 = vpop.eup %10115 }
 0xd46   :  { %v4769_v47 = vadd.f32 1e-05, %v4753_v35  ;;  %v4844_v58 = vadd.f32 %v14430_v1, %v4820_v6  ;;  %v4797_v14 = vmul.f32 %v10116_v4, %v14319_v44 }
 0xd47   :  { %v4722_v3 = vpop.xlane.xlu1 %4721 }
 0xd48   :  { %10123 = vrsqrt.f32 %v4769_v47  ;;  %v4754_v25 = vmul.f32 0.015625, %v4722_v3  ;;  %8497 = vmatmul.mubr.msk.f32.gmra.mxu0 %vm217_vm0, %v4844_v58  ;;  %v4821_v46 = vmul.f32 %v14424_v28, %v4797_v14 }
 0xd49   :  { %v10118_v13 = vpop.eup %10117  ;;  %5013 = vmatprep.mubr.f32.mxu0 %v18010_v40 }
 0xd4a   :  { %v4770_v52 = vadd.f32 1e-05, %v4754_v25  ;;  %v4845_v16 = vadd.f32 %v14430_v1, %v4821_v46  ;;  %v4798_v23 = vmul.f32 %v10118_v13, %v14325_v8 }
 0xd4b   :  { %v4725_v27 = vpop.xlane.xlu0 %4724 }
 0xd4c   :  { %10125 = vrsqrt.f32 %v4770_v52  ;;  %v4755_v9 = vmul.f32 0.015625, %v4725_v27  ;;  %8498 = vmatmul.mubr.msk.f32.gmra.mxu0 %vm217_vm0, %v4845_v16  ;;  %v4822_v44 = vmul.f32 %v14424_v28, %v4798_v23 }
 0xd4d   :  { %v10120_v60 = vpop.eup %10119  ;;  %5019 = vmatprep.mubr.f32.mxu0 %v18010_v40 }
 0xd4e   :  { %v4771_v48 = vadd.f32 1e-05, %v4755_v9  ;;  %v4846_v54 = vadd.f32 %v14430_v1, %v4822_v44  ;;  %v4799_v61 = vmul.f32 %v10120_v60, %v14331_v62 }
 0xd4f   :  { %v4728_v10 = vpop.xlane.xlu1 %4727 }
 0xd50   :  { %10127 = vrsqrt.f32 %v4771_v48  ;;  %v4756_v26 = vmul.f32 0.015625, %v4728_v10  ;;  %8499 = vmatmul.mubr.msk.f32.gmra.mxu0 %vm217_vm0, %v4846_v54  ;;  %v4823_v8 = vmul.f32 %v14424_v28, %v4799_v61 }
 0xd51   :  { %v10122_v5 = vpop.eup %10121  ;;  %5025 = vmatprep.mubr.f32.mxu0 %v18010_v40 }
 0xd52   :  { %v4772_v49 = vadd.f32 1e-05, %v4756_v26  ;;  %v4847_v11 = vadd.f32 %v14430_v1, %v4823_v8  ;;  %v4800_v35 = vmul.f32 %v10122_v5, %v14337_v53 }
 0xd53   :  { %v4731_v6 = vpop.xlane.xlu0 %4730 }
 0xd54   :  { %10129 = vrsqrt.f32 %v4772_v49  ;;  %v4757_v4 = vmul.f32 0.015625, %v4731_v6  ;;  %8500 = vmatmul.mubr.msk.f32.gmra.mxu0 %vm217_vm0, %v4847_v11  ;;  %v4824_v62 = vmul.f32 %v14424_v28, %v4800_v35 }
 0xd55   :  { %v10124_v47 = vpop.eup %10123  ;;  %5031 = vmatprep.mubr.f32.mxu0 %v18010_v40 }
 0xd56   :  { %v4773_v58 = vadd.f32 1e-05, %v4757_v4  ;;  %v4848_v14 = vadd.f32 %v14430_v1, %v4824_v62  ;;  %v4801_v3 = vmul.f32 %v10124_v47, %v14343_v32 }
 0xd57   :  { %v4734_v25 = vpop.xlane.xlu1 %4733 }
 0xd58   :  { %10131 = vrsqrt.f32 %v4773_v58  ;;  %v4758_v46 = vmul.f32 0.015625, %v4734_v25  ;;  %8501 = vmatmul.mubr.msk.f32.gmra.mxu0 %vm217_vm0, %v4848_v14  ;;  %v4825_v53 = vmul.f32 %v14424_v28, %v4801_v3 }
 0xd59   :  { %v10126_v13 = vpop.eup %10125  ;;  %5037 = vmatprep.mubr.f32.mxu0 %v18010_v40 }
 0xd5a   :  { %v4774_v52 = vadd.f32 1e-05, %v4758_v46  ;;  %v4849_v16 = vadd.f32 %v14430_v1, %v4825_v53  ;;  %v4802_v23 = vmul.f32 %v10126_v13, %v14349_v17 }
 0xd5b   :  { %v4737_v27 = vpop.xlane.xlu0 %4736 }
 0xd5c   :  { %10133 = vrsqrt.f32 %v4774_v52  ;;  %v4759_v9 = vmul.f32 0.015625, %v4737_v27  ;;  %8502 = vmatmul.mubr.msk.f32.gmra.mxu0 %vm217_vm0, %v4849_v16  ;;  %v4826_v32 = vmul.f32 %v14424_v28, %v4802_v23 }
 0xd5d   :  { %v10128_v44 = vpop.eup %10127  ;;  %5043 = vmatprep.mubr.f32.mxu0 %v18010_v40 }
 0xd5e   :  { %v4775_v60 = vadd.f32 1e-05, %v4759_v9  ;;  %v4850_v48 = vadd.f32 %v14430_v1, %v4826_v32  ;;  %v4803_v54 = vmul.f32 %v10128_v44, %v14355_v36 }
 0xd5f   :  { %v4740_v61 = vpop.xlane.xlu1 %4739 }
 0xd60   :  { %10135 = vrsqrt.f32 %v4775_v60  ;;  %v4760_v10 = vmul.f32 0.015625, %v4740_v61  ;;  %8503 = vmatmul.mubr.msk.f32.gmra.mxu0 %vm217_vm0, %v4850_v48  ;;  %v4827_v17 = vmul.f32 %v14424_v28, %v4803_v54 }
 0xd61   :  { %v10130_v26 = vpop.eup %10129  ;;  %5049 = vmatprep.mubr.f32.mxu0 %v18010_v40 }
 0xd62   :  { %v4776_v8 = vadd.f32 1e-05, %v4760_v10  ;;  %v4851_v5 = vadd.f32 %v14430_v1, %v4827_v17  ;;  %v4804_v49 = vmul.f32 %v10130_v26, %v14373_v43 }
 0xd63   :  { %v4743_v11 = vpop.xlane.xlu0 %4742 }
 0xd64   :  { %10137 = vrsqrt.f32 %v4776_v8  ;;  %v4761_v35 = vmul.f32 0.015625, %v4743_v11  ;;  %8504 = vmatmul.mubr.msk.f32.gmra.mxu0 %vm217_vm0, %v4851_v5  ;;  %v4828_v36 = vmul.f32 %v14424_v28, %v4804_v49 }
 0xd65   :  { %v10132_v6 = vpop.eup %10131  ;;  %5055 = vmatprep.mubr.f32.mxu0 %v18010_v40 }
 0xd66   :  { %v4777_v4 = vadd.f32 1e-05, %v4761_v35  ;;  %v4852_v62 = vadd.f32 %v14430_v1, %v4828_v36  ;;  %v4805_v47 = vmul.f32 %v10132_v6, %v14385_v7 }
 0xd67   :  { %v4746_v58 = vpop.xlane.xlu1 %4745 }
 0xd68   :  { %10139 = vrsqrt.f32 %v4777_v4  ;;  %v4762_v14 = vmul.f32 0.015625, %v4746_v58  ;;  %8505 = vmatmul.mubr.msk.f32.gmra.mxu0 %vm217_vm0, %v4852_v62  ;;  %v4829_v43 = vmul.f32 %v14424_v28, %v4805_v47 }
 0xd69   :  { %v10134_v3 = vpop.eup %10133  ;;  %5061 = vmatprep.mubr.f32.mxu0 %v18010_v40 }
 0xd6a   :  { %v4778_v25 = vadd.f32 1e-05, %v4762_v14  ;;  %v4853_v46 = vadd.f32 %v14430_v1, %v4829_v43  ;;  %v4806_v53 = vmul.f32 %v10134_v3, %v14391_v38 }
 0xd6c   :  { %10141 = vrsqrt.f32 %v4778_v25  ;;  %8506 = vmatmul.mubr.msk.f32.gmra.mxu0 %vm217_vm0, %v4853_v46  ;;  %v4830_v7 = vmul.f32 %v14424_v28, %v4806_v53 }
 0xd6d   :  { %v10136_v13 = vpop.eup %10135  ;;  %5067 = vmatprep.mubr.f32.mxu0 %v18010_v40 }
 0xd6e   :  { %v4854_v52 = vadd.f32 %v14430_v1, %v4830_v7  ;;  %v4807_v16 = vmul.f32 %v10136_v13, %v14397_v59 }
 0xd70   :  { %8507 = vmatmul.mubr.msk.f32.gmra.mxu0 %vm217_vm0, %v4854_v52  ;;  %v4831_v23 = vmul.f32 %v14424_v28, %v4807_v16 }
 0xd71   :  { %v10138_v27 = vpop.eup %10137  ;;  %5073 = vmatprep.mubr.f32.mxu0 %v18010_v40 }
 0xd72   :  { %v4855_v38 = vadd.f32 %v14430_v1, %v4831_v23  ;;  %v4808_v9 = vmul.f32 %v10138_v27, %v14403_v30 }
 0xd74   :  { %8508 = vmatmul.mubr.msk.f32.gmra.mxu0 %vm217_vm0, %v4855_v38  ;;  %v4832_v32 = vmul.f32 %v14424_v28, %v4808_v9 }
 0xd75   :  { %v10140_v44 = vpop.eup %10139  ;;  %5079 = vmatprep.mubr.f32.mxu0 %v18010_v40 }
 0xd76   :  { %v4856_v59 = vadd.f32 %v14430_v1, %v4832_v32  ;;  %v4809_v60 = vmul.f32 %v10140_v44, %v14409_v56  ;;  %v8495_v56 = vld [vmem:[%s17172_s6 + $0x2] sm:$0x3] }
 0xd77   :  { %v14514_v26 = vrot.slane %v8495_v56, %v18011_v34  ;;  %v14517_v8 = vrot.slane %v8495_v56, %v18012_v63 }
 0xd78   :  { %8509 = vmatmul.mubr.msk.f32.gmra.mxu0 %vm217_vm0, %v4856_v59  ;;  %v4833_v48 = vmul.f32 %v14424_v28, %v4809_v60 }
 0xd79   :  { %v10142_v54 = vpop.eup %10141  ;;  %5085 = vmatprep.mubr.f32.mxu0 %v18010_v40 }
 0xd7a   :  { %v4857_v30 = vadd.f32 %v14430_v1, %v4833_v48  ;;  %v4810_v61 = vmul.f32 %v10142_v54, %v14415_v41 }
 0xd7c   :  { %8510 = vmatmul.mubr.msk.f32.gmra.mxu0 %vm217_vm0, %v4857_v30  ;;  %v4834_v10 = vmul.f32 %v14424_v28, %v4810_v61 }
 0xd7d   :  { %5091 = vmatprep.mubr.f32.mxu0 %v18010_v40 }
 0xd7e   :  { %v4858_v17 = vadd.f32 %v14430_v1, %v4834_v10 }
 0xd80   :  { %8511 = vmatmul.mubr.msk.f32.gmra.mxu0 %vm217_vm0, %v4858_v17 }
 0xe04   :  { %v5003_v41 = vpop.f32.mrf.mxu0 }
 0xe05   :  { %v14520_v5 = vadd.f32 %v5003_v41, %v14514_v26 }
 0xe06   :  { %v5005_v28 = vpop.f32.mrf.mxu0 }
 0xe07   :  { %v14523_v49 = vadd.f32 %v5005_v28, %v14517_v8  ;;  %9557 = vmatprep.mubr.msk.f32.mxu1 %vm797_vm1, %v14520_v5 }
 0xe08   :  { %v5009_v1 = vpop.f32.mrf.mxu0 }
 0xe09   :  { %18029 = vst [vmem:[#allocation141_spill] sm:$0xff] %v14523_v49  ;;  %v14528_v11 = vadd.f32 %v5009_v1, %v14514_v26 }
 0xe0a   :  { %v5011_v35 = vpop.f32.mrf.mxu0 }
 0xe0b   :  { %v14531_v36 = vadd.f32 %v5011_v35, %v14517_v8 }
 0xe0c   :  { %v5015_v6 = vpop.f32.mrf.mxu0 }
 0xe0d   :  { %18030 = vst [vmem:[#allocation166_spill] sm:$0xff] %v14531_v36  ;;  %v14534_v4 = vadd.f32 %v5015_v6, %v14514_v26 }
 0xe0e   :  { %v5017_v62 = vpop.f32.mrf.mxu0 }
 0xe0f   :  { %v14537_v47 = vadd.f32 %v5017_v62, %v14517_v8 }
 0xe10   :  { %v5021_v58 = vpop.f32.mrf.mxu0 }
 0xe11   :  { %18031 = vst [vmem:[#allocation142_spill] sm:$0xff] %v14537_v47  ;;  %v14540_v14 = vadd.f32 %v5021_v58, %v14514_v26 }
 0xe12   :  { %v5023_v43 = vpop.f32.mrf.mxu0 }
 0xe13   :  { %v14543_v3 = vadd.f32 %v5023_v43, %v14517_v8 }
 0xe14   :  { %v5027_v25 = vpop.f32.mrf.mxu0 }
 0xe15   :  { %18032 = vst [vmem:[#allocation144_spill] sm:$0xff] %v14543_v3  ;;  %v14546_v46 = vadd.f32 %v5027_v25, %v14514_v26 }
 0xe16   :  { %v5029_v53 = vpop.f32.mrf.mxu0 }
 0xe17   :  { %v14549_v7 = vadd.f32 %v5029_v53, %v14517_v8 }
 0xe18   :  { %v5033_v13 = vpop.f32.mrf.mxu0 }
 0xe19   :  { %18033 = vst [vmem:[#allocation145_spill] sm:$0xff] %v14549_v7 }
 0xe1a   :  { %v5035_v52 = vpop.f32.mrf.mxu0 }
 0xe1b   :  { %v14552_v16 = vadd.f32 %v5035_v52, %v14517_v8 }
 0xe1c   :  { %v5039_v23 = vpop.f32.mrf.mxu0 }
 0xe1d   :  { %18034 = vst [vmem:[#allocation158_spill] sm:$0xff] %v14552_v16 }
 0xe1e   :  { %v14554_v27 = vpop.f32.mrf.mxu0 }
 0xe20   :  { %v5045_v38 = vpop.f32.mrf.mxu0 }
 0xe22   :  { %v14556_v9 = vpop.f32.mrf.mxu0 }
 0xe23   :  { %18035 = vst [vmem:[#allocation161_spill] sm:$0xff] %v14556_v9 }
 0xe24   :  { %v5051_v32 = vpop.f32.mrf.mxu0 }
 0xe26   :  { %v14558_v44 = vpop.f32.mrf.mxu0 }
 0xe28   :  { %v5057_v59 = vpop.f32.mrf.mxu0 }
 0xe29   :  { %v14598_v53 = vadd.f32 %v5057_v59, %v14514_v26  ;;  %v14618_v59 = vadd.f32 %v5033_v13, %v14514_v26 }
 0xe2a   :  { %v14560_v60 = vpop.f32.mrf.mxu0 }
 0xe2c   :  { %v5063_v48 = vpop.f32.mrf.mxu0 }
 0xe2d   :  { %v14601_v52 = vadd.f32 %v5063_v48, %v14514_v26  ;;  %v14621_v48 = vadd.f32 %v5039_v23, %v14514_v26 }
 0xe2e   :  { %v14562_v54 = vpop.f32.mrf.mxu0 }
 0xe30   :  { %v5069_v30 = vpop.f32.mrf.mxu0 }
 0xe31   :  { %v14588_v43 = vadd.f32 %v5069_v30, %v14514_v26  ;;  %v14608_v30 = vadd.f32 %v5045_v38, %v14514_v26 }
 0xe32   :  { %v14564_v61 = vpop.f32.mrf.mxu0 }
 0xe34   :  { %v5075_v10 = vpop.f32.mrf.mxu0 }
 0xe35   :  { %v14591_v25 = vadd.f32 %v5075_v10, %v14514_v26  ;;  %v14611_v10 = vadd.f32 %v5051_v32, %v14514_v26 }
 0xe36   :  { %v14566_v17 = vpop.f32.mrf.mxu0 }
 0xe38   :  { %v5081_v56 = vpop.f32.mrf.mxu0 }
 0xe39   :  { %v14578_v62 = vadd.f32 %v5081_v56, %v14514_v26 }
 0xe3a   :  { %v14568_v41 = vpop.f32.mrf.mxu0 }
 0xe3c   :  { %v5087_v28 = vpop.f32.mrf.mxu0 }
 0xe3d   :  { %v14571_v1 = vadd.f32 %v5087_v28, %v14514_v26 }
 0xe3e   :  { %v14573_v35 = vpop.f32.mrf.mxu0 }
 0xe3f   :  { %5183 = vrot.lane.b32.xlu1 %v14571_v1, %s10411_s24 }
 0xe40   :  { %v5093_v6 = vpop.f32.mrf.mxu0 }
 0xe41   :  { %v14581_v58 = vadd.f32 %v5093_v6, %v14514_v26 }
 0xe43   :  { %5185 = vrot.lane.b32.xlu0 %v14581_v58, %s10411_s24  ;;  %5181 = vrot.lane.b32.xlu1 %v14578_v62, %s10411_s24 }
 0xe47   :  { %5179 = vrot.lane.b32.xlu0 %v14591_v25, %s10411_s24  ;;  %5177 = vrot.lane.b32.xlu1 %v14588_v43, %s10411_s24 }
 0xe4b   :  { %5175 = vrot.lane.b32.xlu0 %v14601_v52, %s10411_s24  ;;  %5173 = vrot.lane.b32.xlu1 %v14598_v53, %s10411_s24 }
 0xe4f   :  { %5171 = vrot.lane.b32.xlu0 %v14611_v10, %s10411_s24  ;;  %5169 = vrot.lane.b32.xlu1 %v14608_v30, %s10411_s24 }
 0xe53   :  { %5167 = vrot.lane.b32.xlu0 %v14621_v48, %s10411_s24  ;;  %5165 = vrot.lane.b32.xlu1 %v14618_v59, %s10411_s24 }
 0xe57   :  { %5163 = vrot.lane.b32.xlu0 %v14546_v46, %s10411_s24  ;;  %5161 = vrot.lane.b32.xlu1 %v14540_v14, %s10411_s24 }
 0xe5b   :  { %5159 = vrot.lane.b32.xlu0 %v14534_v4, %s10411_s24  ;;  %5157 = vrot.lane.b32.xlu1 %v14528_v11, %s10411_s24 }
 0xe5f   :  { %5155 = vrot.lane.b32.xlu0 %v14520_v5, %s10411_s24  ;;  %5568 = vrot.lane.b32.xlu1 %v14571_v1, %s10412_s25 }
 0xe63   :  { %5566 = vrot.lane.b32.xlu0 %v14578_v62, %s10412_s25  ;;  %5564 = vrot.lane.b32.xlu1 %v14591_v25, %s10412_s25 }
 0xe67   :  { %5562 = vrot.lane.b32.xlu0 %v14588_v43, %s10412_s25  ;;  %5560 = vrot.lane.b32.xlu1 %v14601_v52, %s10412_s25 }
 0xe6b   :  { %5556 = vrot.lane.b32.xlu0 %v14611_v10, %s10412_s25  ;;  %5558 = vrot.lane.b32.xlu1 %v14598_v53, %s10412_s25 }
 0xe6f   :  { %5552 = vrot.lane.b32.xlu0 %v14621_v48, %s10412_s25  ;;  %5554 = vrot.lane.b32.xlu1 %v14608_v30, %s10412_s25 }
 0xe73   :  { %5548 = vrot.lane.b32.xlu0 %v14546_v46, %s10412_s25  ;;  %5550 = vrot.lane.b32.xlu1 %v14618_v59, %s10412_s25 }
 0xe77   :  { %5570 = vrot.lane.b32.xlu0 %v14581_v58, %s10412_s25 }
 0xeb1   :  { %v5184_v26 = vpop.permute.xlu1 %5183 }
 0xeb5   :  { %v5186_v13 = vpop.permute.xlu0 %5185  ;;  %v5182_v38 = vpop.permute.xlu1 %5181 }
 0xeb6   :  { %9525 = vmatprep.subr.msk.mxu1 %vm797_vm1, %v5186_v13 }
 0xeb7   :  { %9526 = vmatpush3.xpose.msk.msra.mxu1 %vm797_vm1, %v5186_v13 }
 0xeb8   :  { %9527 = vmatprep.subr.msk.mxu1 %vm797_vm1, %v5184_v26 }
 0xeb9   :  { %v5180_v23 = vpop.permute.xlu0 %5179  ;;  %v5178_v28 = vpop.permute.xlu1 %5177 }
 0xebb   :  { %9528 = vmatpush3.xpose.msk.msra.mxu1 %vm797_vm1, %v5184_v26 }
 0xebc   :  { %9529 = vmatprep.subr.msk.mxu1 %vm797_vm1, %v5182_v38 }
 0xebd   :  { %v5176_v32 = vpop.permute.xlu0 %5175  ;;  %v5174_v26 = vpop.permute.xlu1 %5173 }
 0xebf   :  { %9530 = vmatpush3.xpose.msk.msra.mxu1 %vm797_vm1, %v5182_v38 }
 0xec0   :  { %9531 = vmatprep.subr.msk.mxu1 %vm797_vm1, %v5180_v23 }
 0xec1   :  { %v5172_v56 = vpop.permute.xlu0 %5171 }
 0xec3   :  { %9532 = vmatpush3.xpose.msk.msra.mxu1 %vm797_vm1, %v5180_v23  ;;  %v5170_v23 = vpop.permute.xlu1 %5169 }
 0xec4   :  { %9533 = vmatprep.subr.msk.mxu1 %vm797_vm1, %v5178_v28 }
 0xec5   :  { %v5168_v6 = vpop.permute.xlu0 %5167 }
 0xec7   :  { %9534 = vmatpush3.xpose.msk.msra.mxu1 %vm797_vm1, %v5178_v28  ;;  %v5166_v34 = vpop.permute.xlu1 %5165 }
 0xec8   :  { %9535 = vmatprep.subr.msk.mxu1 %vm797_vm1, %v5176_v32 }
 0xec9   :  { %v5164_v13 = vpop.permute.xlu0 %5163 }
 0xecb   :  { %9536 = vmatpush3.xpose.msk.msra.mxu1 %vm797_vm1, %v5176_v32 }
 0xecc   :  { %9537 = vmatprep.subr.msk.mxu1 %vm797_vm1, %v5174_v26 }
 0xecd   :  { %v5160_v38 = vpop.permute.xlu0 %5159 }
 0xecf   :  { %9538 = vmatpush3.xpose.msk.msra.mxu1 %vm797_vm1, %v5174_v26  ;;  %v5162_v26 = vpop.permute.xlu1 %5161 }
 0xed0   :  { %9539 = vmatprep.subr.msk.mxu1 %vm797_vm1, %v5172_v56 }
 0xed1   :  { %v5156_v63 = vpop.permute.xlu0 %5155 }
 0xed3   :  { %9540 = vmatpush3.xpose.msk.msra.mxu1 %vm797_vm1, %v5172_v56  ;;  %v5158_v56 = vpop.permute.xlu1 %5157 }
 0xed4   :  { %9541 = vmatprep.subr.msk.mxu1 %vm797_vm1, %v5170_v23 }
 0xed5   :  { %v5567_v28 = vpop.permute.xlu0 %5566 }
 0xed7   :  { %9542 = vmatpush3.xpose.msk.msra.mxu1 %vm797_vm1, %v5170_v23  ;;  %v5569_v15 = vpop.permute.xlu1 %5568 }
 0xed8   :  { %9543 = vmatprep.subr.msk.mxu1 %vm797_vm1, %v5168_v6 }
 0xed9   :  { %v5563_v32 = vpop.permute.xlu0 %5562 }
 0xedb   :  { %9544 = vmatpush3.xpose.msk.msra.mxu1 %vm797_vm1, %v5168_v6 }
 0xedc   :  { %9545 = vmatprep.subr.msk.mxu1 %vm797_vm1, %v5166_v34 }
 0xedd   :  { %v5557_v42 = vpop.permute.xlu0 %5556 }
 0xedf   :  { %9546 = vmatpush3.xpose.msk.msra.mxu1 %vm797_vm1, %v5166_v34  ;;  %v5565_v34 = vpop.permute.xlu1 %5564 }
 0xee0   :  { %9547 = vmatprep.subr.msk.mxu1 %vm797_vm1, %v5164_v13 }
 0xee1   :  { %v5553_v23 = vpop.permute.xlu0 %5552 }
 0xee3   :  { %9548 = vmatpush3.xpose.msk.msra.mxu1 %vm797_vm1, %v5164_v13 }
 0xee4   :  { %9549 = vmatprep.subr.msk.mxu1 %vm797_vm1, %v5162_v26 }
 0xee5   :  { %v5549_v6 = vpop.permute.xlu0 %5548 }
 0xee7   :  { %9550 = vmatpush3.xpose.msk.msra.mxu1 %vm797_vm1, %v5162_v26  ;;  %v5561_v26 = vpop.permute.xlu1 %5560 }
 0xee8   :  { %9551 = vmatprep.subr.msk.mxu1 %vm797_vm1, %v5160_v38 }
 0xee9   :  { %v5571_v13 = vpop.permute.xlu0 %5570 }
 0xeeb   :  { %9552 = vmatpush3.xpose.msk.msra.mxu1 %vm797_vm1, %v5160_v38 }
 0xeec   :  { %9553 = vmatprep.subr.msk.mxu1 %vm797_vm1, %v5158_v56 }
 0xeef   :  { %9554 = vmatpush3.xpose.msk.msra.mxu1 %vm797_vm1, %v5158_v56 }
 0xef0   :  { %9555 = vmatprep.subr.msk.mxu1 %vm797_vm1, %v5156_v63 }
 0xef3   :  { %9556 = vmatpush3.xpose.msk.msra.mxu1 %vm797_vm1, %v5156_v63  ;;  %v5559_v63 = vpop.permute.xlu1 %5558 }
 0xef4   :  { %9581 = vmatprep.subr.mxu1 %v5571_v13 }
 0xef6   :  { %9558 = vmatmul.mubr.msk.f32.vlgmr.msra.gmra.mxu1 %vm797_vm1, %v14528_v11 }
 0xef7   :  { %9560 = vmatprep.mubr.msk.f32.mxu1 %vm797_vm1, %v14534_v4  ;;  %9582 = vmatpush3.msra.mxu1 %v5571_v13 }
 0xef8   :  { %9583 = vmatprep.subr.mxu1 %v5569_v15 }
 0xef9   :  { %9584 = vmatpush3.msra.mxu1 %v5569_v15  ;;  %v5555_v15 = vpop.permute.xlu1 %5554 }
 0xefa   :  { %9561 = vmatmul.mubr.msk.f32.gmra.mxu1 %vm797_vm1, %v14540_v14  ;;  %9585 = vmatprep.subr.mxu1 %v5567_v28 }
 0xefb   :  { %9563 = vmatprep.mubr.msk.f32.mxu1 %vm797_vm1, %v14546_v46  ;;  %9586 = vmatpush3.msra.mxu1 %v5567_v28 }
 0xefc   :  { %9587 = vmatprep.subr.mxu1 %v5565_v34 }
 0xefd   :  { %9588 = vmatpush3.msra.mxu1 %v5565_v34  ;;  %v5551_v38 = vpop.permute.xlu1 %5550  ;;  %v8517_v34 = vld [vmem:[%s17168_s2 + $0x118] sm:$0xff] }
 0xefe   :  { %9564 = vmatmul.mubr.msk.f32.gmra.mxu1 %vm797_vm1, %v14618_v59  ;;  %9589 = vmatprep.subr.mxu1 %v5563_v32 }
 0xeff   :  { %9566 = vmatprep.mubr.msk.f32.mxu1 %vm797_vm1, %v14621_v48  ;;  %9590 = vmatpush3.msra.mxu1 %v5563_v32  ;;  %v8514_v32 = vld [vmem:[%s17168_s2 + $0x100] sm:$0xff] }
 0xf00   :  { %9591 = vmatprep.subr.mxu1 %v5561_v26 }
 0xf01   :  { %9592 = vmatpush3.msra.mxu1 %v5561_v26  ;;  %v8516_v26 = vld [vmem:[%s17168_s2 + $0x110] sm:$0xff] }
 0xf02   :  { %9567 = vmatmul.mubr.msk.f32.gmra.mxu1 %vm797_vm1, %v14608_v30  ;;  %9593 = vmatprep.subr.mxu1 %v5559_v63 }
 0xf03   :  { %9569 = vmatprep.mubr.msk.f32.mxu1 %vm797_vm1, %v14611_v10  ;;  %9594 = vmatpush3.msra.mxu1 %v5559_v63 }
 0xf04   :  { %9595 = vmatprep.subr.mxu1 %v5557_v42 }
 0xf05   :  { %9596 = vmatpush3.msra.mxu1 %v5557_v42  ;;  %v8515_v42 = vld [vmem:[%s17168_s2 + $0x108] sm:$0xff] }
 0xf06   :  { %9570 = vmatmul.mubr.msk.f32.gmra.mxu1 %vm797_vm1, %v14598_v53  ;;  %9597 = vmatprep.subr.mxu1 %v5555_v15 }
 0xf07   :  { %9572 = vmatprep.mubr.msk.f32.mxu1 %vm797_vm1, %v14601_v52  ;;  %9598 = vmatpush3.msra.mxu1 %v5555_v15 }
 0xf08   :  { %9599 = vmatprep.subr.mxu1 %v5553_v23 }
 0xf09   :  { %9600 = vmatpush3.msra.mxu1 %v5553_v23 }
 0xf0a   :  { %9573 = vmatmul.mubr.msk.f32.gmra.mxu1 %vm797_vm1, %v14588_v43  ;;  %9601 = vmatprep.subr.mxu1 %v5551_v38 }
 0xf0b   :  { %9575 = vmatprep.mubr.msk.f32.mxu1 %vm797_vm1, %v14591_v25  ;;  %9602 = vmatpush3.msra.mxu1 %v5551_v38 }
 0xf0c   :  { %9603 = vmatprep.subr.mxu1 %v5549_v6 }
 0xf0d   :  { %9604 = vmatpush3.msra.mxu1 %v5549_v6 }
 0xf0e   :  { %9576 = vmatmul.mubr.msk.f32.gmra.mxu1 %vm797_vm1, %v14578_v62 }
 0xf0f   :  { %9578 = vmatprep.mubr.msk.f32.mxu1 %vm797_vm1, %v14571_v1 }
 0xf12   :  { %9579 = vmatmul.mubr.msk.f32.gmra.mxu1 %vm797_vm1, %v14581_v58 }
 0xfb6   :  { %v9559_v28 = vpop.f32.mrf.mxu1 }
 0xfb7   :  { %v14729_v56 = vadd.f32 %v9559_v28, %v8515_v42  ;;  %v8519_v42 = vld [vmem:[%s17168_s2 + $0x128] sm:$0xff] }
 0xfb8   :  { %v5317_v23 = vpop.f32.mrf.mxu1 }
 0xfb9   :  { %v14731_v6 = vadd.f32 %v8514_v32, %v5317_v23  ;;  %5398 = vmax.xlane.f32.xlu0 %v14729_v56  ;;  %v8518_v32 = vld [vmem:[%s17168_s2 + $0x120] sm:$0xff] }
 0xfba   :  { %v9562_v13 = vpop.f32.mrf.mxu1 }
 0xfbb   :  { %5396 = vmax.xlane.f32.xlu1 %v14731_v6  ;;  %v14741_v15 = vadd.f32 %v9562_v13, %v8517_v34  ;;  %v8521_v13 = vld [vmem:[%s17168_s2 + $0x138] sm:$0xff] }
 0xfbc   :  { %v5327_v63 = vpop.f32.mrf.mxu1 }
 0xfbd   :  { %v14743_v38 = vadd.f32 %v8516_v26, %v5327_v63  ;;  %v8520_v63 = vld [vmem:[%s17168_s2 + $0x130] sm:$0xff] }
 0xfbe   :  { %v9565_v28 = vpop.f32.mrf.mxu1 }
 0xfbf   :  { %5400 = vmax.xlane.f32.xlu0 %v14743_v38  ;;  %5402 = vmax.xlane.f32.xlu1 %v14741_v15  ;;  %v14753_v39 = vadd.f32 %v9565_v28, %v8519_v42  ;;  %v8523_v28 = vld [vmem:[%s17168_s2 + $0x148] sm:$0xff] }
 0xfc0   :  { %v5337_v23 = vpop.f32.mrf.mxu1 }
 0xfc1   :  { %v14755_v34 = vadd.f32 %v8518_v32, %v5337_v23  ;;  %v8522_v23 = vld [vmem:[%s17168_s2 + $0x140] sm:$0xff] }
 0xfc2   :  { %v9568_v26 = vpop.f32.mrf.mxu1 }
 0xfc3   :  { %5404 = vmax.xlane.f32.xlu0 %v14755_v34  ;;  %5406 = vmax.xlane.f32.xlu1 %v14753_v39  ;;  %v14765_v22 = vadd.f32 %v9568_v26, %v8521_v13 }
 0xfc4   :  { %v5347_v21 = vpop.f32.mrf.mxu1 }
 0xfc5   :  { %v14767_v42 = vadd.f32 %v8520_v63, %v5347_v21  ;;  %v8525_v21 = vld [vmem:[%s17168_s2 + $0x158] sm:$0xff]  ;;  %v8524_v63 = vld [vmem:[%s17168_s2 + $0x150] sm:$0xff] }
 0xfc6   :  { %v9571_v32 = vpop.f32.mrf.mxu1 }
 0xfc7   :  { %5408 = vmax.xlane.f32.xlu0 %v14767_v42  ;;  %5410 = vmax.xlane.f32.xlu1 %v14765_v22  ;;  %v14777_v24 = vadd.f32 %v9571_v32, %v8523_v28 }
 0xfc8   :  { %v5357_v20 = vpop.f32.mrf.mxu1 }
 0xfc9   :  { %v14779_v13 = vadd.f32 %v8522_v23, %v5357_v20  ;;  %v8527_v20 = vld [vmem:[%s17168_s2 + $0x168] sm:$0xff]  ;;  %v8526_v23 = vld [vmem:[%s17168_s2 + $0x160] sm:$0xff] }
 0xfca   :  { %v9574_v26 = vpop.f32.mrf.mxu1 }
 0xfcb   :  { %5412 = vmax.xlane.f32.xlu0 %v14779_v13  ;;  %5414 = vmax.xlane.f32.xlu1 %v14777_v24  ;;  %v14789_v37 = vadd.f32 %v9574_v26, %v8525_v21 }
 0xfcc   :  { %v5367_v2 = vpop.f32.mrf.mxu1 }
 0xfcd   :  { %v14791_v28 = vadd.f32 %v8524_v63, %v5367_v2  ;;  %v8529_v2 = vld [vmem:[%s17168_s2 + $0x178] sm:$0xff]  ;;  %v8528_v63 = vld [vmem:[%s17168_s2 + $0x170] sm:$0xff] }
 0xfce   :  { %v9577_v32 = vpop.f32.mrf.mxu1 }
 0xfcf   :  { %5416 = vmax.xlane.f32.xlu0 %v14791_v28  ;;  %5418 = vmax.xlane.f32.xlu1 %v14789_v37  ;;  %v14801_v51 = vadd.f32 %v9577_v32, %v8527_v20 }
 0xfd0   :  { %v5377_v55 = vpop.f32.mrf.mxu1 }
 0xfd1   :  { %v14803_v21 = vadd.f32 %v8526_v23, %v5377_v55 }
 0xfd2   :  { %v9580_v26 = vpop.f32.mrf.mxu1 }
 0xfd3   :  { %5420 = vmax.xlane.f32.xlu0 %v14803_v21  ;;  %5422 = vmax.xlane.f32.xlu1 %v14801_v51  ;;  %v14813_v29 = vadd.f32 %v9580_v26, %v8529_v2 }
 0xfd4   :  { %v5387_v31 = vpop.f32.mrf.mxu1 }
 0xfd5   :  { %v14815_v20 = vadd.f32 %v8528_v63, %v5387_v31 }
 0xfd7   :  { %5424 = vmax.xlane.f32.xlu0 %v14815_v20  ;;  %5426 = vmax.xlane.f32.xlu1 %v14813_v29 }
 0xfe8   :  { %5546 = vrot.lane.b32.xlu1 %v14540_v14, %s10412_s25 }
 0xfed   :  { %5544 = vrot.lane.b32.xlu0 %v14534_v4, %s10412_s25 }
0x1042   :  { %v5399_v55 = vpop.xlane.xlu0 %5398 }
0x1043   :  { %v5429_v32 = vsub.f32 %v14729_v56, %v5399_v55 }
0x1044   :  { %v5397_v23 = vpop.xlane.xlu1 %5396 }
0x1045   :  { %v5446_v50 = vmul.f32 1.442695, %v5429_v32  ;;  %v5428_v2 = vsub.f32 %v14731_v6, %v5397_v23 }
0x1047   :  { %10143 = vpow2.f32 %v5446_v50  ;;  %v5444_v31 = vmul.f32 1.442695, %v5428_v2 }
0x1048   :  { %v5401_v26 = vpop.xlane.xlu0 %5400  ;;  %v5403_v63 = vpop.xlane.xlu1 %5402 }
0x1049   :  { %10145 = vpow2.f32 %v5444_v31  ;;  %v5431_v49 = vsub.f32 %v14741_v15, %v5403_v63  ;;  %v5430_v36 = vsub.f32 %v14743_v38, %v5401_v26 }
0x104b   :  { %v5450_v47 = vmul.f32 1.442695, %v5431_v49  ;;  %v5448_v7 = vmul.f32 1.442695, %v5430_v36 }
0x104c   :  { %v5405_v45 = vpop.xlane.xlu0 %5404  ;;  %v5407_v33 = vpop.xlane.xlu1 %5406 }
0x104d   :  { %v5432_v3 = vsub.f32 %v14755_v34, %v5405_v45  ;;  %v5433_v16 = vsub.f32 %v14753_v39, %v5407_v33  ;;  %10147 = vpow2.f32 %v5450_v47 }
0x104e   :  { %10149 = vpow2.f32 %v5448_v7 }
0x1050   :  { %v5409_v19 = vpop.xlane.xlu0 %5408  ;;  %v5411_v57 = vpop.xlane.xlu1 %5410 }
0x1054   :  { %v14825_v18 = vpop.eup %10143  ;;  %v5413_v0 = vpop.xlane.xlu0 %5412 }
0x1055   :  { %18036 = vst [vmem:[#allocation162_spill] sm:$0xff] %v14825_v18  ;;  %v5415_v12 = vpop.xlane.xlu1 %5414  ;;  %5478 = vadd.xlane.f32.xlu0 %v14825_v18  ;;  %v5434_v18 = vsub.f32 %v14767_v42, %v5409_v19  ;;  %v5436_v15 = vsub.f32 %v14779_v13, %v5413_v0 }
0x1056   :  { %v14828_v56 = vpop.eup %10145  ;;  %v5437_v49 = vsub.f32 %v14777_v24, %v5415_v12 }
0x1057   :  { %18037 = vst [vmem:[#allocation168_spill] sm:$0xff] %v14828_v56  ;;  %5476 = vadd.xlane.f32.xlu1 %v14828_v56  ;;  %v5454_v56 = vmul.f32 1.442695, %v5433_v16  ;;  %v5456_v9 = vmul.f32 1.442695, %v5434_v18 }
0x1058   :  { %v5417_v6 = vpop.xlane.xlu0 %5416  ;;  %v5460_v45 = vmul.f32 1.442695, %v5436_v15  ;;  %v5462_v33 = vmul.f32 1.442695, %v5437_v49  ;;  %v18043_v49 = vld [vmem:[#allocation144_spill] sm:$0xff] }
0x1059   :  { %v5419_v50 = vpop.xlane.xlu1 %5418  ;;  %v5438_v39 = vsub.f32 %v14791_v28, %v5417_v6 }
0x105a   :  { %v5439_v19 = vsub.f32 %v14789_v37, %v5419_v50 }
0x105b   :  { %v5464_v36 = vmul.f32 1.442695, %v5438_v39 }
0x105c   :  { %v5421_v55 = vpop.xlane.xlu0 %5420  ;;  %v5466_v0 = vmul.f32 1.442695, %v5439_v19  ;;  %v18040_v6 = vld [vmem:[#allocation162_spill] sm:$0xff] }
0x105d   :  { %v5423_v32 = vpop.xlane.xlu1 %5422 }
0x105e   :  { %v5441_v18 = vsub.f32 %v14801_v51, %v5423_v32 }
0x1060   :  { %v5425_v23 = vpop.xlane.xlu0 %5424 }
0x1061   :  { %v5427_v2 = vpop.xlane.xlu1 %5426  ;;  %v5442_v47 = vsub.f32 %v14815_v20, %v5425_v23  ;;  %v18041_v23 = vld [vmem:[#allocation158_spill] sm:$0xff] }
0x1062   :  { %v5443_v7 = vsub.f32 %v14813_v29, %v5427_v2 }
0x1063   :  { %v5472_v51 = vmul.f32 1.442695, %v5442_v47 }
0x1064   :  { %v5545_v40 = vpop.permute.xlu0 %5544  ;;  %v5474_v34 = vmul.f32 1.442695, %v5443_v7 }
0x1065   :  { %v5547_v31 = vpop.permute.xlu1 %5546 }
0x1066   :  { %9605 = vmatprep.subr.mxu1 %v5547_v31 }
0x1067   :  { %9606 = vmatpush3.msra.mxu1 %v5547_v31  ;;  %v5452_v31 = vmul.f32 1.442695, %v5432_v3  ;;  %v5470_v3 = vmul.f32 1.442695, %v5441_v18 }
0x1068   :  { %9607 = vmatprep.subr.mxu1 %v5545_v40  ;;  %5542 = vrot.lane.b32.xlu1 %v14528_v11, %s10412_s25 }
0x1069   :  { %9608 = vmatpush3.msra.mxu1 %v5545_v40  ;;  %v5435_v40 = vsub.f32 %v14765_v22, %v5411_v57  ;;  %10151 = vpow2.f32 %v5452_v31  ;;  %v5440_v57 = vsub.f32 %v14803_v21, %v5421_v55  ;;  %v14846_v22 = vpop.eup %10147 }
0x106a   :  { %10153 = vpow2.f32 %v5454_v56  ;;  %v14850_v12 = vpop.eup %10149 }
0x106b   :  { %5540 = vrot.lane.b32.xlu0 %v14520_v5, %s10412_s25  ;;  %v5458_v38 = vmul.f32 1.442695, %v5435_v40  ;;  %10155 = vpow2.f32 %v5456_v9  ;;  %v5468_v24 = vmul.f32 1.442695, %v5440_v57  ;;  %v18042_v40 = vld [vmem:[#allocation145_spill] sm:$0xff] }
0x106d   :  { %10157 = vpow2.f32 %v5458_v38 }
0x106e   :  { %10159 = vpow2.f32 %v5460_v45 }
0x106f   :  { %10161 = vpow2.f32 %v5462_v33 }
0x1070   :  { %10163 = vpow2.f32 %v5464_v36  ;;  %v18044_v36 = vld [vmem:[#allocation142_spill] sm:$0xff] }
0x1071   :  { %10165 = vpow2.f32 %v5466_v0 }
0x1072   :  { %10167 = vpow2.f32 %v5468_v24 }
0x1073   :  { %10169 = vpow2.f32 %v5470_v3 }
0x1074   :  { %10171 = vpow2.f32 %v5472_v51  ;;  %v18045_v51 = vld [vmem:[#allocation166_spill] sm:$0xff] }
0x1075   :  { %10173 = vpow2.f32 %v5474_v34 }
0x1076   :  { %v14854_v37 = vpop.eup %10151 }
0x1077   :  { %v14858_v16 = vpop.eup %10153 }
0x1078   :  { %v14861_v9 = vpop.eup %10155 }
0x107a   :  { %v14864_v42 = vpop.eup %10157 }
0x107b   :  { %v14867_v29 = vpop.eup %10159 }
0x107c   :  { %v14870_v13 = vpop.eup %10161 }
0x107d   :  { %v14873_v28 = vpop.eup %10163 }
0x107e   :  { %v14876_v21 = vpop.eup %10165 }
0x107f   :  { %v14879_v20 = vpop.eup %10167 }
0x1080   :  { %v14882_v26 = vpop.eup %10169 }
0x1081   :  { %v14885_v63 = vpop.eup %10171 }
0x1082   :  { %v14888_v56 = vpop.eup %10173 }
0x108a   :  { %5482 = vadd.xlane.f32.xlu0 %v14846_v22 }
0x108c   :  { %5480 = vadd.xlane.f32.xlu1 %v14850_v12 }
0x108e   :  { %5484 = vadd.xlane.f32.xlu0 %v14854_v37 }
0x1090   :  { %5486 = vadd.xlane.f32.xlu1 %v14858_v16 }
0x1092   :  { %5488 = vadd.xlane.f32.xlu0 %v14861_v9 }
0x1094   :  { %5490 = vadd.xlane.f32.xlu1 %v14864_v42 }
0x1096   :  { %5492 = vadd.xlane.f32.xlu0 %v14867_v29 }
0x1098   :  { %5494 = vadd.xlane.f32.xlu1 %v14870_v13 }
0x109a   :  { %5496 = vadd.xlane.f32.xlu0 %v14873_v28 }
0x109c   :  { %5498 = vadd.xlane.f32.xlu1 %v14876_v21 }
0x109e   :  { %5500 = vadd.xlane.f32.xlu0 %v14879_v20 }
0x10a0   :  { %5502 = vadd.xlane.f32.xlu1 %v14882_v26 }
0x10a2   :  { %5504 = vadd.xlane.f32.xlu0 %v14885_v63 }
0x10a4   :  { %5506 = vadd.xlane.f32.xlu1 %v14888_v56 }
0x10b5   :  { %5966 = vrot.lane.b32.xlu1 %v14528_v11, %s10413_s20  ;;  %v8564_v11 = vld [vmem:[%s17173_s7 + $0x50] sm:$0xff] }
0x10b8   :  { %5964 = vrot.lane.b32.xlu0 %v14520_v5, %s10413_s20  ;;  %v8565_v5 = vld [vmem:[%s17173_s7 + $0x58] sm:$0xff] }
0x10b9   :  { %5968 = vrot.lane.b32.xlu1 %v14534_v4, %s10413_s20  ;;  %9637 = vmatprep.subr.mxu0 %v8565_v5  ;;  %v8563_v4 = vld [vmem:[%s17173_s7 + $0x48] sm:$0xff] }
0x10ba   :  { %9638 = vmatpush3.msra.mxu0 %v8565_v5 }
0x10bb   :  { %9639 = vmatprep.subr.mxu0 %v8564_v11 }
0x10bc   :  { %5970 = vrot.lane.b32.xlu0 %v14540_v14, %s10413_s20  ;;  %9640 = vmatpush3.msra.mxu0 %v8564_v11  ;;  %v8562_v14 = vld [vmem:[%s17173_s7 + $0x40] sm:$0xff] }
0x10bd   :  { %5972 = vrot.lane.b32.xlu1 %v14546_v46, %s10413_s20  ;;  %9641 = vmatprep.subr.mxu0 %v8563_v4  ;;  %v5090_v46 = vadd.f32 %v14573_v35, %v14517_v8  ;;  %v5066_v35 = vadd.f32 %v14562_v54, %v14517_v8  ;;  %v5060_v54 = vadd.f32 %v14560_v60, %v14517_v8 }
0x10be   :  { %9642 = vmatpush3.msra.mxu0 %v8563_v4  ;;  %v18046_v4 = vld [vmem:[#allocation141_spill] sm:$0xff] }
0x10bf   :  { %9643 = vmatprep.subr.mxu0 %v8562_v14 }
0x10c0   :  { %5974 = vrot.lane.b32.xlu0 %v14618_v59, %s10413_s20  ;;  %9644 = vmatpush3.msra.mxu0 %v8562_v14 }
0x10c1   :  { %5976 = vrot.lane.b32.xlu1 %v14621_v48, %s10413_s20 }
0x10c4   :  { %5978 = vrot.lane.b32.xlu0 %v14608_v30, %s10413_s20 }
0x10c5   :  { %5980 = vrot.lane.b32.xlu1 %v14611_v10, %s10413_s20 }
0x10c8   :  { %5982 = vrot.lane.b32.xlu0 %v14598_v53, %s10413_s20  ;;  %v5078_v53 = vadd.f32 %v14566_v17, %v14517_v8  ;;  %v5054_v17 = vadd.f32 %v14558_v44, %v14517_v8  ;;  %v18038_v44 = vld [vmem:[#allocation161_spill] sm:$0xff] }
0x10c9   :  { %5984 = vrot.lane.b32.xlu1 %v14601_v52, %s10413_s20  ;;  %v5048_v30 = vadd.f32 %v18038_v44, %v14517_v8 }
0x10cc   :  { %5986 = vrot.lane.b32.xlu0 %v14588_v43, %s10413_s20  ;;  %v5095_v43 = vpop.f32.mrf.mxu0 }
0x10cd   :  { %5988 = vrot.lane.b32.xlu1 %v14591_v25, %s10413_s20  ;;  %v5096_v25 = vadd.f32 %v5095_v43, %v14517_v8 }
0x10d0   :  { %5990 = vrot.lane.b32.xlu0 %v14578_v62, %s10413_s20  ;;  %v5072_v62 = vadd.f32 %v14564_v61, %v14517_v8 }
0x10d1   :  { %5992 = vrot.lane.b32.xlu1 %v14571_v1, %s10413_s20  ;;  %v5084_v1 = vadd.f32 %v14568_v41, %v14517_v8  ;;  %v5042_v41 = vadd.f32 %v14554_v27, %v14517_v8  ;;  %v18039_v27 = vld [vmem:[#allocation168_spill] sm:$0xff] }
0x10d4   :  { %5994 = vrot.lane.b32.xlu0 %v14581_v58, %s10413_s20 }
0x10d5   :  { %6393 = vrot.lane.b32.xlu1 %v5090_v46, %s10411_s24 }
0x10d8   :  { %6395 = vrot.lane.b32.xlu0 %v5096_v25, %s10411_s24 }
0x10d9   :  { %6389 = vrot.lane.b32.xlu1 %v5078_v53, %s10411_s24 }
0x10dc   :  { %6391 = vrot.lane.b32.xlu0 %v5084_v1, %s10411_s24 }
0x10dd   :  { %6385 = vrot.lane.b32.xlu1 %v5066_v35, %s10411_s24 }
0x10de   :  { %v5479_v58 = vpop.xlane.xlu0 %5478 }
0x10df   :  { %10175 = vrcp.f32 %v5479_v58 }
0x10e0   :  { %6387 = vrot.lane.b32.xlu0 %v5072_v62, %s10411_s24  ;;  %v5477_v52 = vpop.xlane.xlu1 %5476 }
0x10e1   :  { %10177 = vrcp.f32 %v5477_v52  ;;  %6381 = vrot.lane.b32.xlu1 %v5054_v17, %s10411_s24 }
0x10e2   :  { %v5541_v10 = vpop.permute.xlu0 %5540 }
0x10e4   :  { %6383 = vrot.lane.b32.xlu0 %v5060_v54, %s10411_s24  ;;  %v5543_v61 = vpop.permute.xlu1 %5542 }
0x10e5   :  { %6377 = vrot.lane.b32.xlu1 %v5042_v41, %s10411_s24  ;;  %9609 = vmatprep.subr.mxu1 %v5543_v61 }
0x10e6   :  { %9610 = vmatpush3.msra.mxu1 %v5543_v61 }
0x10e7   :  { %9611 = vmatprep.subr.mxu1 %v5541_v10 }
0x10e8   :  { %6379 = vrot.lane.b32.xlu0 %v5048_v30, %s10411_s24  ;;  %9612 = vmatpush3.msra.mxu1 %v5541_v10 }
0x10e9   :  { %9669 = vmatprep.subr.msk.mxu1 %vm797_vm1, %v5096_v25 }
0x10ec   :  { %v10176_v60 = vpop.eup %10175 }
0x10ed   :  { %v5525_v50 = vmul.f32 %v10176_v60, %v18040_v6 }
0x10ee   :  { %v10178_v59 = vpop.eup %10177 }
0x10ef   :  { %v5524_v48 = vmul.f32 %v10178_v59, %v18039_v27 }
0x10f1   :  { %9613 = vmatprep.mubr.f32.mxu1 %v5524_v48 }
0x10f2   :  { %9614 = vmatmul.mubr.f32.vlgmr.msra.gmra.mxu1 %v5525_v50 }
0x10f3   :  { %9670 = vmatpush3.xpose.msk.msra.mxu1 %vm797_vm1, %v5096_v25 }
0x10f4   :  { %9671 = vmatprep.subr.msk.mxu1 %vm797_vm1, %v5090_v46 }
0x10f7   :  { %9672 = vmatpush3.xpose.msk.msra.mxu1 %vm797_vm1, %v5090_v46 }
0x10f8   :  { %9673 = vmatprep.subr.msk.mxu1 %vm797_vm1, %v5084_v1 }
0x10fb   :  { %9674 = vmatpush3.xpose.msk.msra.mxu1 %vm797_vm1, %v5084_v1 }
0x10fc   :  { %9675 = vmatprep.subr.msk.mxu1 %vm797_vm1, %v5078_v53 }
0x10ff   :  { %9676 = vmatpush3.xpose.msk.msra.mxu1 %vm797_vm1, %v5078_v53 }
0x1100   :  { %9677 = vmatprep.subr.msk.mxu1 %vm797_vm1, %v5072_v62 }
0x1103   :  { %9678 = vmatpush3.xpose.msk.msra.mxu1 %vm797_vm1, %v5072_v62 }
0x1104   :  { %9679 = vmatprep.subr.msk.mxu1 %vm797_vm1, %v5066_v35 }
0x1107   :  { %9680 = vmatpush3.xpose.msk.msra.mxu1 %vm797_vm1, %v5066_v35 }
0x1108   :  { %9681 = vmatprep.subr.msk.mxu1 %vm797_vm1, %v5060_v54 }
0x110b   :  { %9682 = vmatpush3.xpose.msk.msra.mxu1 %vm797_vm1, %v5060_v54 }
0x110c   :  { %9683 = vmatprep.subr.msk.mxu1 %vm797_vm1, %v5054_v17 }
0x110f   :  { %9684 = vmatpush3.xpose.msk.msra.mxu1 %vm797_vm1, %v5054_v17 }
0x1110   :  { %9685 = vmatprep.subr.msk.mxu1 %vm797_vm1, %v5048_v30 }
0x1113   :  { %9686 = vmatpush3.xpose.msk.msra.mxu1 %vm797_vm1, %v5048_v30  ;;  %v5483_v8 = vpop.xlane.xlu0 %5482 }
0x1114   :  { %9687 = vmatprep.subr.msk.mxu1 %vm797_vm1, %v5042_v41  ;;  %10179 = vrcp.f32 %v5483_v8 }
0x1115   :  { %v5481_v55 = vpop.xlane.xlu1 %5480 }
0x1116   :  { %10181 = vrcp.f32 %v5481_v55  ;;  %v18047_v55 = vmov 0.0  }
0x1117   :  { %9688 = vmatpush3.xpose.msk.msra.mxu1 %vm797_vm1, %v5042_v41  ;;  %v5485_v32 = vpop.xlane.xlu0 %5484 }
0x1118   :  { %10183 = vrcp.f32 %v5485_v32  ;;  %9689 = vmatprep.subr.msk.mxu1 %vm797_vm1, %v18041_v23 }
0x1119   :  { %v5487_v2 = vpop.xlane.xlu1 %5486 }
0x111a   :  { %10185 = vrcp.f32 %v5487_v2 }
0x111b   :  { %9690 = vmatpush3.xpose.msk.msra.mxu1 %vm797_vm1, %v18041_v23  ;;  %v5489_v31 = vpop.xlane.xlu0 %5488 }
0x111c   :  { %10187 = vrcp.f32 %v5489_v31  ;;  %9691 = vmatprep.subr.msk.mxu1 %vm797_vm1, %v18042_v40 }
0x111d   :  { %v5491_v15 = vpop.xlane.xlu1 %5490 }
0x111e   :  { %10189 = vrcp.f32 %v5491_v15 }
0x111f   :  { %9692 = vmatpush3.xpose.msk.msra.mxu1 %vm797_vm1, %v18042_v40  ;;  %v5493_v38 = vpop.xlane.xlu0 %5492 }
0x1120   :  { %10191 = vrcp.f32 %v5493_v38  ;;  %9693 = vmatprep.subr.msk.mxu1 %vm797_vm1, %v18043_v49 }
0x1121   :  { %v5495_v45 = vpop.xlane.xlu1 %5494  ;;  %v10180_v39 = vpop.eup %10179 }
0x1122   :  { %10193 = vrcp.f32 %v5495_v45  ;;  %v5527_v24 = vmul.f32 %v10180_v39, %v14846_v22 }
0x1123   :  { %v10182_v33 = vpop.eup %10181  ;;  %9694 = vmatpush3.xpose.msk.msra.mxu1 %vm797_vm1, %v18043_v49  ;;  %v5497_v19 = vpop.xlane.xlu0 %5496 }
0x1124   :  { %10195 = vrcp.f32 %v5497_v19  ;;  %9695 = vmatprep.subr.msk.mxu1 %vm797_vm1, %v18044_v36  ;;  %v5526_v57 = vmul.f32 %v10182_v33, %v14850_v12 }
0x1125   :  { %v10184_v0 = vpop.eup %10183  ;;  %v5499_v18 = vpop.xlane.xlu1 %5498 }
0x1126   :  { %10197 = vrcp.f32 %v5499_v18  ;;  %9616 = vmatprep.mubr.f32.mxu1 %v5526_v57  ;;  %v5528_v47 = vmul.f32 %v10184_v0, %v14854_v37 }
0x1127   :  { %v10186_v3 = vpop.eup %10185  ;;  %9696 = vmatpush3.xpose.msk.msra.mxu1 %vm797_vm1, %v18044_v36  ;;  %v5501_v7 = vpop.xlane.xlu0 %5500 }
0x1128   :  { %10199 = vrcp.f32 %v5501_v7  ;;  %9617 = vmatmul.mubr.f32.gmra.mxu1 %v5527_v24  ;;  %9697 = vmatprep.subr.msk.mxu1 %vm797_vm1, %v18045_v51  ;;  %v5529_v12 = vmul.f32 %v10186_v3, %v14858_v16 }
0x1129   :  { %v10188_v34 = vpop.eup %10187  ;;  %9619 = vmatprep.mubr.f32.mxu1 %v5528_v47  ;;  %v5503_v5 = vpop.xlane.xlu1 %5502 }
0x112a   :  { %10201 = vrcp.f32 %v5503_v5  ;;  %v5530_v22 = vmul.f32 %v10188_v34, %v14861_v9 }
0x112b   :  { %v10190_v11 = vpop.eup %10189  ;;  %9698 = vmatpush3.xpose.msk.msra.mxu1 %vm797_vm1, %v18045_v51  ;;  %v5505_v37 = vpop.xlane.xlu0 %5504 }
0x112c   :  { %10203 = vrcp.f32 %v5505_v37  ;;  %9620 = vmatmul.mubr.f32.gmra.mxu1 %v5529_v12  ;;  %9699 = vmatprep.subr.msk.mxu1 %vm797_vm1, %v18046_v4  ;;  %v5531_v14 = vmul.f32 %v10190_v11, %v14864_v42 }
0x112d   :  { %v10192_v46 = vpop.eup %10191  ;;  %9622 = vmatprep.mubr.f32.mxu1 %v5530_v22  ;;  %v5507_v16 = vpop.xlane.xlu1 %5506 }
0x112e   :  { %10205 = vrcp.f32 %v5507_v16  ;;  %v5532_v43 = vmul.f32 %v10192_v46, %v14867_v29 }
0x112f   :  { %v10194_v25 = vpop.eup %10193  ;;  %9700 = vmatpush3.xpose.msk.msra.mxu1 %vm797_vm1, %v18046_v4  ;;  %v5965_v9 = vpop.permute.xlu0 %5964 }
0x1130   :  { %9623 = vmatmul.mubr.f32.gmra.mxu1 %v5531_v14  ;;  %v5533_v53 = vmul.f32 %v10194_v25, %v14870_v13 }
0x1131   :  { %v10196_v1 = vpop.eup %10195  ;;  %9625 = vmatprep.mubr.f32.mxu1 %v5532_v43  ;;  %v5967_v35 = vpop.permute.xlu1 %5966  ;;  %v8583_v43 = vld [vmem:[%s17168_s2 + $0x188] sm:$0xff] }
0x1132   :  { %v5534_v62 = vmul.f32 %v10196_v1, %v14873_v28 }
0x1133   :  { %v10198_v42 = vpop.eup %10197  ;;  %v5971_v58 = vpop.permute.xlu0 %5970 }
0x1134   :  { %9626 = vmatmul.mubr.f32.gmra.mxu1 %v5533_v53  ;;  %v5535_v17 = vmul.f32 %v10198_v42, %v14876_v21 }
0x1135   :  { %v10200_v52 = vpop.eup %10199  ;;  %9628 = vmatprep.mubr.f32.mxu1 %v5534_v62  ;;  %v5969_v61 = vpop.permute.xlu1 %5968  ;;  %v8585_v62 = vld [vmem:[%s17168_s2 + $0x198] sm:$0xff] }
0x1136   :  { %v5536_v29 = vmul.f32 %v10200_v52, %v14879_v20 }
0x1137   :  { %v10202_v54 = vpop.eup %10201  ;;  %v5975_v41 = vpop.permute.xlu0 %5974 }
0x1138   :  { %9629 = vmatmul.mubr.f32.gmra.mxu1 %v5535_v17  ;;  %v5537_v13 = vmul.f32 %v10202_v54, %v14882_v26  ;;  %v8587_v54 = vld [vmem:[%s17168_s2 + $0x1a8] sm:$0xff] }
0x1139   :  { %v10204_v44 = vpop.eup %10203  ;;  %9631 = vmatprep.mubr.f32.mxu1 %v5536_v29  ;;  %v5973_v21 = vpop.permute.xlu1 %5972 }
0x113a   :  { %v5538_v30 = vmul.f32 %v10204_v44, %v14885_v63 }
0x113b   :  { %v10206_v28 = vpop.eup %10205  ;;  %v5979_v10 = vpop.permute.xlu0 %5978 }
0x113c   :  { %9632 = vmatmul.mubr.f32.gmra.mxu1 %v5537_v13  ;;  %v5539_v60 = vmul.f32 %v10206_v28, %v14888_v56  ;;  %v8589_v28 = vld [vmem:[%s17168_s2 + $0x1b8] sm:$0xff] }
0x113d   :  { %9634 = vmatprep.mubr.f32.mxu1 %v5538_v30  ;;  %v5977_v27 = vpop.permute.xlu1 %5976 }
0x113f   :  { %v5983_v59 = vpop.permute.xlu0 %5982 }
0x1140   :  { %9635 = vmatmul.mubr.f32.gmra.mxu1 %v5539_v60  ;;  %v8588_v60 = vld [vmem:[%s17168_s2 + $0x1b0] sm:$0xff] }
0x1141   :  { %9701 = vmatprep.mubr.msk.f32.mxu1 %vm797_vm1, %v5965_v9  ;;  %v5981_v63 = vpop.permute.xlu1 %5980  ;;  %v8582_v9 = vld [vmem:[%s17168_s2 + $0x180] sm:$0xff] }
0x1143   :  { %v5987_v20 = vpop.permute.xlu0 %5986 }
0x1144   :  { %9702 = vmatmul.mubr.msk.f32.vlgmr.msra.gmra.mxu1 %vm797_vm1, %v5967_v35 }
0x1145   :  { %9704 = vmatprep.mubr.msk.f32.mxu1 %vm797_vm1, %v5969_v61  ;;  %v5985_v6 = vpop.permute.xlu1 %5984  ;;  %v8586_v61 = vld [vmem:[%s17168_s2 + $0x1a0] sm:$0xff] }
0x1147   :  { %v5991_v26 = vpop.permute.xlu0 %5990 }
0x1148   :  { %9705 = vmatmul.mubr.msk.f32.gmra.mxu1 %vm797_vm1, %v5971_v58  ;;  %v8584_v58 = vld [vmem:[%s17168_s2 + $0x190] sm:$0xff] }
0x1149   :  { %9707 = vmatprep.mubr.msk.f32.mxu1 %vm797_vm1, %v5973_v21  ;;  %v5989_v50 = vpop.permute.xlu1 %5988 }
0x114b   :  { %v5995_v48 = vpop.permute.xlu0 %5994 }
0x114c   :  { %9708 = vmatmul.mubr.msk.f32.gmra.mxu1 %vm797_vm1, %v5975_v41 }
0x114d   :  { %9710 = vmatprep.mubr.msk.f32.mxu1 %vm797_vm1, %v5977_v27  ;;  %v5993_v8 = vpop.permute.xlu1 %5992  ;;  %v8591_v27 = vld [vmem:[%s17168_s2 + $0x1c8] sm:$0xff] }
0x114f   :  { %v6396_v56 = vpop.permute.xlu0 %6395 }
0x1150   :  { %9711 = vmatmul.mubr.msk.f32.gmra.mxu1 %vm797_vm1, %v5979_v10  ;;  %9725 = vmatprep.subr.mxu0 %v6396_v56 }
0x1151   :  { %9713 = vmatprep.mubr.msk.f32.mxu1 %vm797_vm1, %v5981_v63  ;;  %v6394_v32 = vpop.permute.xlu1 %6393  ;;  %v8590_v63 = vld [vmem:[%s17168_s2 + $0x1c0] sm:$0xff] }
0x1153   :  { %v6392_v31 = vpop.permute.xlu0 %6391 }
0x1154   :  { %9714 = vmatmul.mubr.msk.f32.gmra.mxu1 %vm797_vm1, %v5983_v59 }
0x1155   :  { %9716 = vmatprep.mubr.msk.f32.mxu1 %vm797_vm1, %v5985_v6  ;;  %v6390_v38 = vpop.permute.xlu1 %6389 }
0x1157   :  { %v6388_v45 = vpop.permute.xlu0 %6387 }
0x1158   :  { %9717 = vmatmul.mubr.msk.f32.gmra.mxu1 %vm797_vm1, %v5987_v20 }
0x1159   :  { %9719 = vmatprep.mubr.msk.f32.mxu1 %vm797_vm1, %v5989_v50  ;;  %v6386_v39 = vpop.permute.xlu1 %6385  ;;  %v8593_v50 = vld [vmem:[%s17168_s2 + $0x1d8] sm:$0xff] }
0x115b   :  { %v6384_v33 = vpop.permute.xlu0 %6383 }
0x115c   :  { %9720 = vmatmul.mubr.msk.f32.gmra.mxu1 %vm797_vm1, %v5991_v26 }
0x115d   :  { %9722 = vmatprep.mubr.msk.f32.mxu1 %vm797_vm1, %v5993_v8  ;;  %v6382_v19 = vpop.permute.xlu1 %6381 }
0x115f   :  { %v6380_v57 = vpop.permute.xlu0 %6379 }
0x1160   :  { %9723 = vmatmul.mubr.msk.f32.gmra.mxu1 %vm797_vm1, %v5995_v48 }
0x1161   :  { %7804 = vmatprep.mubr.f32.mxu1 %v18047_v55  ;;  %v6378_v0 = vpop.permute.xlu1 %6377  ;;  %v18097_v55 = vld [vmem:[#allocation37_spill] sm:$0xff] }
0x11b2   :  { %v9615_v2 = vpop.f32.mrf.mxu1 }
0x11b4   :  { %v5654_v15 = vpop.f32.mrf.mxu1 }
0x11b5   :  { %9645 = vmatprep.mubr.msk.f32.mxu0 %vm797_vm1, %v5654_v15 }
0x11b6   :  { %9646 = vmatmul.mubr.msk.f32.vlgmr.msra.gmra.mxu0 %vm797_vm1, %v9615_v2 }
0x11b7   :  { %9726 = vmatpush3.msra.mxu0 %v6396_v56 }
0x11b8   :  { %9727 = vmatprep.subr.mxu0 %v6394_v32 }
0x11b9   :  { %9728 = vmatpush3.msra.mxu0 %v6394_v32  ;;  %v8592_v32 = vld [vmem:[%s17168_s2 + $0x1d0] sm:$0xff] }
0x11ba   :  { %9729 = vmatprep.subr.mxu0 %v6392_v31 }
0x11bb   :  { %9730 = vmatpush3.msra.mxu0 %v6392_v31 }
0x11bc   :  { %9731 = vmatprep.subr.mxu0 %v6390_v38 }
0x11bd   :  { %9732 = vmatpush3.msra.mxu0 %v6390_v38  ;;  %v8595_v38 = vld [vmem:[%s17168_s2 + $0x1e8] sm:$0xff] }
0x11be   :  { %9733 = vmatprep.subr.mxu0 %v6388_v45 }
0x11bf   :  { %9734 = vmatpush3.msra.mxu0 %v6388_v45 }
0x11c0   :  { %9735 = vmatprep.subr.mxu0 %v6386_v39 }
0x11c1   :  { %9736 = vmatpush3.msra.mxu0 %v6386_v39  ;;  %v8594_v39 = vld [vmem:[%s17168_s2 + $0x1e0] sm:$0xff] }
0x11c2   :  { %9737 = vmatprep.subr.mxu0 %v6384_v33 }
0x11c3   :  { %9738 = vmatpush3.msra.mxu0 %v6384_v33 }
0x11c4   :  { %9739 = vmatprep.subr.mxu0 %v6382_v19 }
0x11c5   :  { %9740 = vmatpush3.msra.mxu0 %v6382_v19 }
0x11c6   :  { %9741 = vmatprep.subr.mxu0 %v6380_v57 }
0x11c7   :  { %9742 = vmatpush3.msra.mxu0 %v6380_v57 }
0x11c8   :  { %9743 = vmatprep.subr.mxu0 %v6378_v0 }
0x11c9   :  { %9744 = vmatpush3.msra.mxu0 %v6378_v0  ;;  %v8597_v0 = vld [vmem:[%s17168_s2 + $0x1f8] sm:$0xff] }
0x11e8   :  { %v9618_v18 = vpop.f32.mrf.mxu1 }
0x11ea   :  { %v5664_v24 = vpop.f32.mrf.mxu1 }
0x11eb   :  { %9648 = vmatprep.mubr.msk.f32.mxu0 %vm797_vm1, %v5664_v24  ;;  %v8596_v24 = vld [vmem:[%s17168_s2 + $0x1f0] sm:$0xff] }
0x11ec   :  { %v9621_v47 = vpop.f32.mrf.mxu1  ;;  %9649 = vmatmul.mubr.msk.f32.gmra.mxu0 %vm797_vm1, %v9618_v18 }
0x11ee   :  { %v5674_v3 = vpop.f32.mrf.mxu1 }
0x11ef   :  { %9651 = vmatprep.mubr.msk.f32.mxu0 %vm797_vm1, %v5674_v3 }
0x11f0   :  { %v9624_v7 = vpop.f32.mrf.mxu1  ;;  %9652 = vmatmul.mubr.msk.f32.gmra.mxu0 %vm797_vm1, %v9621_v47 }
0x11f2   :  { %v5684_v12 = vpop.f32.mrf.mxu1 }
0x11f3   :  { %9654 = vmatprep.mubr.msk.f32.mxu0 %vm797_vm1, %v5684_v12 }
0x11f4   :  { %v9627_v34 = vpop.f32.mrf.mxu1  ;;  %9655 = vmatmul.mubr.msk.f32.gmra.mxu0 %vm797_vm1, %v9624_v7 }
0x11f6   :  { %v5694_v5 = vpop.f32.mrf.mxu1 }
0x11f7   :  { %9657 = vmatprep.mubr.msk.f32.mxu0 %vm797_vm1, %v5694_v5 }
0x11f8   :  { %v9630_v22 = vpop.f32.mrf.mxu1  ;;  %9658 = vmatmul.mubr.msk.f32.gmra.mxu0 %vm797_vm1, %v9627_v34 }
0x11fa   :  { %v5704_v11 = vpop.f32.mrf.mxu1 }
0x11fb   :  { %9660 = vmatprep.mubr.msk.f32.mxu0 %vm797_vm1, %v5704_v11 }
0x11fc   :  { %v9633_v37 = vpop.f32.mrf.mxu1  ;;  %9661 = vmatmul.mubr.msk.f32.gmra.mxu0 %vm797_vm1, %v9630_v22 }
0x11fe   :  { %v5714_v14 = vpop.f32.mrf.mxu1 }
0x11ff   :  { %9663 = vmatprep.mubr.msk.f32.mxu0 %vm797_vm1, %v5714_v14 }
0x1200   :  { %v9636_v46 = vpop.f32.mrf.mxu1  ;;  %9664 = vmatmul.mubr.msk.f32.gmra.mxu0 %vm797_vm1, %v9633_v37 }
0x1202   :  { %v5724_v16 = vpop.f32.mrf.mxu1 }
0x1203   :  { %9666 = vmatprep.mubr.msk.f32.mxu0 %vm797_vm1, %v5724_v16 }
0x1204   :  { %9667 = vmatmul.mubr.msk.f32.gmra.mxu0 %vm797_vm1, %v9636_v46  ;;  %v9703_v25 = vpop.f32.mrf.mxu1 }
0x1205   :  { %v15063_v53 = vadd.f32 %v9703_v25, %v8583_v43 }
0x1206   :  { %v6142_v1 = vpop.f32.mrf.mxu1 }
0x1207   :  { %v15065_v35 = vadd.f32 %v8582_v9, %v6142_v1  ;;  %6223 = vmax.xlane.f32.xlu0 %v15063_v53 }
0x1208   :  { %v9706_v42 = vpop.f32.mrf.mxu1 }
0x1209   :  { %6221 = vmax.xlane.f32.xlu1 %v15065_v35  ;;  %v15075_v52 = vadd.f32 %v9706_v42, %v8585_v62 }
0x120a   :  { %v6152_v17 = vpop.f32.mrf.mxu1 }
0x120b   :  { %v15077_v29 = vadd.f32 %v8584_v58, %v6152_v17 }
0x120c   :  { %v9709_v41 = vpop.f32.mrf.mxu1 }
0x120d   :  { %6227 = vmax.xlane.f32.xlu1 %v15075_v52  ;;  %6225 = vmax.xlane.f32.xlu0 %v15077_v29  ;;  %v15087_v44 = vadd.f32 %v9709_v41, %v8587_v54 }
0x120e   :  { %v6162_v13 = vpop.f32.mrf.mxu1 }
0x120f   :  { %v15089_v30 = vadd.f32 %v8586_v61, %v6162_v13 }
0x1210   :  { %v9712_v10 = vpop.f32.mrf.mxu1 }
0x1211   :  { %6231 = vmax.xlane.f32.xlu1 %v15087_v44  ;;  %6229 = vmax.xlane.f32.xlu0 %v15089_v30  ;;  %v15099_v59 = vadd.f32 %v9712_v10, %v8589_v28 }
0x1212   :  { %v6172_v21 = vpop.f32.mrf.mxu1 }
0x1213   :  { %v15101_v20 = vadd.f32 %v8588_v60, %v6172_v21 }
0x1214   :  { %v9715_v26 = vpop.f32.mrf.mxu1 }
0x1215   :  { %6235 = vmax.xlane.f32.xlu1 %v15099_v59  ;;  %6233 = vmax.xlane.f32.xlu0 %v15101_v20  ;;  %v15111_v56 = vadd.f32 %v9715_v26, %v8591_v27 }
0x1216   :  { %v6182_v48 = vpop.f32.mrf.mxu1 }
0x1217   :  { %v15113_v6 = vadd.f32 %v8590_v63, %v6182_v48 }
0x1218   :  { %v9718_v8 = vpop.f32.mrf.mxu1 }
0x1219   :  { %6239 = vmax.xlane.f32.xlu1 %v15111_v56  ;;  %6237 = vmax.xlane.f32.xlu0 %v15113_v6  ;;  %v15123_v31 = vadd.f32 %v9718_v8, %v8593_v50 }
0x121a   :  { %v6192_v2 = vpop.f32.mrf.mxu1 }
0x121b   :  { %v15125_v15 = vadd.f32 %v8592_v32, %v6192_v2 }
0x121c   :  { %v9721_v45 = vpop.f32.mrf.mxu1 }
0x121d   :  { %6243 = vmax.xlane.f32.xlu1 %v15123_v31  ;;  %6241 = vmax.xlane.f32.xlu0 %v15125_v15  ;;  %v15135_v19 = vadd.f32 %v9721_v45, %v8595_v38 }
0x121e   :  { %v6202_v33 = vpop.f32.mrf.mxu1 }
0x121f   :  { %v15137_v57 = vadd.f32 %v8594_v39, %v6202_v33 }
0x1220   :  { %v9724_v18 = vpop.f32.mrf.mxu1 }
0x1221   :  { %6247 = vmax.xlane.f32.xlu1 %v15135_v19  ;;  %6245 = vmax.xlane.f32.xlu0 %v15137_v57  ;;  %v15147_v3 = vadd.f32 %v9724_v18, %v8597_v0 }
0x1222   :  { %v6212_v47 = vpop.f32.mrf.mxu1 }
0x1223   :  { %v15149_v7 = vadd.f32 %v8596_v24, %v6212_v47 }
0x1225   :  { %6251 = vmax.xlane.f32.xlu1 %v15147_v3  ;;  %6249 = vmax.xlane.f32.xlu0 %v15149_v7 }
0x1236   :  { %6373 = vrot.lane.b32.xlu1 %v18042_v40, %s10411_s24 }
0x123a   :  { %6369 = vrot.lane.b32.xlu1 %v18044_v36, %s10411_s24 }
0x123b   :  { %6375 = vrot.lane.b32.xlu0 %v18041_v23, %s10411_s24 }
0x123e   :  { %6365 = vrot.lane.b32.xlu1 %v18046_v4, %s10411_s24 }
0x123f   :  { %6371 = vrot.lane.b32.xlu0 %v18043_v49, %s10411_s24 }
0x1243   :  { %6367 = vrot.lane.b32.xlu0 %v18045_v51, %s10411_s24 }
0x1290   :  { %v6224_v12 = vpop.xlane.xlu0 %6223 }
0x1291   :  { %v6254_v34 = vsub.f32 %v15063_v53, %v6224_v12 }
0x1292   :  { %v6222_v5 = vpop.xlane.xlu1 %6221 }
0x1293   :  { %v6271_v40 = vmul.f32 1.442695, %v6254_v34  ;;  %v6253_v22 = vsub.f32 %v15065_v35, %v6222_v5 }
0x1295   :  { %10207 = vpow2.f32 %v6271_v40  ;;  %v6269_v36 = vmul.f32 1.442695, %v6253_v22 }
0x1296   :  { %v6226_v11 = vpop.xlane.xlu0 %6225  ;;  %v6228_v23 = vpop.xlane.xlu1 %6227 }
0x1297   :  { %10209 = vpow2.f32 %v6269_v36  ;;  %v6255_v4 = vsub.f32 %v15077_v29, %v6226_v11  ;;  %v6256_v37 = vsub.f32 %v15075_v52, %v6228_v23  ;;  %v8633_v23 = vld [vmem:[%s17173_s7 + $0x78] sm:$0xff] }
0x1299   :  { %v6273_v49 = vmul.f32 1.442695, %v6255_v4  ;;  %v6275_v14 = vmul.f32 1.442695, %v6256_v37 }
0x129a   :  { %v6230_v46 = vpop.xlane.xlu0 %6229  ;;  %v6232_v51 = vpop.xlane.xlu1 %6231 }
0x129b   :  { %10211 = vpow2.f32 %v6273_v49  ;;  %v6257_v16 = vsub.f32 %v15089_v30, %v6230_v46  ;;  %v6258_v43 = vsub.f32 %v15087_v44, %v6232_v51 }
0x129c   :  { %10213 = vpow2.f32 %v6275_v14 }
0x129d   :  { %v6277_v25 = vmul.f32 1.442695, %v6257_v16  ;;  %v6279_v9 = vmul.f32 1.442695, %v6258_v43 }
0x129e   :  { %v6234_v53 = vpop.xlane.xlu0 %6233  ;;  %v6236_v1 = vpop.xlane.xlu1 %6235 }
0x129f   :  { %10215 = vpow2.f32 %v6277_v25  ;;  %v6259_v35 = vsub.f32 %v15101_v20, %v6234_v53  ;;  %v6260_v62 = vsub.f32 %v15099_v59, %v6236_v1 }
0x12a0   :  { %10217 = vpow2.f32 %v6279_v9 }
0x12a1   :  { %v6281_v42 = vmul.f32 1.442695, %v6259_v35  ;;  %v6283_v58 = vmul.f32 1.442695, %v6260_v62 }
0x12a2   :  { %v15173_v17 = vpop.eup %10207  ;;  %v6238_v52 = vpop.xlane.xlu0 %6237 }
0x12a3   :  { %v6240_v29 = vpop.xlane.xlu1 %6239  ;;  %10219 = vpow2.f32 %v6281_v42  ;;  %v6261_v54 = vsub.f32 %v15113_v6, %v6238_v52  ;;  %6303 = vadd.xlane.f32.xlu0 %v15173_v17  ;;  %v8632_v42 = vld [vmem:[%s17173_s7 + $0x70] sm:$0xff] }
0x12a4   :  { %v6262_v41 = vsub.f32 %v15111_v56, %v6240_v29  ;;  %v15178_v61 = vpop.eup %10209  ;;  %10221 = vpow2.f32 %v6283_v58 }
0x12a5   :  { %v6285_v13 = vmul.f32 1.442695, %v6261_v54  ;;  %6301 = vadd.xlane.f32.xlu1 %v15178_v61  ;;  %v8631_v54 = vld [vmem:[%s17173_s7 + $0x68] sm:$0xff] }
0x12a6   :  { %v6287_v44 = vmul.f32 1.442695, %v6262_v41  ;;  %v6242_v30 = vpop.xlane.xlu0 %6241 }
0x12a7   :  { %v6244_v28 = vpop.xlane.xlu1 %6243  ;;  %10223 = vpow2.f32 %v6285_v13  ;;  %v6263_v10 = vsub.f32 %v15125_v15, %v6242_v30  ;;  %v8630_v13 = vld [vmem:[%s17173_s7 + $0x60] sm:$0xff] }
0x12a8   :  { %v6264_v60 = vsub.f32 %v15123_v31, %v6244_v28  ;;  %v15183_v21 = vpop.eup %10211  ;;  %10225 = vpow2.f32 %v6287_v44 }
0x12a9   :  { %v15185_v59 = vpop.eup %10213  ;;  %v6289_v20 = vmul.f32 1.442695, %v6263_v10  ;;  %6305 = vadd.xlane.f32.xlu1 %v15183_v21 }
0x12aa   :  { %v6291_v27 = vmul.f32 1.442695, %v6264_v60  ;;  %6307 = vadd.xlane.f32.xlu0 %v15185_v59  ;;  %v6246_v26 = vpop.xlane.xlu0 %6245 }
0x12ab   :  { %v6248_v63 = vpop.xlane.xlu1 %6247  ;;  %10227 = vpow2.f32 %v6289_v20  ;;  %v6265_v48 = vsub.f32 %v15137_v57, %v6246_v26 }
0x12ac   :  { %v6266_v56 = vsub.f32 %v15135_v19, %v6248_v63  ;;  %v15191_v6 = vpop.eup %10215  ;;  %10229 = vpow2.f32 %v6291_v27 }
0x12ad   :  { %v15193_v50 = vpop.eup %10217  ;;  %v6293_v8 = vmul.f32 1.442695, %v6265_v48  ;;  %6309 = vadd.xlane.f32.xlu1 %v15191_v6 }
0x12ae   :  { %v6295_v32 = vmul.f32 1.442695, %v6266_v56  ;;  %6311 = vadd.xlane.f32.xlu0 %v15193_v50  ;;  %v6250_v2 = vpop.xlane.xlu0 %6249 }
0x12af   :  { %10231 = vpow2.f32 %v6293_v8  ;;  %v6267_v31 = vsub.f32 %v15149_v7, %v6250_v2  ;;  %v6252_v15 = vpop.xlane.xlu1 %6251 }
0x12b0   :  { %v15198_v38 = vpop.eup %10219  ;;  %10233 = vpow2.f32 %v6295_v32  ;;  %v6268_v45 = vsub.f32 %v15147_v3, %v6252_v15 }
0x12b1   :  { %v15201_v39 = vpop.eup %10221  ;;  %v6297_v33 = vmul.f32 1.442695, %v6267_v31  ;;  %6313 = vadd.xlane.f32.xlu1 %v15198_v38 }
0x12b2   :  { %v6299_v19 = vmul.f32 1.442695, %v6268_v45  ;;  %6315 = vadd.xlane.f32.xlu0 %v15201_v39  ;;  %v6376_v57 = vpop.permute.xlu0 %6375 }
0x12b3   :  { %10235 = vpow2.f32 %v6297_v33  ;;  %v6374_v0 = vpop.permute.xlu1 %6373  ;;  %9745 = vmatprep.subr.mxu0 %v6376_v57 }
0x12b4   :  { %v15205_v18 = vpop.eup %10223  ;;  %10237 = vpow2.f32 %v6299_v19  ;;  %9746 = vmatpush3.msra.mxu0 %v6376_v57 }
0x12b5   :  { %v15207_v24 = vpop.eup %10225  ;;  %6317 = vadd.xlane.f32.xlu1 %v15205_v18  ;;  %9747 = vmatprep.subr.mxu0 %v6374_v0 }
0x12b6   :  { %6319 = vadd.xlane.f32.xlu0 %v15207_v24  ;;  %v6372_v47 = vpop.permute.xlu0 %6371  ;;  %9748 = vmatpush3.msra.mxu0 %v6374_v0 }
0x12b7   :  { %v6370_v3 = vpop.permute.xlu1 %6369  ;;  %9749 = vmatprep.subr.mxu0 %v6372_v47 }
0x12b8   :  { %v15211_v7 = vpop.eup %10227  ;;  %9750 = vmatpush3.msra.mxu0 %v6372_v47 }
0x12b9   :  { %v15213_v12 = vpop.eup %10229  ;;  %6321 = vadd.xlane.f32.xlu1 %v15211_v7  ;;  %9751 = vmatprep.subr.mxu0 %v6370_v3 }
0x12ba   :  { %6323 = vadd.xlane.f32.xlu0 %v15213_v12  ;;  %v6368_v34 = vpop.permute.xlu0 %6367  ;;  %9752 = vmatpush3.msra.mxu0 %v6370_v3 }
0x12bb   :  { %9753 = vmatprep.subr.mxu0 %v6368_v34  ;;  %v6366_v40 = vpop.permute.xlu1 %6365 }
0x12bc   :  { %v15217_v5 = vpop.eup %10231  ;;  %9754 = vmatpush3.msra.mxu0 %v6368_v34 }
0x12bd   :  { %v15219_v22 = vpop.eup %10233  ;;  %6325 = vadd.xlane.f32.xlu1 %v15217_v5  ;;  %9755 = vmatprep.subr.mxu0 %v6366_v40 }
0x12be   :  { %6327 = vadd.xlane.f32.xlu0 %v15219_v22  ;;  %9756 = vmatpush3.msra.mxu0 %v6366_v40 }
0x12bf   :  { %9781 = vmatprep.subr.mxu0 %v8633_v23 }
0x12c0   :  { %v15223_v36 = vpop.eup %10235 }
0x12c1   :  { %v15225_v11 = vpop.eup %10237  ;;  %6329 = vadd.xlane.f32.xlu1 %v15223_v36 }
0x12c2   :  { %6331 = vadd.xlane.f32.xlu0 %v15225_v11 }
0x132c   :  { %v6304_v4 = vpop.xlane.xlu0 %6303 }
0x132d   :  { %10239 = vrcp.f32 %v6304_v4 }
0x132e   :  { %v6302_v37 = vpop.xlane.xlu1 %6301 }
0x132f   :  { %10241 = vrcp.f32 %v6302_v37 }
0x1332   :  { %v6306_v49 = vpop.xlane.xlu1 %6305 }
0x1333   :  { %v6308_v14 = vpop.xlane.xlu0 %6307  ;;  %10243 = vrcp.f32 %v6306_v49 }
0x1334   :  { %10245 = vrcp.f32 %v6308_v14 }
0x1336   :  { %v6310_v46 = vpop.xlane.xlu1 %6309 }
0x1337   :  { %v6312_v51 = vpop.xlane.xlu0 %6311  ;;  %10247 = vrcp.f32 %v6310_v46 }
0x1338   :  { %10249 = vrcp.f32 %v6312_v51 }
0x133a   :  { %v6314_v16 = vpop.xlane.xlu1 %6313  ;;  %v10240_v43 = vpop.eup %10239 }
0x133b   :  { %v6316_v25 = vpop.xlane.xlu0 %6315  ;;  %10251 = vrcp.f32 %v6314_v16  ;;  %v6350_v1 = vmul.f32 %v10240_v43, %v15173_v17 }
0x133c   :  { %v10242_v9 = vpop.eup %10241  ;;  %10253 = vrcp.f32 %v6316_v25 }
0x133d   :  { %v6349_v53 = vmul.f32 %v10242_v9, %v15178_v61 }
0x133e   :  { %v6318_v35 = vpop.xlane.xlu1 %6317 }
0x133f   :  { %v6320_v62 = vpop.xlane.xlu0 %6319  ;;  %10255 = vrcp.f32 %v6318_v35  ;;  %9757 = vmatprep.mubr.f32.mxu0 %v6349_v53 }
0x1340   :  { %v10244_v58 = vpop.eup %10243  ;;  %10257 = vrcp.f32 %v6320_v62  ;;  %9758 = vmatmul.mubr.f32.vlgmr.msra.gmra.mxu0 %v6350_v1 }
0x1341   :  { %v10246_v52 = vpop.eup %10245  ;;  %v6351_v29 = vmul.f32 %v10244_v58, %v15183_v21  ;;  %9782 = vmatpush3.msra.mxu0 %v8633_v23 }
0x1342   :  { %v6322_v17 = vpop.xlane.xlu1 %6321  ;;  %v6352_v41 = vmul.f32 %v10246_v52, %v15185_v59  ;;  %9783 = vmatprep.subr.mxu0 %v8632_v42 }
0x1343   :  { %v6324_v61 = vpop.xlane.xlu0 %6323  ;;  %10259 = vrcp.f32 %v6322_v17  ;;  %9760 = vmatprep.mubr.f32.mxu0 %v6351_v29  ;;  %9784 = vmatpush3.msra.mxu0 %v8632_v42 }
0x1344   :  { %v10248_v44 = vpop.eup %10247  ;;  %10261 = vrcp.f32 %v6324_v61  ;;  %9761 = vmatmul.mubr.f32.gmra.mxu0 %v6352_v41  ;;  %9785 = vmatprep.subr.mxu0 %v8631_v54  ;;  %v15308_v41 = vld [vmem:[%s17175_s9 + $0xa] ss:$0 sm:$0xff]  ;;  %v15313_v61 = vld [vmem:[%s17175_s9 + $0xb] ss:$0 sm:$0xff] }
0x1345   :  { %v10250_v30 = vpop.eup %10249  ;;  %v6353_v28 = vmul.f32 %v10248_v44, %v15191_v6  ;;  %9786 = vmatpush3.msra.mxu0 %v8631_v54  ;;  %v15323_v44 = vld [vmem:[%s17175_s9 + $0xc] ss:$0 sm:$0xff] }
0x1346   :  { %v6326_v10 = vpop.xlane.xlu1 %6325  ;;  %v6354_v60 = vmul.f32 %v10250_v30, %v15193_v50  ;;  %9787 = vmatprep.subr.mxu0 %v8630_v13  ;;  %v15328_v30 = vld [vmem:[%s17175_s9 + $0xd] ss:$0 sm:$0xff] }
0x1347   :  { %v6328_v21 = vpop.xlane.xlu0 %6327  ;;  %10263 = vrcp.f32 %v6326_v10  ;;  %9763 = vmatprep.mubr.f32.mxu0 %v6353_v28  ;;  %9788 = vmatpush3.msra.mxu0 %v8630_v13  ;;  %v15318_v13 = vld [vmem:[%s17175_s9 + $0x9] ss:$0 sm:$0xff]  ;;  %v15333_v28 = vld [vmem:[%s17175_s9 + $0xf] ss:$0 sm:$0xff]  ;;  %v18048_v10 = vld [vmem:[#allocation13_spill] sm:$0xff] }
0x1348   :  { %v10252_v59 = vpop.eup %10251  ;;  %10265 = vrcp.f32 %v6328_v21  ;;  %9764 = vmatmul.mubr.f32.gmra.mxu0 %v6354_v60  ;;  %v15337_v60 = vmul.f32 %v15308_v41, %v18048_v10  ;;  %v18050_v21 = vld [vmem:[#allocation15_spill] sm:$0xff]  ;;  %v18077_v10 = vld [vmem:[#allocation24_spill] sm:$0xff] }
0x1349   :  { %v10254_v20 = vpop.eup %10253  ;;  %v6355_v27 = vmul.f32 %v10252_v59, %v15198_v38  ;;  %v15341_v59 = vmul.f32 %v15313_v61, %v18050_v21  ;;  %v15428_v21 = vmul.f32 %v15318_v13, %v18077_v10 }
0x134a   :  { %v6330_v26 = vpop.xlane.xlu1 %6329  ;;  %v6356_v63 = vmul.f32 %v10254_v20, %v15201_v39  ;;  %18049 = vst [vmem:[#allocation170_spill] sm:$0xff] %v15337_v60  ;;  %v18052_v20 = vld [vmem:[#allocation14_spill] sm:$0xff]  ;;  %v18134_v60 = vld [vmem:[#allocation57_spill] sm:$0xff] }
0x134b   :  { %v6332_v48 = vpop.xlane.xlu0 %6331  ;;  %10267 = vrcp.f32 %v6330_v26  ;;  %9766 = vmatprep.mubr.f32.mxu0 %v6355_v27  ;;  %18051 = vst [vmem:[#allocation169_spill] sm:$0xff] %v15341_v59  ;;  %v15345_v27 = vmul.f32 %v15318_v13, %v18052_v20  ;;  %v15350_v26 = vld [vmem:[%s17175_s9 + $0xe] ss:$0 sm:$0xff]  ;;  %v18123_v59 = vld [vmem:[#allocation51_spill] sm:$0xff] }
0x134c   :  { %v10256_v56 = vpop.eup %10255  ;;  %10269 = vrcp.f32 %v6332_v48  ;;  %9767 = vmatmul.mubr.f32.gmra.mxu0 %v6356_v63  ;;  %v18054_v63 = vld [vmem:[#allocation12_spill] sm:$0xff]  ;;  %v18078_v20 = vld [vmem:[#allocation30_spill] sm:$0xff] }
0x134d   :  { %v10258_v6 = vpop.eup %10257  ;;  %v6357_v50 = vmul.f32 %v10256_v56, %v15205_v18  ;;  %18053 = vst [vmem:[#allocation171_spill] sm:$0xff] %v15345_v27  ;;  %v15354_v48 = vmul.f32 %v15308_v41, %v18054_v63  ;;  %v18055_v56 = vld [vmem:[#allocation11_spill] sm:$0xff]  ;;  %v15432_v63 = vmul.f32 %v15318_v13, %v18078_v20  ;;  %v18090_v20 = vld [vmem:[#allocation33_spill] sm:$0xff]  ;;  %v18128_v27 = vld [vmem:[#allocation60_spill] sm:$0xff] }
0x134e   :  { %v6358_v8 = vmul.f32 %v10258_v6, %v15207_v24  ;;  %v15257_v24 = vpop.f32.mrf.mxu0  ;;  %v15358_v6 = vmul.f32 %v15323_v44, %v18055_v56  ;;  %v18079_v56 = vld [vmem:[#allocation26_spill] sm:$0xff] }
0x134f   :  { %9769 = vmatprep.mubr.f32.mxu0 %v6357_v50  ;;  %v18057_v50 = vld [vmem:[#allocation10_spill] sm:$0xff] }
0x1350   :  { %v10260_v32 = vpop.eup %10259  ;;  %9770 = vmatmul.mubr.f32.gmra.mxu0 %v6358_v8  ;;  %v15259_v47 = vpop.f32.mrf.mxu0  ;;  %18056 = vst [vmem:[#allocation174_spill] sm:$0xff] %v15358_v6  ;;  %v15362_v8 = vmul.f32 %v15313_v61, %v18057_v50  ;;  %v15436_v50 = vmul.f32 %v15323_v44, %v18079_v56  ;;  %v15468_v56 = vmul.f32 %v15308_v41, %v18090_v20  ;;  %v18121_v6 = vld [vmem:[#allocation56_spill] sm:$0xff] }
0x1351   :  { %v10262_v2 = vpop.eup %10261  ;;  %v6359_v31 = vmul.f32 %v10260_v32, %v15211_v7  ;;  %v18058_v32 = vld [vmem:[#allocation9_spill] sm:$0xff] }
0x1352   :  { %v6360_v15 = vmul.f32 %v10262_v2, %v15213_v12  ;;  %v15261_v3 = vpop.f32.mrf.mxu0  ;;  %v15366_v2 = vmul.f32 %v15328_v30, %v18058_v32  ;;  %v18080_v32 = vld [vmem:[#allocation32_spill] sm:$0xff] }
0x1353   :  { %9772 = vmatprep.mubr.f32.mxu0 %v6359_v31  ;;  %v18059_v31 = vld [vmem:[#allocation8_spill] sm:$0xff] }
0x1354   :  { %v10264_v38 = vpop.eup %10263  ;;  %9773 = vmatmul.mubr.f32.gmra.mxu0 %v6360_v15  ;;  %v15263_v7 = vpop.f32.mrf.mxu0  ;;  %v15370_v15 = vmul.f32 %v15318_v13, %v18059_v31  ;;  %v15440_v31 = vmul.f32 %v15323_v44, %v18080_v32  ;;  %v18091_v32 = vld [vmem:[#allocation40_spill] sm:$0xff] }
0x1355   :  { %v10266_v45 = vpop.eup %10265  ;;  %v6361_v39 = vmul.f32 %v10264_v38, %v15217_v5  ;;  %v18060_v38 = vld [vmem:[#allocation7_spill] sm:$0xff] }
0x1356   :  { %v6362_v33 = vmul.f32 %v10266_v45, %v15219_v22  ;;  %v15265_v12 = vpop.f32.mrf.mxu0  ;;  %v15374_v45 = vmul.f32 %v15323_v44, %v18060_v38  ;;  %v18081_v38 = vld [vmem:[#allocation27_spill] sm:$0xff] }
0x1357   :  { %9775 = vmatprep.mubr.f32.mxu0 %v6361_v39  ;;  %v18061_v39 = vld [vmem:[#allocation6_spill] sm:$0xff] }
0x1358   :  { %v10268_v19 = vpop.eup %10267  ;;  %9776 = vmatmul.mubr.f32.gmra.mxu0 %v6362_v33  ;;  %v15267_v34 = vpop.f32.mrf.mxu0  ;;  %v15378_v33 = vmul.f32 %v15313_v61, %v18061_v39 }
0x1359   :  { %v10270_v57 = vpop.eup %10269  ;;  %v6363_v0 = vmul.f32 %v10268_v19, %v15223_v36  ;;  %v18062_v19 = vld [vmem:[#allocation18_spill] sm:$0xff] }
0x135a   :  { %v6364_v18 = vmul.f32 %v10270_v57, %v15225_v11  ;;  %v15269_v5 = vpop.f32.mrf.mxu0  ;;  %v15382_v57 = vmul.f32 %v15333_v28, %v18062_v19  ;;  %v18082_v19 = vld [vmem:[#allocation34_spill] sm:$0xff] }
0x135b   :  { %9778 = vmatprep.mubr.f32.mxu0 %v6363_v0  ;;  %v18064_v0 = vld [vmem:[#allocation17_spill] sm:$0xff] }
0x135c   :  { %9779 = vmatmul.mubr.f32.gmra.mxu0 %v6364_v18  ;;  %v15271_v40 = vpop.f32.mrf.mxu0  ;;  %18063 = vst [vmem:[#allocation175_spill] sm:$0xff] %v15382_v57  ;;  %v15386_v18 = vmul.f32 %v15318_v13, %v18064_v0  ;;  %v18101_v57 = vld [vmem:[#allocation39_spill] sm:$0xff] }
0x135e   :  { %v15273_v22 = vpop.f32.mrf.mxu0  ;;  %18065 = vst [vmem:[#allocation182_spill] sm:$0xff] %v15386_v18  ;;  %v18126_v18 = vld [vmem:[#allocation53_spill] sm:$0xff] }
0x1360   :  { %v15275_v36 = vpop.f32.mrf.mxu0 }
0x1362   :  { %v15277_v11 = vpop.f32.mrf.mxu0 }
0x1364   :  { %v15279_v23 = vpop.f32.mrf.mxu0 }
0x1366   :  { %v15281_v4 = vpop.f32.mrf.mxu0 }
0x1368   :  { %v15283_v37 = vpop.f32.mrf.mxu0 }
0x136a   :  { %v15285_v49 = vpop.f32.mrf.mxu0 }
0x136c   :  { %v15287_v14 = vpop.f32.mrf.mxu0 }
0x1400   :  { %v9759_v46 = vpop.f32.mrf.mxu0 }
0x1402   :  { %v6479_v51 = vpop.f32.mrf.mxu0 }
0x1403   :  { %9789 = vmatprep.mubr.msk.f32.mxu0 %vm797_vm1, %v6479_v51 }
0x1404   :  { %v9762_v16 = vpop.f32.mrf.mxu0  ;;  %9790 = vmatmul.mubr.msk.f32.vlgmr.msra.gmra.mxu0 %vm797_vm1, %v9759_v46  ;;  %v18066_v46 = vld [vmem:[#allocation20_spill] sm:$0xff] }
0x1405   :  { %v15390_v51 = vmul.f32 %v15308_v41, %v18066_v46  ;;  %v18084_v46 = vld [vmem:[#allocation29_spill] sm:$0xff] }
0x1406   :  { %v6489_v43 = vpop.f32.mrf.mxu0 }
0x1407   :  { %9792 = vmatprep.mubr.msk.f32.mxu0 %vm797_vm1, %v6489_v43 }
0x1408   :  { %v9765_v25 = vpop.f32.mrf.mxu0  ;;  %9793 = vmatmul.mubr.msk.f32.gmra.mxu0 %vm797_vm1, %v9762_v16  ;;  %v18067_v16 = vld [vmem:[#allocation19_spill] sm:$0xff] }
0x1409   :  { %v15394_v43 = vmul.f32 %v15308_v41, %v18067_v16  ;;  %v15452_v16 = vmul.f32 %v15328_v30, %v18084_v46 }
0x140a   :  { %v6499_v9 = vpop.f32.mrf.mxu0 }
0x140b   :  { %9795 = vmatprep.mubr.msk.f32.mxu0 %vm797_vm1, %v6499_v9 }
0x140c   :  { %v9768_v53 = vpop.f32.mrf.mxu0  ;;  %9796 = vmatmul.mubr.msk.f32.gmra.mxu0 %vm797_vm1, %v9765_v25  ;;  %v18068_v25 = vld [vmem:[#allocation23_spill] sm:$0xff] }
0x140d   :  { %v15398_v9 = vmul.f32 %v15350_v26, %v18068_v25  ;;  %v18085_v25 = vld [vmem:[#allocation36_spill] sm:$0xff] }
0x140e   :  { %v6509_v1 = vpop.f32.mrf.mxu0 }
0x140f   :  { %9798 = vmatprep.mubr.msk.f32.mxu0 %vm797_vm1, %v6509_v1  ;;  %18069 = vst [vmem:[#allocation177_spill] sm:$0xff] %v15398_v9  ;;  %v18070_v1 = vld [vmem:[#allocation21_spill] sm:$0xff] }
0x1410   :  { %v9771_v35 = vpop.f32.mrf.mxu0  ;;  %9799 = vmatmul.mubr.msk.f32.gmra.mxu0 %vm797_vm1, %v9768_v53  ;;  %v15403_v53 = vld [vmem:[%s17175_s9 + $0x10] ss:$0 sm:$0xff]  ;;  %v18119_v9 = vld [vmem:[#allocation49_spill] sm:$0xff] }
0x1411   :  { %v15444_v39 = vmul.f32 %v15403_v53, %v18081_v38  ;;  %v15448_v0 = vmul.f32 %v15403_v53, %v18082_v19  ;;  %v15472_v38 = vmul.f32 %v15308_v41, %v18091_v32  ;;  %v18093_v19 = vld [vmem:[#allocation35_spill] sm:$0xff]  ;;  %v15492_v32 = vmul.f32 %v15333_v28, %v18101_v57 }
0x1412   :  { %v6519_v62 = vpop.f32.mrf.mxu0  ;;  %v15476_v46 = vmul.f32 %v15350_v26, %v18093_v19 }
0x1413   :  { %9801 = vmatprep.mubr.msk.f32.mxu0 %vm797_vm1, %v6519_v62  ;;  %v18072_v62 = vld [vmem:[#allocation25_spill] sm:$0xff]  ;;  %18083 = vst [vmem:[#allocation191_spill] sm:$0xff] %v15448_v0  ;;  %18092 = vst [vmem:[#allocation190_spill] sm:$0xff] %v15472_v38  ;;  %v18109_v0 = vld [vmem:[#allocation43_spill] sm:$0xff] }
0x1414   :  { %v9774_v42 = vpop.f32.mrf.mxu0  ;;  %9802 = vmatmul.mubr.msk.f32.gmra.mxu0 %vm797_vm1, %v9771_v35  ;;  %v15407_v35 = vmul.f32 %v15350_v26, %v18070_v1  ;;  %v15456_v1 = vmul.f32 %v15328_v30, %v18085_v25  ;;  %18094 = vst [vmem:[#allocation193_spill] sm:$0xff] %v15476_v46  ;;  %v18095_v25 = vld [vmem:[#allocation42_spill] sm:$0xff]  ;;  %18102 = vst [vmem:[#allocation194_spill] sm:$0xff] %v15492_v32  ;;  %v18113_v32 = vld [vmem:[#allocation45_spill] sm:$0xff] }
0x1415   :  { %v18118_v46 = vld [vmem:[#allocation54_spill] sm:$0xff] }
0x1416   :  { %v6529_v58 = vpop.f32.mrf.mxu0  ;;  %18071 = vst [vmem:[#allocation179_spill] sm:$0xff] %v15407_v35  ;;  %v18103_v35 = vld [vmem:[#allocation46_spill] sm:$0xff] }
0x1417   :  { %9804 = vmatprep.mubr.msk.f32.mxu0 %vm797_vm1, %v6529_v58  ;;  %v18074_v58 = vld [vmem:[#allocation22_spill] sm:$0xff]  ;;  %v15496_v19 = vmul.f32 %v15333_v28, %v18103_v35  ;;  %v15516_v35 = vmul.f32 %v15403_v53, %v18113_v32 }
0x1418   :  { %v9777_v52 = vpop.f32.mrf.mxu0  ;;  %9805 = vmatmul.mubr.msk.f32.gmra.mxu0 %vm797_vm1, %v9774_v42  ;;  %v15411_v42 = vmul.f32 %v15313_v61, %v18072_v62  ;;  %v18086_v62 = vld [vmem:[#allocation31_spill] sm:$0xff] }
0x1419   :  { %18104 = vst [vmem:[#allocation152_spill] sm:$0xff] %v15496_v19  ;;  %v18114_v19 = vld [vmem:[#allocation52_spill] sm:$0xff] }
0x141a   :  { %v6539_v29 = vpop.f32.mrf.mxu0  ;;  %18073 = vst [vmem:[#allocation185_spill] sm:$0xff] %v15411_v42  ;;  %v18136_v42 = vld [vmem:[#allocation64_spill] sm:$0xff] }
0x141b   :  { %9807 = vmatprep.mubr.msk.f32.mxu0 %vm797_vm1, %v6539_v29  ;;  %v18075_v29 = vld [vmem:[#allocation28_spill] sm:$0xff] }
0x141c   :  { %v9780_v54 = vpop.f32.mrf.mxu0  ;;  %9808 = vmatmul.mubr.msk.f32.gmra.mxu0 %vm797_vm1, %v9777_v52  ;;  %v15415_v52 = vmul.f32 %v15328_v30, %v18074_v58 }
0x141e   :  { %v6549_v17 = vpop.f32.mrf.mxu0 }
0x141f   :  { %9810 = vmatprep.mubr.msk.f32.mxu0 %vm797_vm1, %v6549_v17  ;;  %v15424_v17 = vld [vmem:[%s17175_s9 + $0x11] ss:$0 sm:$0xff] }
0x1420   :  { %9811 = vmatmul.mubr.msk.f32.gmra.mxu0 %vm797_vm1, %v9780_v54  ;;  %v15419_v54 = vmul.f32 %v15333_v28, %v18075_v29  ;;  %v15460_v58 = vmul.f32 %v15424_v17, %v18086_v62  ;;  %v18088_v29 = vld [vmem:[#allocation38_spill] sm:$0xff]  ;;  %v15480_v62 = vmul.f32 %v15350_v26, %v18095_v25  ;;  %v15536_v32 = vmul.f32 %v15424_v17, %v18121_v6 }
0x1421   :  { %v15464_v10 = vmul.f32 %v15424_v17, %v18088_v29  ;;  %v15484_v29 = vmul.f32 %v15313_v61, %v18097_v55 }
0x1422   :  { %18076 = vst [vmem:[#allocation186_spill] sm:$0xff] %v15419_v54  ;;  %18087 = vst [vmem:[#allocation189_spill] sm:$0xff] %v15460_v58  ;;  %v18099_v58 = vld [vmem:[#allocation44_spill] sm:$0xff]  ;;  %v18116_v54 = vld [vmem:[#allocation47_spill] sm:$0xff] }
0x1423   :  { %18089 = vst [vmem:[#allocation180_spill] sm:$0xff] %v15464_v10  ;;  %18096 = vst [vmem:[#allocation192_spill] sm:$0xff] %v15480_v62  ;;  %v15488_v20 = vmul.f32 %v15313_v61, %v18099_v58  ;;  %v18105_v10 = vld [vmem:[#allocation41_spill] sm:$0xff]  ;;  %v18107_v62 = vld [vmem:[#allocation48_spill] sm:$0xff]  ;;  %v15508_v58 = vmul.f32 %v15323_v44, %v18109_v0  ;;  %v15528_v0 = vmul.f32 %v15328_v30, %v18118_v46 }
0x1424   :  { %18098 = vst [vmem:[#allocation200_spill] sm:$0xff] %v15484_v29  ;;  %v15500_v25 = vmul.f32 %v15318_v13, %v18105_v10  ;;  %v15504_v55 = vmul.f32 %v15318_v13, %v18107_v62  ;;  %v15520_v10 = vmul.f32 %v15403_v53, %v18114_v19  ;;  %v15524_v62 = vmul.f32 %v15328_v30, %v18116_v54  ;;  %v18321_v29 = vld [vmem:[#allocation139_spill] sm:$0xff] }
0x1425   :  { %18100 = vst [vmem:[#allocation205_spill] sm:$0xff] %v15488_v20  ;;  %18110 = vst [vmem:[#allocation197_spill] sm:$0xff] %v15508_v58  ;;  %v18111_v20 = vld [vmem:[#allocation50_spill] sm:$0xff]  ;;  %v15540_v19 = vmul.f32 %v15308_v41, %v18123_v59  ;;  %v15548_v46 = vmul.f32 %v15350_v26, %v18126_v18  ;;  %v15568_v18 = vmul.f32 %v15333_v28, %v18136_v42 }
0x1426   :  { %18106 = vst [vmem:[#allocation196_spill] sm:$0xff] %v15500_v25  ;;  %18108 = vst [vmem:[#allocation181_spill] sm:$0xff] %v15504_v55  ;;  %v15512_v57 = vmul.f32 %v15323_v44, %v18111_v20  ;;  %v15532_v20 = vmul.f32 %v15424_v17, %v18119_v9  ;;  %v15552_v9 = vmul.f32 %v15350_v26, %v18128_v27  ;;  %v18322_v55 = vld [vmem:[#allocation227_spill] sm:$0xff] }
0x1427   :  { %18115 = vst [vmem:[#allocation206_spill] sm:$0xff] %v15520_v10  ;;  %18117 = vst [vmem:[#allocation211_spill] sm:$0xff] %v15524_v62  ;;  %v18124_v10 = vld [vmem:[#allocation58_spill] sm:$0xff]  ;;  %v18323_v25 = vld [vmem:[#allocation143_spill] sm:$0xff] }
0x1428   :  { %18112 = vst [vmem:[#allocation201_spill] sm:$0xff] %v15512_v57  ;;  %18120 = vst [vmem:[#allocation209_spill] sm:$0xff] %v15532_v20  ;;  %v15544_v54 = vmul.f32 %v15308_v41, %v18124_v10  ;;  %v18130_v20 = vld [vmem:[#allocation55_spill] sm:$0xff]  ;;  %v15564_v10 = vmul.f32 %v15333_v28, %v18134_v60  ;;  %v18150_v57 = vld [vmem:[#allocation65_spill] sm:$0xff] }
0x1429   :  { %18122 = vst [vmem:[#allocation198_spill] sm:$0xff] %v15536_v32  ;;  %18127 = vst [vmem:[#allocation157_spill] sm:$0xff] %v15548_v46  ;;  %v15556_v6 = vmul.f32 %v15313_v61, %v18130_v20  ;;  %v18132_v32 = vld [vmem:[#allocation62_spill] sm:$0xff]  ;;  %v18138_v46 = vld [vmem:[#allocation59_spill] sm:$0xff] }
0x142a   :  { %18125 = vst [vmem:[#allocation164_spill] sm:$0xff] %v15544_v54  ;;  %18129 = vst [vmem:[#allocation187_spill] sm:$0xff] %v15552_v9  ;;  %v15560_v59 = vmul.f32 %v15313_v61, %v18132_v32  ;;  %v15572_v27 = vmul.f32 %v15318_v13, %v18138_v46  ;;  %v18140_v9 = vld [vmem:[#allocation66_spill] sm:$0xff]  ;;  %v18170_v54 = vld [vmem:[#allocation75_spill] sm:$0xff] }
0x142b   :  { %18131 = vst [vmem:[#allocation212_spill] sm:$0xff] %v15556_v6  ;;  %18135 = vst [vmem:[#allocation213_spill] sm:$0xff] %v15564_v10  ;;  %v15576_v20 = vmul.f32 %v15318_v13, %v18140_v9  ;;  %v18142_v6 = vld [vmem:[#allocation61_spill] sm:$0xff]  ;;  %v18146_v10 = vld [vmem:[#allocation63_spill] sm:$0xff]  ;;  %v15596_v9 = vmul.f32 %v15328_v30, %v18150_v57 }
0x142c   :  { %18133 = vst [vmem:[#allocation210_spill] sm:$0xff] %v15560_v59  ;;  %18137 = vst [vmem:[#allocation219_spill] sm:$0xff] %v15568_v18  ;;  %v15580_v32 = vmul.f32 %v15323_v44, %v18142_v6  ;;  %v18144_v59 = vld [vmem:[#allocation68_spill] sm:$0xff]  ;;  %v15588_v42 = vmul.f32 %v15403_v53, %v18146_v10  ;;  %v18148_v18 = vld [vmem:[#allocation70_spill] sm:$0xff] }
0x142d   :  { %18139 = vst [vmem:[#allocation151_spill] sm:$0xff] %v15572_v27  ;;  %18141 = vst [vmem:[#allocation216_spill] sm:$0xff] %v15576_v20  ;;  %v15584_v60 = vmul.f32 %v15323_v44, %v18144_v59  ;;  %v15592_v46 = vmul.f32 %v15403_v53, %v18148_v18  ;;  %v18152_v20 = vld [vmem:[#allocation72_spill] sm:$0xff]  ;;  %v18164_v27 = vld [vmem:[#allocation78_spill] sm:$0xff] }
0x142e   :  { %18143 = vst [vmem:[#allocation153_spill] sm:$0xff] %v15580_v32  ;;  %18147 = vst [vmem:[#allocation223_spill] sm:$0xff] %v15588_v42  ;;  %v15600_v6 = vmul.f32 %v15328_v30, %v18152_v20  ;;  %v18154_v32 = vld [vmem:[#allocation67_spill] sm:$0xff]  ;;  %v18158_v42 = vld [vmem:[#allocation69_spill] sm:$0xff] }
0x142f   :  { %18145 = vst [vmem:[#allocation217_spill] sm:$0xff] %v15584_v60  ;;  %18149 = vst [vmem:[#allocation214_spill] sm:$0xff] %v15592_v46  ;;  %v15604_v59 = vmul.f32 %v15424_v17, %v18154_v32  ;;  %v18156_v60 = vld [vmem:[#allocation74_spill] sm:$0xff]  ;;  %v15612_v18 = vmul.f32 %v15308_v41, %v18158_v42  ;;  %v18160_v46 = vld [vmem:[#allocation76_spill] sm:$0xff]  ;;  %v15624_v32 = vmul.f32 %v15350_v26, %v18164_v27 }
0x1430   :  { %18151 = vst [vmem:[#allocation220_spill] sm:$0xff] %v15596_v9  ;;  %18153 = vst [vmem:[#allocation224_spill] sm:$0xff] %v15600_v6  ;;  %v15608_v10 = vmul.f32 %v15424_v17, %v18156_v60  ;;  %v15616_v57 = vmul.f32 %v15308_v41, %v18160_v46  ;;  %v18162_v9 = vld [vmem:[#allocation71_spill] sm:$0xff]  ;;  %v15636_v46 = vmul.f32 %v15333_v28, %v18170_v54 }
0x1431   :  { %18155 = vst [vmem:[#allocation228_spill] sm:$0xff] %v15604_v59  ;;  %18159 = vst [vmem:[#allocation218_spill] sm:$0xff] %v15612_v18  ;;  %v15620_v20 = vmul.f32 %v15350_v26, %v18162_v9  ;;  %v18166_v59 = vld [vmem:[#allocation73_spill] sm:$0xff]  ;;  %v18325_v62 = vld [vmem:[#allocation235_spill] sm:$0xff] }
0x1432   :  { %18157 = vst [vmem:[#allocation231_spill] sm:$0xff] %v15608_v10  ;;  %18161 = vst [vmem:[#allocation130_spill] sm:$0xff] %v15616_v57  ;;  %v15628_v60 = vmul.f32 %v15313_v61, %v18166_v59  ;;  %v18168_v10 = vld [vmem:[#allocation80_spill] sm:$0xff]  ;;  %v18172_v57 = vld [vmem:[#allocation82_spill] sm:$0xff] }
0x1433   :  { %18163 = vst [vmem:[#allocation167_spill] sm:$0xff] %v15620_v20  ;;  %18165 = vst [vmem:[#allocation229_spill] sm:$0xff] %v15624_v32  ;;  %v15632_v42 = vmul.f32 %v15313_v61, %v18168_v10  ;;  %v15640_v9 = vmul.f32 %v15333_v28, %v18172_v57  ;;  %v18174_v20 = vld [vmem:[#allocation77_spill] sm:$0xff]  ;;  %v18176_v32 = vld [vmem:[#allocation84_spill] sm:$0xff] }
0x1434   :  { %18167 = vst [vmem:[#allocation232_spill] sm:$0xff] %v15628_v60  ;;  %18171 = vst [vmem:[#allocation239_spill] sm:$0xff] %v15636_v46  ;;  %v15644_v27 = vmul.f32 %v15318_v13, %v18174_v20  ;;  %v15648_v59 = vmul.f32 %v15318_v13, %v18176_v32  ;;  %v18178_v60 = vld [vmem:[#allocation79_spill] sm:$0xff]  ;;  %v18182_v46 = vld [vmem:[#allocation81_spill] sm:$0xff] }
0x1435   :  { %18169 = vst [vmem:[#allocation233_spill] sm:$0xff] %v15632_v42  ;;  %18173 = vst [vmem:[#allocation184_spill] sm:$0xff] %v15640_v9  ;;  %v15652_v10 = vmul.f32 %v15323_v44, %v18178_v60  ;;  %v18180_v42 = vld [vmem:[#allocation86_spill] sm:$0xff]  ;;  %v15660_v57 = vmul.f32 %v15403_v53, %v18182_v46  ;;  %v18184_v9 = vld [vmem:[#allocation88_spill] sm:$0xff] }
0x1436   :  { %18175 = vst [vmem:[#allocation234_spill] sm:$0xff] %v15644_v27  ;;  %18177 = vst [vmem:[#allocation236_spill] sm:$0xff] %v15648_v59  ;;  %v15656_v54 = vmul.f32 %v15323_v44, %v18180_v42  ;;  %v15664_v20 = vmul.f32 %v15403_v53, %v18184_v9  ;;  %v18186_v27 = vld [vmem:[#allocation83_spill] sm:$0xff]  ;;  %v18188_v59 = vld [vmem:[#allocation90_spill] sm:$0xff] }
0x1437   :  { %18179 = vst [vmem:[#allocation242_spill] sm:$0xff] %v15652_v10  ;;  %18183 = vst [vmem:[#allocation237_spill] sm:$0xff] %v15660_v57  ;;  %v15668_v32 = vmul.f32 %v15328_v30, %v18186_v27  ;;  %v15672_v60 = vmul.f32 %v15328_v30, %v18188_v59  ;;  %v18190_v10 = vld [vmem:[#allocation85_spill] sm:$0xff]  ;;  %v18194_v57 = vld [vmem:[#allocation87_spill] sm:$0xff] }
0x1438   :  { %18181 = vst [vmem:[#allocation240_spill] sm:$0xff] %v15656_v54  ;;  %18185 = vst [vmem:[#allocation246_spill] sm:$0xff] %v15664_v20  ;;  %v15676_v42 = vmul.f32 %v15424_v17, %v18190_v10  ;;  %v18192_v54 = vld [vmem:[#allocation92_spill] sm:$0xff]  ;;  %v15684_v9 = vmul.f32 %v15308_v41, %v18194_v57  ;;  %v18196_v20 = vld [vmem:[#allocation94_spill] sm:$0xff] }
0x1439   :  { %18187 = vst [vmem:[#allocation238_spill] sm:$0xff] %v15668_v32  ;;  %18189 = vst [vmem:[#allocation243_spill] sm:$0xff] %v15672_v60  ;;  %v15680_v46 = vmul.f32 %v15424_v17, %v18192_v54  ;;  %v15688_v27 = vmul.f32 %v15308_v41, %v18196_v20  ;;  %v18198_v32 = vld [vmem:[#allocation89_spill] sm:$0xff]  ;;  %v18200_v60 = vld [vmem:[#allocation96_spill] sm:$0xff] }
0x143a   :  { %18191 = vst [vmem:[#allocation183_spill] sm:$0xff] %v15676_v42  ;;  %18195 = vst [vmem:[#allocation244_spill] sm:$0xff] %v15684_v9  ;;  %v15692_v59 = vmul.f32 %v15350_v26, %v18198_v32  ;;  %v15696_v10 = vmul.f32 %v15350_v26, %v18200_v60  ;;  %v18202_v42 = vld [vmem:[#allocation91_spill] sm:$0xff]  ;;  %v18206_v9 = vld [vmem:[#allocation93_spill] sm:$0xff] }
0x143b   :  { %18193 = vst [vmem:[#allocation132_spill] sm:$0xff] %v15680_v46  ;;  %18197 = vst [vmem:[#allocation133_spill] sm:$0xff] %v15688_v27  ;;  %v15700_v54 = vmul.f32 %v15313_v61, %v18202_v42  ;;  %v18204_v46 = vld [vmem:[#allocation98_spill] sm:$0xff]  ;;  %v15708_v20 = vmul.f32 %v15333_v28, %v18206_v9  ;;  %v18208_v27 = vld [vmem:[#allocation100_spill] sm:$0xff] }
0x143c   :  { %18199 = vst [vmem:[#allocation248_spill] sm:$0xff] %v15692_v59  ;;  %18201 = vst [vmem:[#allocation245_spill] sm:$0xff] %v15696_v10  ;;  %v15704_v57 = vmul.f32 %v15313_v61, %v18204_v46  ;;  %v15712_v32 = vmul.f32 %v15333_v28, %v18208_v27  ;;  %v18210_v59 = vld [vmem:[#allocation95_spill] sm:$0xff]  ;;  %v18212_v10 = vld [vmem:[#allocation102_spill] sm:$0xff] }
0x143d   :  { %18203 = vst [vmem:[#allocation176_spill] sm:$0xff] %v15700_v54  ;;  %18207 = vst [vmem:[#allocation250_spill] sm:$0xff] %v15708_v20  ;;  %v15716_v60 = vmul.f32 %v15318_v13, %v18210_v59  ;;  %v15720_v42 = vmul.f32 %v15318_v13, %v18212_v10  ;;  %v18214_v54 = vld [vmem:[#allocation97_spill] sm:$0xff]  ;;  %v18218_v20 = vld [vmem:[#allocation99_spill] sm:$0xff] }
0x143e   :  { %18205 = vst [vmem:[#allocation249_spill] sm:$0xff] %v15704_v57  ;;  %18209 = vst [vmem:[#allocation253_spill] sm:$0xff] %v15712_v32  ;;  %v15724_v46 = vmul.f32 %v15323_v44, %v18214_v54  ;;  %v18216_v57 = vld [vmem:[#allocation104_spill] sm:$0xff]  ;;  %v15732_v27 = vmul.f32 %v15403_v53, %v18218_v20  ;;  %v18220_v32 = vld [vmem:[#allocation106_spill] sm:$0xff] }
0x143f   :  { %18211 = vst [vmem:[#allocation257_spill] sm:$0xff] %v15716_v60  ;;  %18213 = vst [vmem:[#allocation255_spill] sm:$0xff] %v15720_v42  ;;  %v15728_v9 = vmul.f32 %v15323_v44, %v18216_v57  ;;  %v15736_v59 = vmul.f32 %v15403_v53, %v18220_v32  ;;  %v18222_v60 = vld [vmem:[#allocation101_spill] sm:$0xff]  ;;  %v18224_v42 = vld [vmem:[#allocation108_spill] sm:$0xff] }
0x1440   :  { %18215 = vst [vmem:[#allocation134_spill] sm:$0xff] %v15724_v46  ;;  %18219 = vst [vmem:[#allocation254_spill] sm:$0xff] %v15732_v27  ;;  %v15740_v10 = vmul.f32 %v15328_v30, %v18222_v60  ;;  %v15744_v54 = vmul.f32 %v15328_v30, %v18224_v42  ;;  %v18226_v46 = vld [vmem:[#allocation103_spill] sm:$0xff]  ;;  %v18230_v27 = vld [vmem:[#allocation105_spill] sm:$0xff] }
0x1441   :  { %18217 = vst [vmem:[#allocation252_spill] sm:$0xff] %v15728_v9  ;;  %18221 = vst [vmem:[#allocation262_spill] sm:$0xff] %v15736_v59  ;;  %v15748_v57 = vmul.f32 %v15424_v17, %v18226_v46  ;;  %v18228_v9 = vld [vmem:[#allocation110_spill] sm:$0xff]  ;;  %v15756_v32 = vmul.f32 %v15308_v41, %v18230_v27  ;;  %v18232_v59 = vld [vmem:[#allocation112_spill] sm:$0xff] }
0x1442   :  { %18223 = vst [vmem:[#allocation260_spill] sm:$0xff] %v15740_v10  ;;  %18225 = vst [vmem:[#allocation261_spill] sm:$0xff] %v15744_v54  ;;  %v15752_v20 = vmul.f32 %v15424_v17, %v18228_v9  ;;  %v15760_v60 = vmul.f32 %v15308_v41, %v18232_v59  ;;  %v18234_v10 = vld [vmem:[#allocation107_spill] sm:$0xff]  ;;  %v18236_v54 = vld [vmem:[#allocation114_spill] sm:$0xff] }
0x1443   :  { %18227 = vst [vmem:[#allocation263_spill] sm:$0xff] %v15748_v57  ;;  %18231 = vst [vmem:[#allocation258_spill] sm:$0xff] %v15756_v32  ;;  %v15764_v42 = vmul.f32 %v15350_v26, %v18234_v10  ;;  %v15768_v46 = vmul.f32 %v15350_v26, %v18236_v54  ;;  %v18238_v57 = vld [vmem:[#allocation109_spill] sm:$0xff]  ;;  %v18242_v32 = vld [vmem:[#allocation111_spill] sm:$0xff] }
0x1444   :  { %18229 = vst [vmem:[#allocation203_spill] sm:$0xff] %v15752_v20  ;;  %18233 = vst [vmem:[#allocation256_spill] sm:$0xff] %v15760_v60  ;;  %v15772_v9 = vmul.f32 %v15313_v61, %v18238_v57  ;;  %v18240_v20 = vld [vmem:[#allocation116_spill] sm:$0xff]  ;;  %v15780_v59 = vmul.f32 %v15333_v28, %v18242_v32  ;;  %v18244_v60 = vld [vmem:[#allocation118_spill] sm:$0xff] }
0x1445   :  { %18235 = vst [vmem:[#allocation207_spill] sm:$0xff] %v15764_v42  ;;  %18237 = vst [vmem:[#allocation148_spill] sm:$0xff] %v15768_v46  ;;  %v15776_v27 = vmul.f32 %v15313_v61, %v18240_v20  ;;  %v15784_v10 = vmul.f32 %v15333_v28, %v18244_v60  ;;  %v18246_v42 = vld [vmem:[#allocation113_spill] sm:$0xff]  ;;  %v18248_v46 = vld [vmem:[#allocation120_spill] sm:$0xff] }
0x1446   :  { %18239 = vst [vmem:[#allocation131_spill] sm:$0xff] %v15772_v9  ;;  %18243 = vst [vmem:[#allocation165_spill] sm:$0xff] %v15780_v59  ;;  %v15788_v54 = vmul.f32 %v15318_v13, %v18246_v42  ;;  %v15792_v57 = vmul.f32 %v15318_v13, %v18248_v46  ;;  %v18250_v9 = vld [vmem:[#allocation115_spill] sm:$0xff]  ;;  %v18254_v59 = vld [vmem:[#allocation117_spill] sm:$0xff] }
0x1447   :  { %18241 = vst [vmem:[#allocation259_spill] sm:$0xff] %v15776_v27  ;;  %18245 = vst [vmem:[#allocation161_spill] sm:$0xff] %v15784_v10  ;;  %v15796_v20 = vmul.f32 %v15323_v44, %v18250_v9  ;;  %v18252_v27 = vld [vmem:[#allocation122_spill] sm:$0xff]  ;;  %v15804_v60 = vmul.f32 %v15403_v53, %v18254_v59  ;;  %v18256_v10 = vld [vmem:[#allocation124_spill] sm:$0xff] }
0x1448   :  { %18247 = vst [vmem:[#allocation168_spill] sm:$0xff] %v15788_v54  ;;  %18249 = vst [vmem:[#allocation162_spill] sm:$0xff] %v15792_v57  ;;  %v15800_v32 = vmul.f32 %v15323_v44, %v18252_v27  ;;  %v15808_v42 = vmul.f32 %v15403_v53, %v18256_v10  ;;  %v18258_v54 = vld [vmem:[#allocation119_spill] sm:$0xff]  ;;  %v18260_v57 = vld [vmem:[#allocation126_spill] sm:$0xff] }
0x1449   :  { %18251 = vst [vmem:[#allocation158_spill] sm:$0xff] %v15796_v20  ;;  %18255 = vst [vmem:[#allocation144_spill] sm:$0xff] %v15804_v60  ;;  %v15812_v46 = vmul.f32 %v15328_v30, %v18258_v54  ;;  %v15816_v9 = vmul.f32 %v15328_v30, %v18260_v57  ;;  %v18262_v20 = vld [vmem:[#allocation121_spill] sm:$0xff]  ;;  %v18266_v60 = vld [vmem:[#allocation123_spill] sm:$0xff] }
0x144a   :  { %18253 = vst [vmem:[#allocation145_spill] sm:$0xff] %v15800_v32  ;;  %18257 = vst [vmem:[#allocation142_spill] sm:$0xff] %v15808_v42  ;;  %v15820_v27 = vmul.f32 %v15424_v17, %v18262_v20  ;;  %v18264_v32 = vld [vmem:[#allocation128_spill] sm:$0xff]  ;;  %v15828_v10 = vmul.f32 %v15308_v41, %v18266_v60  ;;  %v18324_v18 = vld [vmem:[#allocation241_spill] sm:$0xff] }
0x144b   :  { %18259 = vst [vmem:[#allocation166_spill] sm:$0xff] %v15812_v46  ;;  %18261 = vst [vmem:[#allocation141_spill] sm:$0xff] %v15816_v9  ;;  %v15824_v59 = vmul.f32 %v15424_v17, %v18264_v32  ;;  %v18268_v42 = vld [vmem:[#allocation136_spill] sm:$0xff]  ;;  %v18270_v46 = vld [vmem:[#allocation125_spill] sm:$0xff] }
0x144c   :  { %18263 = vst [vmem:[#allocation13_spill] sm:$0xff] %v15820_v27  ;;  %18267 = vst [vmem:[#allocation14_spill] sm:$0xff] %v15828_v10  ;;  %v15832_v54 = vmul.f32 %v15308_v41, %v18268_v42  ;;  %v15836_v57 = vmul.f32 %v15350_v26, %v18270_v46  ;;  %v18272_v9 = vld [vmem:[#allocation146_spill] sm:$0xff]  ;;  %v18274_v27 = vld [vmem:[#allocation127_spill] sm:$0xff] }
0x144d   :  { %18265 = vst [vmem:[#allocation15_spill] sm:$0xff] %v15824_v59  ;;  %v15840_v20 = vmul.f32 %v15350_v26, %v18272_v9  ;;  %v15844_v32 = vmul.f32 %v15313_v61, %v18274_v27  ;;  %v18276_v59 = vld [vmem:[#allocation149_spill] sm:$0xff]  ;;  %v18280_v42 = vld [vmem:[#allocation154_spill] sm:$0xff] }
0x144e   :  { %18269 = vst [vmem:[#allocation12_spill] sm:$0xff] %v15832_v54  ;;  %18271 = vst [vmem:[#allocation11_spill] sm:$0xff] %v15836_v57  ;;  %v15848_v60 = vmul.f32 %v15313_v61, %v18276_v59  ;;  %v18278_v10 = vld [vmem:[#allocation129_spill] sm:$0xff]  ;;  %v15856_v46 = vmul.f32 %v15333_v28, %v18280_v42  ;;  %v18282_v57 = vld [vmem:[#allocation140_spill] sm:$0xff] }
0x144f   :  { %18273 = vst [vmem:[#allocation10_spill] sm:$0xff] %v15840_v20  ;;  %18275 = vst [vmem:[#allocation9_spill] sm:$0xff] %v15844_v32  ;;  %v15852_v41 = vmul.f32 %v15333_v28, %v18278_v10  ;;  %v15860_v9 = vmul.f32 %v15318_v13, %v18282_v57  ;;  %v18284_v20 = vld [vmem:[#allocation172_spill] sm:$0xff]  ;;  %v18286_v32 = vld [vmem:[#allocation147_spill] sm:$0xff] }
0x1450   :  { %18277 = vst [vmem:[#allocation8_spill] sm:$0xff] %v15848_v60  ;;  %18281 = vst [vmem:[#allocation6_spill] sm:$0xff] %v15856_v46  ;;  %v15864_v27 = vmul.f32 %v15323_v44, %v18284_v20  ;;  %v15868_v61 = vmul.f32 %v15323_v44, %v18286_v32  ;;  %v18288_v59 = vld [vmem:[#allocation199_spill] sm:$0xff]  ;;  %v8513_v42 = vld [vmem:[%s17174_s8 + $0x1] ss:$0 sm:$0xff] }
0x1451   :  { %18279 = vst [vmem:[#allocation7_spill] sm:$0xff] %v15852_v41  ;;  %18283 = vst [vmem:[#allocation18_spill] sm:$0xff] %v15860_v9  ;;  %v15872_v10 = vmul.f32 %v15403_v53, %v18288_v59  ;;  %v18290_v41 = vld [vmem:[#allocation150_spill] sm:$0xff]  ;;  %v18292_v57 = vld [vmem:[#allocation225_spill] sm:$0xff] }
0x1452   :  { %18285 = vst [vmem:[#allocation17_spill] sm:$0xff] %v15864_v27  ;;  %18287 = vst [vmem:[#allocation20_spill] sm:$0xff] %v15868_v61  ;;  %v15879_v13 = vmul.f32 %v15403_v53, %v18290_v41  ;;  %v15883_v20 = vmul.f32 %v15333_v28, %v18292_v57  ;;  %v18294_v46 = vld [vmem:[#allocation159_spill] sm:$0xff] }
0x1453   :  { %18289 = vst [vmem:[#allocation19_spill] sm:$0xff] %v15872_v10  ;;  %v15887_v44 = vmul.f32 %v15328_v30, %v18294_v46  ;;  %v18296_v32 = vld [vmem:[#allocation247_spill] sm:$0xff]  ;;  %v18298_v10 = vld [vmem:[#allocation178_spill] sm:$0xff] }
0x1454   :  { %18291 = vst [vmem:[#allocation23_spill] sm:$0xff] %v15879_v13  ;;  %18293 = vst [vmem:[#allocation21_spill] sm:$0xff] %v15883_v20  ;;  %v15891_v59 = vmul.f32 %v15350_v26, %v18296_v32  ;;  %v15895_v60 = vmul.f32 %v15424_v17, %v18298_v10  ;;  %v18300_v27 = vld [vmem:[#allocation155_spill] sm:$0xff]  ;;  %v18302_v13 = vld [vmem:[#allocation204_spill] sm:$0xff] }
0x1455   :  { %18295 = vst [vmem:[#allocation25_spill] sm:$0xff] %v15887_v44  ;;  %v15899_v41 = vmul.f32 %v15333_v28, %v18300_v27  ;;  %v15903_v57 = vmul.f32 %v15350_v26, %v18302_v13  ;;  %v18304_v20 = vld [vmem:[#allocation202_spill] sm:$0xff]  ;;  %v18311_v28 = vld [vmem:[#allocation195_spill] sm:$0xff] }
0x1456   :  { %18297 = vst [vmem:[#allocation22_spill] sm:$0xff] %v15891_v59  ;;  %18299 = vst [vmem:[#allocation28_spill] sm:$0xff] %v15895_v60  ;;  %v15907_v46 = vmul.f32 %v15403_v53, %v18304_v20  ;;  %v18306_v44 = vld [vmem:[#allocation230_spill] sm:$0xff]  ;;  %v18308_v59 = vld [vmem:[#allocation251_spill] sm:$0xff]  ;;  %v5106_v27 = vadd.f32 %v8513_v42, %v18311_v28 }
0x1457   :  { %18301 = vst [vmem:[#allocation24_spill] sm:$0xff] %v15899_v41  ;;  %18303 = vst [vmem:[#allocation30_spill] sm:$0xff] %v15903_v57  ;;  %v15911_v32 = vmul.f32 %v15328_v30, %v18306_v44  ;;  %v15915_v10 = vmul.f32 %v15424_v17, %v18308_v59  ;;  %v18310_v60 = vld [vmem:[#allocation135_spill] sm:$0xff]  ;;  %v18312_v41 = vld [vmem:[#allocation156_spill] sm:$0xff] }
0x1458   :  { %18305 = vst [vmem:[#allocation26_spill] sm:$0xff] %v15907_v46  ;;  %v5107_v61 = vadd.f32 %v8513_v42, %v18310_v60  ;;  %v5109_v9 = vadd.f32 %v8513_v42, %v18312_v41  ;;  %v18313_v26 = vld [vmem:[#allocation226_spill] sm:$0xff]  ;;  %v18314_v57 = vld [vmem:[#allocation208_spill] sm:$0xff]  ;;  %v18316_v46 = vld [vmem:[#allocation221_spill] sm:$0xff]  ;;  %v5116_v41 = vadd.f32 %v8513_v42, %v18321_v29 }
0x1459   :  { %18307 = vst [vmem:[#allocation32_spill] sm:$0xff] %v15911_v32  ;;  %18309 = vst [vmem:[#allocation27_spill] sm:$0xff] %v15915_v10  ;;  %v5108_v13 = vadd.f32 %v8513_v42, %v18313_v26  ;;  %v5111_v54 = vadd.f32 %v8513_v42, %v18314_v57  ;;  %v18315_v53 = vld [vmem:[#allocation222_spill] sm:$0xff]  ;;  %v5113_v6 = vadd.f32 %v8513_v42, %v18316_v46  ;;  %v18317_v30 = vld [vmem:[#allocation137_spill] sm:$0xff] }
0x145a   :  { %v5110_v20 = vadd.f32 %v8513_v42, %v18315_v53  ;;  %v5112_v44 = vadd.f32 %v8513_v42, %v18317_v30  ;;  %v18318_v32 = vld [vmem:[#allocation215_spill] sm:$0xff]  ;;  %v18319_v17 = vld [vmem:[#allocation138_spill] sm:$0xff]  ;;  %v5932_v60 = vadd.f32 %v15257_v24, %v5107_v61  ;;  %v5118_v26 = vadd.f32 %v8513_v42, %v18322_v55 }
0x145b   :  { %v5115_v58 = vadd.f32 %v8513_v42, %v18318_v32  ;;  %v5114_v59 = vadd.f32 %v8513_v42, %v18319_v17  ;;  %v18320_v10 = vld [vmem:[#allocation163_spill] sm:$0xff]  ;;  %v5931_v57 = vadd.f32 %v15259_v47, %v5106_v27  ;;  %v5119_v53 = vadd.f32 %v8513_v42, %v18323_v25 }
0x145c   :  { %v5117_v28 = vadd.f32 %v8513_v42, %v18320_v10  ;;  %v5121_v46 = vadd.f32 %v8513_v42, %v18324_v18  ;;  %v5120_v30 = vadd.f32 %v8513_v42, %v18325_v62  ;;  %v5934_v32 = vadd.f32 %v15261_v3, %v5109_v9 }
0x145d   :  { %v5933_v17 = vadd.f32 %v15263_v7, %v5108_v13  ;;  %v5936_v24 = vadd.f32 %v15265_v12, %v5111_v54  ;;  %v5935_v29 = vadd.f32 %v15267_v34, %v5110_v20  ;;  %v5938_v55 = vadd.f32 %v15269_v5, %v5113_v6 }
0x145e   :  { %v15941_v47 = vadd.f32 %v15271_v40, %v5112_v44  ;;  %v15944_v25 = vadd.f32 %v15273_v22, %v5115_v58  ;;  %v15947_v62 = vadd.f32 %v15275_v36, %v5114_v59  ;;  %v15950_v3 = vadd.f32 %v15277_v11, %v5117_v28 }
0x145f   :  { %v15953_v7 = vadd.f32 %v15279_v23, %v5116_v41  ;;  %v15956_v12 = vadd.f32 %v15281_v4, %v5119_v53  ;;  %v15959_v34 = vadd.f32 %v15283_v37, %v5118_v26  ;;  %v15962_v5 = vadd.f32 %v15285_v49, %v5121_v46 }
0x1460   :  { %v15965_v40 = vadd.f32 %v15287_v14, %v5120_v30 }
0x14c4   :  { %v9791_v38 = vpop.f32.mrf.mxu0 }
0x14c5   :  { %v6757_v61 = vadd.f32 %v9791_v38, %v5932_v60 }
0x14c6   :  { %v6677_v18 = vpop.f32.mrf.mxu0 }
0x14c7   :  { %v15967_v22 = vadd.f32 %v6677_v18, %v5931_v57  ;;  %v6804_v11 = vrot.slane %v6757_v61, 7  ;;  %v6925_v38 = vmul.f32 %v15394_v43, %v6757_v61  ;;  %v6958_v23 = vrot.slane %v6757_v61, 1 }
0x14c8   :  { %v9794_v36 = vpop.f32.mrf.mxu0  ;;  %v15971_v4 = vmul.f32 %v15415_v52, %v6757_v61  ;;  %v15976_v54 = vmul.f32 %v15444_v39, %v6757_v61 }
0x14c9   :  { %18326 = vst [vmem:[#allocation34_spill] sm:$0xff] %v15967_v22  ;;  %v6759_v58 = vadd.f32 %v9794_v36, %v5934_v32  ;;  %v17391_v37 = vrot.slane %v15967_v22, 7  ;;  %v17390_v6 = vrot.slane %v15967_v22, 1  ;;  %v15980_v14 = vmul.f32 %v15354_v48, %v15967_v22 }
0x14ca   :  { %v6687_v49 = vpop.f32.mrf.mxu0  ;;  %v15984_v43 = vmul.f32 %v15366_v2, %v15967_v22 }
0x14cb   :  { %v6808_v9 = vrot.slane %v6759_v58, 7  ;;  %v6927_v52 = vmul.f32 %v15468_v56, %v6759_v58  ;;  %v15990_v42 = vsel %vm2393_vm2, %v17391_v37, %v6804_v11  ;;  %v15995_v39 = vsel %vm2727_vm3, %v17390_v6, %v6958_v23 }
0x14cc   :  { %v6962_v10 = vrot.slane %v6759_v58, 1  ;;  %v15997_v48 = vadd.f32 %v6687_v49, %v5933_v17  ;;  %v9797_v27 = vpop.f32.mrf.mxu0  ;;  %v6871_v2 = vmul.f32 %v15370_v15, %v15990_v42  ;;  %v16002_v13 = vmul.f32 %v15456_v1, %v6759_v58 }
0x14cd   :  { %v16004_v56 = vadd.f32 %v9797_v27, %v5936_v24  ;;  %v16007_v20 = vmul.f32 %v15516_v35, %v6759_v58  ;;  %v16011_v44 = vmul.f32 %v15362_v8, %v15995_v39  ;;  %v16015_v59 = vmul.f32 %v15374_v45, %v15990_v42  ;;  %v18327_v58 = vld [vmem:[#allocation190_spill] sm:$0xff]  ;;  %v18328_v27 = vld [vmem:[#allocation211_spill] sm:$0xff] }
0x14ce   :  { %v6806_v60 = vrot.slane %v15997_v48, 7  ;;  %v6960_v15 = vrot.slane %v15997_v48, 1  ;;  %v6697_v28 = vpop.f32.mrf.mxu0  ;;  %v6926_v1 = vmul.f32 %v15390_v51, %v15997_v48  ;;  %v6941_v41 = vadd.f32 %v6925_v38, %v6871_v2 }
0x14cf   :  { %v7136_v35 = vmul.f32 %v15452_v16, %v15997_v48  ;;  %v6812_v26 = vrot.slane %v16004_v56, 7  ;;  %v6929_v53 = vmul.f32 %v15540_v19, %v16004_v56  ;;  %v17393_v32 = vrot.slane %v16004_v56, 1 }
0x14d0   :  { %v16025_v8 = vsel %vm2393_vm2, %v6804_v11, %v6806_v60  ;;  %v16028_v45 = vsel %vm2393_vm2, %v6806_v60, %v6808_v9  ;;  %v16031_v57 = vsel %vm2727_vm3, %v6958_v23, %v6960_v15  ;;  %v9800_v46 = vpop.f32.mrf.mxu0  ;;  %v16044_v17 = vmul.f32 %v15528_v0, %v16004_v56  ;;  %v18330_v60 = vld [vmem:[#allocation218_spill] sm:$0xff] }
0x14d1   :  { %v6872_v51 = vmul.f32 %v15428_v21, %v16025_v8  ;;  %v6873_v16 = vmul.f32 %v15432_v63, %v16028_v45  ;;  %v7028_v30 = vmul.f32 %v15378_v33, %v16031_v57  ;;  %v16046_v24 = vadd.f32 %v6697_v28, %v5935_v29 }
0x14d2   :  { %v16048_v61 = vadd.f32 %v9800_v46, %v5938_v55  ;;  %v6707_v19 = vpop.f32.mrf.mxu0  ;;  %v16051_v18 = vsel %vm2727_vm3, %v6960_v15, %v6962_v10  ;;  %v7082_v33 = vmul.f32 %v15436_v50, %v16025_v8  ;;  %v16059_v11 = vmul.f32 %v15440_v31, %v16028_v45 }
0x14d3   :  { %v16053_v21 = vadd.f32 %v6926_v1, %v6872_v51  ;;  %v7044_v63 = vadd.f32 %v7028_v30, %v6941_v41  ;;  %v6943_v36 = vadd.f32 %v6927_v52, %v6873_v16  ;;  %v6810_v0 = vrot.slane %v16046_v24, 7  ;;  %v18331_v41 = vld [vmem:[#allocation196_spill] sm:$0xff] }
0x14d4   :  { %v17389_v29 = vrot.slane %v16046_v24, 1  ;;  %v16064_v55 = vadd.f32 %v6707_v19, %v15941_v47  ;;  %v9803_v38 = vpop.f32.mrf.mxu0  ;;  %v6928_v49 = vmul.f32 %v18327_v58, %v16046_v24  ;;  %v7138_v50 = vmul.f32 %v18328_v27, %v16046_v24  ;;  %v18333_v16 = vld [vmem:[#allocation200_spill] sm:$0xff]  ;;  %v18334_v19 = vld [vmem:[#allocation197_spill] sm:$0xff] }
0x14d5   :  { %v7098_v23 = vadd.f32 %v7082_v33, %v7044_v63  ;;  %v6816_v52 = vrot.slane %v16048_v61, 7  ;;  %v16072_v31 = vsel %vm2393_vm2, %v6808_v9, %v6810_v0  ;;  %v16075_v2 = vsel %vm2393_vm2, %v6810_v0, %v6812_v26  ;;  %v18332_v9 = vld [vmem:[#allocation181_spill] sm:$0xff]  ;;  %v18335_v33 = vld [vmem:[#allocation224_spill] sm:$0xff] }
0x14d6   :  { %18329 = vst [vmem:[#allocation29_spill] sm:$0xff] %v16075_v2  ;;  %v16080_v47 = vsel %vm2727_vm3, %v6962_v10, %v17389_v29  ;;  %v6931_v15 = vmul.f32 %v18330_v60, %v16048_v61  ;;  %v6717_v28 = vpop.f32.mrf.mxu0  ;;  %v6874_v46 = vmul.f32 %v18331_v41, %v16072_v31  ;;  %v6875_v51 = vmul.f32 %v18332_v9, %v16075_v2 }
0x14d7   :  { %v16084_v1 = vadd.f32 %v7136_v35, %v7098_v23  ;;  %v7030_v30 = vmul.f32 %v18333_v16, %v16080_v47  ;;  %v7084_v63 = vmul.f32 %v18334_v19, %v16072_v31  ;;  %v16097_v0 = vmul.f32 %v18335_v33, %v16048_v61  ;;  %v18339_v19 = vld [vmem:[#allocation164_spill] sm:$0xff] }
0x14d8   :  { %v6814_v35 = vrot.slane %v16064_v55, 7  ;;  %v9806_v23 = vpop.f32.mrf.mxu0  ;;  %v16100_v58 = vadd.f32 %v6928_v49, %v6874_v46  ;;  %v6945_v60 = vadd.f32 %v6929_v53, %v6875_v51  ;;  %v17392_v41 = vrot.slane %v16064_v55, 1  ;;  %v18340_v49 = vld [vmem:[#allocation151_spill] sm:$0xff]  ;;  %v18341_v53 = vld [vmem:[#allocation216_spill] sm:$0xff]  ;;  %v18342_v51 = vld [vmem:[#allocation201_spill] sm:$0xff] }
0x14d9   :  { %18336 = vst [vmem:[#allocation36_spill] sm:$0xff] %v16097_v0  ;;  %v7046_v27 = vadd.f32 %v7030_v30, %v6943_v36  ;;  %v6930_v29 = vmul.f32 %v18339_v19, %v16064_v55  ;;  %v16112_v33 = vadd.f32 %v9803_v38, %v15944_v25  ;;  %v16127_v30 = vmul.f32 %v18342_v51, %v16075_v2  ;;  %v18343_v25 = vld [vmem:[#allocation212_spill] sm:$0xff] }
0x14da   :  { %v16104_v9 = vsel %vm2393_vm2, %v6812_v26, %v6814_v35  ;;  %v16107_v16 = vsel %vm2393_vm2, %v6814_v35, %v6816_v52  ;;  %v6727_v6 = vpop.f32.mrf.mxu0  ;;  %v16123_v26 = vsel %vm2727_vm3, %v17393_v32, %v17392_v41  ;;  %v18346_v41 = vld [vmem:[#allocation217_spill] sm:$0xff] }
0x14db   :  { %18337 = vst [vmem:[#allocation31_spill] sm:$0xff] %v16104_v9  ;;  %18338 = vst [vmem:[#allocation38_spill] sm:$0xff] %v16107_v16  ;;  %v7100_v37 = vadd.f32 %v7084_v63, %v7046_v27  ;;  %v6876_v36 = vmul.f32 %v18340_v49, %v16104_v9  ;;  %v6877_v46 = vmul.f32 %v18341_v53, %v16107_v16  ;;  %v18344_v63 = vld [vmem:[#allocation153_spill] sm:$0xff]  ;;  %v18345_v27 = vld [vmem:[#allocation220_spill] sm:$0xff]  ;;  %v6820_v51 = vrot.slane %v16112_v33, 7 }
0x14dc   :  { %v7032_v38 = vmul.f32 %v18343_v25, %v16123_v26  ;;  %v7086_v35 = vmul.f32 %v18344_v63, %v16104_v9  ;;  %v7140_v19 = vmul.f32 %v18345_v27, %v16064_v55  ;;  %v9809_v49 = vpop.f32.mrf.mxu0  ;;  %v16141_v32 = vmul.f32 %v18346_v41, %v16107_v16  ;;  %v18348_v25 = vld [vmem:[#allocation244_spill] sm:$0xff] }
0x14dd   :  { %v16135_v53 = vadd.f32 %v7138_v50, %v7100_v37  ;;  %v16137_v10 = vadd.f32 %v6930_v29, %v6876_v36  ;;  %v6933_v2 = vmul.f32 %v18348_v25, %v16112_v33  ;;  %v16147_v63 = vadd.f32 %v6717_v28, %v15947_v62  ;;  %v18349_v29 = vld [vmem:[#allocation243_spill] sm:$0xff]  ;;  %v18352_v28 = vld [vmem:[#allocation130_spill] sm:$0xff] }
0x14de   :  { %18347 = vst [vmem:[#allocation33_spill] sm:$0xff] %v16141_v32  ;;  %v7048_v0 = vadd.f32 %v7032_v38, %v6945_v60  ;;  %v6947_v9 = vadd.f32 %v6931_v15, %v6877_v46  ;;  %v6737_v27 = vpop.f32.mrf.mxu0  ;;  %v16152_v50 = vmul.f32 %v18349_v29, %v16112_v33  ;;  %v16155_v41 = vadd.f32 %v9806_v23, %v15950_v3  ;;  %v18353_v25 = vld [vmem:[#allocation238_spill] sm:$0xff] }
0x14df   :  { %v16158_v36 = vadd.f32 %v6727_v6, %v15953_v7  ;;  %v6818_v38 = vrot.slane %v16147_v63, 7  ;;  %v17397_v62 = vrot.slane %v16147_v63, 1  ;;  %v16163_v15 = vadd.f32 %v9809_v49, %v15956_v12  ;;  %v18359_v49 = vld [vmem:[#allocation234_spill] sm:$0xff] }
0x14e0   :  { %18350 = vst [vmem:[#allocation40_spill] sm:$0xff] %v16152_v50  ;;  %v7102_v60 = vadd.f32 %v7086_v35, %v7048_v0  ;;  %v6932_v46 = vmul.f32 %v18352_v28, %v16147_v63  ;;  %v7142_v29 = vmul.f32 %v18353_v25, %v16147_v63  ;;  %v6824_v3 = vrot.slane %v16155_v41, 7  ;;  %v18363_v25 = vld [vmem:[#allocation242_spill] sm:$0xff]  ;;  %v18364_v50 = vld [vmem:[#allocation240_spill] sm:$0xff] }
0x14e1   :  { %18351 = vst [vmem:[#allocation35_spill] sm:$0xff] %v16158_v36  ;;  %v16171_v23 = vadd.f32 %v6737_v27, %v15959_v34  ;;  %v16176_v6 = vsel %vm2393_vm2, %v6816_v52, %v6818_v38  ;;  %v16179_v0 = vsel %vm2393_vm2, %v6818_v38, %v6820_v51  ;;  %v18357_v12 = vrot.slane %v16048_v61, 1  ;;  %v18360_v34 = vld [vmem:[#allocation236_spill] sm:$0xff] }
0x14e2   :  { %v16173_v7 = vadd.f32 %v7140_v19, %v7102_v60  ;;  %18355 = vst [vmem:[#allocation37_spill] sm:$0xff] %v16176_v6  ;;  %18356 = vst [vmem:[#allocation44_spill] sm:$0xff] %v16179_v0  ;;  %v6878_v28 = vmul.f32 %v18359_v49, %v16176_v6  ;;  %v6879_v19 = vmul.f32 %v18360_v34, %v16179_v0  ;;  %v18361_v27 = vld [vmem:[#allocation232_spill] sm:$0xff]  ;;  %v18362_v60 = vld [vmem:[#allocation258_spill] sm:$0xff]  ;;  %v6822_v49 = vrot.slane %v16158_v36, 7 }
0x14e3   :  { %v16186_v35 = vsel %vm2727_vm3, %v18357_v12, %v17397_v62  ;;  %v6935_v38 = vmul.f32 %v18362_v60, %v16155_v41  ;;  %v7088_v37 = vmul.f32 %v18363_v25, %v16176_v6  ;;  %v16200_v16 = vmul.f32 %v18364_v50, %v16179_v0  ;;  %v18367_v60 = vld [vmem:[#allocation261_spill] sm:$0xff]  ;;  %v18379_v6 = vld [vmem:[#allocation252_spill] sm:$0xff] }
0x14e4   :  { %18354 = vst [vmem:[#allocation42_spill] sm:$0xff] %v16173_v7  ;;  %18358 = vst [vmem:[#allocation39_spill] sm:$0xff] %v16186_v35  ;;  %v7034_v52 = vmul.f32 %v18361_v27, %v16186_v35  ;;  %v16204_v62 = vadd.f32 %v6932_v46, %v6878_v28  ;;  %v6949_v7 = vadd.f32 %v6933_v2, %v6879_v19  ;;  %v17402_v27 = vrot.slane %v16158_v36, 1  ;;  %v9812_v35 = vpop.f32.mrf.mxu0  ;;  %v18371_v12 = vld [vmem:[#allocation133_spill] sm:$0xff]  ;;  %v18373_v28 = vld [vmem:[#allocation255_spill] sm:$0xff] }
0x14e5   :  { %18365 = vst [vmem:[#allocation46_spill] sm:$0xff] %v16200_v16  ;;  %v16209_v32 = vmul.f32 %v18367_v60, %v16155_v41  ;;  %v16212_v25 = vsel %vm2393_vm2, %v6820_v51, %v6822_v49  ;;  %v16215_v50 = vsel %vm2393_vm2, %v6822_v49, %v6824_v3  ;;  %v6934_v0 = vmul.f32 %v18371_v12, %v16158_v36  ;;  %v18376_v49 = vld [vmem:[#allocation176_spill] sm:$0xff] }
0x14e6   :  { %18366 = vst [vmem:[#allocation41_spill] sm:$0xff] %v16204_v62  ;;  %v7050_v34 = vadd.f32 %v7034_v52, %v6947_v9  ;;  %18369 = vst [vmem:[#allocation43_spill] sm:$0xff] %v16212_v25  ;;  %v18372_v9 = vld [vmem:[#allocation257_spill] sm:$0xff]  ;;  %v6881_v19 = vmul.f32 %v18373_v28, %v16215_v50  ;;  %v18374_v52 = vrot.slane %v16112_v33, 1  ;;  %v16243_v62 = vmul.f32 %v18379_v6, %v16215_v50 }
0x14e7   :  { %18368 = vst [vmem:[#allocation48_spill] sm:$0xff] %v16209_v32  ;;  %18370 = vst [vmem:[#allocation50_spill] sm:$0xff] %v16215_v50  ;;  %v6880_v2 = vmul.f32 %v18372_v9, %v16212_v25  ;;  %v18377_v32 = vld [vmem:[#allocation134_spill] sm:$0xff]  ;;  %v6828_v9 = vrot.slane %v16163_v15, 7  ;;  %v17409_v6 = vrot.slane %v16171_v23, 1 }
0x14e8   :  { %v7104_v46 = vadd.f32 %v7088_v37, %v7050_v34  ;;  %v16228_v51 = vsel %vm2727_vm3, %v18374_v52, %v17402_v27  ;;  %v7090_v12 = vmul.f32 %v18377_v32, %v16212_v25  ;;  %v18378_v37 = vld [vmem:[#allocation260_spill] sm:$0xff]  ;;  %18380 = vst [vmem:[#allocation52_spill] sm:$0xff] %v16243_v62  ;;  %v18381_v52 = vld [vmem:[#allocation14_spill] sm:$0xff]  ;;  %v6826_v25 = vrot.slane %v16171_v23, 7 }
0x14e9   :  { %18375 = vst [vmem:[#allocation45_spill] sm:$0xff] %v16228_v51  ;;  %v7036_v60 = vmul.f32 %v18376_v49, %v16228_v51  ;;  %v7144_v34 = vmul.f32 %v18378_v37, %v16158_v36  ;;  %v16239_v28 = vadd.f32 %v6934_v0, %v6880_v2  ;;  %v6937_v27 = vmul.f32 %v18381_v52, %v16163_v15  ;;  %v6747_v49 = vpop.f32.mrf.mxu0  ;;  %v18382_v36 = vld [vmem:[#allocation141_spill] sm:$0xff]  ;;  %v18384_v0 = vld [vmem:[#allocation256_spill] sm:$0xff]  ;;  %v18396_v50 = vld [vmem:[#allocation158_spill] sm:$0xff] }
0x14ea   :  { %v16237_v16 = vadd.f32 %v7142_v29, %v7104_v46  ;;  %v6951_v37 = vadd.f32 %v6935_v38, %v6881_v19  ;;  %v16251_v29 = vmul.f32 %v18382_v36, %v16163_v15  ;;  %v6936_v46 = vmul.f32 %v18384_v0, %v16171_v23  ;;  %v18387_v36 = vld [vmem:[#allocation168_spill] sm:$0xff]  ;;  %v18388_v0 = vld [vmem:[#allocation162_spill] sm:$0xff] }
0x14eb   :  { %v7052_v51 = vadd.f32 %v7036_v60, %v6949_v7  ;;  %v16257_v2 = vadd.f32 %v9812_v35, %v15962_v5  ;;  %v16260_v7 = vsel %vm2393_vm2, %v6824_v3, %v6826_v25  ;;  %v16263_v60 = vsel %vm2393_vm2, %v6826_v25, %v6828_v9  ;;  %v18391_v3 = vld [vmem:[#allocation166_spill] sm:$0xff] }
0x14ec   :  { %18383 = vst [vmem:[#allocation47_spill] sm:$0xff] %v16251_v29  ;;  %18385 = vst [vmem:[#allocation54_spill] sm:$0xff] %v16260_v7  ;;  %v16266_v38 = vadd.f32 %v6747_v49, %v15965_v40  ;;  %v6882_v19 = vmul.f32 %v18387_v36, %v16260_v7  ;;  %v6883_v32 = vmul.f32 %v18388_v0, %v16263_v60  ;;  %v18389_v5 = vrot.slane %v16155_v41, 1  ;;  %v18393_v40 = vld [vmem:[#allocation131_spill] sm:$0xff]  ;;  %v18394_v36 = vld [vmem:[#allocation185_spill] sm:$0xff] }
0x14ed   :  { %v7106_v52 = vadd.f32 %v7090_v12, %v7052_v51  ;;  %18386 = vst [vmem:[#allocation49_spill] sm:$0xff] %v16263_v60  ;;  %v7146_v25 = vmul.f32 %v18391_v3, %v16171_v23  ;;  %v6785_v49 = vrot.slane %v16257_v2, 7  ;;  %v7029_v0 = vmul.f32 %v18394_v36, %v16051_v18 }
0x14ee   :  { %v16277_v35 = vsel %vm2727_vm3, %v18389_v5, %v17409_v6  ;;  %v16288_v29 = vadd.f32 %v6936_v46, %v6882_v19  ;;  %v7092_v62 = vmul.f32 %v18396_v50, %v16260_v7  ;;  %v18397_v5 = vld [vmem:[#allocation145_spill] sm:$0xff]  ;;  %v18399_v3 = vrot.slane %v15967_v22, 7  ;;  %v18402_v19 = vld [vmem:[#allocation171_spill] sm:$0xff] }
0x14ef   :  { %18390 = vst [vmem:[#allocation56_spill] sm:$0xff] %v16277_v35  ;;  %v16281_v51 = vadd.f32 %v7144_v34, %v7106_v52  ;;  %v7038_v12 = vmul.f32 %v18393_v40, %v16277_v35  ;;  %v16294_v6 = vmul.f32 %v18397_v5, %v16263_v60  ;;  %v17415_v34 = vrot.slane %v16257_v2, 1 }
0x14f0   :  { %18395 = vst [vmem:[#allocation58_spill] sm:$0xff] %v16288_v29  ;;  %v16300_v40 = vsel %vm2393_vm2, %v6785_v49, %v18399_v3  ;;  %v6784_v46 = vrot.slane %v16266_v38, 7  ;;  %v18403_v7 = vrot.slane %v15967_v22, 1  ;;  %v6953_v3 = vadd.f32 %v6937_v27, %v6883_v32  ;;  %v18410_v29 = vld [vmem:[#allocation18_spill] sm:$0xff]  ;;  %v18411_v32 = vld [vmem:[#allocation169_spill] sm:$0xff] }
0x14f1   :  { %18392 = vst [vmem:[#allocation51_spill] sm:$0xff] %v16281_v51  ;;  %18398 = vst [vmem:[#allocation53_spill] sm:$0xff] %v16294_v6  ;;  %v7054_v52 = vadd.f32 %v7038_v12, %v6951_v37  ;;  %v18401_v51 = vld [vmem:[#allocation170_spill] sm:$0xff]  ;;  %v6870_v50 = vmul.f32 %v18402_v19, %v16300_v40  ;;  %v18405_v37 = vld [vmem:[#allocation32_spill] sm:$0xff]  ;;  %v17419_v27 = vrot.slane %v16266_v38, 1 }
0x14f2   :  { %18400 = vst [vmem:[#allocation60_spill] sm:$0xff] %v16300_v40  ;;  %v6923_v36 = vmul.f32 %v18401_v51, %v16257_v2  ;;  %v16312_v5 = vsel %vm2727_vm3, %v17415_v34, %v18403_v7  ;;  %v16316_v12 = vmul.f32 %v18405_v37, %v16257_v2  ;;  %v16319_v51 = vsel %vm2393_vm2, %v6784_v46, %v6785_v49  ;;  %v18408_v19 = vld [vmem:[#allocation12_spill] sm:$0xff]  ;;  %v18409_v7 = vld [vmem:[#allocation182_spill] sm:$0xff] }
0x14f3   :  { %18404 = vst [vmem:[#allocation55_spill] sm:$0xff] %v16312_v5  ;;  %v7108_v60 = vadd.f32 %v7092_v62, %v7054_v52  ;;  %18407 = vst [vmem:[#allocation57_spill] sm:$0xff] %v16319_v51  ;;  %v16322_v6 = vsel %vm2393_vm2, %v6828_v9, %v6784_v46  ;;  %v6938_v22 = vmul.f32 %v18408_v19, %v16266_v38  ;;  %v18412_v9 = vld [vmem:[#allocation174_spill] sm:$0xff]  ;;  %v18413_v46 = vld [vmem:[#allocation20_spill] sm:$0xff] }
0x14f4   :  { %18406 = vst [vmem:[#allocation62_spill] sm:$0xff] %v16316_v12  ;;  %v6940_v35 = vadd.f32 %v15980_v14, %v6870_v50  ;;  %v6869_v34 = vmul.f32 %v18409_v7, %v16319_v51  ;;  %v6884_v37 = vmul.f32 %v18410_v29, %v16322_v6  ;;  %v7026_v49 = vmul.f32 %v18411_v32, %v16312_v5  ;;  %v18423_v12 = vld [vmem:[#allocation180_spill] sm:$0xff] }
0x14f5   :  { %v16332_v62 = vadd.f32 %v7146_v25, %v7108_v60  ;;  %v7080_v52 = vmul.f32 %v18412_v9, %v16300_v40  ;;  %v7094_v19 = vmul.f32 %v18413_v46, %v16322_v6  ;;  %v18414_v50 = vrot.slane %v16163_v15, 1  ;;  %v18415_v60 = vld [vmem:[#allocation17_spill] sm:$0xff] }
0x14f6   :  { %v6939_v14 = vadd.f32 %v6923_v36, %v6869_v34  ;;  %v16349_v25 = vmul.f32 %v18415_v60, %v16319_v51  ;;  %v7043_v7 = vadd.f32 %v16011_v44, %v6940_v35  ;;  %v16352_v32 = vadd.f32 %v6938_v22, %v6884_v37  ;;  %v18417_v9 = vld [vmem:[#allocation9_spill] sm:$0xff]  ;;  %v18421_v44 = vld [vmem:[#allocation186_spill] sm:$0xff]  ;;  %v18422_v37 = vld [vmem:[#allocation191_spill] sm:$0xff] }
0x14f7   :  { %v16345_v29 = vsel %vm2727_vm3, %v18414_v50, %v17419_v27  ;;  %v18418_v34 = vld [vmem:[#allocation25_spill] sm:$0xff]  ;;  %v7045_v46 = vadd.f32 %v7029_v0, %v16053_v21  ;;  %v7243_v22 = vmul.f32 %v18421_v44, %v16025_v8 }
0x14f8   :  { %18416 = vst [vmem:[#allocation64_spill] sm:$0xff] %v16349_v25  ;;  %v7040_v40 = vmul.f32 %v18417_v9, %v16345_v29  ;;  %v7148_v36 = vmul.f32 %v18418_v34, %v16266_v38  ;;  %v7097_v5 = vadd.f32 %v16015_v59, %v7043_v7  ;;  %v18419_v50 = vld [vmem:[#allocation177_spill] sm:$0xff]  ;;  %v7297_v9 = vmul.f32 %v18422_v37, %v15997_v48  ;;  %v18424_v59 = vld [vmem:[#allocation179_spill] sm:$0xff]  ;;  %v18430_v37 = vld [vmem:[#allocation192_spill] sm:$0xff] }
0x14f9   :  { %v7189_v27 = vmul.f32 %v18419_v50, %v16031_v57  ;;  %v18420_v60 = vld [vmem:[#allocation193_spill] sm:$0xff]  ;;  %v7351_v34 = vmul.f32 %v18423_v12, %v16051_v18  ;;  %v7042_v25 = vadd.f32 %v7026_v49, %v6939_v14  ;;  %v7188_v0 = vmul.f32 %v18424_v59, %v15995_v39  ;;  %v18427_v48 = vld [vmem:[#allocation175_spill] sm:$0xff] }
0x14fa   :  { %v7190_v51 = vmul.f32 %v18420_v60, %v16051_v18  ;;  %v7056_v35 = vadd.f32 %v7040_v40, %v6953_v3  ;;  %v7151_v21 = vadd.f32 %v15971_v4, %v7097_v5  ;;  %v18425_v7 = vrot.slane %v16004_v56, 1  ;;  %v18428_v18 = vld [vmem:[#allocation205_spill] sm:$0xff] }
0x14fb   :  { %v18426_v50 = vrot.slane %v16046_v24, 1  ;;  %v7099_v8 = vadd.f32 %v16059_v11, %v7045_v46  ;;  %v7096_v3 = vadd.f32 %v7080_v52, %v7042_v25  ;;  %v7242_v44 = vmul.f32 %v18427_v48, %v15990_v42  ;;  %v18429_v4 = vld [vmem:[#allocation189_spill] sm:$0xff]  ;;  %v18432_v25 = vld [vmem:[#allocation152_spill] sm:$0xff] }
0x14fc   :  { %v7110_v40 = vadd.f32 %v7094_v19, %v7056_v35  ;;  %v7205_v49 = vadd.f32 %v7189_v27, %v7151_v21  ;;  %v7350_v5 = vmul.f32 %v18429_v4, %v16031_v57  ;;  %v7191_v59 = vmul.f32 %v18430_v37, %v16080_v47  ;;  %v18431_v19 = vld [vmem:[#allocation157_spill] sm:$0xff] }
0x14fd   :  { %v6967_v60 = vsel %vm2727_vm3, %v18426_v50, %v18425_v7  ;;  %v7153_v14 = vadd.f32 %v16002_v13, %v7099_v8  ;;  %v7150_v7 = vadd.f32 %v15984_v43, %v7096_v3  ;;  %v7245_v42 = vmul.f32 %v18432_v25, %v16072_v31  ;;  %v18433_v13 = vld [vmem:[#allocation206_spill] sm:$0xff]  ;;  %v18443_v25 = vld [vmem:[#allocation219_spill] sm:$0xff] }
0x14fe   :  { %v7031_v12 = vmul.f32 %v18428_v18, %v6967_v60  ;;  %v7192_v52 = vmul.f32 %v18431_v19, %v6967_v60  ;;  %v16392_v46 = vadd.f32 %v7148_v36, %v7110_v40  ;;  %v7259_v27 = vadd.f32 %v7243_v22, %v7205_v49  ;;  %v18434_v8 = vld [vmem:[#allocation194_spill] sm:$0xff] }
0x14ff   :  { %v7207_v35 = vadd.f32 %v7191_v59, %v7153_v14  ;;  %v7206_v57 = vadd.f32 %v7190_v51, %v16084_v1  ;;  %v7204_v21 = vadd.f32 %v7188_v0, %v7150_v7  ;;  %v7299_v50 = vmul.f32 %v18433_v13, %v16046_v24  ;;  %v18437_v40 = vld [vmem:[#allocation210_spill] sm:$0xff]  ;;  %v18439_v24 = vld [vmem:[#allocation187_spill] sm:$0xff] }
0x1500   :  { %v7047_v11 = vadd.f32 %v7031_v12, %v16100_v58  ;;  %v7244_v43 = vmul.f32 %v18434_v8, %v16028_v45  ;;  %v18435_v58 = vrot.slane %v16048_v61, 1  ;;  %v18436_v3 = vrot.slane %v16064_v55, 1  ;;  %v18438_v51 = vld [vmem:[#allocation198_spill] sm:$0xff]  ;;  %v18441_v7 = vld [vmem:[#allocation167_spill] sm:$0xff] }
0x1501   :  { %v7313_v31 = vadd.f32 %v7297_v9, %v7259_v27  ;;  %v7261_v36 = vadd.f32 %v7245_v42, %v7207_v35  ;;  %v7258_v1 = vadd.f32 %v7242_v44, %v7204_v21  ;;  %v7353_v0 = vmul.f32 %v18438_v51, %v6967_v60  ;;  %v16414_v9 = vld [vmem:[%s17176_s10 + $0x1] ss:$0 sm:$0xff]  ;;  %v18446_v8 = vld [vmem:[#allocation214_spill] sm:$0xff] }
0x1502   :  { %v6971_v48 = vsel %vm2727_vm3, %v18436_v3, %v18435_v58  ;;  %v7101_v18 = vadd.f32 %v16127_v30, %v7047_v11  ;;  %v7260_v12 = vadd.f32 %v7244_v43, %v7206_v57  ;;  %v7193_v49 = vmul.f32 %v18439_v24, %v16123_v26  ;;  %v18440_v60 = vld [vmem:[#allocation209_spill] sm:$0xff]  ;;  %v18452_v24 = vld [vmem:[#allocation228_spill] sm:$0xff] }
0x1503   :  { %v7033_v22 = vmul.f32 %v18437_v40, %v6971_v48  ;;  %v7367_v45 = vadd.f32 %v7351_v34, %v7313_v31  ;;  %v7315_v4 = vadd.f32 %v7299_v50, %v7261_v36  ;;  %v7312_v30 = vadd.f32 %v15976_v54, %v7258_v1  ;;  %v18444_v54 = vld [vmem:[#allocation29_spill] sm:$0xff]  ;;  %v18448_v36 = vld [vmem:[#allocation231_spill] sm:$0xff] }
0x1504   :  { %v7155_v37 = vadd.f32 %v16044_v17, %v7101_v18  ;;  %v7314_v44 = vadd.f32 %v16007_v20, %v7260_v12  ;;  %v7352_v59 = vmul.f32 %v18440_v60, %v16080_v47  ;;  %v7194_v11 = vmul.f32 %v18441_v7, %v6971_v48  ;;  %v18442_v17 = vld [vmem:[#allocation31_spill] sm:$0xff]  ;;  %v18445_v21 = vld [vmem:[#allocation213_spill] sm:$0xff] }
0x1505   :  { %v7049_v14 = vadd.f32 %v7033_v22, %v16137_v10  ;;  %v16422_v34 = vadd.f32 %v16414_v9, %v7367_v45  ;;  %v7369_v10 = vadd.f32 %v7353_v0, %v7315_v4  ;;  %v7247_v42 = vmul.f32 %v18443_v25, %v18442_v17  ;;  %v18451_v1 = vld [vmem:[#allocation33_spill] sm:$0xff] }
0x1506   :  { %v7209_v19 = vadd.f32 %v7193_v49, %v7155_v37  ;;  %v7366_v27 = vadd.f32 %v7350_v5, %v7312_v30  ;;  %v7368_v35 = vadd.f32 %v7352_v59, %v7314_v44  ;;  %v7208_v57 = vadd.f32 %v7192_v52, %v16135_v53  ;;  %v18447_v52 = vld [vmem:[#allocation223_spill] sm:$0xff]  ;;  %v18453_v45 = vld [vmem:[#allocation233_spill] sm:$0xff]  ;;  %v18454_v37 = vld [vmem:[#allocation36_spill] sm:$0xff] }
0x1507   :  { %v7246_v20 = vmul.f32 %v18445_v21, %v18444_v54  ;;  %v7409_v47 = vsel %vm217_vm0, %v16422_v34, 0.0  ;;  %v16432_v13 = vadd.f32 %v16414_v9, %v7369_v10  ;;  %v7301_v43 = vmul.f32 %v18446_v8, %v16064_v55  ;;  %v18455_v44 = vld [vmem:[#allocation39_spill] sm:$0xff]  ;;  %v18456_v60 = vld [vmem:[#allocation229_spill] sm:$0xff]  ;;  %v18461_v54 = vld [vmem:[#allocation42_spill] sm:$0xff] }
0x1508   :  { %v7263_v50 = vadd.f32 %v7247_v42, %v7209_v19  ;;  %7410 = vadd.xlane.f32.xlu1 %v7409_v47  ;;  %v16437_v58 = vadd.f32 %v16414_v9, %v7366_v27  ;;  %v16440_v5 = vadd.f32 %v16414_v9, %v7368_v35  ;;  %v7300_v3 = vmul.f32 %v18447_v52, %v16004_v56  ;;  %v18457_v10 = vld [vmem:[#allocation41_spill] sm:$0xff]  ;;  %v18460_v35 = vld [vmem:[#allocation184_spill] sm:$0xff]  ;;  %v18462_v47 = vld [vmem:[#allocation246_spill] sm:$0xff] }
0x1509   :  { %v7262_v53 = vadd.f32 %v7246_v20, %v7208_v57  ;;  %v7355_v40 = vmul.f32 %v18448_v36, %v6971_v48  ;;  %v18449_v22 = vrot.slane %v16112_v33, 1  ;;  %v18450_v18 = vrot.slane %v16147_v63, 1  ;;  %v18459_v27 = vld [vmem:[#allocation37_spill] sm:$0xff]  ;;  %v18463_v8 = vld [vmem:[#allocation132_spill] sm:$0xff]  ;;  %v18465_v52 = vld [vmem:[#allocation239_spill] sm:$0xff] }
0x150a   :  { %v7317_v31 = vadd.f32 %v7301_v43, %v7263_v50  ;;  %v7103_v51 = vadd.f32 %v18451_v1, %v7049_v14  ;;  %v7406_v0 = vsel %vm217_vm0, %v16437_v58, 0.0  ;;  %v7354_v49 = vmul.f32 %v18452_v24, %v16123_v26  ;;  %v18458_v26 = vld [vmem:[#allocation248_spill] sm:$0xff]  ;;  %v18469_v1 = vld [vmem:[#allocation46_spill] sm:$0xff] }
0x150b   :  { %v6975_v55 = vsel %vm2727_vm3, %v18450_v18, %v18449_v22  ;;  %v7316_v12 = vadd.f32 %v7300_v3, %v7262_v53  ;;  %7407 = vadd.xlane.f32.xlu0 %v7406_v0  ;;  %v7415_v48 = vsel %vm217_vm0, %v16432_v13, 0.0  ;;  %v7195_v59 = vmul.f32 %v18456_v60, %v18455_v44  ;;  %v18464_v53 = vld [vmem:[#allocation38_spill] sm:$0xff]  ;;  %v18467_v22 = vld [vmem:[#allocation35_spill] sm:$0xff]  ;;  %v18475_v60 = vld [vmem:[#allocation245_spill] sm:$0xff] }
0x150c   :  { %v7035_v56 = vmul.f32 %v18453_v45, %v6975_v55  ;;  %v7371_v4 = vadd.f32 %v7355_v40, %v7317_v31  ;;  %v7157_v30 = vadd.f32 %v18454_v37, %v7103_v51  ;;  %7416 = vadd.xlane.f32.xlu1 %v7415_v48  ;;  %v7412_v14 = vsel %vm217_vm0, %v16440_v5, 0.0 }
0x150d   :  { %v7370_v7 = vadd.f32 %v7354_v49, %v7316_v12  ;;  %v7196_v17 = vmul.f32 %v18458_v26, %v6975_v55  ;;  %v7249_v57 = vmul.f32 %v18460_v35, %v18459_v27  ;;  %v7210_v21 = vadd.f32 %v7194_v11, %v18461_v54  ;;  %v18471_v12 = vld [vmem:[#allocation183_spill] sm:$0xff]  ;;  %v18472_v49 = vld [vmem:[#allocation249_spill] sm:$0xff]  ;;  %v18480_v54 = vld [vmem:[#allocation250_spill] sm:$0xff] }
0x150e   :  { %v7051_v19 = vadd.f32 %v7035_v56, %v18457_v10  ;;  %v16466_v25 = vadd.f32 %v16414_v9, %v7371_v4  ;;  %v7211_v42 = vadd.f32 %v7195_v59, %v7157_v30  ;;  %v7303_v50 = vmul.f32 %v18462_v47, %v16147_v63  ;;  %v18473_v4 = vld [vmem:[#allocation40_spill] sm:$0xff]  ;;  %v18474_v30 = vld [vmem:[#allocation45_spill] sm:$0xff]  ;;  %v18476_v10 = vld [vmem:[#allocation207_spill] sm:$0xff] }
0x150f   :  { %v16472_v20 = vadd.f32 %v16414_v9, %v7370_v7  ;;  %v7357_v43 = vmul.f32 %v18463_v8, %v6975_v55  ;;  %v7248_v3 = vmul.f32 %v18465_v52, %v18464_v53  ;;  %7413 = vadd.xlane.f32.xlu0 %v7412_v14  ;;  %v18466_v40 = vrot.slane %v16155_v41, 1  ;;  %v18470_v55 = vld [vmem:[#allocation237_spill] sm:$0xff]  ;;  %v18482_v53 = vld [vmem:[#allocation254_spill] sm:$0xff] }
0x1510   :  { %v7421_v31 = vsel %vm217_vm0, %v16466_v25, 0.0  ;;  %v7265_v36 = vadd.f32 %v7249_v57, %v7211_v42  ;;  %v18468_v11 = vrot.slane %v18467_v22, 1  ;;  %v7105_v51 = vadd.f32 %v18469_v1, %v7051_v19  ;;  %v18478_v26 = vld [vmem:[#allocation253_spill] sm:$0xff]  ;;  %v18479_v57 = vld [vmem:[#allocation44_spill] sm:$0xff] }
0x1511   :  { %7422 = vadd.xlane.f32.xlu1 %v7421_v31  ;;  %v7264_v63 = vadd.f32 %v7248_v3, %v7210_v21  ;;  %v7302_v0 = vmul.f32 %v18470_v55, %v16048_v61  ;;  %v7356_v24 = vmul.f32 %v18471_v12, %v18455_v44  ;;  %v7418_v56 = vsel %vm217_vm0, %v16472_v20, 0.0  ;;  %v18477_v61 = vld [vmem:[#allocation43_spill] sm:$0xff] }
0x1512   :  { %v6979_v18 = vsel %vm2727_vm3, %v18468_v11, %v18466_v40  ;;  %v7319_v48 = vadd.f32 %v7303_v50, %v7265_v36  ;;  %v7159_v37 = vadd.f32 %v18473_v4, %v7105_v51  ;;  %v7197_v59 = vmul.f32 %v18475_v60, %v18474_v30  ;;  %v18481_v50 = vld [vmem:[#allocation262_spill] sm:$0xff]  ;;  %v18485_v36 = vld [vmem:[#allocation259_spill] sm:$0xff] }
0x1513   :  { %v7037_v45 = vmul.f32 %v18472_v49, %v6979_v18  ;;  %v7318_v14 = vadd.f32 %v7302_v0, %v7264_v63  ;;  %v7198_v19 = vmul.f32 %v18476_v10, %v6979_v18  ;;  %v7251_v42 = vmul.f32 %v18478_v26, %v18477_v61  ;;  %7419 = vadd.xlane.f32.xlu0 %v7418_v56  ;;  %v18488_v63 = vld [vmem:[#allocation52_spill] sm:$0xff]  ;;  %v18489_v49 = vld [vmem:[#allocation58_spill] sm:$0xff]  ;;  %v18495_v61 = vld [vmem:[#allocation161_spill] sm:$0xff] }
0x1514   :  { %v7373_v44 = vadd.f32 %v7357_v43, %v7319_v48  ;;  %v7213_v27 = vadd.f32 %v7197_v59, %v7159_v37  ;;  %v7212_v35 = vadd.f32 %v7196_v17, %v16237_v16  ;;  %v7250_v21 = vmul.f32 %v18480_v54, %v18479_v57  ;;  %v18490_v48 = vld [vmem:[#allocation48_spill] sm:$0xff]  ;;  %v18493_v59 = vld [vmem:[#allocation11_spill] sm:$0xff]  ;;  %v18494_v10 = vld [vmem:[#allocation54_spill] sm:$0xff] }
0x1515   :  { %v7053_v7 = vadd.f32 %v7037_v45, %v16239_v28  ;;  %v7372_v47 = vadd.f32 %v7356_v24, %v7318_v14  ;;  %v7305_v8 = vmul.f32 %v18481_v50, %v18467_v22  ;;  %v7304_v28 = vmul.f32 %v18482_v53, %v16112_v33  ;;  %v18486_v22 = vld [vmem:[#allocation203_spill] sm:$0xff]  ;;  %v18491_v37 = vld [vmem:[#allocation56_spill] sm:$0xff]  ;;  %v18500_v50 = vld [vmem:[#allocation165_spill] sm:$0xff] }
0x1516   :  { %v18483_v52 = vrot.slane %v16163_v15, 1  ;;  %v18484_v3 = vrot.slane %v16171_v23, 1  ;;  %v16514_v43 = vadd.f32 %v16414_v9, %v7373_v44  ;;  %v7267_v16 = vadd.f32 %v7251_v42, %v7213_v27  ;;  %v18487_v33 = vld [vmem:[#allocation263_spill] sm:$0xff] }
0x1517   :  { %v7266_v17 = vadd.f32 %v7250_v21, %v7212_v35  ;;  %v16518_v11 = vadd.f32 %v16414_v9, %v7372_v47  ;;  %v7359_v1 = vmul.f32 %v18486_v22, %v6979_v18  ;;  %v7358_v51 = vmul.f32 %v18487_v33, %v18474_v30  ;;  %v18492_v18 = vld [vmem:[#allocation148_spill] sm:$0xff]  ;;  %v18496_v42 = vld [vmem:[#allocation51_spill] sm:$0xff]  ;;  %v18497_v35 = vld [vmem:[#allocation142_spill] sm:$0xff] }
0x1518   :  { %v6983_v31 = vsel %vm2727_vm3, %v18484_v3, %v18483_v52  ;;  %v7107_v55 = vadd.f32 %v18488_v63, %v7053_v7  ;;  %v7427_v0 = vsel %vm217_vm0, %v16514_v43, 0.0  ;;  %v7321_v12 = vadd.f32 %v7305_v8, %v7267_v16  ;;  %v18498_v54 = vld [vmem:[#allocation15_spill] sm:$0xff]  ;;  %v18499_v47 = vld [vmem:[#allocation50_spill] sm:$0xff]  ;;  %v18503_v16 = vld [vmem:[#allocation53_spill] sm:$0xff] }
0x1519   :  { %v7039_v40 = vmul.f32 %v18485_v36, %v6983_v31  ;;  %v7320_v24 = vadd.f32 %v7304_v28, %v7266_v17  ;;  %7428 = vadd.xlane.f32.xlu1 %v7427_v0  ;;  %v7424_v56 = vsel %vm217_vm0, %v16518_v11, 0.0  ;;  %v7199_v60 = vmul.f32 %v18492_v18, %v18491_v37  ;;  %v18505_v22 = vld [vmem:[#allocation8_spill] sm:$0xff]  ;;  %v18506_v63 = vld [vmem:[#allocation47_spill] sm:$0xff]  ;;  %v18507_v0 = vld [vmem:[#allocation10_spill] sm:$0xff] }
0x151a   :  { %v7161_v4 = vadd.f32 %v18490_v48, %v7107_v55  ;;  %v7200_v30 = vmul.f32 %v18493_v59, %v6983_v31  ;;  %7425 = vadd.xlane.f32.xlu0 %v7424_v56  ;;  %v7375_v14 = vadd.f32 %v7359_v1, %v7321_v12  ;;  %v7253_v26 = vmul.f32 %v18495_v61, %v18494_v10  ;;  %v18509_v56 = vld [vmem:[#allocation30_spill] sm:$0xff]  ;;  %v18511_v61 = vld [vmem:[#allocation49_spill] sm:$0xff] }
0x151b   :  { %v7055_v45 = vadd.f32 %v7039_v40, %v18489_v49  ;;  %v7374_v7 = vadd.f32 %v7358_v51, %v7320_v24  ;;  %v7214_v44 = vadd.f32 %v7198_v19, %v18496_v42  ;;  %v7307_v57 = vmul.f32 %v18497_v35, %v16171_v23  ;;  %v18510_v18 = vld [vmem:[#allocation6_spill] sm:$0xff] }
0x151c   :  { %v7215_v27 = vadd.f32 %v7199_v60, %v7161_v4  ;;  %v7361_v21 = vmul.f32 %v18498_v54, %v6983_v31  ;;  %v7252_v8 = vmul.f32 %v18500_v50, %v18499_v47  ;;  %v16542_v53 = vadd.f32 %v16414_v9, %v7375_v14  ;;  %v18504_v31 = vld [vmem:[#allocation144_spill] sm:$0xff] }
0x151d   :  { %v16545_v28 = vadd.f32 %v16414_v9, %v7374_v7  ;;  %v18501_v52 = vrot.slane %v16257_v2, 1  ;;  %v18502_v3 = vrot.slane %v16266_v38, 1  ;;  %v7109_v17 = vadd.f32 %v18503_v16, %v7055_v45  ;;  %v18508_v45 = vld [vmem:[#allocation13_spill] sm:$0xff]  ;;  %v18515_v54 = vld [vmem:[#allocation64_spill] sm:$0xff]  ;;  %v18519_v16 = vld [vmem:[#allocation55_spill] sm:$0xff] }
0x151e   :  { %v7269_v23 = vadd.f32 %v7253_v26, %v7215_v27  ;;  %v7268_v36 = vadd.f32 %v7252_v8, %v7214_v44  ;;  %v7306_v40 = vmul.f32 %v18504_v31, %v16155_v41  ;;  %v7433_v33 = vsel %vm217_vm0, %v16542_v53, 0.0  ;;  %v18512_v26 = vld [vmem:[#allocation7_spill] sm:$0xff]  ;;  %v18517_v8 = vld [vmem:[#allocation28_spill] sm:$0xff] }
0x151f   :  { %v6986_v19 = vsel %vm2727_vm3, %v18502_v3, %v18501_v52  ;;  %v7430_v51 = vsel %vm217_vm0, %v16545_v28, 0.0  ;;  %v7163_v55 = vadd.f32 %v18506_v63, %v7109_v17  ;;  %v7201_v12 = vmul.f32 %v18507_v0, %v16345_v29  ;;  %7434 = vadd.xlane.f32.xlu1 %v7433_v33  ;;  %v18513_v27 = vld [vmem:[#allocation19_spill] sm:$0xff]  ;;  %v18518_v3 = vld [vmem:[#allocation62_spill] sm:$0xff]  ;;  %v18523_v63 = vld [vmem:[#allocation173_spill] sm:$0xff] }
0x1520   :  { %v7041_v1 = vmul.f32 %v18505_v22, %v6986_v19  ;;  %7431 = vadd.xlane.f32.xlu0 %v7430_v51  ;;  %v7323_v24 = vadd.f32 %v7307_v57, %v7269_v23  ;;  %v7322_v49 = vadd.f32 %v7306_v40, %v7268_v36  ;;  %v7360_v41 = vmul.f32 %v18508_v45, %v18491_v37  ;;  %v18514_v37 = vld [vmem:[#allocation27_spill] sm:$0xff]  ;;  %v18521_v40 = vld [vmem:[#allocation60_spill] sm:$0xff] }
0x1521   :  { %v7202_v48 = vmul.f32 %v18509_v56, %v6986_v19  ;;  %v7217_v4 = vadd.f32 %v7201_v12, %v7163_v55  ;;  %v7255_v60 = vmul.f32 %v18510_v18, %v16322_v6  ;;  %v7216_v10 = vadd.f32 %v7200_v30, %v16332_v62  ;;  %v18516_v62 = vld [vmem:[#allocation23_spill] sm:$0xff]  ;;  %v18522_v22 = vld [vmem:[#allocation24_spill] sm:$0xff]  ;;  %v18524_v12 = vld [vmem:[#allocation57_spill] sm:$0xff] }
0x1522   :  { %v7057_v59 = vadd.f32 %v7041_v1, %v16352_v32  ;;  %v7377_v14 = vadd.f32 %v7361_v21, %v7323_v24  ;;  %v7376_v7 = vadd.f32 %v7360_v41, %v7322_v49  ;;  %v7254_v42 = vmul.f32 %v18512_v26, %v18511_v61  ;;  %v10386_v51 = vld [vmem:[%s17175_s9 + $0x10] ss:$0 sm:$0xff]  ;;  %v18525_v24 = vld [vmem:[#allocation21_spill] sm:$0xff]  ;;  %v10387_v45 = vld [vmem:[%s17175_s9 + $0x11] ss:$0 sm:$0xff] }
0x1523   :  { %v7271_v44 = vadd.f32 %v7255_v60, %v7217_v4  ;;  %v7309_v35 = vmul.f32 %v18513_v27, %v16266_v38  ;;  %v7363_v57 = vmul.f32 %v18514_v37, %v6986_v19  ;;  %v7308_v30 = vmul.f32 %v18516_v62, %v16163_v15  ;;  %v18520_v19 = vld [vmem:[#allocation22_spill] sm:$0xff]  ;;  %v18526_v41 = vld [vmem:[#allocation160_spill] sm:$0xff] }
0x1524   :  { %v7111_v47 = vadd.f32 %v18515_v54, %v7057_v59  ;;  %v16577_v50 = vadd.f32 %v16414_v9, %v7377_v14  ;;  %v16580_v6 = vadd.f32 %v16414_v9, %v7376_v7  ;;  %v7270_v32 = vadd.f32 %v7254_v42, %v7216_v10  ;;  %v18528_v18 = vld [vmem:[#allocation26_spill] sm:$0xff]  ;;  %v18529_v59 = vld [vmem:[#allocation188_spill] sm:$0xff] }
0x1525   :  { %v7325_v21 = vadd.f32 %v7309_v35, %v7271_v44  ;;  %v7362_v52 = vmul.f32 %v18517_v8, %v16345_v29  ;;  %v7203_v17 = vmul.f32 %v18520_v19, %v18519_v16  ;;  %v7257_v1 = vmul.f32 %v18522_v22, %v18521_v40  ;;  %v8689_v62 = vld [vmem:[%s17179_s13 + $0xf8] sm:$0xff] }
0x1526   :  { %v7165_v38 = vadd.f32 %v18518_v3, %v7111_v47  ;;  %v7439_v23 = vsel %vm217_vm0, %v16577_v50, 0.0  ;;  %v7436_v36 = vsel %vm217_vm0, %v16580_v6, 0.0  ;;  %v7324_v31 = vadd.f32 %v7308_v30, %v7270_v32  ;;  %v8688_v30 = vld [vmem:[%s17179_s13 + $0xf0] sm:$0xff]  ;;  %7756 = vmatprep.subr.mxu1 %v8689_v62 }
0x1527   :  { %7440 = vadd.xlane.f32.xlu1 %v7439_v23  ;;  %7437 = vadd.xlane.f32.xlu0 %v7436_v36  ;;  %v7379_v15 = vadd.f32 %v7363_v57, %v7325_v21  ;;  %v7218_v29 = vadd.f32 %v7202_v48, %v16392_v46  ;;  %v7294_v55 = vmul.f32 %v10386_v51, %v18523_v63  ;;  %v18527_v48 = vld [vmem:[#allocation34_spill] sm:$0xff]  ;;  %v8686_v21 = vld [vmem:[%s17179_s13 + $0xe0] sm:$0xff] }
0x1528   :  { %v7219_v33 = vadd.f32 %v7203_v17, %v7165_v38  ;;  %v7378_v0 = vadd.f32 %v7362_v52, %v7324_v31  ;;  %v7256_v49 = vmul.f32 %v18525_v24, %v18524_v12  ;;  %v7349_v56 = vmul.f32 %v10387_v45, %v18526_v41  ;;  %7757 = vmatpush1.msra.mxu1 %v8688_v30 }
0x1529   :  { %v16607_v4 = vadd.f32 %v16414_v9, %v7379_v15  ;;  %v7311_v60 = vmul.f32 %v18528_v18, %v18527_v48  ;;  %v7348_v14 = vmul.f32 %v10387_v45, %v18529_v59  ;;  %v7310_v61 = vmul.f32 %v7294_v55, %v16257_v2 }
0x152a   :  { %v7273_v46 = vadd.f32 %v7257_v1, %v7219_v33  ;;  %v16613_v7 = vadd.f32 %v16414_v9, %v7378_v0  ;;  %v7272_v10 = vadd.f32 %v7256_v49, %v7218_v29  ;;  %v7365_v44 = vmul.f32 %v7349_v56, %v15995_v39 }
0x152b   :  { %v7445_v26 = vsel %vm217_vm0, %v16607_v4, 0.0  ;;  %v7364_v37 = vmul.f32 %v7348_v14, %v18519_v16 }
0x152c   :  { %v7327_v42 = vadd.f32 %v7311_v60, %v7273_v46  ;;  %7446 = vadd.xlane.f32.xlu1 %v7445_v26  ;;  %v7442_v27 = vsel %vm217_vm0, %v16613_v7, 0.0  ;;  %v7326_v35 = vadd.f32 %v7310_v61, %v7272_v10 }
0x152d   :  { %7443 = vadd.xlane.f32.xlu0 %v7442_v27 }
0x152e   :  { %v7381_v57 = vadd.f32 %v7365_v44, %v7327_v42  ;;  %v7380_v54 = vadd.f32 %v7364_v37, %v7326_v35 }
0x1530   :  { %v16623_v47 = vadd.f32 %v16414_v9, %v7381_v57  ;;  %v16626_v2 = vadd.f32 %v16414_v9, %v7380_v54  ;;  %v8687_v9 = vld [vmem:[%s17179_s13 + $0xe8] sm:$0xff] }
0x1531   :  { %7758 = vmatprep.subr.mxu1 %v8687_v9 }
0x1532   :  { %v7451_v32 = vsel %vm217_vm0, %v16623_v47, 0.0  ;;  %v7448_v39 = vsel %vm217_vm0, %v16626_v2, 0.0  ;;  %7759 = vmatpush1.msra.mxu1 %v8686_v21 }
0x1533   :  { %7452 = vadd.xlane.f32.xlu1 %v7451_v32  ;;  %7449 = vadd.xlane.f32.xlu0 %v7448_v39 }
0x1591   :  { %v7411_v8 = vpop.xlane.xlu1 %7410 }
0x1592   :  { %v7455_v52 = vmul.f32 0.015625, %v7411_v8 }
0x1594   :  { %v16645_v3 = vsub.f32 %v16422_v34, %v7455_v52  ;;  %v7408_v38 = vpop.xlane.xlu0 %7407 }
0x1595   :  { %v7454_v16 = vmul.f32 0.015625, %v7408_v38  ;;  %v7417_v19 = vpop.xlane.xlu1 %7416 }
0x1596   :  { %v7457_v17 = vmul.f32 0.015625, %v7417_v19  ;;  %v7487_v23 = vmul.f32 %v16645_v3, %v16645_v3 }
0x1597   :  { %v16650_v36 = vsub.f32 %v16437_v58, %v7454_v16 }
0x1598   :  { %v16653_v31 = vsub.f32 %v16432_v13, %v7457_v17  ;;  %v7414_v40 = vpop.xlane.xlu0 %7413  ;;  %v7505_v22 = vsel %vm217_vm0, %v7487_v23, 0.0 }
0x1599   :  { %v7456_v1 = vmul.f32 0.015625, %v7414_v40  ;;  %7506 = vadd.xlane.f32.xlu1 %v7505_v22  ;;  %v7486_v33 = vmul.f32 %v16650_v36, %v16650_v36 }
0x159a   :  { %v7423_v15 = vpop.xlane.xlu1 %7422  ;;  %v7489_v51 = vmul.f32 %v16653_v31, %v16653_v31 }
0x159b   :  { %v7459_v29 = vmul.f32 0.015625, %v7423_v15  ;;  %v16661_v63 = vsub.f32 %v16440_v5, %v7456_v1  ;;  %v7502_v55 = vsel %vm217_vm0, %v7486_v33, 0.0 }
0x159c   :  { %7503 = vadd.xlane.f32.xlu0 %v7502_v55  ;;  %v7420_v12 = vpop.xlane.xlu0 %7419  ;;  %v7511_v24 = vsel %vm217_vm0, %v7489_v51, 0.0 }
0x159d   :  { %v16665_v0 = vsub.f32 %v16466_v25, %v7459_v29  ;;  %v7458_v49 = vmul.f32 0.015625, %v7420_v12  ;;  %7512 = vadd.xlane.f32.xlu1 %v7511_v24  ;;  %v7488_v45 = vmul.f32 %v16661_v63, %v16661_v63 }
0x159f   :  { %v7491_v41 = vmul.f32 %v16665_v0, %v16665_v0  ;;  %v16673_v56 = vsub.f32 %v16472_v20, %v7458_v49  ;;  %v7508_v46 = vsel %vm217_vm0, %v7488_v45, 0.0 }
0x15a0   :  { %7509 = vadd.xlane.f32.xlu0 %v7508_v46 }
0x15a1   :  { %v7517_v48 = vsel %vm217_vm0, %v7491_v41, 0.0  ;;  %v7490_v60 = vmul.f32 %v16673_v56, %v16673_v56 }
0x15a2   :  { %v7429_v18 = vpop.xlane.xlu1 %7428  ;;  %7518 = vadd.xlane.f32.xlu1 %v7517_v48 }
0x15a3   :  { %v7461_v59 = vmul.f32 0.015625, %v7429_v18  ;;  %v7426_v14 = vpop.xlane.xlu0 %7425  ;;  %v7514_v61 = vsel %vm217_vm0, %v7490_v60, 0.0 }
0x15a4   :  { %v7460_v10 = vmul.f32 0.015625, %v7426_v14  ;;  %7515 = vadd.xlane.f32.xlu0 %v7514_v61  ;;  %v8685_v61 = vld [vmem:[%s17179_s13 + $0xd8] sm:$0xff] }
0x15a5   :  { %v16681_v26 = vsub.f32 %v16514_v43, %v7461_v59  ;;  %7760 = vmatprep.subr.mxu1 %v8685_v61 }
0x15a6   :  { %v16684_v42 = vsub.f32 %v16518_v11, %v7460_v10 }
0x15a7   :  { %v7493_v44 = vmul.f32 %v16681_v26, %v16681_v26 }
0x15a8   :  { %v7435_v27 = vpop.xlane.xlu1 %7434  ;;  %v7492_v37 = vmul.f32 %v16684_v42, %v16684_v42 }
0x15a9   :  { %v7432_v35 = vpop.xlane.xlu0 %7431  ;;  %v7463_v57 = vmul.f32 0.015625, %v7435_v27  ;;  %v7523_v32 = vsel %vm217_vm0, %v7493_v44, 0.0  ;;  %v8684_v44 = vld [vmem:[%s17179_s13 + $0xd0] sm:$0xff]  ;;  %v8683_v27 = vld [vmem:[%s17179_s13 + $0xc8] sm:$0xff] }
0x15aa   :  { %v7462_v54 = vmul.f32 0.015625, %v7432_v35  ;;  %7524 = vadd.xlane.f32.xlu1 %v7523_v32  ;;  %v7520_v39 = vsel %vm217_vm0, %v7492_v37, 0.0  ;;  %v8682_v37 = vld [vmem:[%s17179_s13 + $0xc0] sm:$0xff]  ;;  %7761 = vmatpush1.msra.mxu1 %v8684_v44 }
0x15ab   :  { %v16693_v62 = vsub.f32 %v16542_v53, %v7463_v57  ;;  %7521 = vadd.xlane.f32.xlu0 %v7520_v39  ;;  %7762 = vmatprep.subr.mxu1 %v8683_v27  ;;  %v8681_v39 = vld [vmem:[%s17179_s13 + $0xb8] sm:$0xff] }
0x15ac   :  { %v16696_v30 = vsub.f32 %v16545_v28, %v7462_v54  ;;  %7763 = vmatpush1.msra.mxu1 %v8682_v37 }
0x15ad   :  { %v7495_v9 = vmul.f32 %v16693_v62, %v16693_v62  ;;  %7764 = vmatprep.subr.mxu1 %v8681_v39 }
0x15ae   :  { %v7494_v21 = vmul.f32 %v16696_v30, %v16696_v30 }
0x15af   :  { %v7529_v38 = vsel %vm217_vm0, %v7495_v9, 0.0  ;;  %v8680_v9 = vld [vmem:[%s17179_s13 + $0xb0] sm:$0xff] }
0x15b0   :  { %v7441_v8 = vpop.xlane.xlu1 %7440  ;;  %v7438_v52 = vpop.xlane.xlu0 %7437  ;;  %v7526_v16 = vsel %vm217_vm0, %v7494_v21, 0.0  ;;  %7530 = vadd.xlane.f32.xlu1 %v7529_v38  ;;  %7765 = vmatpush1.msra.mxu1 %v8680_v9  ;;  %v8677_v38 = vld [vmem:[%s17179_s13 + $0x98] sm:$0xff] }
0x15b1   :  { %v7465_v19 = vmul.f32 0.015625, %v7441_v8  ;;  %v7464_v17 = vmul.f32 0.015625, %v7438_v52  ;;  %7527 = vadd.xlane.f32.xlu0 %v7526_v16  ;;  %v8679_v8 = vld [vmem:[%s17179_s13 + $0xa8] sm:$0xff]  ;;  %v8678_v52 = vld [vmem:[%s17179_s13 + $0xa0] sm:$0xff]  ;;  %v8676_v16 = vld [vmem:[%s17179_s13 + $0x90] sm:$0xff] }
0x15b2   :  { %7766 = vmatprep.subr.mxu1 %v8679_v8 }
0x15b3   :  { %v16705_v23 = vsub.f32 %v16577_v50, %v7465_v19  ;;  %v16708_v40 = vsub.f32 %v16580_v6, %v7464_v17  ;;  %7767 = vmatpush1.msra.mxu1 %v8678_v52  ;;  %v8675_v19 = vld [vmem:[%s17179_s13 + $0x88] sm:$0xff]  ;;  %v8674_v17 = vld [vmem:[%s17179_s13 + $0x80] sm:$0xff] }
0x15b4   :  { %7768 = vmatprep.subr.mxu1 %v8677_v38 }
0x15b5   :  { %v7447_v22 = vpop.xlane.xlu1 %7446  ;;  %v7497_v1 = vmul.f32 %v16705_v23, %v16705_v23  ;;  %v7496_v15 = vmul.f32 %v16708_v40, %v16708_v40  ;;  %7769 = vmatpush1.msra.mxu1 %v8676_v16 }
0x15b6   :  { %v7467_v33 = vmul.f32 0.015625, %v7447_v22  ;;  %v7444_v29 = vpop.xlane.xlu0 %7443  ;;  %7770 = vmatprep.subr.mxu1 %v8675_v19  ;;  %v8738_v22 = vld [vmem:[%s17181_s15 + $0x1f8] sm:$0xff] }
0x15b7   :  { %v7466_v51 = vmul.f32 0.015625, %v7444_v29  ;;  %v7535_v55 = vsel %vm217_vm0, %v7497_v1, 0.0  ;;  %v7532_v12 = vsel %vm217_vm0, %v7496_v15, 0.0  ;;  %7771 = vmatpush1.msra.mxu1 %v8674_v17  ;;  %v8722_v1 = vld [vmem:[%s17181_s15 + $0x178] sm:$0xff]  ;;  %v16785_v15 = vld [vmem:[%s17181_s15 + $0x1f0] sm:$0xff]  ;;  %9157 = vmatprep.subr.mxu0 %v8738_v22  ;;  %v16795_v29 = vld [vmem:[%s17181_s15 + $0x1e8] sm:$0xff] }
0x15b8   :  { %v16717_v24 = vsub.f32 %v16607_v4, %v7467_v33  ;;  %7536 = vadd.xlane.f32.xlu1 %v7535_v55  ;;  %7533 = vadd.xlane.f32.xlu0 %v7532_v12  ;;  %v16790_v33 = vld [vmem:[%s17181_s15 + $0x170] sm:$0xff]  ;;  %v16810_v17 = vld [vmem:[%s17177_s11 + $0x1] ss:$0 sm:$0xff] }
0x15b9   :  { %v16720_v49 = vsub.f32 %v16613_v7, %v7466_v51  ;;  %9813 = vmatprep.subr.mxu1 %v8738_v22  ;;  %9158 = vmatpush3.msra.mxu0 %v8722_v1  ;;  %v16801_v51 = vld [vmem:[%s17181_s15 + $0x168] sm:$0xff] }
0x15ba   :  { %v7499_v45 = vmul.f32 %v16717_v24, %v16717_v24  ;;  %9159 = vmatprep.subr.mxu0 %v16785_v15 }
0x15bb   :  { %v7498_v46 = vmul.f32 %v16720_v49, %v16720_v49  ;;  %9160 = vmatpush3.msra.mxu0 %v16790_v33 }
0x15bc   :  { %v7453_v41 = vpop.xlane.xlu1 %7452  ;;  %v7450_v18 = vpop.xlane.xlu0 %7449  ;;  %v7541_v60 = vsel %vm217_vm0, %v7499_v45, 0.0  ;;  %9161 = vmatprep.subr.mxu0 %v16795_v29 }
0x15bd   :  { %v7469_v48 = vmul.f32 0.015625, %v7453_v41  ;;  %v7468_v59 = vmul.f32 0.015625, %v7450_v18  ;;  %7542 = vadd.xlane.f32.xlu1 %v7541_v60  ;;  %v7538_v14 = vsel %vm217_vm0, %v7498_v46, 0.0  ;;  %9162 = vmatpush3.msra.mxu0 %v16801_v51 }
0x15be   :  { %7539 = vadd.xlane.f32.xlu0 %v7538_v14 }
0x15bf   :  { %v16729_v10 = vsub.f32 %v16623_v47, %v7469_v48  ;;  %v16741_v35 = vsub.f32 %v16626_v2, %v7468_v59 }
0x15c1   :  { %v7501_v57 = vmul.f32 %v16729_v10, %v16729_v10  ;;  %v7500_v54 = vmul.f32 %v16741_v35, %v16741_v35 }
0x15c3   :  { %v7547_v32 = vsel %vm217_vm0, %v7501_v57, 0.0  ;;  %v7544_v21 = vsel %vm217_vm0, %v7500_v54, 0.0 }
0x15c4   :  { %7548 = vadd.xlane.f32.xlu1 %v7547_v32  ;;  %7545 = vadd.xlane.f32.xlu0 %v7544_v21 }
0x1622   :  { %v7507_v55 = vpop.xlane.xlu1 %7506 }
0x1623   :  { %v7551_v12 = vmul.f32 0.015625, %v7507_v55 }
0x1625   :  { %v7567_v45 = vadd.f32 1e-05, %v7551_v12  ;;  %v7504_v41 = vpop.xlane.xlu0 %7503 }
0x1626   :  { %v7550_v46 = vmul.f32 0.015625, %v7504_v41  ;;  %v7513_v48 = vpop.xlane.xlu1 %7512 }
0x1627   :  { %10271 = vrsqrt.f32 %v7567_v45  ;;  %v7553_v18 = vmul.f32 0.015625, %v7513_v48 }
0x1628   :  { %v7566_v60 = vadd.f32 1e-05, %v7550_v46  ;;  %v16817_v46 = vld [vmem:[%s17178_s12 + $0x1] ss:$0 sm:$0xff] }
0x1629   :  { %v7510_v59 = vpop.xlane.xlu0 %7509  ;;  %v7569_v61 = vadd.f32 1e-05, %v7553_v18 }
0x162a   :  { %10273 = vrsqrt.f32 %v7566_v60  ;;  %v7552_v14 = vmul.f32 0.015625, %v7510_v59 }
0x162b   :  { %v7519_v27 = vpop.xlane.xlu1 %7518 }
0x162c   :  { %v7568_v44 = vadd.f32 1e-05, %v7552_v14  ;;  %v7555_v54 = vmul.f32 0.015625, %v7519_v27  ;;  %v18530_v27 = vmov 0.0  }
0x162d   :  { %v7516_v37 = vpop.xlane.xlu0 %7515 }
0x162e   :  { %10275 = vrsqrt.f32 %v7568_v44  ;;  %v7554_v57 = vmul.f32 0.015625, %v7516_v37  ;;  %v7571_v39 = vadd.f32 1e-05, %v7555_v54 }
0x162f   :  { %10277 = vrsqrt.f32 %v7569_v61 }
0x1630   :  { %v7570_v32 = vadd.f32 1e-05, %v7554_v57 }
0x1632   :  { %10279 = vrsqrt.f32 %v7570_v32 }
0x1633   :  { %v7525_v8 = vpop.xlane.xlu1 %7524  ;;  %10281 = vrsqrt.f32 %v7571_v39 }
0x1634   :  { %v7522_v9 = vpop.xlane.xlu0 %7521  ;;  %v10272_v21 = vpop.eup %10271  ;;  %v7557_v19 = vmul.f32 0.015625, %v7525_v8 }
0x1635   :  { %v7556_v52 = vmul.f32 0.015625, %v7522_v9  ;;  %v7599_v16 = vmul.f32 %v10272_v21, %v16645_v3 }
0x1636   :  { %v7573_v3 = vadd.f32 1e-05, %v7557_v19 }
0x1637   :  { %v10274_v38 = vpop.eup %10273  ;;  %v7572_v55 = vadd.f32 1e-05, %v7556_v52  ;;  %v7623_v48 = vmul.f32 %v16810_v17, %v7599_v16 }
0x1638   :  { %v7598_v22 = vmul.f32 %v10274_v38, %v16650_v36 }
0x1639   :  { %10283 = vrsqrt.f32 %v7572_v55  ;;  %v7531_v36 = vpop.xlane.xlu1 %7530  ;;  %v7647_v57 = vadd.f32 %v16817_v46, %v7623_v48 }
0x163a   :  { %v7528_v12 = vpop.xlane.xlu0 %7527  ;;  %v7622_v45 = vmul.f32 %v16810_v17, %v7598_v22  ;;  %10285 = vrsqrt.f32 %v7573_v3  ;;  %v7559_v44 = vmul.f32 0.015625, %v7531_v36 }
0x163b   :  { %v10276_v41 = vpop.eup %10275  ;;  %v7558_v14 = vmul.f32 0.015625, %v7528_v12 }
0x163c   :  { %v10278_v18 = vpop.eup %10277  ;;  %v7646_v60 = vadd.f32 %v16817_v46, %v7622_v45  ;;  %v7600_v59 = vmul.f32 %v10276_v41, %v16661_v63 }
0x163d   :  { %v7601_v61 = vmul.f32 %v10278_v18, %v16653_v31  ;;  %v7574_v37 = vadd.f32 1e-05, %v7558_v14  ;;  %v7575_v31 = vadd.f32 1e-05, %v7559_v44 }
0x163e   :  { %8691 = vmatmul.mubr.msk.f32.vlgmr.msra.gmra.mxu1 %vm217_vm0, %v7646_v60  ;;  %v7624_v54 = vmul.f32 %v16810_v17, %v7600_v59 }
0x163f   :  { %7810 = vmatprep.mubr.f32.mxu1 %v18530_v27  ;;  %9829 = vmatpush3.msra.mxu1 %v8722_v1  ;;  %v10280_v63 = vpop.eup %10279  ;;  %v7625_v1 = vmul.f32 %v16810_v17, %v7601_v61  ;;  %10287 = vrsqrt.f32 %v7574_v37 }
0x1640   :  { %9814 = vmatprep.subr.mxu1 %v16785_v15  ;;  %v10282_v39 = vpop.eup %10281  ;;  %v7602_v9 = vmul.f32 %v10280_v63, %v16673_v56  ;;  %v7648_v8 = vadd.f32 %v16817_v46, %v7624_v54  ;;  %10289 = vrsqrt.f32 %v7575_v31 }
0x1641   :  { %v7534_v32 = vpop.xlane.xlu0 %7533  ;;  %9830 = vmatpush3.msra.mxu1 %v16790_v33  ;;  %v7537_v15 = vpop.xlane.xlu1 %7536  ;;  %v7603_v33 = vmul.f32 %v10282_v39, %v16665_v0  ;;  %v7649_v38 = vadd.f32 %v16817_v46, %v7625_v1 }
0x1642   :  { %8692 = vmatmul.mubr.msk.f32.gmra.mxu1 %vm217_vm0, %v7647_v57  ;;  %9815 = vmatprep.subr.mxu1 %v16795_v29  ;;  %v7560_v21 = vmul.f32 0.015625, %v7534_v32  ;;  %v7561_v29 = vmul.f32 0.015625, %v7537_v15 }
0x1643   :  { %7816 = vmatprep.mubr.f32.mxu1 %v18530_v27  ;;  %9831 = vmatpush3.msra.mxu1 %v16801_v51  ;;  %v7626_v51 = vmul.f32 %v16810_v17, %v7602_v9  ;;  %v7627_v22 = vmul.f32 %v16810_v17, %v7603_v33 }
0x1644   :  { %v7576_v52 = vadd.f32 1e-05, %v7560_v21  ;;  %v7577_v19 = vadd.f32 1e-05, %v7561_v29 }
0x1645   :  { %v7650_v41 = vadd.f32 %v16817_v46, %v7626_v51  ;;  %v7651_v60 = vadd.f32 %v16817_v46, %v7627_v22 }
0x1646   :  { %8693 = vmatmul.mubr.msk.f32.gmra.mxu1 %vm217_vm0, %v7648_v8  ;;  %v10284_v16 = vpop.eup %10283  ;;  %10291 = vrsqrt.f32 %v7576_v52  ;;  %v7543_v12 = vpop.xlane.xlu1 %7542 }
0x1647   :  { %7822 = vmatprep.mubr.f32.mxu1 %v18530_v27  ;;  %v7540_v56 = vpop.xlane.xlu0 %7539  ;;  %v10286_v55 = vpop.eup %10285  ;;  %v7604_v0 = vmul.f32 %v10284_v16, %v16684_v42  ;;  %v7563_v48 = vmul.f32 0.015625, %v7543_v12  ;;  %10293 = vrsqrt.f32 %v7577_v19 }
0x1648   :  { %v7562_v45 = vmul.f32 0.015625, %v7540_v56  ;;  %v7605_v3 = vmul.f32 %v10286_v55, %v16681_v26 }
0x1649   :  { %v7628_v59 = vmul.f32 %v16810_v17, %v7604_v0  ;;  %v7579_v14 = vadd.f32 1e-05, %v7563_v48 }
0x164a   :  { %8694 = vmatmul.mubr.msk.f32.gmra.mxu1 %vm217_vm0, %v7649_v38  ;;  %v7578_v18 = vadd.f32 1e-05, %v7562_v45  ;;  %v7629_v61 = vmul.f32 %v16810_v17, %v7605_v3 }
0x164b   :  { %7828 = vmatprep.mubr.f32.mxu1 %v18530_v27  ;;  %v7652_v57 = vadd.f32 %v16817_v46, %v7628_v59  ;;  %v8717_v59 = vld [vmem:[%s17181_s15 + $0x150] sm:$0xff] }
0x164c   :  { %v10288_v36 = vpop.eup %10287  ;;  %10295 = vrsqrt.f32 %v7578_v18  ;;  %v7653_v1 = vadd.f32 %v16817_v46, %v7629_v61  ;;  %v8715_v61 = vld [vmem:[%s17181_s15 + $0x140] sm:$0xff] }
0x164d   :  { %v7546_v42 = vpop.xlane.xlu0 %7545  ;;  %v7606_v26 = vmul.f32 %v10288_v36, %v16696_v30  ;;  %v7549_v44 = vpop.xlane.xlu1 %7548  ;;  %10297 = vrsqrt.f32 %v7579_v14  ;;  %v8732_v36 = vld [vmem:[%s17181_s15 + $0x1c8] sm:$0xff]  ;;  %v8731_v14 = vld [vmem:[%s17181_s15 + $0x1c0] sm:$0xff] }
0x164e   :  { %8695 = vmatmul.mubr.msk.f32.gmra.mxu1 %vm217_vm0, %v7650_v41  ;;  %v7564_v37 = vmul.f32 0.015625, %v7546_v42  ;;  %v10290_v54 = vpop.eup %10289  ;;  %v7565_v63 = vmul.f32 0.015625, %v7549_v44  ;;  %v8716_v42 = vld [vmem:[%s17181_s15 + $0x148] sm:$0xff]  ;;  %v8714_v44 = vld [vmem:[%s17181_s15 + $0x138] sm:$0xff] }
0x164f   :  { %7834 = vmatprep.mubr.f32.mxu1 %v18530_v27  ;;  %v7607_v32 = vmul.f32 %v10290_v54, %v16693_v62  ;;  %v7630_v39 = vmul.f32 %v16810_v17, %v7606_v26  ;;  %v8730_v26 = vld [vmem:[%s17181_s15 + $0x1b8] sm:$0xff]  ;;  %v8728_v54 = vld [vmem:[%s17181_s15 + $0x1a8] sm:$0xff] }
0x1650   :  { %v7580_v31 = vadd.f32 1e-05, %v7564_v37  ;;  %v7581_v9 = vadd.f32 1e-05, %v7565_v63  ;;  %v8729_v37 = vld [vmem:[%s17181_s15 + $0x1b0] sm:$0xff]  ;;  %v8712_v63 = vld [vmem:[%s17181_s15 + $0x128] sm:$0xff] }
0x1651   :  { %v7654_v21 = vadd.f32 %v16817_v46, %v7630_v39  ;;  %v7631_v8 = vmul.f32 %v16810_v17, %v7607_v32  ;;  %v8727_v32 = vld [vmem:[%s17181_s15 + $0x1a0] sm:$0xff]  ;;  %v8710_v39 = vld [vmem:[%s17181_s15 + $0x118] sm:$0xff] }
0x1652   :  { %8696 = vmatmul.mubr.msk.f32.gmra.mxu1 %vm217_vm0, %v7651_v60  ;;  %10299 = vrsqrt.f32 %v7580_v31  ;;  %v8719_v60 = vld [vmem:[%s17181_s15 + $0x160] sm:$0xff] }
0x1653   :  { %7840 = vmatprep.mubr.f32.mxu1 %v18530_v27  ;;  %v10292_v30 = vpop.eup %10291  ;;  %10301 = vrsqrt.f32 %v7581_v9  ;;  %v7655_v29 = vadd.f32 %v16817_v46, %v7631_v8  ;;  %v8711_v31 = vld [vmem:[%s17181_s15 + $0x120] sm:$0xff]  ;;  %v8709_v9 = vld [vmem:[%s17181_s15 + $0x110] sm:$0xff] }
0x1654   :  { %v7608_v15 = vmul.f32 %v10292_v30, %v16708_v40  ;;  %v10294_v33 = vpop.eup %10293  ;;  %v8725_v30 = vld [vmem:[%s17181_s15 + $0x190] sm:$0xff]  ;;  %v8723_v8 = vld [vmem:[%s17181_s15 + $0x180] sm:$0xff] }
0x1655   :  { %v7609_v62 = vmul.f32 %v10294_v33, %v16705_v23  ;;  %v8707_v33 = vld [vmem:[%s17181_s15 + $0x100] sm:$0xff] }
0x1656   :  { %8697 = vmatmul.mubr.msk.f32.gmra.mxu1 %vm217_vm0, %v7652_v57  ;;  %v7632_v52 = vmul.f32 %v16810_v17, %v7608_v15  ;;  %v8713_v57 = vld [vmem:[%s17181_s15 + $0x130] sm:$0xff]  ;;  %v8724_v15 = vld [vmem:[%s17181_s15 + $0x188] sm:$0xff] }
0x1657   :  { %7846 = vmatprep.mubr.f32.mxu1 %v18530_v27  ;;  %v7633_v56 = vmul.f32 %v16810_v17, %v7609_v62  ;;  %v8690_v62 = vld [vmem:[%s17180_s14 + $0x2] sm:$0x3] }
0x1658   :  { %v7656_v16 = vadd.f32 %v16817_v46, %v7632_v52 }
0x1659   :  { %v10296_v38 = vpop.eup %10295  ;;  %v7657_v19 = vadd.f32 %v16817_v46, %v7633_v56 }
0x165a   :  { %8698 = vmatmul.mubr.msk.f32.gmra.mxu1 %vm217_vm0, %v7653_v1  ;;  %v10298_v40 = vpop.eup %10297  ;;  %v7610_v51 = vmul.f32 %v10296_v38, %v16720_v49  ;;  %v8726_v1 = vld [vmem:[%s17181_s15 + $0x198] sm:$0xff] }
0x165b   :  { %7852 = vmatprep.mubr.f32.mxu1 %v18530_v27  ;;  %v7611_v23 = vmul.f32 %v10298_v40, %v16717_v24  ;;  %v18532_v38 = vld [vmem:[#allocation16_spill] sm:$0xff] }
0x165c   :  { %v7634_v22 = vmul.f32 %v16810_v17, %v7610_v51  ;;  %v16984_v40 = vrot.slane %v8690_v62, %v18532_v38 }
0x165d   :  { %v7635_v12 = vmul.f32 %v16810_v17, %v7611_v23 }
0x165e   :  { %8699 = vmatmul.mubr.msk.f32.gmra.mxu1 %vm217_vm0, %v7654_v21  ;;  %v7658_v0 = vadd.f32 %v16817_v46, %v7634_v22  ;;  %v8708_v21 = vld [vmem:[%s17181_s15 + $0x108] sm:$0xff] }
0x165f   :  { %7858 = vmatprep.mubr.f32.mxu1 %v18530_v27  ;;  %v10300_v55 = vpop.eup %10299  ;;  %v7659_v41 = vadd.f32 %v16817_v46, %v7635_v12 }
0x1660   :  { %v7612_v49 = vmul.f32 %v10300_v55, %v16741_v35  ;;  %v10302_v45 = vpop.eup %10301 }
0x1661   :  { %v7613_v24 = vmul.f32 %v10302_v45, %v16729_v10  ;;  %v8735_v10 = vld [vmem:[%s17181_s15 + $0x1e0] sm:$0xff] }
0x1662   :  { %8700 = vmatmul.mubr.msk.f32.gmra.mxu1 %vm217_vm0, %v7655_v29  ;;  %v7636_v3 = vmul.f32 %v16810_v17, %v7612_v49  ;;  %9163 = vmatprep.subr.mxu0 %v8735_v10  ;;  %v18531_v29 = vld [vmem:[#allocation5_spill] sm:$0xff] }
0x1663   :  { %7864 = vmatprep.mubr.f32.mxu1 %v18530_v27  ;;  %v7637_v48 = vmul.f32 %v16810_v17, %v7613_v24  ;;  %v8734_v17 = vld [vmem:[%s17181_s15 + $0x1d8] sm:$0xff]  ;;  %9816 = vmatprep.subr.mxu1 %v8735_v10  ;;  %v16981_v52 = vrot.slane %v8690_v62, %v18531_v29 }
0x1664   :  { %v7660_v35 = vadd.f32 %v16817_v46, %v7636_v3  ;;  %9164 = vmatpush3.msra.mxu0 %v8719_v60  ;;  %9832 = vmatpush3.msra.mxu1 %v8719_v60 }
0x1665   :  { %v7661_v18 = vadd.f32 %v16817_v46, %v7637_v48  ;;  %9165 = vmatprep.subr.mxu0 %v8734_v17  ;;  %9817 = vmatprep.subr.mxu1 %v8734_v17  ;;  %v8733_v46 = vld [vmem:[%s17181_s15 + $0x1d0] sm:$0xff] }
0x1666   :  { %8701 = vmatmul.mubr.msk.f32.gmra.mxu1 %vm217_vm0, %v7656_v16 }
0x1667   :  { %7870 = vmatprep.mubr.f32.mxu1 %v18530_v27 }
0x166a   :  { %8702 = vmatmul.mubr.msk.f32.gmra.mxu1 %vm217_vm0, %v7657_v19 }
0x166b   :  { %7876 = vmatprep.mubr.f32.mxu1 %v18530_v27 }
0x166e   :  { %8703 = vmatmul.mubr.msk.f32.gmra.mxu1 %vm217_vm0, %v7658_v0 }
0x166f   :  { %7882 = vmatprep.mubr.f32.mxu1 %v18530_v27 }
0x1672   :  { %8704 = vmatmul.mubr.msk.f32.gmra.mxu1 %vm217_vm0, %v7659_v41 }
0x1673   :  { %7888 = vmatprep.mubr.f32.mxu1 %v18530_v27 }
0x1676   :  { %8705 = vmatmul.mubr.msk.f32.gmra.mxu1 %vm217_vm0, %v7660_v35 }
0x1677   :  { %7894 = vmatprep.mubr.f32.mxu1 %v18530_v27  ;;  %v8718_v27 = vld [vmem:[%s17181_s15 + $0x158] sm:$0xff] }
0x1678   :  { %9166 = vmatpush3.msra.mxu0 %v8718_v27  ;;  %9833 = vmatpush3.msra.mxu1 %v8718_v27 }
0x1679   :  { %9167 = vmatprep.subr.mxu0 %v8733_v46  ;;  %9818 = vmatprep.subr.mxu1 %v8733_v46 }
0x167a   :  { %8706 = vmatmul.mubr.msk.f32.gmra.mxu1 %vm217_vm0, %v7661_v18  ;;  %9168 = vmatpush3.msra.mxu0 %v8717_v59 }
0x167b   :  { %9834 = vmatpush3.msra.mxu1 %v8717_v59  ;;  %9169 = vmatprep.subr.mxu0 %v8732_v36 }
0x167c   :  { %9819 = vmatprep.subr.mxu1 %v8732_v36  ;;  %9170 = vmatpush3.msra.mxu0 %v8716_v42 }
0x167d   :  { %9835 = vmatpush3.msra.mxu1 %v8716_v42  ;;  %9171 = vmatprep.subr.mxu0 %v8731_v14 }
0x167e   :  { %9820 = vmatprep.subr.mxu1 %v8731_v14  ;;  %9172 = vmatpush3.msra.mxu0 %v8715_v61 }
0x167f   :  { %9836 = vmatpush3.msra.mxu1 %v8715_v61  ;;  %9173 = vmatprep.subr.mxu0 %v8730_v26 }
0x1680   :  { %9821 = vmatprep.subr.mxu1 %v8730_v26  ;;  %9174 = vmatpush3.msra.mxu0 %v8714_v44 }
0x1681   :  { %9837 = vmatpush3.msra.mxu1 %v8714_v44  ;;  %9175 = vmatprep.subr.mxu0 %v8729_v37 }
0x1682   :  { %9822 = vmatprep.subr.mxu1 %v8729_v37  ;;  %9176 = vmatpush3.msra.mxu0 %v8713_v57 }
0x1683   :  { %9838 = vmatpush3.msra.mxu1 %v8713_v57  ;;  %9177 = vmatprep.subr.mxu0 %v8728_v54 }
0x1684   :  { %9823 = vmatprep.subr.mxu1 %v8728_v54  ;;  %9178 = vmatpush3.msra.mxu0 %v8712_v63 }
0x1685   :  { %9839 = vmatpush3.msra.mxu1 %v8712_v63  ;;  %9179 = vmatprep.subr.mxu0 %v8727_v32 }
0x1686   :  { %9824 = vmatprep.subr.mxu1 %v8727_v32  ;;  %9180 = vmatpush3.msra.mxu0 %v8711_v31 }
0x1687   :  { %9840 = vmatpush3.msra.mxu1 %v8711_v31  ;;  %9181 = vmatprep.subr.mxu0 %v8726_v1 }
0x1688   :  { %9825 = vmatprep.subr.mxu1 %v8726_v1  ;;  %9182 = vmatpush3.msra.mxu0 %v8710_v39 }
0x1689   :  { %9841 = vmatpush3.msra.mxu1 %v8710_v39  ;;  %9183 = vmatprep.subr.mxu0 %v8725_v30 }
0x168a   :  { %9826 = vmatprep.subr.mxu1 %v8725_v30  ;;  %9184 = vmatpush3.msra.mxu0 %v8709_v9 }
0x168b   :  { %9842 = vmatpush3.msra.mxu1 %v8709_v9  ;;  %9185 = vmatprep.subr.mxu0 %v8724_v15 }
0x168c   :  { %9827 = vmatprep.subr.mxu1 %v8724_v15  ;;  %9186 = vmatpush3.msra.mxu0 %v8708_v21 }
0x168d   :  { %9843 = vmatpush3.msra.mxu1 %v8708_v21  ;;  %9187 = vmatprep.subr.mxu0 %v8723_v8 }
0x168e   :  { %9828 = vmatprep.subr.mxu1 %v8723_v8  ;;  %9188 = vmatpush3.msra.mxu0 %v8707_v33 }
0x168f   :  { %9844 = vmatpush3.msra.mxu1 %v8707_v33 }
0x16fe   :  { %v7806_v51 = vpop.f32.mrf.mxu1 }
0x16ff   :  { %v7807_v16 = vadd.f32 %v7806_v51, %v16981_v52 }
0x1700   :  { %v7808_v56 = vpop.f32.mrf.mxu1 }
0x1701   :  { %v7933_v23 = vmul.f32 0.70710677, %v7807_v16  ;;  %v7809_v19 = vadd.f32 %v7808_v56, %v16984_v40  ;;  %v7901_v15 = vmul.f32 0.5, %v7807_v16 }
0x1702   :  { %v7812_v22 = vpop.f32.mrf.mxu1 }
0x1703   :  { %10303 = verf.f32 %v7933_v23  ;;  %v7934_v55 = vmul.f32 0.70710677, %v7809_v19  ;;  %v7813_v49 = vadd.f32 %v7812_v22, %v16981_v52  ;;  %v7902_v39 = vmul.f32 0.5, %v7809_v19 }
0x1704   :  { %v7814_v0 = vpop.f32.mrf.mxu1 }
0x1705   :  { %10305 = verf.f32 %v7934_v55  ;;  %v7935_v12 = vmul.f32 0.70710677, %v7813_v49  ;;  %v7815_v45 = vadd.f32 %v7814_v0, %v16984_v40  ;;  %v7903_v0 = vmul.f32 0.5, %v7813_v49 }
0x1706   :  { %v7818_v24 = vpop.f32.mrf.mxu1 }
0x1707   :  { %10307 = verf.f32 %v7935_v12  ;;  %v7936_v41 = vmul.f32 0.70710677, %v7815_v45  ;;  %v7819_v3 = vadd.f32 %v7818_v24, %v16981_v52  ;;  %v7904_v19 = vmul.f32 0.5, %v7815_v45 }
0x1708   :  { %v7820_v35 = vpop.f32.mrf.mxu1 }
0x1709   :  { %10309 = verf.f32 %v7936_v41  ;;  %v7937_v48 = vmul.f32 0.70710677, %v7819_v3  ;;  %v7821_v18 = vadd.f32 %v7820_v35, %v16984_v40 }
0x170a   :  { %v7824_v10 = vpop.f32.mrf.mxu1 }
0x170b   :  { %10311 = verf.f32 %v7937_v48  ;;  %v7938_v60 = vmul.f32 0.70710677, %v7821_v18  ;;  %v16993_v17 = vadd.f32 %v7824_v10, %v16981_v52  ;;  %v7906_v49 = vmul.f32 0.5, %v7821_v18 }
0x170c   :  { %v7826_v27 = vpop.f32.mrf.mxu1 }
0x170d   :  { %10313 = verf.f32 %v7938_v60  ;;  %v7939_v46 = vmul.f32 0.70710677, %v16993_v17  ;;  %v16997_v59 = vadd.f32 %v7826_v27, %v16984_v40 }
0x170e   :  { %v7830_v36 = vpop.f32.mrf.mxu1 }
0x170f   :  { %10315 = verf.f32 %v7939_v46  ;;  %v7940_v42 = vmul.f32 0.70710677, %v16997_v59  ;;  %v17001_v14 = vadd.f32 %v7830_v36, %v16981_v52  ;;  %v7905_v36 = vmul.f32 0.5, %v7819_v3 }
0x1710   :  { %v10304_v61 = vpop.eup %10303  ;;  %v7832_v26 = vpop.f32.mrf.mxu1 }
0x1711   :  { %10317 = verf.f32 %v7940_v42  ;;  %v7941_v44 = vmul.f32 0.70710677, %v17001_v14  ;;  %v17005_v57 = vadd.f32 %v7832_v26, %v16984_v40  ;;  %v7997_v63 = vadd.f32 1.0, %v10304_v61 }
0x1712   :  { %v10306_v37 = vpop.eup %10305  ;;  %v7836_v54 = vpop.f32.mrf.mxu1 }
0x1713   :  { %10319 = verf.f32 %v7941_v44  ;;  %v17008_v32 = vadd.f32 %v7836_v54, %v16981_v52  ;;  %v7998_v31 = vadd.f32 1.0, %v10306_v37  ;;  %v7942_v30 = vmul.f32 0.70710677, %v17005_v57 }
0x1714   :  { %v10308_v1 = vpop.eup %10307  ;;  %v7838_v9 = vpop.f32.mrf.mxu1  ;;  %v8029_v38 = vmul.f32 %v7997_v63, %v7901_v15 }
0x1715   :  { %v7943_v21 = vmul.f32 0.70710677, %v17008_v32  ;;  %v17013_v8 = vadd.f32 %v7838_v9, %v16984_v40  ;;  %10321 = verf.f32 %v7942_v30  ;;  %v8030_v29 = vmul.f32 %v7998_v31, %v7902_v39 }
0x1716   :  { %v10310_v33 = vpop.eup %10309  ;;  %v7842_v62 = vpop.f32.mrf.mxu1  ;;  %v7999_v51 = vadd.f32 1.0, %v10308_v1  ;;  %v7908_v30 = vmul.f32 0.5, %v16997_v59 }
0x1717   :  { %10323 = verf.f32 %v7943_v21  ;;  %v7944_v56 = vmul.f32 0.70710677, %v17013_v8  ;;  %v17017_v22 = vadd.f32 %v7842_v62, %v16981_v52  ;;  %8158 = vmatprep.mubr.f32.mxu0 %v8030_v29  ;;  %v8000_v55 = vadd.f32 1.0, %v10310_v33 }
0x1718   :  { %v10312_v23 = vpop.eup %10311  ;;  %v7844_v16 = vpop.f32.mrf.mxu1  ;;  %8159 = vmatmul.mubr.f32.vlgmr.msra.gmra.mxu0 %v8029_v38  ;;  %v8031_v60 = vmul.f32 %v7999_v51, %v7903_v0  ;;  %v7907_v21 = vmul.f32 0.5, %v16993_v17 }
0x1719   :  { %10325 = verf.f32 %v7944_v56  ;;  %v17020_v12 = vadd.f32 %v7844_v16, %v16984_v40  ;;  %v8001_v41 = vadd.f32 1.0, %v10312_v23  ;;  %v7945_v35 = vmul.f32 0.70710677, %v17017_v22 }
0x171a   :  { %v10314_v24 = vpop.eup %10313  ;;  %v7848_v48 = vpop.f32.mrf.mxu1  ;;  %v8032_v10 = vmul.f32 %v8000_v55, %v7904_v19  ;;  %v7910_v16 = vmul.f32 0.5, %v17005_v57 }
0x171b   :  { %v7946_v45 = vmul.f32 0.70710677, %v17020_v12  ;;  %v17025_v27 = vadd.f32 %v7848_v48, %v16981_v52  ;;  %10327 = verf.f32 %v7945_v35  ;;  %v8002_v61 = vadd.f32 1.0, %v10314_v24 }
0x171c   :  { %v10316_v46 = vpop.eup %10315  ;;  %8163 = vmatprep.mubr.f32.mxu0 %v8032_v10  ;;  %v7850_v42 = vpop.f32.mrf.mxu1  ;;  %v8033_v37 = vmul.f32 %v8001_v41, %v7905_v36  ;;  %v7909_v24 = vmul.f32 0.5, %v17001_v14  ;;  %v7912_v14 = vmul.f32 0.5, %v17013_v8 }
0x171d   :  { %10329 = verf.f32 %v7946_v45  ;;  %v7947_v26 = vmul.f32 0.70710677, %v17025_v27  ;;  %8164 = vmatmul.mubr.f32.gmra.mxu0 %v8031_v60  ;;  %v17029_v54 = vadd.f32 %v7850_v42, %v16984_v40  ;;  %v8034_v31 = vmul.f32 %v8002_v61, %v7906_v49 }
0x171e   :  { %v10318_v44 = vpop.eup %10317  ;;  %v7854_v63 = vpop.f32.mrf.mxu1  ;;  %v8003_v1 = vadd.f32 1.0, %v10316_v46  ;;  %v7911_v49 = vmul.f32 0.5, %v17008_v32 }
0x171f   :  { %10331 = verf.f32 %v7947_v26  ;;  %v17032_v3 = vadd.f32 %v7854_v63, %v16981_v52  ;;  %v8004_v18 = vadd.f32 1.0, %v10318_v44  ;;  %v7948_v9 = vmul.f32 0.70710677, %v17029_v54  ;;  %8168 = vmatprep.mubr.f32.mxu0 %v8034_v31 }
0x1720   :  { %v10320_v39 = vpop.eup %10319  ;;  %v7856_v15 = vpop.f32.mrf.mxu1  ;;  %v8035_v56 = vmul.f32 %v8003_v1, %v7907_v21 }
0x1721   :  { %v7949_v33 = vmul.f32 0.70710677, %v17032_v3  ;;  %v17039_v62 = vadd.f32 %v7856_v15, %v16984_v40  ;;  %8169 = vmatmul.mubr.f32.gmra.mxu0 %v8033_v37  ;;  %10333 = verf.f32 %v7948_v9  ;;  %v8036_v38 = vmul.f32 %v8004_v18, %v7908_v30 }
0x1722   :  { %v7860_v29 = vpop.f32.mrf.mxu1  ;;  %v10322_v51 = vpop.eup %10321  ;;  %v8005_v23 = vadd.f32 1.0, %v10320_v39  ;;  %v7914_v9 = vmul.f32 0.5, %v17020_v12 }
0x1723   :  { %10335 = verf.f32 %v7949_v33  ;;  %v7950_v59 = vmul.f32 0.70710677, %v17039_v62  ;;  %v17044_v17 = vadd.f32 %v7860_v29, %v16981_v52  ;;  %8173 = vmatprep.mubr.f32.mxu0 %v8036_v38  ;;  %v8006_v0 = vadd.f32 1.0, %v10322_v51 }
0x1724   :  { %v10324_v19 = vpop.eup %10323  ;;  %v7862_v55 = vpop.f32.mrf.mxu1  ;;  %v8037_v57 = vmul.f32 %v8005_v23, %v7909_v24  ;;  %v7913_v33 = vmul.f32 0.5, %v17017_v22 }
0x1725   :  { %10337 = verf.f32 %v7950_v59  ;;  %v17048_v41 = vadd.f32 %v7862_v55, %v16984_v40  ;;  %8174 = vmatmul.mubr.f32.gmra.mxu0 %v8035_v56  ;;  %v8007_v48 = vadd.f32 1.0, %v10324_v19  ;;  %v7951_v10 = vmul.f32 0.70710677, %v17044_v17 }
0x1726   :  { %v10326_v35 = vpop.eup %10325  ;;  %v7866_v60 = vpop.f32.mrf.mxu1  ;;  %v8038_v45 = vmul.f32 %v8006_v0, %v7910_v16  ;;  %v7916_v55 = vmul.f32 0.5, %v17029_v54 }
0x1727   :  { %v7952_v46 = vmul.f32 0.70710677, %v17048_v41  ;;  %v17053_v36 = vadd.f32 %v7866_v60, %v16981_v52  ;;  %10339 = verf.f32 %v7951_v10  ;;  %v8008_v61 = vadd.f32 1.0, %v10326_v35 }
0x1728   :  { %8178 = vmatprep.mubr.f32.mxu0 %v8038_v45  ;;  %v7868_v42 = vpop.f32.mrf.mxu1  ;;  %v10328_v26 = vpop.eup %10327  ;;  %v8039_v31 = vmul.f32 %v8007_v48, %v7911_v49  ;;  %v7915_v35 = vmul.f32 0.5, %v17025_v27 }
0x1729   :  { %10341 = verf.f32 %v7952_v46  ;;  %v7953_v44 = vmul.f32 0.70710677, %v17053_v36  ;;  %v17059_v37 = vadd.f32 %v7868_v42, %v16984_v40  ;;  %8179 = vmatmul.mubr.f32.gmra.mxu0 %v8037_v57  ;;  %v8040_v18 = vmul.f32 %v8008_v61, %v7912_v14 }
0x172a   :  { %v10330_v63 = vpop.eup %10329  ;;  %v7872_v1 = vpop.f32.mrf.mxu1  ;;  %v8009_v39 = vadd.f32 1.0, %v10328_v26  ;;  %v7918_v14 = vmul.f32 0.5, %v17039_v62 }
0x172b   :  { %10343 = verf.f32 %v7953_v44  ;;  %v7954_v32 = vmul.f32 0.70710677, %v17059_v37  ;;  %v17063_v8 = vadd.f32 %v7872_v1, %v16981_v52  ;;  %8183 = vmatprep.mubr.f32.mxu0 %v8040_v18  ;;  %v8010_v21 = vadd.f32 1.0, %v10330_v63 }
0x172c   :  { %v10332_v30 = vpop.eup %10331  ;;  %v7874_v15 = vpop.f32.mrf.mxu1  ;;  %v8041_v59 = vmul.f32 %v8009_v39, %v7913_v33  ;;  %v7917_v44 = vmul.f32 0.5, %v17032_v3  ;;  %v7919_v3 = vmul.f32 0.5, %v17044_v17  ;;  %v7920_v33 = vmul.f32 0.5, %v17048_v41 }
0x172d   :  { %10345 = verf.f32 %v7954_v32  ;;  %v7955_v29 = vmul.f32 0.70710677, %v17063_v8  ;;  %8184 = vmatmul.mubr.f32.gmra.mxu0 %v8039_v31  ;;  %v17069_v38 = vadd.f32 %v7874_v15, %v16984_v40  ;;  %v8042_v56 = vmul.f32 %v8010_v21, %v7914_v9 }
0x172e   :  { %v7878_v51 = vpop.f32.mrf.mxu1  ;;  %v10334_v23 = vpop.eup %10333  ;;  %v8011_v19 = vadd.f32 1.0, %v10332_v30  ;;  %v7922_v41 = vmul.f32 0.5, %v17059_v37 }
0x172f   :  { %10347 = verf.f32 %v7955_v29  ;;  %v17072_v12 = vadd.f32 %v7878_v51, %v16981_v52  ;;  %v7956_v22 = vmul.f32 0.70710677, %v17069_v38  ;;  %8188 = vmatprep.mubr.f32.mxu0 %v8042_v56  ;;  %v8012_v24 = vadd.f32 1.0, %v10334_v23 }
0x1730   :  { %v10336_v16 = vpop.eup %10335  ;;  %v7880_v0 = vpop.f32.mrf.mxu1  ;;  %v8043_v46 = vmul.f32 %v8011_v19, %v7915_v35 }
0x1731   :  { %v7957_v48 = vmul.f32 0.70710677, %v17072_v12  ;;  %v17079_v10 = vadd.f32 %v7880_v0, %v16984_v40  ;;  %8189 = vmatmul.mubr.f32.gmra.mxu0 %v8041_v59  ;;  %10349 = verf.f32 %v7956_v22  ;;  %v8044_v57 = vmul.f32 %v8012_v24, %v7916_v55 }
0x1732   :  { %v10338_v60 = vpop.eup %10337  ;;  %v7884_v45 = vpop.f32.mrf.mxu1  ;;  %v8013_v49 = vadd.f32 1.0, %v10336_v16 }
0x1733   :  { %10351 = verf.f32 %v7957_v48  ;;  %v7958_v54 = vmul.f32 0.70710677, %v17079_v10  ;;  %v17084_v42 = vadd.f32 %v7884_v45, %v16981_v52  ;;  %8193 = vmatprep.mubr.f32.mxu0 %v8044_v57  ;;  %v8014_v61 = vadd.f32 1.0, %v10338_v60 }
0x1734   :  { %v7886_v27 = vpop.f32.mrf.mxu1  ;;  %v10340_v26 = vpop.eup %10339  ;;  %v8045_v32 = vmul.f32 %v8013_v49, %v7917_v44  ;;  %v7921_v48 = vmul.f32 0.5, %v17053_v36 }
0x1735   :  { %10353 = verf.f32 %v7958_v54  ;;  %v17088_v63 = vadd.f32 %v7886_v27, %v16984_v40  ;;  %8194 = vmatmul.mubr.f32.gmra.mxu0 %v8043_v46  ;;  %v8015_v1 = vadd.f32 1.0, %v10340_v26  ;;  %v7959_v18 = vmul.f32 0.70710677, %v17084_v42 }
0x1736   :  { %v10342_v31 = vpop.eup %10341  ;;  %v7890_v39 = vpop.f32.mrf.mxu1  ;;  %v8046_v62 = vmul.f32 %v8014_v61, %v7918_v14  ;;  %v7924_v27 = vmul.f32 0.5, %v17069_v38  ;;  %v7923_v61 = vmul.f32 0.5, %v17063_v8 }
0x1737   :  { %v7960_v30 = vmul.f32 0.70710677, %v17088_v63  ;;  %v17093_v9 = vadd.f32 %v7890_v39, %v16981_v52  ;;  %v8016_v15 = vadd.f32 1.0, %v10342_v31  ;;  %10355 = verf.f32 %v7959_v18 }
0x1738   :  { %v10344_v21 = vpop.eup %10343  ;;  %8198 = vmatprep.mubr.f32.mxu0 %v8046_v62  ;;  %v7892_v29 = vpop.f32.mrf.mxu1  ;;  %v8047_v23 = vmul.f32 %v8015_v1, %v7919_v3  ;;  %v7926_v31 = vmul.f32 0.5, %v17079_v10  ;;  %v7925_v39 = vmul.f32 0.5, %v17072_v12  ;;  %v7928_v8 = vmul.f32 0.5, %v17088_v63 }
0x1739   :  { %10357 = verf.f32 %v7960_v30  ;;  %v7961_v51 = vmul.f32 0.70710677, %v17093_v9  ;;  %8199 = vmatmul.mubr.f32.gmra.mxu0 %v8045_v32  ;;  %v7893_v59 = vadd.f32 %v7892_v29, %v16984_v40  ;;  %v8048_v16 = vmul.f32 %v8016_v15, %v7920_v33 }
0x173a   :  { %v10346_v56 = vpop.eup %10345  ;;  %v7896_v19 = vpop.f32.mrf.mxu1  ;;  %v8017_v55 = vadd.f32 1.0, %v10344_v21  ;;  %v7927_v3 = vmul.f32 0.5, %v17084_v42 }
0x173b   :  { %10359 = verf.f32 %v7961_v51  ;;  %v7897_v22 = vadd.f32 %v7896_v19, %v16981_v52  ;;  %v8018_v17 = vadd.f32 1.0, %v10346_v56  ;;  %v7962_v24 = vmul.f32 0.70710677, %v7893_v59  ;;  %8203 = vmatprep.mubr.f32.mxu0 %v8048_v16 }
0x173c   :  { %v10348_v0 = vpop.eup %10347  ;;  %v7898_v35 = vpop.f32.mrf.mxu1  ;;  %v8049_v49 = vmul.f32 %v8017_v55, %v7921_v48  ;;  %v7930_v12 = vmul.f32 0.5, %v7893_v59  ;;  %v7929_v19 = vmul.f32 0.5, %v17093_v9  ;;  %v17113_v9 = vld [vmem:[%s17182_s16 + $0x1] ss:$0 sm:$0xff]  ;;  %s10415_s16 = smov [#allocation2]  }
0x173d   :  { %v7963_v60 = vmul.f32 0.70710677, %v7897_v22  ;;  %v7899_v45 = vadd.f32 %v7898_v35, %v16984_v40  ;;  %8204 = vmatmul.mubr.f32.gmra.mxu0 %v8047_v23  ;;  %10361 = verf.f32 %v7962_v24  ;;  %v8050_v57 = vmul.f32 %v8018_v17, %v7922_v41  ;;  %s8300_s11 = sshll.u32 %s10415_s16, 4  ;;  %s8301_s11 = int_to_ptr.vmem [resolvable:$true] %s8300_s11 }
0x173e   :  { %v10350_v46 = vpop.eup %10349  ;;  %v8019_v54 = vadd.f32 1.0, %v10348_v0  ;;  %v7931_v42 = vmul.f32 0.5, %v7897_v22  ;;  %s10388_s12 = scalar_lea.vmem %s8301_s11, 2048  ;;  %p10393_p1 = scmp.lt.s32.totalorder %s8301_s11, %s8301_s11 }
0x173f   :  { %10363 = verf.f32 %v7963_v60  ;;  %v7964_v52 = vmul.f32 0.70710677, %v7899_v45  ;;  %8208 = vmatprep.mubr.f32.mxu0 %v8050_v57  ;;  %v8020_v37 = vadd.f32 1.0, %v10350_v46  ;;  %v7932_v0 = vmul.f32 0.5, %v7899_v45  ;;  %p10389_p0 = scmp.ne.s32.totalorder %s8301_s11, %s10388_s12  ;;  %p10394_p2 = scmp.lt.s32.totalorder %s10388_s12, %s10388_s12 }
0x1740   :  { %v10352_v14 = vpop.eup %10351  ;;  %v8051_v40 = vmul.f32 %v8019_v54, %v7923_v61 }
0x1741   :  { %10365 = verf.f32 %v7964_v52  ;;  %8209 = vmatmul.mubr.f32.gmra.mxu0 %v8049_v49  ;;  %v8052_v26 = vmul.f32 %v8020_v37, %v7924_v27  ;;  %v8021_v44 = vadd.f32 1.0, %v10352_v14  ;;  %p10395_p3 = por %p10394_p2, %p10393_p1 }
0x1742   :  { %v10354_v36 = vpop.eup %10353 }
0x1743   :  { %v8022_v1 = vadd.f32 1.0, %v10354_v36  ;;  %8213 = vmatprep.mubr.f32.mxu0 %v8052_v26  ;;  %v8053_v32 = vmul.f32 %v8021_v44, %v7925_v39  ;;  %p10396_p4 = pnand %p10395_p3, %p10389_p0 }
0x1744   :  { %v10356_v18 = vpop.eup %10355 }
0x1745   :  { %8214 = vmatmul.mubr.f32.gmra.mxu0 %v8051_v40  ;;  %v8054_v62 = vmul.f32 %v8022_v1, %v7926_v31  ;;  %v8023_v30 = vadd.f32 1.0, %v10356_v18 }
0x1746   :  { %v10358_v38 = vpop.eup %10357 }
0x1747   :  { %8218 = vmatprep.mubr.f32.mxu0 %v8054_v62  ;;  %v8024_v15 = vadd.f32 1.0, %v10358_v38  ;;  %v8055_v29 = vmul.f32 %v8023_v30, %v7927_v3 }
0x1748   :  { %v10360_v21 = vpop.eup %10359 }
0x1749   :  { %8219 = vmatmul.mubr.f32.gmra.mxu0 %v8053_v32  ;;  %v8056_v33 = vmul.f32 %v8024_v15, %v7928_v8  ;;  %v8025_v51 = vadd.f32 1.0, %v10360_v21 }
0x174a   :  { %v10362_v10 = vpop.eup %10361 }
0x174b   :  { %8223 = vmatprep.mubr.f32.mxu0 %v8056_v33  ;;  %v8026_v23 = vadd.f32 1.0, %v10362_v10  ;;  %v8057_v63 = vmul.f32 %v8025_v51, %v7929_v19 }
0x174c   :  { %v10364_v56 = vpop.eup %10363 }
0x174d   :  { %8224 = vmatmul.mubr.f32.gmra.mxu0 %v8055_v29  ;;  %v8058_v55 = vmul.f32 %v8026_v23, %v7930_v12  ;;  %v8027_v17 = vadd.f32 1.0, %v10364_v56 }
0x174e   :  { %v10366_v16 = vpop.eup %10365 }
0x174f   :  { %v8028_v41 = vadd.f32 1.0, %v10366_v16  ;;  %8228 = vmatprep.mubr.f32.mxu1 %v8058_v55  ;;  %v8059_v35 = vmul.f32 %v8027_v17, %v7931_v42 }
0x1750   :  { %8229 = vmatmul.mubr.f32.vlgmr.msra.gmra.mxu1 %v8057_v63 }
0x1751   :  { %v8060_v24 = vmul.f32 %v8028_v41, %v7932_v0 }
0x1753   :  { %8233 = vmatprep.mubr.f32.mxu1 %v8060_v24 }
0x1754   :  { %8234 = vmatmul.mubr.f32.gmra.mxu1 %v8059_v35 }
0x17d8   :  { %v9189_v48 = vpop.f32.mrf.mxu0 }
0x17da   :  { %v9190_v60 = vpop.f32.mrf.mxu0 }
0x17db   :  { %v9191_v59 = vadd.f32 %v9190_v60, %v9189_v48 }
0x17dd   :  { %v9192_v57 = vpop.f32.mrf.mxu0  ;;  %v8239_v46 = vadd.f32 %v9191_v59, %v16437_v58 }
0x17df   :  { %v9193_v45 = vpop.f32.mrf.mxu0  ;;  %v8263_v49 = vadd.f32 %v17113_v9, %v8239_v46 }
0x17e0   :  { %v9194_v22 = vadd.f32 %v9193_v45, %v9192_v57 }
0x17e1   :  { %v9195_v54 = vpop.f32.mrf.mxu0  ;;  %8279 = vst.msk [vmem:[#allocation2] sm:$0xff] %vm217_vm0, %v8263_v49 }
0x17e2   :  { %v8240_v52 = vadd.f32 %v9194_v22, %v16422_v34 }
0x17e3   :  { %v9196_v14 = vpop.f32.mrf.mxu0 }
0x17e4   :  { %v8264_v27 = vadd.f32 %v17113_v9, %v8240_v52  ;;  %v9197_v37 = vadd.f32 %v9196_v14, %v9195_v54 }
0x17e5   :  { %v9198_v61 = vpop.f32.mrf.mxu0 }
0x17e6   :  { %8280 = vst.msk [vmem:[#allocation2 + $0x8] sm:$0xff] %vm217_vm0, %v8264_v27  ;;  %v8241_v36 = vadd.f32 %v9197_v37, %v16440_v5 }
0x17e7   :  { %v9199_v26 = vpop.f32.mrf.mxu0 }
0x17e8   :  { %v8265_v58 = vadd.f32 %v17113_v9, %v8241_v36  ;;  %v9200_v40 = vadd.f32 %v9199_v26, %v9198_v61 }
0x17e9   :  { %v9201_v44 = vpop.f32.mrf.mxu0 }
0x17ea   :  { %8281 = vst.msk [vmem:[#allocation2 + $0x10] sm:$0xff] %vm217_vm0, %v8265_v58  ;;  %v8242_v31 = vadd.f32 %v9200_v40, %v16432_v13 }
0x17eb   :  { %v9202_v1 = vpop.f32.mrf.mxu0 }
0x17ec   :  { %v8266_v34 = vadd.f32 %v17113_v9, %v8242_v31  ;;  %v9203_v18 = vadd.f32 %v9202_v1, %v9201_v44 }
0x17ed   :  { %v9204_v39 = vpop.f32.mrf.mxu0 }
0x17ee   :  { %8282 = vst.msk [vmem:[#allocation2 + $0x18] sm:$0xff] %vm217_vm0, %v8266_v34  ;;  %v8243_v62 = vadd.f32 %v9203_v18, %v16472_v20 }
0x17ef   :  { %v9205_v38 = vpop.f32.mrf.mxu0 }
0x17f0   :  { %v8267_v5 = vadd.f32 %v17113_v9, %v8243_v62  ;;  %v9206_v32 = vadd.f32 %v9205_v38, %v9204_v39 }
0x17f1   :  { %v9207_v30 = vpop.f32.mrf.mxu0 }
0x17f2   :  { %8283 = vst.msk [vmem:[#allocation2 + $0x20] sm:$0xff] %vm217_vm0, %v8267_v5  ;;  %v8244_v8 = vadd.f32 %v9206_v32, %v16466_v25 }
0x17f3   :  { %v9208_v15 = vpop.f32.mrf.mxu0 }
0x17f4   :  { %v8268_v13 = vadd.f32 %v17113_v9, %v8244_v8  ;;  %v9209_v21 = vadd.f32 %v9208_v15, %v9207_v30 }
0x17f5   :  { %v9210_v3 = vpop.f32.mrf.mxu0 }
0x17f6   :  { %8284 = vst.msk [vmem:[#allocation2 + $0x28] sm:$0xff] %vm217_vm0, %v8268_v13  ;;  %v8245_v33 = vadd.f32 %v9209_v21, %v16518_v11 }
0x17f7   :  { %v9211_v10 = vpop.f32.mrf.mxu0 }
0x17f8   :  { %v8269_v20 = vadd.f32 %v17113_v9, %v8245_v33  ;;  %v9212_v29 = vadd.f32 %v9211_v10, %v9210_v3 }
0x17f9   :  { %v9213_v51 = vpop.f32.mrf.mxu0 }
0x17fa   :  { %8285 = vst.msk [vmem:[#allocation2 + $0x30] sm:$0xff] %vm217_vm0, %v8269_v20  ;;  %v8246_v56 = vadd.f32 %v9212_v29, %v16514_v43 }
0x17fb   :  { %v9214_v12 = vpop.f32.mrf.mxu0 }
0x17fc   :  { %v8270_v25 = vadd.f32 %v17113_v9, %v8246_v56  ;;  %v9215_v23 = vadd.f32 %v9214_v12, %v9213_v51 }
0x17fd   :  { %v9216_v19 = vpop.f32.mrf.mxu0 }
0x17fe   :  { %8286 = vst.msk [vmem:[#allocation2 + $0x38] sm:$0xff] %vm217_vm0, %v8270_v25  ;;  %v8247_v16 = vadd.f32 %v9215_v23, %v16545_v28 }
0x17ff   :  { %v9217_v55 = vpop.f32.mrf.mxu0 }
0x1800   :  { %v8271_v11 = vadd.f32 %v17113_v9, %v8247_v16  ;;  %v9218_v63 = vadd.f32 %v9217_v55, %v9216_v19 }
0x1801   :  { %v9219_v17 = vpop.f32.mrf.mxu0 }
0x1802   :  { %8287 = vst.msk [vmem:[#allocation2 + $0x40] sm:$0xff] %vm217_vm0, %v8271_v11  ;;  %v8248_v0 = vadd.f32 %v9218_v63, %v16542_v53 }
0x1803   :  { %v9220_v41 = vpop.f32.mrf.mxu0 }
0x1804   :  { %v8272_v43 = vadd.f32 %v17113_v9, %v8248_v0  ;;  %v9221_v42 = vadd.f32 %v9220_v41, %v9219_v17 }
0x1805   :  { %v9222_v24 = vpop.f32.mrf.mxu0 }
0x1806   :  { %8288 = vst.msk [vmem:[#allocation2 + $0x48] sm:$0xff] %vm217_vm0, %v8272_v43  ;;  %v8249_v35 = vadd.f32 %v9221_v42, %v16580_v6 }
0x1807   :  { %v9223_v48 = vpop.f32.mrf.mxu0 }
0x1808   :  { %v8273_v28 = vadd.f32 %v17113_v9, %v8249_v35  ;;  %v9224_v60 = vadd.f32 %v9223_v48, %v9222_v24 }
0x1809   :  { %v9225_v59 = vpop.f32.mrf.mxu0 }
0x180a   :  { %8289 = vst.msk [vmem:[#allocation2 + $0x50] sm:$0xff] %vm217_vm0, %v8273_v28  ;;  %v8250_v57 = vadd.f32 %v9224_v60, %v16577_v50 }
0x180b   :  { %v9226_v46 = vpop.f32.mrf.mxu0 }
0x180c   :  { %v8274_v53 = vadd.f32 %v17113_v9, %v8250_v57  ;;  %v9227_v45 = vadd.f32 %v9226_v46, %v9225_v59 }
0x180d   :  { %v9228_v49 = vpop.f32.mrf.mxu0 }
0x180e   :  { %8290 = vst.msk [vmem:[#allocation2 + $0x58] sm:$0xff] %vm217_vm0, %v8274_v53  ;;  %v8251_v22 = vadd.f32 %v9227_v45, %v16613_v7 }
0x180f   :  { %v9229_v54 = vpop.f32.mrf.mxu0 }
0x1810   :  { %v8275_v6 = vadd.f32 %v17113_v9, %v8251_v22  ;;  %v9230_v52 = vadd.f32 %v9229_v54, %v9228_v49  ;;  %v9231_v14 = vpop.f32.mrf.mxu1 }
0x1812   :  { %8291 = vst.msk [vmem:[#allocation2 + $0x60] sm:$0xff] %vm217_vm0, %v8275_v6  ;;  %v8252_v27 = vadd.f32 %v9230_v52, %v16607_v4  ;;  %v9232_v37 = vpop.f32.mrf.mxu1 }
0x1813   :  { %v9233_v61 = vadd.f32 %v9232_v37, %v9231_v14 }
0x1814   :  { %v8276_v50 = vadd.f32 %v17113_v9, %v8252_v27  ;;  %v9234_v36 = vpop.f32.mrf.mxu1 }
0x1815   :  { %v8253_v26 = vadd.f32 %v9233_v61, %v16626_v2 }
0x1816   :  { %8292 = vst.msk [vmem:[#allocation2 + $0x68] sm:$0xff] %vm217_vm0, %v8276_v50  ;;  %v9235_v58 = vpop.f32.mrf.mxu1 }
0x1817   :  { %v8277_v7 = vadd.f32 %v17113_v9, %v8253_v26  ;;  %v9236_v40 = vadd.f32 %v9235_v58, %v9234_v36 }
0x1819   :  { %8293 = vst.msk [vmem:[#allocation2 + $0x70] sm:$0xff] %vm217_vm0, %v8277_v7  ;;  %v8254_v44 = vadd.f32 %v9236_v40, %v16623_v47 }
0x181b   :  { %v8278_v4 = vadd.f32 %v17113_v9, %v8254_v44 }
0x181d   :  { %8294 = vst.msk [vmem:[#allocation2 + $0x78] sm:$0xff] %vm217_vm0, %v8278_v4 }
0x181e   :  { %10399 = shalt.err (!%p10396_p4)
}
0x181f   :  { %s10416_s30 = smov 128   ;;  %s10417_s9 = smov 8  }
0x1820   :  { %8306 = dma.vmem_to_hbm [thread:$0]  %s8301_s11, 2048, %s17183_s17, [#allocation3], %s10416_s30, %s10416_s30, %s10417_s9  }
0x1821   :  { %10408 = dma.done.wait [#allocation3], 2048  }
0x1822   :  { %10409 = vsyncadd [#allocation3], 4294965248 }
0x1823   :  { %8310 = vsyncpa [#allocation3], 1 }

</bundles_post_ra>
